<compile_context>
chip_gen: v5e
topology: v5e:2x2
jax: 0.10.0
libtpu: 0.0.40
codegen_flags: <defaults>
</compile_context>

<pallas_src>
import jax
import jax.numpy as jnp
from jax.experimental import pallas as pl
from jax.experimental.pallas import tpu as pltpu

SLOPE = 0.1     # nn.LeakyReLU(0.1)
LANE = 128      # TPU vreg lane width


def _round_up(v, m):
    return ((v + m - 1) // m) * m


def _lrelu(v):
    return jnp.where(v > 0, v, SLOPE * v)


# ---------------- fused Pallas kernel ----------------

def _simple_block_kernel(x_ref, w1_ref, w2_ref, o_ref,
                         p1_ref, p2_ref, acc1_ref, acc2_ref):
    # x_ref   : (1, H, W, C)        input dtype   one batch sample, unpadded channels
    # w1_ref  : (9, Cp, Hp)         bf16          per-tap Conv1 weights (zero-padded)
    # w2_ref  : (9, Hp, Cp)         bf16          per-tap Conv2 weights (zero-padded)
    # o_ref   : (1, H, W, C)        input dtype
    # p1_ref  : VMEM (H+2, W+2, Cp) bf16          zero-"same"-padded LeakyReLU(x)
    # p2_ref  : VMEM (H+2, W+2, Hp) bf16          zero-"same"-padded LeakyReLU(h1)
    # acc1_ref: VMEM (H*W, Hp)      f32           Conv1 accumulator
    # acc2_ref: VMEM (H*W, Cp)      f32           Conv2 accumulator
    H, W, C = x_ref.shape[1], x_ref.shape[2], x_ref.shape[3]
    Cp = p1_ref.shape[2]
    Hp = p2_ref.shape[2]

    x = x_ref[0].astype(jnp.float32)                       # (H, W, C) f32

    # ---- LeakyReLU(0.1) in f32 (VPU), lane-pad channels in-register, write interior ----
    a = _lrelu(x).astype(p1_ref.dtype)                     # (H, W, C) bf16
    if Cp > C:
        a = jnp.concatenate(
            [a, jnp.zeros((H, W, Cp - C), p1_ref.dtype)], axis=-1)   # (H, W, Cp)
    p1_ref[1:H + 1, 1:W + 1, :] = a
    # zero ONLY the 1-pixel halo strips (not the whole buffer) every step
    zrow1 = jnp.zeros((1, W + 2, Cp), p1_ref.dtype)
    zcol1 = jnp.zeros((H, 1, Cp), p1_ref.dtype)
    p1_ref[0:1, :, :] = zrow1
    p1_ref[H + 1:H + 2, :, :] = zrow1
    p1_ref[1:H + 1, 0:1, :] = zcol1
    p1_ref[1:H + 1, W + 1:W + 2, :] = zcol1

    # ---- Conv1: 9 per-tap matmuls (K = Cp), accumulate in f32 VMEM ----
    for dy in range(3):
        for dx in range(3):
            t = dy * 3 + dx
            tap = p1_ref[dy:dy + H, dx:dx + W, :].reshape(H * W, Cp)
            part = jnp.dot(tap, w1_ref[t], preferred_element_type=jnp.float32)
            if t == 0:
                acc1_ref[...] = part
            else:
                acc1_ref[...] += part

    # ---- LeakyReLU(h1) + padded VMEM buffer for Conv2 ----
    # (columns Hid..Hp of acc1 are exactly zero because the padded w1 output columns are
    #  zero, so no extra channel-pad zeroing is needed here.)
    b = _lrelu(acc1_ref[...]).astype(p2_ref.dtype).reshape(H, W, Hp)
    p2_ref[1:H + 1, 1:W + 1, :] = b
    zrow2 = jnp.zeros((1, W + 2, Hp), p2_ref.dtype)
    zcol2 = jnp.zeros((H, 1, Hp), p2_ref.dtype)
    p2_ref[0:1, :, :] = zrow2
    p2_ref[H + 1:H + 2, :, :] = zrow2
    p2_ref[1:H + 1, 0:1, :] = zcol2
    p2_ref[1:H + 1, W + 1:W + 2, :] = zcol2

    # ---- Conv2: 9 per-tap matmuls (K = Hp) ----
    for dy in range(3):
        for dx in range(3):
            t = dy * 3 + dx
            tap = p2_ref[dy:dy + H, dx:dx + W, :].reshape(H * W, Hp)
            part = jnp.dot(tap, w2_ref[t], preferred_element_type=jnp.float32)
            if t == 0:
                acc2_ref[...] = part
            else:
                acc2_ref[...] += part

    # ---- residual add fused in the epilogue; store only the real C channels ----
    h2 = acc2_ref[...].reshape(H, W, Cp)[:, :, :C]
    o_ref[0] = (x + h2).astype(o_ref.dtype)


# ---------------- wrappers ----------------

def _prep_weight(w_oihw, cin_p, cout_p):
    """PyTorch OIHW conv weight -> bf16 per-tap matrices (9, Cin_pad, Cout_pad)."""
    cout, cin, kh, kw = w_oihw.shape
    w = jnp.transpose(w_oihw, (2, 3, 1, 0))                       # (3, 3, Cin, Cout)
    w = jnp.pad(w, ((0, 0), (0, 0), (0, cin_p - cin), (0, cout_p - cout)))
    return w.reshape(kh * kw, cin_p, cout_p).astype(jnp.bfloat16)


def simple_block_forward_nhwc(x_nhwc, w1_oihw, w2_oihw):
    """SimpleBlock_D.forward on NHWC input (preferred entry point for NHWC models)."""
    N, H, W, C = x_nhwc.shape
    Hid = w1_oihw.shape[0]
    Cp = _round_up(C, LANE)
    Hp = _round_up(Hid, LANE)

    w1 = _prep_weight(w1_oihw, Cp, Hp)          # (9, Cp, Hp) bf16
    w2 = _prep_weight(w2_oihw, Hp, Cp)          # (9, Hp, Cp) bf16

    itemsize = jnp.dtype(x_nhwc.dtype).itemsize
    # Per-step VMEM footprint: double-buffered x/out blocks + weights, plus scratch.
    need = (2 * H * W * C * itemsize * 2
            + 2 * (w1.size + w2.size) * 2
            + (H + 2) * (W + 2) * (Cp + Hp) * 2
            + H * W * (Hp + Cp) * 4)
    vmem_limit = int(min(max(2 * need, 32 * 1024 * 1024), 100 * 1024 * 1024))

    flops = 4 * N * H * W * 9 * Cp * Hp                 # two convs, 2 flops per MAC
    bytes_accessed = 2 * N * H * W * C * itemsize + (w1.size + w2.size) * 2

    return pl.pallas_call(
        _simple_block_kernel,
        out_shape=jax.ShapeDtypeStruct((N, H, W, C), x_nhwc.dtype),
        grid_spec=pltpu.PrefetchScalarGridSpec(
            num_scalar_prefetch=0,
            grid=(N,),                                           # one sample per step
            in_specs=[
                pl.BlockSpec((1, H, W, C), lambda n: (n, 0, 0, 0)),
                pl.BlockSpec((9, Cp, Hp), lambda n: (0, 0, 0)),
                pl.BlockSpec((9, Hp, Cp), lambda n: (0, 0, 0)),
            ],
            out_specs=pl.BlockSpec((1, H, W, C), lambda n: (n, 0, 0, 0)),
            scratch_shapes=[
                pltpu.VMEM((H + 2, W + 2, Cp), jnp.bfloat16),    # padded lrelu(x)
                pltpu.VMEM((H + 2, W + 2, Hp), jnp.bfloat16),    # padded lrelu(h1)
                pltpu.VMEM((H * W, Hp), jnp.float32),            # Conv1 accumulator
                pltpu.VMEM((H * W, Cp), jnp.float32),            # Conv2 accumulator
            ],
        ),
        compiler_params=pltpu.CompilerParams(
            dimension_semantics=("parallel",),                   # v7x: 2 TCs split batch
            vmem_limit_bytes=vmem_limit,
        ),
        cost_estimate=pl.CostEstimate(
            flops=flops, transcendentals=0, bytes_accessed=bytes_accessed),
    )(x_nhwc, w1, w2)


def simple_block_forward(x_nchw, w1_oihw, w2_oihw):
    """PyTorch-interface wrapper. x: (N, C, H, W); w1: (Hid, C, 3, 3); w2: (C, Hid, 3, 3).

    NOTE: the NCHW<->NHWC transposes below are full HBM round trips done by XLA outside
    the kernel; a model applying this block repeatedly should stay NHWC end-to-end and
    call simple_block_forward_nhwc directly.
    """
    x = jnp.transpose(x_nchw, (0, 2, 3, 1))                  # NCHW -> NHWC
    out = simple_block_forward_nhwc(x, w1_oihw, w2_oihw)
    return jnp.transpose(out, (0, 3, 1, 2))                  # NHWC -> NCHW


# ---------------- pure-JAX reference (f32) ----------------

def _reference(x_nchw, w1_oihw, w2_oihw):
    def conv(v, w):
        return jax.lax.conv_general_dilated(
            v, w, window_strides=(1, 1), padding="SAME",
            dimension_numbers=("NCHW", "OIHW", "NCHW"))

    h1 = conv(_lrelu(x_nchw), w1_oihw)
    h2 = conv(_lrelu(h1), w2_oihw)
    return x_nchw + h2


if __name__ == "__main__":
    # Small instantiation consistent with the module: input_channels=4,
    # hidden_channels=32, 16x16 spatial, batch=2.
    N, C, Hid, H, W = 2, 4, 32, 16, 16

    key = jax.random.PRNGKey(0)
    kx, k1, k2 = jax.random.split(key, 3)
    x = jax.random.normal(kx, (N, C, H, W), jnp.float32)
    w1 = 0.05 * jax.random.normal(k1, (Hid, C, 3, 3), jnp.float32)   # Conv1 (OIHW)
    w2 = 0.05 * jax.random.normal(k2, (C, Hid, 3, 3), jnp.float32)   # Conv2 (OIHW)

    fwd = jax.jit(simple_block_forward)
    out = jax.block_until_ready(fwd(x, w1, w2))

    assert out.shape == (N, C, H, W), out.shape
    assert bool(jnp.all(jnp.isfinite(out)))

    ref = _reference(x, w1, w2)
    max_err = float(jnp.max(jnp.abs(out - ref)))
    assert max_err < 5e-2, f"max abs err vs f32 reference: {max_err}"

    print("KERNEL_OK")
</pallas_src>

<mosaic_0001>
module attributes {stable_mosaic.version = 11 : i64} {
  func.func @_simple_block_kernel(%arg0: i32, %arg1: memref<1x16x16x4xf32, #tpu.memory_space<vmem>>, %arg2: memref<9x128x128xbf16, #tpu.memory_space<vmem>>, %arg3: memref<9x128x128xbf16, #tpu.memory_space<vmem>>, %arg4: memref<1x16x16x4xf32, #tpu.memory_space<vmem>>, %arg5: memref<18x18x128xbf16, #tpu.memory_space<vmem>>, %arg6: memref<18x18x128xbf16, #tpu.memory_space<vmem>>, %arg7: memref<256x128xf32, #tpu.memory_space<vmem>>, %arg8: memref<256x128xf32, #tpu.memory_space<vmem>>) attributes {dimension_semantics = [#tpu.dimension_semantics<parallel>], iteration_bounds = array<i64: 2>, scalar_prefetch = 0 : i64, scratch_operands = 4 : i64, tpu.core_type = #tpu.core_type<tc>, window_params = [{transform_indices = @transform_0, window_bounds = array<i64: 1, 16, 16, 4>}, {pipeline_mode = #tpu.pipeline_mode<synchronous>, transform_indices = @transform_1, window_bounds = array<i64: 9, 128, 128>}, {pipeline_mode = #tpu.pipeline_mode<synchronous>, transform_indices = @transform_2, window_bounds = array<i64: 9, 128, 128>}, {transform_indices = @transform_3, window_bounds = array<i64: 1, 16, 16, 4>}]} {
    %c0 = arith.constant 0 : index
    %c0_0 = arith.constant 0 : index
    %c0_1 = arith.constant 0 : index
    %c0_2 = arith.constant 0 : index
    %0 = vector.load %arg1[%c0, %c0_0, %c0_1, %c0_2] : memref<1x16x16x4xf32, #tpu.memory_space<vmem>>, vector<1x16x16x4xf32>
    %1 = vector.shape_cast %0 : vector<1x16x16x4xf32> to vector<16x16x4xf32>
    %cst = arith.constant 0.000000e+00 : f32
    %2 = vector.broadcast %cst : f32 to vector<16x16x4xf32>
    %3 = arith.cmpf ogt, %1, %2 : vector<16x16x4xf32>
    %cst_3 = arith.constant 1.000000e-01 : f32
    %4 = vector.broadcast %cst_3 : f32 to vector<16x16x4xf32>
    %5 = arith.mulf %4, %1 : vector<16x16x4xf32>
    %6 = arith.select %3, %1, %5 : vector<16x16x4xi1>, vector<16x16x4xf32>
    %7 = arith.truncf %6 : vector<16x16x4xf32> to vector<16x16x4xbf16>
    %cst_4 = arith.constant 0.000000e+00 : bf16
    %8 = vector.broadcast %cst_4 : bf16 to vector<16x16x124xbf16>
    %9 = tpu.concatenate %7, %8 in 2 : vector<16x16x4xbf16>, vector<16x16x124xbf16> -> vector<16x16x128xbf16>
    %c1 = arith.constant 1 : index
    %c1_5 = arith.constant 1 : index
    %c0_6 = arith.constant 0 : index
    %10 = vector.load %arg5[%c1, %c1_5, %c0_6] : memref<18x18x128xbf16, #tpu.memory_space<vmem>>, vector<16x16x128xbf16>
    tpu.vector_store %arg5[%c1, %c1_5, %c0_6], %9 {strides = array<i32>} : memref<18x18x128xbf16, #tpu.memory_space<vmem>>, vector<16x16x128xbf16>,
    %cst_7 = arith.constant 0.000000e+00 : bf16
    %11 = vector.broadcast %cst_7 : bf16 to vector<1x18x128xbf16>
    %cst_8 = arith.constant 0.000000e+00 : bf16
    %12 = vector.broadcast %cst_8 : bf16 to vector<16x1x128xbf16>
    %c0_9 = arith.constant 0 : index
    %c0_10 = arith.constant 0 : index
    %c0_11 = arith.constant 0 : index
    %13 = vector.load %arg5[%c0_9, %c0_10, %c0_11] : memref<18x18x128xbf16, #tpu.memory_space<vmem>>, vector<1x18x128xbf16>
    tpu.vector_store %arg5[%c0_9, %c0_10, %c0_11], %11 {strides = array<i32>} : memref<18x18x128xbf16, #tpu.memory_space<vmem>>, vector<1x18x128xbf16>,
    %c17 = arith.constant 17 : index
    %c0_12 = arith.constant 0 : index
    %c0_13 = arith.constant 0 : index
    %14 = vector.load %arg5[%c17, %c0_12, %c0_13] : memref<18x18x128xbf16, #tpu.memory_space<vmem>>, vector<1x18x128xbf16>
    tpu.vector_store %arg5[%c17, %c0_12, %c0_13], %11 {strides = array<i32>} : memref<18x18x128xbf16, #tpu.memory_space<vmem>>, vector<1x18x128xbf16>,
    %c1_14 = arith.constant 1 : index
    %c0_15 = arith.constant 0 : index
    %c0_16 = arith.constant 0 : index
    %15 = vector.load %arg5[%c1_14, %c0_15, %c0_16] : memref<18x18x128xbf16, #tpu.memory_space<vmem>>, vector<16x1x128xbf16>
    tpu.vector_store %arg5[%c1_14, %c0_15, %c0_16], %12 {strides = array<i32>} : memref<18x18x128xbf16, #tpu.memory_space<vmem>>, vector<16x1x128xbf16>,
    %c1_17 = arith.constant 1 : index
    %c17_18 = arith.constant 17 : index
    %c0_19 = arith.constant 0 : index
    %16 = vector.load %arg5[%c1_17, %c17_18, %c0_19] : memref<18x18x128xbf16, #tpu.memory_space<vmem>>, vector<16x1x128xbf16>
    tpu.vector_store %arg5[%c1_17, %c17_18, %c0_19], %12 {strides = array<i32>} : memref<18x18x128xbf16, #tpu.memory_space<vmem>>, vector<16x1x128xbf16>,
    %c0_20 = arith.constant 0 : index
    %c0_21 = arith.constant 0 : index
    %c0_22 = arith.constant 0 : index
    %17 = vector.load %arg5[%c0_20, %c0_21, %c0_22] : memref<18x18x128xbf16, #tpu.memory_space<vmem>>, vector<16x16x128xbf16>
    %18 = vector.shape_cast %17 : vector<16x16x128xbf16> to vector<256x128xbf16>
    %c0_23 = arith.constant 0 : index
    %c0_24 = arith.constant 0 : index
    %c0_25 = arith.constant 0 : index
    %19 = vector.load %arg2[%c0_23, %c0_24, %c0_25] : memref<9x128x128xbf16, #tpu.memory_space<vmem>>, vector<1x128x128xbf16>
    %20 = vector.shape_cast %19 : vector<1x128x128xbf16> to vector<128x128xbf16>
    %cst_26 = arith.constant dense<0.000000e+00> : vector<256x128xf32>
    %21 = tpu.matmul %18, %20, %cst_26 {dimension_numbers = #tpu.dot_dimension_numbers<[1], [0], [0], [1], [0, 0, 1, 1], [], []>} : vector<256x128xbf16>, vector<128x128xbf16>, vector<256x128xf32> -> vector<256x128xf32>
    %c0_27 = arith.constant 0 : index
    %c0_28 = arith.constant 0 : index
    %22 = vector.load %arg7[%c0_27, %c0_28] : memref<256x128xf32, #tpu.memory_space<vmem>>, vector<256x128xf32>
    tpu.vector_store %arg7[%c0_27, %c0_28], %21 {strides = array<i32>} : memref<256x128xf32, #tpu.memory_space<vmem>>, vector<256x128xf32>,
    %c0_29 = arith.constant 0 : index
    %c1_30 = arith.constant 1 : index
    %c0_31 = arith.constant 0 : index
    %23 = vector.load %arg5[%c0_29, %c1_30, %c0_31] : memref<18x18x128xbf16, #tpu.memory_space<vmem>>, vector<16x16x128xbf16>
    %24 = vector.shape_cast %23 : vector<16x16x128xbf16> to vector<256x128xbf16>
    %c1_32 = arith.constant 1 : index
    %c0_33 = arith.constant 0 : index
    %c0_34 = arith.constant 0 : index
    %25 = vector.load %arg2[%c1_32, %c0_33, %c0_34] : memref<9x128x128xbf16, #tpu.memory_space<vmem>>, vector<1x128x128xbf16>
    %26 = vector.shape_cast %25 : vector<1x128x128xbf16> to vector<128x128xbf16>
    %cst_35 = arith.constant dense<0.000000e+00> : vector<256x128xf32>
    %27 = tpu.matmul %24, %26, %cst_35 {dimension_numbers = #tpu.dot_dimension_numbers<[1], [0], [0], [1], [0, 0, 1, 1], [], []>} : vector<256x128xbf16>, vector<128x128xbf16>, vector<256x128xf32> -> vector<256x128xf32>
    %c0_36 = arith.constant 0 : index
    %c0_37 = arith.constant 0 : index
    %28 = vector.load %arg7[%c0_36, %c0_37] : memref<256x128xf32, #tpu.memory_space<vmem>>, vector<256x128xf32>
    %29 = arith.addf %28, %27 : vector<256x128xf32>
    %c0_38 = arith.constant 0 : index
    %c0_39 = arith.constant 0 : index
    %30 = vector.load %arg7[%c0_38, %c0_39] : memref<256x128xf32, #tpu.memory_space<vmem>>, vector<256x128xf32>
    tpu.vector_store %arg7[%c0_38, %c0_39], %29 {strides = array<i32>} : memref<256x128xf32, #tpu.memory_space<vmem>>, vector<256x128xf32>,
    %c0_40 = arith.constant 0 : index
    %c2 = arith.constant 2 : index
    %c0_41 = arith.constant 0 : index
    %31 = vector.load %arg5[%c0_40, %c2, %c0_41] : memref<18x18x128xbf16, #tpu.memory_space<vmem>>, vector<16x16x128xbf16>
    %32 = vector.shape_cast %31 : vector<16x16x128xbf16> to vector<256x128xbf16>
    %c2_42 = arith.constant 2 : index
    %c0_43 = arith.constant 0 : index
    %c0_44 = arith.constant 0 : index
    %33 = vector.load %arg2[%c2_42, %c0_43, %c0_44] : memref<9x128x128xbf16, #tpu.memory_space<vmem>>, vector<1x128x128xbf16>
    %34 = vector.shape_cast %33 : vector<1x128x128xbf16> to vector<128x128xbf16>
    %cst_45 = arith.constant dense<0.000000e+00> : vector<256x128xf32>
    %35 = tpu.matmul %32, %34, %cst_45 {dimension_numbers = #tpu.dot_dimension_numbers<[1], [0], [0], [1], [0, 0, 1, 1], [], []>} : vector<256x128xbf16>, vector<128x128xbf16>, vector<256x128xf32> -> vector<256x128xf32>
    %c0_46 = arith.constant 0 : index
    %c0_47 = arith.constant 0 : index
    %36 = vector.load %arg7[%c0_46, %c0_47] : memref<256x128xf32, #tpu.memory_space<vmem>>, vector<256x128xf32>
    %37 = arith.addf %36, %35 : vector<256x128xf32>
    %c0_48 = arith.constant 0 : index
    %c0_49 = arith.constant 0 : index
    %38 = vector.load %arg7[%c0_48, %c0_49] : memref<256x128xf32, #tpu.memory_space<vmem>>, vector<256x128xf32>
    tpu.vector_store %arg7[%c0_48, %c0_49], %37 {strides = array<i32>} : memref<256x128xf32, #tpu.memory_space<vmem>>, vector<256x128xf32>,
    %c1_50 = arith.constant 1 : index
    %c0_51 = arith.constant 0 : index
    %c0_52 = arith.constant 0 : index
    %39 = vector.load %arg5[%c1_50, %c0_51, %c0_52] : memref<18x18x128xbf16, #tpu.memory_space<vmem>>, vector<16x16x128xbf16>
    %40 = vector.shape_cast %39 : vector<16x16x128xbf16> to vector<256x128xbf16>
    %c3 = arith.constant 3 : index
    %c0_53 = arith.constant 0 : index
    %c0_54 = arith.constant 0 : index
    %41 = vector.load %arg2[%c3, %c0_53, %c0_54] : memref<9x128x128xbf16, #tpu.memory_space<vmem>>, vector<1x128x128xbf16>
    %42 = vector.shape_cast %41 : vector<1x128x128xbf16> to vector<128x128xbf16>
    %cst_55 = arith.constant dense<0.000000e+00> : vector<256x128xf32>
    %43 = tpu.matmul %40, %42, %cst_55 {dimension_numbers = #tpu.dot_dimension_numbers<[1], [0], [0], [1], [0, 0, 1, 1], [], []>} : vector<256x128xbf16>, vector<128x128xbf16>, vector<256x128xf32> -> vector<256x128xf32>
    %c0_56 = arith.constant 0 : index
    %c0_57 = arith.constant 0 : index
    %44 = vector.load %arg7[%c0_56, %c0_57] : memref<256x128xf32, #tpu.memory_space<vmem>>, vector<256x128xf32>
    %45 = arith.addf %44, %43 : vector<256x128xf32>
    %c0_58 = arith.constant 0 : index
    %c0_59 = arith.constant 0 : index
    %46 = vector.load %arg7[%c0_58, %c0_59] : memref<256x128xf32, #tpu.memory_space<vmem>>, vector<256x128xf32>
    tpu.vector_store %arg7[%c0_58, %c0_59], %45 {strides = array<i32>} : memref<256x128xf32, #tpu.memory_space<vmem>>, vector<256x128xf32>,
    %c1_60 = arith.constant 1 : index
    %c1_61 = arith.constant 1 : index
    %c0_62 = arith.constant 0 : index
    %47 = vector.load %arg5[%c1_60, %c1_61, %c0_62] : memref<18x18x128xbf16, #tpu.memory_space<vmem>>, vector<16x16x128xbf16>
    %48 = vector.shape_cast %47 : vector<16x16x128xbf16> to vector<256x128xbf16>
    %c4 = arith.constant 4 : index
    %c0_63 = arith.constant 0 : index
    %c0_64 = arith.constant 0 : index
    %49 = vector.load %arg2[%c4, %c0_63, %c0_64] : memref<9x128x128xbf16, #tpu.memory_space<vmem>>, vector<1x128x128xbf16>
    %50 = vector.shape_cast %49 : vector<1x128x128xbf16> to vector<128x128xbf16>
    %cst_65 = arith.constant dense<0.000000e+00> : vector<256x128xf32>
    %51 = tpu.matmul %48, %50, %cst_65 {dimension_numbers = #tpu.dot_dimension_numbers<[1], [0], [0], [1], [0, 0, 1, 1], [], []>} : vector<256x128xbf16>, vector<128x128xbf16>, vector<256x128xf32> -> vector<256x128xf32>
    %c0_66 = arith.constant 0 : index
    %c0_67 = arith.constant 0 : index
    %52 = vector.load %arg7[%c0_66, %c0_67] : memref<256x128xf32, #tpu.memory_space<vmem>>, vector<256x128xf32>
    %53 = arith.addf %52, %51 : vector<256x128xf32>
    %c0_68 = arith.constant 0 : index
    %c0_69 = arith.constant 0 : index
    %54 = vector.load %arg7[%c0_68, %c0_69] : memref<256x128xf32, #tpu.memory_space<vmem>>, vector<256x128xf32>
    tpu.vector_store %arg7[%c0_68, %c0_69], %53 {strides = array<i32>} : memref<256x128xf32, #tpu.memory_space<vmem>>, vector<256x128xf32>,
    %c1_70 = arith.constant 1 : index
    %c2_71 = arith.constant 2 : index
    %c0_72 = arith.constant 0 : index
    %55 = vector.load %arg5[%c1_70, %c2_71, %c0_72] : memref<18x18x128xbf16, #tpu.memory_space<vmem>>, vector<16x16x128xbf16>
    %56 = vector.shape_cast %55 : vector<16x16x128xbf16> to vector<256x128xbf16>
    %c5 = arith.constant 5 : index
    %c0_73 = arith.constant 0 : index
    %c0_74 = arith.constant 0 : index
    %57 = vector.load %arg2[%c5, %c0_73, %c0_74] : memref<9x128x128xbf16, #tpu.memory_space<vmem>>, vector<1x128x128xbf16>
    %58 = vector.shape_cast %57 : vector<1x128x128xbf16> to vector<128x128xbf16>
    %cst_75 = arith.constant dense<0.000000e+00> : vector<256x128xf32>
    %59 = tpu.matmul %56, %58, %cst_75 {dimension_numbers = #tpu.dot_dimension_numbers<[1], [0], [0], [1], [0, 0, 1, 1], [], []>} : vector<256x128xbf16>, vector<128x128xbf16>, vector<256x128xf32> -> vector<256x128xf32>
    %c0_76 = arith.constant 0 : index
    %c0_77 = arith.constant 0 : index
    %60 = vector.load %arg7[%c0_76, %c0_77] : memref<256x128xf32, #tpu.memory_space<vmem>>, vector<256x128xf32>
    %61 = arith.addf %60, %59 : vector<256x128xf32>
    %c0_78 = arith.constant 0 : index
    %c0_79 = arith.constant 0 : index
    %62 = vector.load %arg7[%c0_78, %c0_79] : memref<256x128xf32, #tpu.memory_space<vmem>>, vector<256x128xf32>
    tpu.vector_store %arg7[%c0_78, %c0_79], %61 {strides = array<i32>} : memref<256x128xf32, #tpu.memory_space<vmem>>, vector<256x128xf32>,
    %c2_80 = arith.constant 2 : index
    %c0_81 = arith.constant 0 : index
    %c0_82 = arith.constant 0 : index
    %63 = vector.load %arg5[%c2_80, %c0_81, %c0_82] : memref<18x18x128xbf16, #tpu.memory_space<vmem>>, vector<16x16x128xbf16>
    %64 = vector.shape_cast %63 : vector<16x16x128xbf16> to vector<256x128xbf16>
    %c6 = arith.constant 6 : index
    %c0_83 = arith.constant 0 : index
    %c0_84 = arith.constant 0 : index
    %65 = vector.load %arg2[%c6, %c0_83, %c0_84] : memref<9x128x128xbf16, #tpu.memory_space<vmem>>, vector<1x128x128xbf16>
    %66 = vector.shape_cast %65 : vector<1x128x128xbf16> to vector<128x128xbf16>
    %cst_85 = arith.constant dense<0.000000e+00> : vector<256x128xf32>
    %67 = tpu.matmul %64, %66, %cst_85 {dimension_numbers = #tpu.dot_dimension_numbers<[1], [0], [0], [1], [0, 0, 1, 1], [], []>} : vector<256x128xbf16>, vector<128x128xbf16>, vector<256x128xf32> -> vector<256x128xf32>
    %c0_86 = arith.constant 0 : index
    %c0_87 = arith.constant 0 : index
    %68 = vector.load %arg7[%c0_86, %c0_87] : memref<256x128xf32, #tpu.memory_space<vmem>>, vector<256x128xf32>
    %69 = arith.addf %68, %67 : vector<256x128xf32>
    %c0_88 = arith.constant 0 : index
    %c0_89 = arith.constant 0 : index
    %70 = vector.load %arg7[%c0_88, %c0_89] : memref<256x128xf32, #tpu.memory_space<vmem>>, vector<256x128xf32>
    tpu.vector_store %arg7[%c0_88, %c0_89], %69 {strides = array<i32>} : memref<256x128xf32, #tpu.memory_space<vmem>>, vector<256x128xf32>,
    %c2_90 = arith.constant 2 : index
    %c1_91 = arith.constant 1 : index
    %c0_92 = arith.constant 0 : index
    %71 = vector.load %arg5[%c2_90, %c1_91, %c0_92] : memref<18x18x128xbf16, #tpu.memory_space<vmem>>, vector<16x16x128xbf16>
    %72 = vector.shape_cast %71 : vector<16x16x128xbf16> to vector<256x128xbf16>
    %c7 = arith.constant 7 : index
    %c0_93 = arith.constant 0 : index
    %c0_94 = arith.constant 0 : index
    %73 = vector.load %arg2[%c7, %c0_93, %c0_94] : memref<9x128x128xbf16, #tpu.memory_space<vmem>>, vector<1x128x128xbf16>
    %74 = vector.shape_cast %73 : vector<1x128x128xbf16> to vector<128x128xbf16>
    %cst_95 = arith.constant dense<0.000000e+00> : vector<256x128xf32>
    %75 = tpu.matmul %72, %74, %cst_95 {dimension_numbers = #tpu.dot_dimension_numbers<[1], [0], [0], [1], [0, 0, 1, 1], [], []>} : vector<256x128xbf16>, vector<128x128xbf16>, vector<256x128xf32> -> vector<256x128xf32>
    %c0_96 = arith.constant 0 : index
    %c0_97 = arith.constant 0 : index
    %76 = vector.load %arg7[%c0_96, %c0_97] : memref<256x128xf32, #tpu.memory_space<vmem>>, vector<256x128xf32>
    %77 = arith.addf %76, %75 : vector<256x128xf32>
    %c0_98 = arith.constant 0 : index
    %c0_99 = arith.constant 0 : index
    %78 = vector.load %arg7[%c0_98, %c0_99] : memref<256x128xf32, #tpu.memory_space<vmem>>, vector<256x128xf32>
    tpu.vector_store %arg7[%c0_98, %c0_99], %77 {strides = array<i32>} : memref<256x128xf32, #tpu.memory_space<vmem>>, vector<256x128xf32>,
    %c2_100 = arith.constant 2 : index
    %c2_101 = arith.constant 2 : index
    %c0_102 = arith.constant 0 : index
    %79 = vector.load %arg5[%c2_100, %c2_101, %c0_102] : memref<18x18x128xbf16, #tpu.memory_space<vmem>>, vector<16x16x128xbf16>
    %80 = vector.shape_cast %79 : vector<16x16x128xbf16> to vector<256x128xbf16>
    %c8 = arith.constant 8 : index
    %c0_103 = arith.constant 0 : index
    %c0_104 = arith.constant 0 : index
    %81 = vector.load %arg2[%c8, %c0_103, %c0_104] : memref<9x128x128xbf16, #tpu.memory_space<vmem>>, vector<1x128x128xbf16>
    %82 = vector.shape_cast %81 : vector<1x128x128xbf16> to vector<128x128xbf16>
    %cst_105 = arith.constant dense<0.000000e+00> : vector<256x128xf32>
    %83 = tpu.matmul %80, %82, %cst_105 {dimension_numbers = #tpu.dot_dimension_numbers<[1], [0], [0], [1], [0, 0, 1, 1], [], []>} : vector<256x128xbf16>, vector<128x128xbf16>, vector<256x128xf32> -> vector<256x128xf32>
    %c0_106 = arith.constant 0 : index
    %c0_107 = arith.constant 0 : index
    %84 = vector.load %arg7[%c0_106, %c0_107] : memref<256x128xf32, #tpu.memory_space<vmem>>, vector<256x128xf32>
    %85 = arith.addf %84, %83 : vector<256x128xf32>
    %c0_108 = arith.constant 0 : index
    %c0_109 = arith.constant 0 : index
    %86 = vector.load %arg7[%c0_108, %c0_109] : memref<256x128xf32, #tpu.memory_space<vmem>>, vector<256x128xf32>
    tpu.vector_store %arg7[%c0_108, %c0_109], %85 {strides = array<i32>} : memref<256x128xf32, #tpu.memory_space<vmem>>, vector<256x128xf32>,
    %c0_110 = arith.constant 0 : index
    %c0_111 = arith.constant 0 : index
    %87 = vector.load %arg7[%c0_110, %c0_111] : memref<256x128xf32, #tpu.memory_space<vmem>>, vector<256x128xf32>
    %cst_112 = arith.constant 0.000000e+00 : f32
    %88 = vector.broadcast %cst_112 : f32 to vector<256x128xf32>
    %89 = arith.cmpf ogt, %87, %88 : vector<256x128xf32>
    %cst_113 = arith.constant 1.000000e-01 : f32
    %90 = vector.broadcast %cst_113 : f32 to vector<256x128xf32>
    %91 = arith.mulf %90, %87 : vector<256x128xf32>
    %92 = arith.select %89, %87, %91 : vector<256x128xi1>, vector<256x128xf32>
    %93 = arith.truncf %92 : vector<256x128xf32> to vector<256x128xbf16>
    %94 = vector.shape_cast %93 : vector<256x128xbf16> to vector<16x16x128xbf16>
    %c1_114 = arith.constant 1 : index
    %c1_115 = arith.constant 1 : index
    %c0_116 = arith.constant 0 : index
    %95 = vector.load %arg6[%c1_114, %c1_115, %c0_116] : memref<18x18x128xbf16, #tpu.memory_space<vmem>>, vector<16x16x128xbf16>
    tpu.vector_store %arg6[%c1_114, %c1_115, %c0_116], %94 {strides = array<i32>} : memref<18x18x128xbf16, #tpu.memory_space<vmem>>, vector<16x16x128xbf16>,
    %cst_117 = arith.constant 0.000000e+00 : bf16
    %96 = vector.broadcast %cst_117 : bf16 to vector<1x18x128xbf16>
    %cst_118 = arith.constant 0.000000e+00 : bf16
    %97 = vector.broadcast %cst_118 : bf16 to vector<16x1x128xbf16>
    %c0_119 = arith.constant 0 : index
    %c0_120 = arith.constant 0 : index
    %c0_121 = arith.constant 0 : index
    %98 = vector.load %arg6[%c0_119, %c0_120, %c0_121] : memref<18x18x128xbf16, #tpu.memory_space<vmem>>, vector<1x18x128xbf16>
    tpu.vector_store %arg6[%c0_119, %c0_120, %c0_121], %96 {strides = array<i32>} : memref<18x18x128xbf16, #tpu.memory_space<vmem>>, vector<1x18x128xbf16>,
    %c17_122 = arith.constant 17 : index
    %c0_123 = arith.constant 0 : index
    %c0_124 = arith.constant 0 : index
    %99 = vector.load %arg6[%c17_122, %c0_123, %c0_124] : memref<18x18x128xbf16, #tpu.memory_space<vmem>>, vector<1x18x128xbf16>
    tpu.vector_store %arg6[%c17_122, %c0_123, %c0_124], %96 {strides = array<i32>} : memref<18x18x128xbf16, #tpu.memory_space<vmem>>, vector<1x18x128xbf16>,
    %c1_125 = arith.constant 1 : index
    %c0_126 = arith.constant 0 : index
    %c0_127 = arith.constant 0 : index
    %100 = vector.load %arg6[%c1_125, %c0_126, %c0_127] : memref<18x18x128xbf16, #tpu.memory_space<vmem>>, vector<16x1x128xbf16>
    tpu.vector_store %arg6[%c1_125, %c0_126, %c0_127], %97 {strides = array<i32>} : memref<18x18x128xbf16, #tpu.memory_space<vmem>>, vector<16x1x128xbf16>,
    %c1_128 = arith.constant 1 : index
    %c17_129 = arith.constant 17 : index
    %c0_130 = arith.constant 0 : index
    %101 = vector.load %arg6[%c1_128, %c17_129, %c0_130] : memref<18x18x128xbf16, #tpu.memory_space<vmem>>, vector<16x1x128xbf16>
    tpu.vector_store %arg6[%c1_128, %c17_129, %c0_130], %97 {strides = array<i32>} : memref<18x18x128xbf16, #tpu.memory_space<vmem>>, vector<16x1x128xbf16>,
    %c0_131 = arith.constant 0 : index
    %c0_132 = arith.constant 0 : index
    %c0_133 = arith.constant 0 : index
    %102 = vector.load %arg6[%c0_131, %c0_132, %c0_133] : memref<18x18x128xbf16, #tpu.memory_space<vmem>>, vector<16x16x128xbf16>
    %103 = vector.shape_cast %102 : vector<16x16x128xbf16> to vector<256x128xbf16>
    %c0_134 = arith.constant 0 : index
    %c0_135 = arith.constant 0 : index
    %c0_136 = arith.constant 0 : index
    %104 = vector.load %arg3[%c0_134, %c0_135, %c0_136] : memref<9x128x128xbf16, #tpu.memory_space<vmem>>, vector<1x128x128xbf16>
    %105 = vector.shape_cast %104 : vector<1x128x128xbf16> to vector<128x128xbf16>
    %cst_137 = arith.constant dense<0.000000e+00> : vector<256x128xf32>
    %106 = tpu.matmul %103, %105, %cst_137 {dimension_numbers = #tpu.dot_dimension_numbers<[1], [0], [0], [1], [0, 0, 1, 1], [], []>} : vector<256x128xbf16>, vector<128x128xbf16>, vector<256x128xf32> -> vector<256x128xf32>
    %c0_138 = arith.constant 0 : index
    %c0_139 = arith.constant 0 : index
    %107 = vector.load %arg8[%c0_138, %c0_139] : memref<256x128xf32, #tpu.memory_space<vmem>>, vector<256x128xf32>
    tpu.vector_store %arg8[%c0_138, %c0_139], %106 {strides = array<i32>} : memref<256x128xf32, #tpu.memory_space<vmem>>, vector<256x128xf32>,
    %c0_140 = arith.constant 0 : index
    %c1_141 = arith.constant 1 : index
    %c0_142 = arith.constant 0 : index
    %108 = vector.load %arg6[%c0_140, %c1_141, %c0_142] : memref<18x18x128xbf16, #tpu.memory_space<vmem>>, vector<16x16x128xbf16>
    %109 = vector.shape_cast %108 : vector<16x16x128xbf16> to vector<256x128xbf16>
    %c1_143 = arith.constant 1 : index
    %c0_144 = arith.constant 0 : index
    %c0_145 = arith.constant 0 : index
    %110 = vector.load %arg3[%c1_143, %c0_144, %c0_145] : memref<9x128x128xbf16, #tpu.memory_space<vmem>>, vector<1x128x128xbf16>
    %111 = vector.shape_cast %110 : vector<1x128x128xbf16> to vector<128x128xbf16>
    %cst_146 = arith.constant dense<0.000000e+00> : vector<256x128xf32>
    %112 = tpu.matmul %109, %111, %cst_146 {dimension_numbers = #tpu.dot_dimension_numbers<[1], [0], [0], [1], [0, 0, 1, 1], [], []>} : vector<256x128xbf16>, vector<128x128xbf16>, vector<256x128xf32> -> vector<256x128xf32>
    %c0_147 = arith.constant 0 : index
    %c0_148 = arith.constant 0 : index
    %113 = vector.load %arg8[%c0_147, %c0_148] : memref<256x128xf32, #tpu.memory_space<vmem>>, vector<256x128xf32>
    %114 = arith.addf %113, %112 : vector<256x128xf32>
    %c0_149 = arith.constant 0 : index
    %c0_150 = arith.constant 0 : index
    %115 = vector.load %arg8[%c0_149, %c0_150] : memref<256x128xf32, #tpu.memory_space<vmem>>, vector<256x128xf32>
    tpu.vector_store %arg8[%c0_149, %c0_150], %114 {strides = array<i32>} : memref<256x128xf32, #tpu.memory_space<vmem>>, vector<256x128xf32>,
    %c0_151 = arith.constant 0 : index
    %c2_152 = arith.constant 2 : index
    %c0_153 = arith.constant 0 : index
    %116 = vector.load %arg6[%c0_151, %c2_152, %c0_153] : memref<18x18x128xbf16, #tpu.memory_space<vmem>>, vector<16x16x128xbf16>
    %117 = vector.shape_cast %116 : vector<16x16x128xbf16> to vector<256x128xbf16>
    %c2_154 = arith.constant 2 : index
    %c0_155 = arith.constant 0 : index
    %c0_156 = arith.constant 0 : index
    %118 = vector.load %arg3[%c2_154, %c0_155, %c0_156] : memref<9x128x128xbf16, #tpu.memory_space<vmem>>, vector<1x128x128xbf16>
    %119 = vector.shape_cast %118 : vector<1x128x128xbf16> to vector<128x128xbf16>
    %cst_157 = arith.constant dense<0.000000e+00> : vector<256x128xf32>
    %120 = tpu.matmul %117, %119, %cst_157 {dimension_numbers = #tpu.dot_dimension_numbers<[1], [0], [0], [1], [0, 0, 1, 1], [], []>} : vector<256x128xbf16>, vector<128x128xbf16>, vector<256x128xf32> -> vector<256x128xf32>
    %c0_158 = arith.constant 0 : index
    %c0_159 = arith.constant 0 : index
    %121 = vector.load %arg8[%c0_158, %c0_159] : memref<256x128xf32, #tpu.memory_space<vmem>>, vector<256x128xf32>
    %122 = arith.addf %121, %120 : vector<256x128xf32>
    %c0_160 = arith.constant 0 : index
    %c0_161 = arith.constant 0 : index
    %123 = vector.load %arg8[%c0_160, %c0_161] : memref<256x128xf32, #tpu.memory_space<vmem>>, vector<256x128xf32>
    tpu.vector_store %arg8[%c0_160, %c0_161], %122 {strides = array<i32>} : memref<256x128xf32, #tpu.memory_space<vmem>>, vector<256x128xf32>,
    %c1_162 = arith.constant 1 : index
    %c0_163 = arith.constant 0 : index
    %c0_164 = arith.constant 0 : index
    %124 = vector.load %arg6[%c1_162, %c0_163, %c0_164] : memref<18x18x128xbf16, #tpu.memory_space<vmem>>, vector<16x16x128xbf16>
    %125 = vector.shape_cast %124 : vector<16x16x128xbf16> to vector<256x128xbf16>
    %c3_165 = arith.constant 3 : index
    %c0_166 = arith.constant 0 : index
    %c0_167 = arith.constant 0 : index
    %126 = vector.load %arg3[%c3_165, %c0_166, %c0_167] : memref<9x128x128xbf16, #tpu.memory_space<vmem>>, vector<1x128x128xbf16>
    %127 = vector.shape_cast %126 : vector<1x128x128xbf16> to vector<128x128xbf16>
    %cst_168 = arith.constant dense<0.000000e+00> : vector<256x128xf32>
    %128 = tpu.matmul %125, %127, %cst_168 {dimension_numbers = #tpu.dot_dimension_numbers<[1], [0], [0], [1], [0, 0, 1, 1], [], []>} : vector<256x128xbf16>, vector<128x128xbf16>, vector<256x128xf32> -> vector<256x128xf32>
    %c0_169 = arith.constant 0 : index
    %c0_170 = arith.constant 0 : index
    %129 = vector.load %arg8[%c0_169, %c0_170] : memref<256x128xf32, #tpu.memory_space<vmem>>, vector<256x128xf32>
    %130 = arith.addf %129, %128 : vector<256x128xf32>
    %c0_171 = arith.constant 0 : index
    %c0_172 = arith.constant 0 : index
    %131 = vector.load %arg8[%c0_171, %c0_172] : memref<256x128xf32, #tpu.memory_space<vmem>>, vector<256x128xf32>
    tpu.vector_store %arg8[%c0_171, %c0_172], %130 {strides = array<i32>} : memref<256x128xf32, #tpu.memory_space<vmem>>, vector<256x128xf32>,
    %c1_173 = arith.constant 1 : index
    %c1_174 = arith.constant 1 : index
    %c0_175 = arith.constant 0 : index
    %132 = vector.load %arg6[%c1_173, %c1_174, %c0_175] : memref<18x18x128xbf16, #tpu.memory_space<vmem>>, vector<16x16x128xbf16>
    %133 = vector.shape_cast %132 : vector<16x16x128xbf16> to vector<256x128xbf16>
    %c4_176 = arith.constant 4 : index
    %c0_177 = arith.constant 0 : index
    %c0_178 = arith.constant 0 : index
    %134 = vector.load %arg3[%c4_176, %c0_177, %c0_178] : memref<9x128x128xbf16, #tpu.memory_space<vmem>>, vector<1x128x128xbf16>
    %135 = vector.shape_cast %134 : vector<1x128x128xbf16> to vector<128x128xbf16>
    %cst_179 = arith.constant dense<0.000000e+00> : vector<256x128xf32>
    %136 = tpu.matmul %133, %135, %cst_179 {dimension_numbers = #tpu.dot_dimension_numbers<[1], [0], [0], [1], [0, 0, 1, 1], [], []>} : vector<256x128xbf16>, vector<128x128xbf16>, vector<256x128xf32> -> vector<256x128xf32>
    %c0_180 = arith.constant 0 : index
    %c0_181 = arith.constant 0 : index
    %137 = vector.load %arg8[%c0_180, %c0_181] : memref<256x128xf32, #tpu.memory_space<vmem>>, vector<256x128xf32>
    %138 = arith.addf %137, %136 : vector<256x128xf32>
    %c0_182 = arith.constant 0 : index
    %c0_183 = arith.constant 0 : index
    %139 = vector.load %arg8[%c0_182, %c0_183] : memref<256x128xf32, #tpu.memory_space<vmem>>, vector<256x128xf32>
    tpu.vector_store %arg8[%c0_182, %c0_183], %138 {strides = array<i32>} : memref<256x128xf32, #tpu.memory_space<vmem>>, vector<256x128xf32>,
    %c1_184 = arith.constant 1 : index
    %c2_185 = arith.constant 2 : index
    %c0_186 = arith.constant 0 : index
    %140 = vector.load %arg6[%c1_184, %c2_185, %c0_186] : memref<18x18x128xbf16, #tpu.memory_space<vmem>>, vector<16x16x128xbf16>
    %141 = vector.shape_cast %140 : vector<16x16x128xbf16> to vector<256x128xbf16>
    %c5_187 = arith.constant 5 : index
    %c0_188 = arith.constant 0 : index
    %c0_189 = arith.constant 0 : index
    %142 = vector.load %arg3[%c5_187, %c0_188, %c0_189] : memref<9x128x128xbf16, #tpu.memory_space<vmem>>, vector<1x128x128xbf16>
    %143 = vector.shape_cast %142 : vector<1x128x128xbf16> to vector<128x128xbf16>
    %cst_190 = arith.constant dense<0.000000e+00> : vector<256x128xf32>
    %144 = tpu.matmul %141, %143, %cst_190 {dimension_numbers = #tpu.dot_dimension_numbers<[1], [0], [0], [1], [0, 0, 1, 1], [], []>} : vector<256x128xbf16>, vector<128x128xbf16>, vector<256x128xf32> -> vector<256x128xf32>
    %c0_191 = arith.constant 0 : index
    %c0_192 = arith.constant 0 : index
    %145 = vector.load %arg8[%c0_191, %c0_192] : memref<256x128xf32, #tpu.memory_space<vmem>>, vector<256x128xf32>
    %146 = arith.addf %145, %144 : vector<256x128xf32>
    %c0_193 = arith.constant 0 : index
    %c0_194 = arith.constant 0 : index
    %147 = vector.load %arg8[%c0_193, %c0_194] : memref<256x128xf32, #tpu.memory_space<vmem>>, vector<256x128xf32>
    tpu.vector_store %arg8[%c0_193, %c0_194], %146 {strides = array<i32>} : memref<256x128xf32, #tpu.memory_space<vmem>>, vector<256x128xf32>,
    %c2_195 = arith.constant 2 : index
    %c0_196 = arith.constant 0 : index
    %c0_197 = arith.constant 0 : index
    %148 = vector.load %arg6[%c2_195, %c0_196, %c0_197] : memref<18x18x128xbf16, #tpu.memory_space<vmem>>, vector<16x16x128xbf16>
    %149 = vector.shape_cast %148 : vector<16x16x128xbf16> to vector<256x128xbf16>
    %c6_198 = arith.constant 6 : index
    %c0_199 = arith.constant 0 : index
    %c0_200 = arith.constant 0 : index
    %150 = vector.load %arg3[%c6_198, %c0_199, %c0_200] : memref<9x128x128xbf16, #tpu.memory_space<vmem>>, vector<1x128x128xbf16>
    %151 = vector.shape_cast %150 : vector<1x128x128xbf16> to vector<128x128xbf16>
    %cst_201 = arith.constant dense<0.000000e+00> : vector<256x128xf32>
    %152 = tpu.matmul %149, %151, %cst_201 {dimension_numbers = #tpu.dot_dimension_numbers<[1], [0], [0], [1], [0, 0, 1, 1], [], []>} : vector<256x128xbf16>, vector<128x128xbf16>, vector<256x128xf32> -> vector<256x128xf32>
    %c0_202 = arith.constant 0 : index
    %c0_203 = arith.constant 0 : index
    %153 = vector.load %arg8[%c0_202, %c0_203] : memref<256x128xf32, #tpu.memory_space<vmem>>, vector<256x128xf32>
    %154 = arith.addf %153, %152 : vector<256x128xf32>
    %c0_204 = arith.constant 0 : index
    %c0_205 = arith.constant 0 : index
    %155 = vector.load %arg8[%c0_204, %c0_205] : memref<256x128xf32, #tpu.memory_space<vmem>>, vector<256x128xf32>
    tpu.vector_store %arg8[%c0_204, %c0_205], %154 {strides = array<i32>} : memref<256x128xf32, #tpu.memory_space<vmem>>, vector<256x128xf32>,
    %c2_206 = arith.constant 2 : index
    %c1_207 = arith.constant 1 : index
    %c0_208 = arith.constant 0 : index
    %156 = vector.load %arg6[%c2_206, %c1_207, %c0_208] : memref<18x18x128xbf16, #tpu.memory_space<vmem>>, vector<16x16x128xbf16>
    %157 = vector.shape_cast %156 : vector<16x16x128xbf16> to vector<256x128xbf16>
    %c7_209 = arith.constant 7 : index
    %c0_210 = arith.constant 0 : index
    %c0_211 = arith.constant 0 : index
    %158 = vector.load %arg3[%c7_209, %c0_210, %c0_211] : memref<9x128x128xbf16, #tpu.memory_space<vmem>>, vector<1x128x128xbf16>
    %159 = vector.shape_cast %158 : vector<1x128x128xbf16> to vector<128x128xbf16>
    %cst_212 = arith.constant dense<0.000000e+00> : vector<256x128xf32>
    %160 = tpu.matmul %157, %159, %cst_212 {dimension_numbers = #tpu.dot_dimension_numbers<[1], [0], [0], [1], [0, 0, 1, 1], [], []>} : vector<256x128xbf16>, vector<128x128xbf16>, vector<256x128xf32> -> vector<256x128xf32>
    %c0_213 = arith.constant 0 : index
    %c0_214 = arith.constant 0 : index
    %161 = vector.load %arg8[%c0_213, %c0_214] : memref<256x128xf32, #tpu.memory_space<vmem>>, vector<256x128xf32>
    %162 = arith.addf %161, %160 : vector<256x128xf32>
    %c0_215 = arith.constant 0 : index
    %c0_216 = arith.constant 0 : index
    %163 = vector.load %arg8[%c0_215, %c0_216] : memref<256x128xf32, #tpu.memory_space<vmem>>, vector<256x128xf32>
    tpu.vector_store %arg8[%c0_215, %c0_216], %162 {strides = array<i32>} : memref<256x128xf32, #tpu.memory_space<vmem>>, vector<256x128xf32>,
    %c2_217 = arith.constant 2 : index
    %c2_218 = arith.constant 2 : index
    %c0_219 = arith.constant 0 : index
    %164 = vector.load %arg6[%c2_217, %c2_218, %c0_219] : memref<18x18x128xbf16, #tpu.memory_space<vmem>>, vector<16x16x128xbf16>
    %165 = vector.shape_cast %164 : vector<16x16x128xbf16> to vector<256x128xbf16>
    %c8_220 = arith.constant 8 : index
    %c0_221 = arith.constant 0 : index
    %c0_222 = arith.constant 0 : index
    %166 = vector.load %arg3[%c8_220, %c0_221, %c0_222] : memref<9x128x128xbf16, #tpu.memory_space<vmem>>, vector<1x128x128xbf16>
    %167 = vector.shape_cast %166 : vector<1x128x128xbf16> to vector<128x128xbf16>
    %cst_223 = arith.constant dense<0.000000e+00> : vector<256x128xf32>
    %168 = tpu.matmul %165, %167, %cst_223 {dimension_numbers = #tpu.dot_dimension_numbers<[1], [0], [0], [1], [0, 0, 1, 1], [], []>} : vector<256x128xbf16>, vector<128x128xbf16>, vector<256x128xf32> -> vector<256x128xf32>
    %c0_224 = arith.constant 0 : index
    %c0_225 = arith.constant 0 : index
    %169 = vector.load %arg8[%c0_224, %c0_225] : memref<256x128xf32, #tpu.memory_space<vmem>>, vector<256x128xf32>
    %170 = arith.addf %169, %168 : vector<256x128xf32>
    %c0_226 = arith.constant 0 : index
    %c0_227 = arith.constant 0 : index
    %171 = vector.load %arg8[%c0_226, %c0_227] : memref<256x128xf32, #tpu.memory_space<vmem>>, vector<256x128xf32>
    tpu.vector_store %arg8[%c0_226, %c0_227], %170 {strides = array<i32>} : memref<256x128xf32, #tpu.memory_space<vmem>>, vector<256x128xf32>,
    %c0_228 = arith.constant 0 : index
    %c0_229 = arith.constant 0 : index
    %172 = vector.load %arg8[%c0_228, %c0_229] : memref<256x128xf32, #tpu.memory_space<vmem>>, vector<256x128xf32>
    %173 = vector.shape_cast %172 : vector<256x128xf32> to vector<16x16x128xf32>
    %174 = vector.extract_strided_slice %173 {offsets = [0, 0, 0], sizes = [16, 16, 4], strides = [1, 1, 1]} : vector<16x16x128xf32> to vector<16x16x4xf32>
    %175 = arith.addf %1, %174 : vector<16x16x4xf32>
    %c0_230 = arith.constant 0 : index
    %c0_231 = arith.constant 0 : index
    %c0_232 = arith.constant 0 : index
    %c0_233 = arith.constant 0 : index
    %176 = vector.load %arg4[%c0_230, %c0_231, %c0_232, %c0_233] : memref<1x16x16x4xf32, #tpu.memory_space<vmem>>, vector<1x16x16x4xf32>
    %177 = vector.shape_cast %176 : vector<1x16x16x4xf32> to vector<16x16x4xf32>
    %178 = vector.shape_cast %175 : vector<16x16x4xf32> to vector<1x16x16x4xf32>
    tpu.vector_store %arg4[%c0_230, %c0_231, %c0_232, %c0_233], %178 {strides = array<i32>} : memref<1x16x16x4xf32, #tpu.memory_space<vmem>>, vector<1x16x16x4xf32>,
    return
  }
  func.func @transform_0(%arg0: i32) -> (i32, i32, i32, i32) {
    %c0_i32 = arith.constant 0 : i32
    %c0_i32_0 = arith.constant 0 : i32
    %c0_i32_1 = arith.constant 0 : i32
    %c0_i32_2 = arith.constant 0 : i32
    return %arg0, %c0_i32, %c0_i32_0, %c0_i32_1 : i32, i32, i32, i32
  }
  func.func @transform_1(%arg0: i32) -> (i32, i32, i32) {
    %c0_i32 = arith.constant 0 : i32
    %c0_i32_0 = arith.constant 0 : i32
    %c0_i32_1 = arith.constant 0 : i32
    %c0_i32_2 = arith.constant 0 : i32
    return %c0_i32, %c0_i32_0, %c0_i32_1 : i32, i32, i32
  }
  func.func @transform_2(%arg0: i32) -> (i32, i32, i32) {
    %c0_i32 = arith.constant 0 : i32
    %c0_i32_0 = arith.constant 0 : i32
    %c0_i32_1 = arith.constant 0 : i32
    %c0_i32_2 = arith.constant 0 : i32
    return %c0_i32, %c0_i32_0, %c0_i32_1 : i32, i32, i32
  }
  func.func @transform_3(%arg0: i32) -> (i32, i32, i32, i32) {
    %c0_i32 = arith.constant 0 : i32
    %c0_i32_0 = arith.constant 0 : i32
    %c0_i32_1 = arith.constant 0 : i32
    %c0_i32_2 = arith.constant 0 : i32
    return %arg0, %c0_i32, %c0_i32_0, %c0_i32_1 : i32, i32, i32, i32
  }
}

</mosaic_0001>

<bundles_post_ra>
// kernel: simple_block_forward.1
= control target key start
LH: loop header
LB: loop body
LE: loop exit
PB: predicated region body
PF: predicated region fallthrough
CT: control target
= control target key end

     0   :  { %s13323_s12 = smov 0   ;;  %s16702_s0 = inlined_call_operand.vmem [shape: f32[2,16,16,4], index: 0, kind: input, shape index: {}]   ;;  %s16703_s1 = inlined_call_operand.vmem [shape: bf16[9,128,128], index: 1, kind: input, shape index: {}]   ;;  %s16704_s2 = inlined_call_operand.vmem [shape: bf16[9,128,128], index: 2, kind: input, shape index: {}]   ;;  %s16705_s3 = inlined_call_operand.vmem [shape: f32[2,16,16,4], index: 3, kind: output, shape index: {}]  }
   0x1 LB: > { %s11672_s13 = sadd.s32 4294967295, %s13300_s12   ;;  %p11676_p0 = scmp.ge.s32.totalorder %s13300_s12, 1  ;;  %s13300_s12 = sphi %s13323_s12, %s13_s12  }
   0x2   : > { %p137_p1 = scmp.lt.s32.totalorder %s13300_s12, 3 }
   0x4   : > { %p138_p2 = pnand %p11676_p0, %p137_p1 }
   0x6   : > { %141 = sbr.rel (%p138_p2) target bundleno = 1549 (0x60d), region = 32 }
   0xb   : > { %v13020_v0 = vld [vmem:[%s16703_s1 + $0x38] sm:$0xff]  ;;  %p161_p3 = scmp.lt.s32.totalorder %s11672_s13, 1  ;;  %v13302_v1 = vmov 0   ;;  %v13019_v2 = vld [vmem:[%s16703_s1 + $0x30] sm:$0xff]  ;;  %v13018_v5 = vld [vmem:[%s16703_s1 + $0x28] sm:$0xff]  ;;  %vm412_vm2 = vcmask 31744  }
   0xc   : > { %967 = vst [vmem:[#allocation2] sm:$0xf] %v13302_v1  ;;  %1263 = vmatpush.bf16.msra.mxu0 %v13020_v0  ;;  %13237 = vmatpush.bf16.msra.mxu2 %v13020_v0  ;;  %v13028_v3 = vld [vmem:[%s16703_s1 + $0x78] sm:$0xff]  ;;  %v13027_v4 = vld [vmem:[%s16703_s1 + $0x70] sm:$0xff]  ;;  %v13026_v9 = vld [vmem:[%s16703_s1 + $0x68] sm:$0xff]  ;;  %vm857_vm6 = vcmask 1040384  }
   0xd   : > { %968 = vst [vmem:[#allocation2 + $0x4] sm:$0xf] %v13302_v1  ;;  %s16889_s13 = smov (!%p161_p3, %s11672_s13), 1  ;;  %1948 = vmatpush.bf16.msra.mxu1 %v13028_v3  ;;  %13245 = vmatpush.bf16.msra.mxu3 %v13028_v3  ;;  %v13017_v14 = vld [vmem:[%s16703_s1 + $0x20] sm:$0xff]  ;;  %vm526_vm5 = vsmask.f32 256 }
   0xe   : > { %969 = vst [vmem:[#allocation2 + $0x8] sm:$0x1] %v13302_v1  ;;  %s12995_s22 = sshll.u32 %s16889_s13, 8  ;;  %v13025_v20 = vld [vmem:[%s16703_s1 + $0x60] sm:$0xff]  ;;  %vm527_vm7 = vsmask.f32 4368  ;;  %vm13405_vm15 = vmand %vm857_vm6, %vm526_vm5 }
   0xf   : > { %971 = vst [vmem:[#allocation2 + $0xcc] sm:$0xf] %v13302_v1  ;;  %s13351_s25 = scalar_lea.vmem %s16702_s0, %s12995_s22  ;;  %v13016_v27 = vld [vmem:[%s16703_s1 + $0x18] sm:$0xff]  ;;  %vm850_vm8 = vcmask 1043456   ;;  %vm851_vm9 = vsmask.f32 7938  ;;  %s16460_s5 = scalar_lea.vmem %s16705_s3, %s12995_s22 }
  0x10   : > { %972 = vst [vmem:[#allocation2 + $0xd0] sm:$0xf] %v13302_v1  ;;  %1264 = vmatpush.bf16.msra.mxu0 %v13019_v2  ;;  %13238 = vmatpush.bf16.msra.mxu2 %v13019_v2  ;;  %v186_v6 = vld [vmem:[%s13351_s25 + $0x70] sm:$0xff]  ;;  %v187_v7 = vld [vmem:[%s13351_s25 + $0x78] sm:$0xff]  ;;  %v172_v12 = vld [vmem:[%s13351_s25] sm:$0xff] }
  0x11   : > { %973 = vst [vmem:[#allocation2 + $0xd4] sm:$0x1] %v13302_v1  ;;  %vm218_vm0 = vcmp.gt.f32.partialorder %v186_v6, 0.0  ;;  %vm219_vm1 = vcmp.gt.f32.partialorder %v187_v7, 0.0  ;;  %v250_v8 = vmul.f32 0.1, %v186_v6  ;;  %1949 = vmatpush.bf16.msra.mxu1 %v13027_v4  ;;  %13246 = vmatpush.bf16.msra.mxu3 %v13027_v4 }
  0x12   : > { %6544 = vst [vmem:[#allocation3] sm:$0xf] %v13302_v1  ;;  %v251_v10 = vmul.f32 0.1, %v187_v7  ;;  %v173_v13 = vld [vmem:[%s13351_s25 + $0x8] sm:$0xff]  ;;  %vm204_vm3 = vcmp.gt.f32.partialorder %v172_v12, 0.0 }
  0x13   : > { %6545 = vst [vmem:[#allocation3 + $0x4] sm:$0xf] %v13302_v1  ;;  %v282_v11 = vsel %vm218_vm0, %v186_v6, %v250_v8  ;;  %vm205_vm4 = vcmp.gt.f32.partialorder %v173_v13, 0.0  ;;  %v236_v18 = vmul.f32 0.1, %v172_v12  ;;  %v13374_v32 = vld [vmem:[%s13351_s25 + $0x80] sm:$0xff] }
  0x14   : > { %6546 = vst [vmem:[#allocation3 + $0x8] sm:$0x1] %v13302_v1  ;;  %1265 = vmatpush.bf16.msra.mxu0 %v13018_v5  ;;  %13239 = vmatpush.bf16.msra.mxu2 %v13018_v5  ;;  %v283_v15 = vsel %vm219_vm1, %v187_v7, %v251_v10  ;;  %v314_v16 = vpack.c.bf16 %v282_v11, %v282_v11  ;;  %v237_v19 = vmul.f32 0.1, %v173_v13  ;;  %v1384_v25 = vld [vmem:[#allocation2] sm:$0xf]  ;;  %vm13414_vm1 = vmor %vm526_vm5, %vm527_vm7 }
  0x15   : > { %6548 = vst [vmem:[#allocation3 + $0xcc] sm:$0xf] %v13302_v1  ;;  %v315_v17 = vpack.c.bf16 %v283_v15, %v283_v15  ;;  %1950 = vmatpush.bf16.msra.mxu1 %v13026_v9  ;;  %13247 = vmatpush.bf16.msra.mxu3 %v13026_v9  ;;  %v268_v23 = vsel %vm204_vm3, %v172_v12, %v236_v18  ;;  %v1385_v26 = vld [vmem:[#allocation2 + $0x4] sm:$0xf]  ;;  %v1436_v30 = vshrl.u32 %v1384_v25, 16  ;;  %v1439_v31 = vshll.u32 %v1384_v25, 16  ;;  %vm13426_vm3 = vmand %vm850_vm8, %vm851_vm9 }
  0x16   : > { %6549 = vst [vmem:[#allocation3 + $0xd0] sm:$0xf] %v13302_v1  ;;  %v378_v21 = vunpack.c.l.b16 %v314_v16  ;;  %v269_v24 = vsel %vm205_vm4, %v173_v13, %v237_v19  ;;  %v300_v28 = vpack.c.bf16 %v268_v23, %v268_v23  ;;  %v1445_v34 = vshll.u32 %v1385_v26, 16  ;;  %v13024_v36 = vld [vmem:[%s16703_s1 + $0x58] sm:$0xff]  ;;  %v13380_v41 = vld [vmem:[%s13351_s25 + $0x88] sm:$0xff]  ;;  %v13015_v46 = vld [vmem:[%s16703_s1 + $0x10] sm:$0xff] }
  0x17   : > { %6550 = vst [vmem:[#allocation3 + $0xd4] sm:$0x1] %v13302_v1  ;;  %v379_v22 = vunpack.c.l.b16 %v315_v17  ;;  %v301_v29 = vpack.c.bf16 %v269_v24, %v269_v24  ;;  %v1449_v35 = vshrl.u32 %v1385_v26, 16  ;;  %v1438_v39 = vrot.slane %v1436_v30, 4  ;;  %v1386_v43 = vld [vmem:[#allocation2 + $0x8] sm:$0x1]  ;;  %vm13473_vm8 = vmand %vm857_vm6, %vm851_vm9 }
  0x18   : > { %1266 = vmatpush.bf16.msra.mxu0 %v13017_v14  ;;  %13240 = vmatpush.bf16.msra.mxu2 %v13017_v14  ;;  %v364_v37 = vunpack.c.l.b16 %v300_v28  ;;  %v1441_v40 = vrot.slane %v1439_v31, 5  ;;  %v1447_v44 = vrot.slane %v1445_v34, 5  ;;  %vm220_vm10 = vcmp.gt.f32.partialorder %v13374_v32, 0.0  ;;  %v13023_v55 = vld [vmem:[%s16703_s1 + $0x50] sm:$0xff]  ;;  %v13014_v0 = vld [vmem:[%s16703_s1 + $0x8] sm:$0xff]  ;;  %v13013_v23 = vld [vmem:[%s16703_s1] sm:$0xff] }
  0x19   : > { %v403_v33 = vpack.c.b16 %v379_v22, %v378_v21  ;;  %1951 = vmatpush.bf16.msra.mxu1 %v13025_v20  ;;  %13248 = vmatpush.bf16.msra.mxu3 %v13025_v20  ;;  %v365_v38 = vunpack.c.l.b16 %v301_v29  ;;  %v1451_v45 = vrot.slane %v1449_v35, 4  ;;  %vm1432_vm11 = vsmask.f32 3328  ;;  %v13398_v59 = vld [vmem:[%s13351_s25 + $0x10] sm:$0xff]  ;;  %v904_v6 = vld [vmem:[#allocation2 + $0x60] sm:$0xf] }
  0x1a   : > { %vm1433_vm12 = vsmask.f32 7440  ;;  %v1442_v50 = vor.u32 %v1441_v40, %v1438_v39  ;;  %v1455_v52 = vshll.u32 %v1386_v43, 16  ;;  %vm221_vm13 = vcmp.gt.f32.partialorder %v13380_v41, 0.0  ;;  %v13022_v14 = vld [vmem:[%s16703_s1 + $0x48] sm:$0xff]  ;;  %v13036_v31 = vld [vmem:[%s16703_s1 + $0xb8] sm:$0xff] }
  0x1b   : > { %v429_v42 = vsel %vm412_vm2, %v403_v33, 0  ;;  %v396_v49 = vpack.c.b16 %v365_v38, %v364_v37  ;;  %v1452_v51 = vor.u32 %v1451_v45, %v1447_v44  ;;  %vm13392_vm14 = vmor %vm1432_vm11, %vm1433_vm12  ;;  %v252_v58 = vmul.f32 0.1, %v13374_v32  ;;  %v908_v22 = vld [vmem:[#allocation2 + $0x68] sm:$0x1]  ;;  %v13021_v37 = vld [vmem:[%s16703_s1 + $0x40] sm:$0xff] }
  0x1c   : > { %1267 = vmatpush.bf16.msra.mxu0 %v13016_v27  ;;  %13241 = vmatpush.bf16.msra.mxu2 %v13016_v27  ;;  %v476_v47 = vunpack.c.l.b16 %v429_v42  ;;  %v477_v48 = vunpack.c.h.b16 %v429_v42  ;;  %v1443_v62 = vrot.slane %v1442_v50, 4  ;;  %v1457_v10 = vrot.slane %v1455_v52, 5  ;;  %v853_v30 = vld [vmem:[#allocation2 + $0xc] sm:$0xf]  ;;  %v175_v40 = vld [vmem:[%s13351_s25 + $0x18] sm:$0xff]  ;;  %v12997_v42 = vld [vmem:[#allocation2] sm:$0xff] }
  0x1d   : > { %1952 = vmatpush.bf16.msra.mxu1 %v13024_v36  ;;  %13249 = vmatpush.bf16.msra.mxu3 %v13024_v36  ;;  %v415_v56 = vsel %vm412_vm2, %v396_v49, 0  ;;  %v1453_v63 = vrot.slane %v1452_v51, 4  ;;  %vm206_vm0 = vcmp.gt.f32.partialorder %v13398_v59, 0.0  ;;  %v253_v16 = vmul.f32 0.1, %v13380_v41  ;;  %v190_v51 = vld [vmem:[%s13351_s25 + $0x90] sm:$0xff] }
  0x1e   : > { %v508_v53 = vpack.c.b16 %v476_v47, %v476_v47  ;;  %v509_v54 = vpack.c.b16 %v477_v48, %v477_v48  ;;  %v462_v60 = vunpack.c.l.b16 %v415_v56  ;;  %v463_v61 = vunpack.c.h.b16 %v415_v56  ;;  %v13060_v47 = vld [vmem:[%s16703_s1 + $0xf8] sm:$0xff] }
  0x1f   : > { %v1448_v9 = vsel %vm13392_vm14, %v1443_v62, %v1447_v44  ;;  %v1458_v33 = vsel %vm13392_vm14, %v1453_v63, %v1457_v10  ;;  %v284_v34 = vsel %vm220_vm10, %v13374_v32, %v252_v58  ;;  %v859_v32 = vld [vmem:[#allocation2 + $0x14] sm:$0x1]  ;;  %v285_v49 = vsel %vm221_vm13, %v13380_v41, %v253_v16  ;;  %v191_v52 = vld [vmem:[%s13351_s25 + $0x98] sm:$0xff] }
  0x20   : > { %1268 = vmatpush.bf16.msra.mxu0 %v13015_v46  ;;  %13242 = vmatpush.bf16.msra.mxu2 %v13015_v46  ;;  %v649_v1 = vshrl.u32 %v508_v53, 16  ;;  %v652_v2 = vshll.u32 %v508_v53, 16  ;;  %v657_v3 = vshrl.u32 %v509_v54, 16  ;;  %v660_v4 = vshll.u32 %v509_v54, 16 }
  0x21   : > { %v494_v7 = vpack.c.b16 %v462_v60, %v462_v60  ;;  %v495_v8 = vpack.c.b16 %v463_v61, %v463_v61  ;;  %1953 = vmatpush.bf16.msra.mxu1 %v13023_v55  ;;  %13250 = vmatpush.bf16.msra.mxu3 %v13023_v55  ;;  %v13421_v15 = vunpack.c.l.b16 %v1448_v9  ;;  %v1837_v38 = vunpack.c.l.b16 %v1458_v33  ;;  %v13068_v33 = vld [vmem:[%s16703_s1 + $0x138] sm:$0xff] }
  0x22   : > { %v651_v12 = vrot.slane %v649_v1, 7  ;;  %v659_v13 = vrot.slane %v657_v3, 7  ;;  %v316_v50 = vpack.c.bf16 %v284_v34, %v284_v34  ;;  %v317_v55 = vpack.c.bf16 %v285_v49, %v285_v49 }
  0x23   : > { %v530_v18 = vshrl.u32 %v494_v7, 16  ;;  %v533_v19 = vshll.u32 %v494_v7, 16  ;;  %v538_v20 = vshrl.u32 %v495_v8, 16  ;;  %v541_v21 = vshll.u32 %v495_v8, 16 }
  0x24   : > { %1269 = vmatpush.bf16.msra.mxu0 %v13014_v0  ;;  %13243 = vmatpush.bf16.msra.mxu2 %v13014_v0  ;;  %v654_v24 = vor.u32 %v652_v2, %v651_v12  ;;  %v655_v25 = vrot.slane %v651_v12, 4  ;;  %v662_v26 = vor.u32 %v660_v4, %v659_v13  ;;  %v664_v27 = vrot.slane %v659_v13, 4  ;;  %v13478_v12 = vld [vmem:[%s13351_s25 + $0x20] sm:$0xff] }
  0x25   : > { %v532_v28 = vrot.slane %v530_v18, 7  ;;  %v540_v29 = vrot.slane %v538_v20, 7  ;;  %1954 = vmatpush.bf16.msra.mxu1 %v13022_v14  ;;  %13251 = vmatpush.bf16.msra.mxu3 %v13022_v14  ;;  %v1868_v48 = vpack.c.b16 %v1837_v38, %v13421_v15  ;;  %vm207_vm4 = vcmp.gt.f32.partialorder %v175_v40, 0.0 }
  0x26   : > { %v663_v35 = vsel %vm13414_vm1, %v655_v25, %v662_v26  ;;  %v905_v36 = vsel %vm13426_vm3, %v654_v24, %v904_v6  ;;  %v909_v39 = vsel %vm13405_vm15, %v664_v27, %v908_v22  ;;  %v380_v56 = vunpack.c.l.b16 %v316_v50 }
  0x27   : > { %906 = vst [vmem:[#allocation2 + $0x60] sm:$0xf] %v905_v36  ;;  %v535_v43 = vor.u32 %v533_v19, %v532_v28  ;;  %v536_v44 = vrot.slane %v532_v28, 4  ;;  %v543_v45 = vor.u32 %v541_v21, %v540_v29  ;;  %v545_v46 = vrot.slane %v540_v29, 4  ;;  %v13035_v36 = vld [vmem:[%s16703_s1 + $0xb0] sm:$0xff] }
  0x28   : > { %1270 = vmatpush.bf16.msra.mxu0 %v13013_v23  ;;  %13244 = vmatpush.bf16.msra.mxu2 %v13013_v23  ;;  %907 = vst [vmem:[#allocation2 + $0x64] sm:$0xf] %v663_v35  ;;  %v238_v58 = vmul.f32 0.1, %v13398_v59  ;;  %v239_v41 = vmul.f32 0.1, %v175_v40  ;;  %v381_v61 = vunpack.c.l.b16 %v317_v55 }
  0x29   : > { %v544_v53 = vsel %vm13414_vm1, %v536_v44, %v543_v45  ;;  %v854_v54 = vsel %vm13426_vm3, %v535_v43, %v853_v30  ;;  %910 = vst [vmem:[#allocation2 + $0x68] sm:$0x1] %v909_v39  ;;  %1955 = vmatpush.bf16.msra.mxu1 %v13021_v37  ;;  %13252 = vmatpush.bf16.msra.mxu3 %v13021_v37  ;;  %vm222_vm5 = vcmp.gt.f32.partialorder %v190_v51, 0.0  ;;  %vm223_vm7 = vcmp.gt.f32.partialorder %v191_v52, 0.0 }
  0x2a   : > { %855 = vst [vmem:[#allocation2 + $0xc] sm:$0xf] %v854_v54  ;;  %v860_v60 = vsel %vm13405_vm15, %v545_v46, %v859_v32  ;;  %v254_v62 = vmul.f32 0.1, %v190_v51  ;;  %v270_v63 = vsel %vm206_vm0, %v13398_v59, %v238_v58  ;;  %v271_v0 = vsel %vm207_vm4, %v175_v40, %v239_v41 }
  0x2b   : > { %1271 = vmatmul.bf16.vlgmr.msra.gmra.mxu0 %v12997_v42  ;;  %856 = vst [vmem:[#allocation2 + $0x10] sm:$0xf] %v544_v53  ;;  %v255_v1 = vmul.f32 0.1, %v191_v52  ;;  %v404_v2 = vpack.c.b16 %v381_v61, %v380_v56  ;;  %v302_v3 = vpack.c.bf16 %v270_v63, %v270_v63  ;;  %v303_v4 = vpack.c.bf16 %v271_v0, %v271_v0 }
  0x2c   : > { %2473 = vmatpush.bf16.msrb.mxu2 %v13036_v31  ;;  %861 = vst [vmem:[#allocation2 + $0x14] sm:$0x1] %v860_v60  ;;  %1956 = vmatmul.bf16.vlgmr.msra.gmra.mxu1 %v1868_v48  ;;  %v286_v6 = vsel %vm222_vm5, %v190_v51, %v254_v62  ;;  %v13486_v27 = vmul.f32 0.1, %v13478_v12  ;;  %vm208_vm6 = vcmp.gt.f32.partialorder %v13478_v12, 0.0 }
  0x2d   : > { %2851 = vmatpush.bf16.msrb.mxu3 %v13060_v47  ;;  %v287_v9 = vsel %vm223_vm7, %v191_v52, %v255_v1  ;;  %v318_v10 = vpack.c.bf16 %v286_v6, %v286_v6  ;;  %v431_v14 = vsel %vm412_vm2, %v404_v2, 0  ;;  %v366_v15 = vunpack.c.l.b16 %v302_v3  ;;  %3597 = vmatpush.bf16.msrb.mxu0 %v13068_v33  ;;  %v911_v47 = vld [vmem:[#allocation2 + $0x6c] sm:$0xf] }
  0x2e   : > { %v995_v7 = vld [vmem:[#allocation2 + $0x60] sm:$0x1]  ;;  %v367_v16 = vunpack.c.l.b16 %v303_v4  ;;  %v478_v21 = vunpack.c.l.b16 %v431_v14  ;;  %v479_v22 = vunpack.c.h.b16 %v431_v14  ;;  %v319_v26 = vpack.c.bf16 %v287_v9, %v287_v9 }
  0x2f   : > { %v996_v59 = vsel %vm13405_vm15, 0, %v995_v7  ;;  %v1409_v13 = vld [vmem:[#allocation2 + $0x64] sm:$0xf]  ;;  %v13499_v38 = vunpack.c.l.b16 %v318_v10  ;;  %v13514_v7 = vld [vmem:[%s13351_s25 + $0x28] sm:$0xff] }
  0x30   : > { %997 = vst [vmem:[#allocation2 + $0x60] sm:$0x1] %v996_v59  ;;  %v1044_v18 = vld [vmem:[#allocation2 + $0x68] sm:$0x1]  ;;  %v1637_v19 = vshll.u32 %v1409_v13, 16  ;;  %v1641_v20 = vshrl.u32 %v1409_v13, 16  ;;  %v397_v25 = vpack.c.b16 %v367_v16, %v366_v15  ;;  %v510_v31 = vpack.c.b16 %v478_v21, %v478_v21  ;;  %2474 = vmatpush.bf16.msrb.mxu2 %v13035_v36 }
  0x31   : > { %v974_v23 = vld [vmem:[#allocation2 + $0xc] sm:$0x1]  ;;  %v1045_v24 = vsel %vm13473_vm8, 0, %v1044_v18  ;;  %v511_v34 = vpack.c.b16 %v479_v22, %v479_v22  ;;  %v13501_v39 = vunpack.c.l.b16 %v319_v26  ;;  %v862_v15 = vld [vmem:[#allocation2 + $0x18] sm:$0xf]  ;;  %vm209_vm9 = vcmp.gt.f32.partialorder %v13514_v7, 0.0 }
  0x32   : > { %v975_v28 = vsel %vm13405_vm15, 0, %v974_v23  ;;  %1046 = vst [vmem:[#allocation2 + $0x68] sm:$0x1] %v1045_v24  ;;  %v13490_v29 = vrot.slane %v1637_v19, 5  ;;  %v1643_v30 = vrot.slane %v1641_v20, 4  ;;  %v417_v35 = vsel %vm412_vm2, %v397_v25, 0 }
  0x33   : > { %976 = vst [vmem:[#allocation2 + $0xc] sm:$0x1] %v975_v28  ;;  %v1023_v37 = vld [vmem:[#allocation2 + $0x14] sm:$0x1]  ;;  %v666_v32 = vshrl.u32 %v510_v31, 16  ;;  %v669_v42 = vshll.u32 %v510_v31, 16  ;;  %v464_v43 = vunpack.c.l.b16 %v417_v35  ;;  %v465_v48 = vunpack.c.h.b16 %v417_v35 }
  0x34   : > { %v1644_v40 = vor.u32 %v1643_v30, %v13490_v29  ;;  %v13504_v44 = vld [vmem:[#allocation2 + $0x10] sm:$0xf]  ;;  %v674_v45 = vshrl.u32 %v511_v34, 16  ;;  %v677_v46 = vshll.u32 %v511_v34, 16  ;;  %v1024_v49 = vsel %vm13473_vm8, 0, %v1023_v37 }
  0x35   : > { %v668_v51 = vrot.slane %v666_v32, 7  ;;  %v496_v52 = vpack.c.b16 %v464_v43, %v464_v43  ;;  %1025 = vst [vmem:[#allocation2 + $0x14] sm:$0x1] %v1024_v49  ;;  %v1469_v53 = vshll.u32 %v13504_v44, 16  ;;  %v497_v58 = vpack.c.b16 %v465_v48, %v465_v48  ;;  %v13059_v34 = vld [vmem:[%s16703_s1 + $0xf0] sm:$0xff] }
  0x36   : > { %v1645_v50 = vrot.slane %v1644_v40, 4  ;;  %v676_v56 = vrot.slane %v674_v45, 7  ;;  %v1473_v41 = vshrl.u32 %v13504_v44, 16  ;;  %v405_v60 = vpack.c.b16 %v13501_v39, %v13499_v38  ;;  %v915_v39 = vld [vmem:[#allocation2 + $0x74] sm:$0x1]  ;;  %2852 = vmatpush.bf16.msrb.mxu3 %v13059_v34 }
  0x37   : > { %v13005_v54 = vld [vmem:[#allocation2 + $0x60] sm:$0xff]  ;;  %v671_v63 = vor.u32 %v669_v42, %v668_v51  ;;  %v672_v0 = vrot.slane %v668_v51, 4  ;;  %v547_v4 = vshrl.u32 %v496_v52, 16  ;;  %v550_v6 = vshll.u32 %v496_v52, 16 }
  0x38   : > { %v1408_v55 = vld [vmem:[#allocation2 + $0x60] sm:$0xf]  ;;  %1311 = vmatmul.bf16.vlgmr.msra.gmra.mxu2 %v13005_v54  ;;  %v679_v2 = vor.u32 %v677_v46, %v676_v56  ;;  %v681_v3 = vrot.slane %v676_v56, 4  ;;  %v555_v20 = vshrl.u32 %v497_v58, 16  ;;  %v558_v21 = vshll.u32 %v497_v58, 16 }
  0x39   : > { %v1628_v61 = vshrl.u32 %v1408_v55, 16  ;;  %v1631_v62 = vshll.u32 %v1408_v55, 16  ;;  %v1410_v1 = vld [vmem:[#allocation2 + $0x68] sm:$0x1]  ;;  %v912_v14 = vsel %vm13426_vm3, %v671_v63, %v911_v47  ;;  %v549_v19 = vrot.slane %v547_v4, 7 }
  0x3a   : > { %v12998_v9 = vld [vmem:[#allocation2 + $0xc] sm:$0xff]  ;;  %v1647_v13 = vshll.u32 %v1410_v1, 16  ;;  %v680_v18 = vsel %vm13414_vm1, %v672_v0, %v679_v2  ;;  %913 = vst [vmem:[#allocation2 + $0x6c] sm:$0xf] %v912_v14  ;;  %v13520_v30 = vrot.slane %v555_v20, 7  ;;  %v1471_v33 = vrot.slane %v1469_v53, 5 }
  0x3b   : > { %v1630_v10 = vrot.slane %v1628_v61, 4  ;;  %v1633_v59 = vrot.slane %v1631_v62, 5  ;;  %v1387_v16 = vld [vmem:[#allocation2 + $0xc] sm:$0xf]  ;;  %1276 = vmatmul.bf16.gmra.mxu0 %v12998_v9  ;;  %914 = vst [vmem:[#allocation2 + $0x70] sm:$0xf] %v680_v18  ;;  %v552_v26 = vor.u32 %v550_v6, %v549_v19  ;;  %v272_v43 = vsel %vm208_vm6, %v13478_v12, %v13486_v27 }
  0x3c   : > { %v1649_v23 = vrot.slane %v1647_v13, 5  ;;  %v1460_v24 = vshrl.u32 %v1387_v16, 16  ;;  %v1463_v25 = vshll.u32 %v1387_v16, 16  ;;  %v553_v28 = vrot.slane %v549_v19, 4  ;;  %v1389_v31 = vld [vmem:[#allocation2 + $0x14] sm:$0x1] }
  0x3d   : > { %v1634_v22 = vor.u32 %v1633_v59, %v1630_v10  ;;  %v560_v32 = vor.u32 %v558_v21, %v13520_v30  ;;  %v863_v42 = vsel %vm13426_vm3, %v552_v26, %v862_v15  ;;  %v1475_v46 = vrot.slane %v1473_v41, 4  ;;  %v866_v59 = vld [vmem:[#allocation2 + $0x20] sm:$0x1]  ;;  %v918_v21 = vld [vmem:[#allocation2 + $0x78] sm:$0xf] }
  0x3e   : > { %v1650_v36 = vsel %vm13392_vm14, %v1645_v50, %v1649_v23  ;;  %v1462_v37 = vrot.slane %v1460_v24, 4  ;;  %v1465_v38 = vrot.slane %v1463_v25, 5  ;;  %864 = vst [vmem:[#allocation2 + $0x18] sm:$0xf] %v863_v42  ;;  %v1479_v47 = vshll.u32 %v1389_v31, 16 }
  0x3f   : > { %v1635_v35 = vrot.slane %v1634_v22, 4  ;;  %v1853_v40 = vunpack.c.l.b16 %v1650_v36  ;;  %v561_v49 = vsel %vm13414_vm1, %v553_v28, %v560_v32  ;;  %v916_v50 = vsel %vm13405_vm15, %v681_v3, %v915_v39 }
  0x40   : > { %v1466_v45 = vor.u32 %v1465_v38, %v1462_v37  ;;  %v433_v51 = vsel %vm412_vm2, %v405_v60, 0  ;;  %865 = vst [vmem:[#allocation2 + $0x1c] sm:$0xf] %v561_v49  ;;  %v1476_v27 = vor.u32 %v1475_v46, %v1471_v33  ;;  %v1481_v53 = vrot.slane %v1479_v47, 5  ;;  %v922_v37 = vld [vmem:[#allocation2 + $0x80] sm:$0x1] }
  0x41   : > { %v1640_v44 = vsel %vm13392_vm14, %v1635_v35, %v13490_v29  ;;  %v998_v52 = vld [vmem:[#allocation2 + $0x6c] sm:$0x1]  ;;  %v480_v54 = vunpack.c.l.b16 %v433_v51  ;;  %917 = vst [vmem:[#allocation2 + $0x74] sm:$0x1] %v916_v50  ;;  %v481_v58 = vunpack.c.h.b16 %v433_v51  ;;  %v304_v41 = vpack.c.bf16 %v272_v43, %v272_v43  ;;  %v192_v43 = vld [vmem:[%s13351_s25 + $0xa0] sm:$0xff] }
  0x42   : > { %v1852_v48 = vunpack.c.l.b16 %v1640_v44  ;;  %v1467_v12 = vrot.slane %v1466_v45, 4  ;;  %v999_v55 = vsel %vm13405_vm15, 0, %v998_v52  ;;  %v1412_v56 = vld [vmem:[#allocation2 + $0x70] sm:$0xf]  ;;  %v1477_v62 = vrot.slane %v1476_v27, 4 }
  0x43   : > { %1000 = vst [vmem:[#allocation2 + $0x6c] sm:$0x1] %v999_v55  ;;  %v1661_v60 = vshll.u32 %v1412_v56, 16  ;;  %v1665_v63 = vshrl.u32 %v1412_v56, 16  ;;  %v512_v1 = vpack.c.b16 %v480_v54, %v480_v54  ;;  %v513_v2 = vpack.c.b16 %v481_v58, %v481_v58  ;;  %v13067_v54 = vld [vmem:[%s16703_s1 + $0x130] sm:$0xff] }
  0x44   : > { %v1876_v29 = vpack.c.b16 %v1853_v40, %v1852_v48  ;;  %v1472_v61 = vsel %vm13392_vm14, %v1467_v12, %v1471_v33  ;;  %v241_v3 = vmul.f32 0.1, %v13514_v7  ;;  %v562_v4 = vrot.slane %v13520_v30, 4  ;;  %v193_v48 = vld [vmem:[%s13351_s25 + $0xa8] sm:$0xff]  ;;  %3598 = vmatpush.bf16.msrb.mxu0 %v13067_v54 }
  0x45   : > { %v1838_v0 = vunpack.c.l.b16 %v1472_v61  ;;  %v1482_v6 = vsel %vm13392_vm14, %v1477_v62, %v1481_v53  ;;  %v13551_v9 = vrot.slane %v1661_v60, 5  ;;  %v1667_v10 = vrot.slane %v1665_v63, 4  ;;  %v977_v13 = vld [vmem:[#allocation2 + $0x18] sm:$0x1] }
  0x46   : > { %1996 = vmatmul.bf16.vlgmr.msra.gmra.mxu3 %v1876_v29  ;;  %v1839_v14 = vunpack.c.l.b16 %v1482_v6  ;;  %v683_v15 = vshrl.u32 %v512_v1, 16  ;;  %v686_v16 = vshll.u32 %v512_v1, 16  ;;  %v691_v18 = vshrl.u32 %v513_v2, 16  ;;  %v13034_v29 = vld [vmem:[%s16703_s1 + $0xa8] sm:$0xff] }
  0x47   : > { %v978_v19 = vsel %vm13405_vm15, 0, %v977_v13  ;;  %v694_v20 = vshll.u32 %v513_v2, 16  ;;  %v273_v22 = vsel %vm209_vm9, %v13514_v7, %v241_v3  ;;  %v368_v23 = vunpack.c.l.b16 %v304_v41  ;;  %v1391_v30 = vld [vmem:[#allocation2 + $0x1c] sm:$0xf]  ;;  %v13058_v41 = vld [vmem:[%s16703_s1 + $0xe8] sm:$0xff]  ;;  %2475 = vmatpush.bf16.msrb.mxu2 %v13034_v29 }
  0x48   : > { %979 = vst [vmem:[#allocation2 + $0x18] sm:$0x1] %v978_v19  ;;  %v1869_v24 = vpack.c.b16 %v1839_v14, %v1838_v0  ;;  %v685_v25 = vrot.slane %v683_v15, 7  ;;  %v693_v26 = vrot.slane %v691_v18, 7  ;;  %v305_v28 = vpack.c.bf16 %v273_v22, %v273_v22  ;;  %v1047_v31 = vld [vmem:[#allocation2 + $0x74] sm:$0x1]  ;;  %2853 = vmatpush.bf16.msrb.mxu3 %v13058_v41 }
  0x49   : > { %v1668_v33 = vor.u32 %v1667_v10, %v13551_v9  ;;  %v867_v34 = vsel %vm13405_vm15, %v562_v4, %v866_v59  ;;  %v1493_v35 = vshll.u32 %v1391_v30, 16  ;;  %v1497_v36 = vshrl.u32 %v1391_v30, 16  ;;  %v13585_v4 = vld [vmem:[%s13351_s25 + $0x30] sm:$0xff] }
  0x4a   : > { %v13006_v38 = vld [vmem:[#allocation2 + $0x6c] sm:$0xff]  ;;  %1961 = vmatmul.bf16.gmra.mxu1 %v1869_v24  ;;  %v1048_v7 = vsel %vm13473_vm8, 0, %v1047_v31  ;;  %v688_v40 = vor.u32 %v686_v16, %v685_v25  ;;  %v689_v32 = vrot.slane %v685_v25, 4  ;;  %v696_v42 = vor.u32 %v694_v20, %v693_v26  ;;  %868 = vst [vmem:[#allocation2 + $0x20] sm:$0x1] %v867_v34 }
  0x4b   : > { %v1411_v39 = vld [vmem:[#allocation2 + $0x6c] sm:$0xf]  ;;  %1049 = vst [vmem:[#allocation2 + $0x74] sm:$0x1] %v1048_v7  ;;  %v698_v46 = vrot.slane %v693_v26, 4  ;;  %v369_v47 = vunpack.c.l.b16 %v305_v28  ;;  %1316 = vmatmul.bf16.gmra.mxu2 %v13006_v38  ;;  %v13569_v51 = vrot.slane %v1493_v35, 5 }
  0x4c   : > { %v1652_v44 = vshrl.u32 %v1411_v39, 16  ;;  %v1655_v45 = vshll.u32 %v1411_v39, 16  ;;  %v697_v49 = vsel %vm13414_vm1, %v689_v32, %v696_v42  ;;  %v919_v50 = vsel %vm13426_vm3, %v688_v40, %v918_v21  ;;  %v13611_v41 = vld [vmem:[%s13351_s25 + $0xb0] sm:$0xff] }
  0x4d   : > { %v1499_v52 = vrot.slane %v1497_v36, 4  ;;  %920 = vst [vmem:[#allocation2 + $0x78] sm:$0xf] %v919_v50  ;;  %v398_v53 = vpack.c.b16 %v369_v47, %v368_v23  ;;  %v923_v55 = vsel %vm13405_vm15, %v698_v46, %v922_v37  ;;  %v1669_v56 = vrot.slane %v1668_v33, 4  ;;  %v869_v36 = vld [vmem:[#allocation2 + $0x24] sm:$0xf] }
  0x4e   : > { %v1654_v12 = vrot.slane %v1652_v44, 4  ;;  %v1657_v27 = vrot.slane %v1655_v45, 5  ;;  %921 = vst [vmem:[#allocation2 + $0x7c] sm:$0xf] %v697_v49  ;;  %vm224_vm10 = vcmp.gt.f32.partialorder %v192_v43, 0.0  ;;  %vm225_vm11 = vcmp.gt.f32.partialorder %v193_v48, 0.0 }
  0x4f   : > { %v1500_v58 = vor.u32 %v1499_v52, %v13569_v51  ;;  %v12999_v61 = vld [vmem:[#allocation2 + $0x18] sm:$0xff]  ;;  %v419_v60 = vsel %vm412_vm2, %v398_v53, 0  ;;  %924 = vst [vmem:[#allocation2 + $0x80] sm:$0x1] %v923_v55  ;;  %v256_v59 = vmul.f32 0.1, %v192_v43 }
  0x50   : > { %v1658_v62 = vor.u32 %v1657_v27, %v1654_v12  ;;  %v1390_v63 = vld [vmem:[#allocation2 + $0x18] sm:$0xf]  ;;  %v466_v0 = vunpack.c.l.b16 %v419_v60  ;;  %v467_v1 = vunpack.c.h.b16 %v419_v60  ;;  %1281 = vmatmul.bf16.gmra.mxu0 %v12999_v61  ;;  %v257_v13 = vmul.f32 0.1, %v193_v48 }
  0x51   : > { %v1484_v2 = vshrl.u32 %v1390_v63, 16  ;;  %v1487_v3 = vshll.u32 %v1390_v63, 16  ;;  %v13587_v10 = vrot.slane %v1500_v58, 4  ;;  %v1026_v22 = vld [vmem:[#allocation2 + $0x20] sm:$0x1]  ;;  %v288_v23 = vsel %vm224_vm10, %v192_v43, %v256_v59  ;;  %v179_v50 = vld [vmem:[%s13351_s25 + $0x38] sm:$0xff] }
  0x52   : > { %v1659_v6 = vrot.slane %v1658_v62, 4  ;;  %v1413_v14 = vld [vmem:[#allocation2 + $0x74] sm:$0x1]  ;;  %v498_v15 = vpack.c.b16 %v466_v0, %v466_v0  ;;  %v499_v16 = vpack.c.b16 %v467_v1, %v467_v1  ;;  %v289_v24 = vsel %vm225_vm11, %v193_v48, %v257_v13  ;;  %v873_v58 = vld [vmem:[#allocation2 + $0x2c] sm:$0x1]  ;;  %v13614_v61 = vld [vmem:[%s13351_s25 + $0xb8] sm:$0xff] }
  0x53   : > { %v1486_v18 = vrot.slane %v1484_v2, 4  ;;  %v1489_v19 = vrot.slane %v1487_v3, 5  ;;  %v1671_v21 = vshll.u32 %v1413_v14, 16  ;;  %vm210_vm12 = vcmp.gt.f32.partialorder %v13585_v4, 0.0 }
  0x54   : > { %v1664_v20 = vsel %vm13392_vm14, %v1659_v6, %v13551_v9  ;;  %v1001_v26 = vld [vmem:[#allocation2 + $0x78] sm:$0x1]  ;;  %v564_v28 = vshrl.u32 %v498_v15, 16  ;;  %v567_v30 = vshll.u32 %v498_v15, 16  ;;  %v572_v31 = vshrl.u32 %v499_v16, 16 }
  0x55   : > { %v1854_v25 = vunpack.c.l.b16 %v1664_v20  ;;  %v1673_v33 = vrot.slane %v1671_v21, 5  ;;  %v1002_v34 = vsel %vm13405_vm15, 0, %v1001_v26  ;;  %v575_v35 = vshll.u32 %v499_v16, 16  ;;  %v1415_v37 = vld [vmem:[#allocation2 + $0x7c] sm:$0xf] }
  0x56   : > { %v1027_v9 = vsel %vm13473_vm8, 0, %v1026_v22  ;;  %1003 = vst [vmem:[#allocation2 + $0x78] sm:$0x1] %v1002_v34  ;;  %v566_v38 = vrot.slane %v564_v28, 7  ;;  %v574_v7 = vrot.slane %v572_v31, 7  ;;  %v1490_v39 = vor.u32 %v1489_v19, %v1486_v18 }
  0x57   : > { %v1050_v40 = vld [vmem:[#allocation2 + $0x80] sm:$0x1]  ;;  %v320_v32 = vpack.c.bf16 %v288_v23, %v288_v23  ;;  %v1674_v42 = vsel %vm13392_vm14, %v1669_v56, %v1673_v33  ;;  %1028 = vst [vmem:[#allocation2 + $0x20] sm:$0x1] %v1027_v9  ;;  %v1685_v44 = vshll.u32 %v1415_v37, 16  ;;  %v1689_v45 = vshrl.u32 %v1415_v37, 16 }
  0x58   : > { %v1051_v43 = vsel %vm13473_vm8, 0, %v1050_v40  ;;  %v1855_v46 = vunpack.c.l.b16 %v1674_v42  ;;  %v569_v47 = vor.u32 %v567_v30, %v566_v38  ;;  %v570_v48 = vrot.slane %v566_v38, 4 }
  0x59   : > { %v577_v49 = vor.u32 %v575_v35, %v574_v7  ;;  %1052 = vst [vmem:[#allocation2 + $0x80] sm:$0x1] %v1051_v43  ;;  %v579_v52 = vrot.slane %v574_v7, 4  ;;  %v1491_v12 = vrot.slane %v1490_v39, 4  ;;  %v13604_v27 = vrot.slane %v1685_v44, 5 }
  0x5a   : > { %v1691_v53 = vrot.slane %v1689_v45, 4  ;;  %v1877_v54 = vpack.c.b16 %v1855_v46, %v1854_v25  ;;  %v870_v55 = vsel %vm13426_vm3, %v569_v47, %v869_v36  ;;  %v321_v56 = vpack.c.bf16 %v289_v24, %v289_v24 }
  0x5b   : > { %v578_v29 = vsel %vm13414_vm1, %v570_v48, %v577_v49  ;;  %871 = vst [vmem:[#allocation2 + $0x24] sm:$0xf] %v870_v55  ;;  %v1496_v62 = vsel %vm13392_vm14, %v1491_v12, %v13569_v51  ;;  %v384_v63 = vunpack.c.l.b16 %v320_v32  ;;  %vm211_vm13 = vcmp.gt.f32.partialorder %v179_v50, 0.0 }
  0x5c   : > { %v1692_v60 = vor.u32 %v1691_v53, %v13604_v27  ;;  %2001 = vmatmul.bf16.gmra.mxu3 %v1877_v54  ;;  %872 = vst [vmem:[#allocation2 + $0x28] sm:$0xf] %v578_v29  ;;  %v1840_v0 = vunpack.c.l.b16 %v1496_v62  ;;  %v385_v1 = vunpack.c.l.b16 %v321_v56  ;;  %v242_v2 = vmul.f32 0.1, %v13585_v4 }
  0x5d   : > { %v243_v3 = vmul.f32 0.1, %v179_v50  ;;  %v13007_v6 = vld [vmem:[#allocation2 + $0x78] sm:$0xff]  ;;  %v874_v14 = vsel %vm13405_vm15, %v579_v52, %v873_v58  ;;  %vm226_vm0 = vcmp.gt.f32.partialorder %v13611_v41, 0.0  ;;  %vm227_vm4 = vcmp.gt.f32.partialorder %v13614_v61, 0.0 }
  0x5e   : > { %v1414_v59 = vld [vmem:[#allocation2 + $0x78] sm:$0xf]  ;;  %v1693_v13 = vrot.slane %v1692_v60, 4  ;;  %v1392_v51 = vld [vmem:[#allocation2 + $0x20] sm:$0x1]  ;;  %v406_v18 = vpack.c.b16 %v385_v1, %v384_v63  ;;  %v274_v19 = vsel %vm210_vm12, %v13585_v4, %v242_v2  ;;  %1321 = vmatmul.bf16.gmra.mxu2 %v13007_v6  ;;  %v13066_v63 = vld [vmem:[%s16703_s1 + $0x128] sm:$0xff] }
  0x5f   : > { %v1676_v15 = vshrl.u32 %v1414_v59, 16  ;;  %v1679_v16 = vshll.u32 %v1414_v59, 16  ;;  %875 = vst [vmem:[#allocation2 + $0x2c] sm:$0x1] %v874_v14  ;;  %v1503_v20 = vshll.u32 %v1392_v51, 16  ;;  %v275_v22 = vsel %vm211_vm13, %v179_v50, %v243_v3  ;;  %3599 = vmatpush.bf16.msrb.mxu0 %v13066_v63 }
  0x60   : > { %v1416_v21 = vld [vmem:[#allocation2 + $0x80] sm:$0x1]  ;;  %v306_v23 = vpack.c.bf16 %v274_v19, %v274_v19  ;;  %v258_v24 = vmul.f32 0.1, %v13611_v41  ;;  %v435_v30 = vsel %vm412_vm2, %v406_v18, 0  ;;  %v307_v35 = vpack.c.bf16 %v275_v22, %v275_v22 }
  0x61   : > { %v1678_v25 = vrot.slane %v1676_v15, 4  ;;  %v1681_v26 = vrot.slane %v1679_v16, 5  ;;  %v1695_v28 = vshll.u32 %v1416_v21, 16  ;;  %v1505_v31 = vrot.slane %v1503_v20, 5  ;;  %v925_v58 = vld [vmem:[#allocation2 + $0x84] sm:$0xf] }
  0x62   : > { %v482_v33 = vunpack.c.l.b16 %v435_v30  ;;  %v483_v34 = vunpack.c.h.b16 %v435_v30  ;;  %v980_v36 = vld [vmem:[#allocation2 + $0x24] sm:$0x1]  ;;  %v370_v37 = vunpack.c.l.b16 %v306_v23  ;;  %v259_v38 = vmul.f32 0.1, %v13614_v61  ;;  %v929_v18 = vld [vmem:[#allocation2 + $0x8c] sm:$0x1] }
  0x63   : > { %v1682_v4 = vor.u32 %v1681_v26, %v1678_v25  ;;  %v1697_v9 = vrot.slane %v1695_v28, 5  ;;  %v981_v7 = vsel %vm13405_vm15, 0, %v980_v36  ;;  %v1506_v39 = vsel %vm13392_vm14, %v13587_v10, %v1505_v31  ;;  %v1394_v46 = vld [vmem:[#allocation2 + $0x28] sm:$0xf] }
  0x64   : > { %v514_v40 = vpack.c.b16 %v482_v33, %v482_v33  ;;  %v515_v32 = vpack.c.b16 %v483_v34, %v483_v34  ;;  %982 = vst [vmem:[#allocation2 + $0x24] sm:$0x1] %v981_v7  ;;  %v1841_v42 = vunpack.c.l.b16 %v1506_v39  ;;  %v371_v45 = vunpack.c.l.b16 %v307_v35  ;;  %v13669_v35 = vld [vmem:[%s13351_s25 + $0x40] sm:$0xff] }
  0x65   : > { %v1683_v43 = vrot.slane %v1682_v4, 4  ;;  %v1698_v44 = vsel %vm13392_vm14, %v1693_v13, %v1697_v9  ;;  %v290_v1 = vsel %vm226_vm0, %v13611_v41, %v258_v24  ;;  %v291_v2 = vsel %vm227_vm4, %v13614_v61, %v259_v38  ;;  %v13057_v41 = vld [vmem:[%s16703_s1 + $0xe0] sm:$0xff] }
  0x66   : > { %v1857_v47 = vunpack.c.l.b16 %v1698_v44  ;;  %v700_v48 = vshrl.u32 %v514_v40, 16  ;;  %v703_v49 = vshll.u32 %v514_v40, 16  ;;  %v708_v50 = vshrl.u32 %v515_v32, 16  ;;  %v1029_v52 = vld [vmem:[#allocation2 + $0x2c] sm:$0x1]  ;;  %2854 = vmatpush.bf16.msrb.mxu3 %v13057_v41 }
  0x67   : > { %v1870_v12 = vpack.c.b16 %v1841_v42, %v1840_v0  ;;  %v1688_v10 = vsel %vm13392_vm14, %v1683_v43, %v13604_v27  ;;  %v711_v53 = vshll.u32 %v515_v32, 16  ;;  %v399_v54 = vpack.c.b16 %v371_v45, %v370_v37  ;;  %v13033_v27 = vld [vmem:[%s16703_s1 + $0xa0] sm:$0xff]  ;;  %v181_v42 = vld [vmem:[%s13351_s25 + $0x48] sm:$0xff] }
  0x68   : > { %v1856_v29 = vunpack.c.l.b16 %v1688_v10  ;;  %v702_v55 = vrot.slane %v700_v48, 7  ;;  %v710_v56 = vrot.slane %v708_v50, 7  ;;  %v1030_v62 = vsel %vm13473_vm8, 0, %v1029_v52  ;;  %2476 = vmatpush.bf16.msrb.mxu2 %v13033_v27  ;;  %v13675_v10 = vld [vmem:[%s13351_s25 + $0xc0] sm:$0xff] }
  0x69   : > { %1966 = vmatmul.bf16.gmra.mxu1 %v1870_v12  ;;  %v421_v60 = vsel %vm412_vm2, %v399_v54, 0  ;;  %1031 = vst [vmem:[#allocation2 + $0x2c] sm:$0x1] %v1030_v62  ;;  %v1517_v0 = vshll.u32 %v1394_v46, 16  ;;  %v1521_v22 = vshrl.u32 %v1394_v46, 16  ;;  %v322_v23 = vpack.c.bf16 %v290_v1, %v290_v1 }
  0x6a   : > { %v1878_v3 = vpack.c.b16 %v1857_v47, %v1856_v29  ;;  %v705_v6 = vor.u32 %v703_v49, %v702_v55  ;;  %v706_v59 = vrot.slane %v702_v55, 4  ;;  %v713_v13 = vor.u32 %v711_v53, %v710_v56  ;;  %v876_v46 = vld [vmem:[#allocation2 + $0x30] sm:$0xf] }
  0x6b   : > { %v715_v14 = vrot.slane %v710_v56, 4  ;;  %v468_v51 = vunpack.c.l.b16 %v421_v60  ;;  %v469_v15 = vunpack.c.h.b16 %v421_v60  ;;  %v13657_v16 = vrot.slane %v1517_v0, 5  ;;  %v13000_v19 = vld [vmem:[#allocation2 + $0x24] sm:$0xff]  ;;  %v880_v0 = vld [vmem:[#allocation2 + $0x38] sm:$0x1] }
  0x6c   : > { %v714_v61 = vsel %vm13414_vm1, %v706_v59, %v713_v13  ;;  %v926_v20 = vsel %vm13426_vm3, %v705_v6, %v925_v58  ;;  %v1393_v21 = vld [vmem:[#allocation2 + $0x24] sm:$0xf]  ;;  %2006 = vmatmul.bf16.gmra.mxu3 %v1878_v3  ;;  %1286 = vmatmul.bf16.gmra.mxu0 %v13000_v19  ;;  %v1523_v30 = vrot.slane %v1521_v22, 4  ;;  %v323_v33 = vpack.c.bf16 %v291_v2, %v291_v2 }
  0x6d   : > { %927 = vst [vmem:[#allocation2 + $0x84] sm:$0xf] %v926_v20  ;;  %v500_v24 = vpack.c.b16 %v468_v51, %v468_v51  ;;  %v501_v25 = vpack.c.b16 %v469_v15, %v469_v15  ;;  %v1508_v26 = vshrl.u32 %v1393_v21, 16  ;;  %v1511_v28 = vshll.u32 %v1393_v21, 16 }
  0x6e   : > { %928 = vst [vmem:[#allocation2 + $0x88] sm:$0xf] %v714_v61  ;;  %v930_v31 = vsel %vm13405_vm15, %v715_v14, %v929_v18  ;;  %v386_v34 = vunpack.c.l.b16 %v322_v23  ;;  %v1524_v40 = vor.u32 %v1523_v30, %v13657_v16  ;;  %v387_v32 = vunpack.c.l.b16 %v323_v33  ;;  %v13698_v23 = vld [vmem:[%s13351_s25 + $0xc8] sm:$0xff] }
  0x6f   : > { %v581_v36 = vshrl.u32 %v500_v24, 16  ;;  %v584_v4 = vshll.u32 %v500_v24, 16  ;;  %v589_v9 = vshrl.u32 %v501_v25, 16  ;;  %v592_v37 = vshll.u32 %v501_v25, 16  ;;  %931 = vst [vmem:[#allocation2 + $0x8c] sm:$0x1] %v930_v31 }
  0x70   : > { %v1395_v38 = vld [vmem:[#allocation2 + $0x2c] sm:$0x1]  ;;  %v1510_v7 = vrot.slane %v1508_v26, 4  ;;  %v1513_v39 = vrot.slane %v1511_v28, 5  ;;  %v1525_v48 = vrot.slane %v1524_v40, 4  ;;  %v407_v49 = vpack.c.b16 %v387_v32, %v386_v34 }
  0x71   : > { %v583_v43 = vrot.slane %v581_v36, 7  ;;  %v591_v44 = vrot.slane %v589_v9, 7  ;;  %v1527_v45 = vshll.u32 %v1395_v38, 16  ;;  %vm212_vm5 = vcmp.gt.f32.partialorder %v13669_v35, 0.0  ;;  %v932_v9 = vld [vmem:[#allocation2 + $0x90] sm:$0xf] }
  0x72   : > { %v1514_v47 = vor.u32 %v1513_v39, %v1510_v7  ;;  %vm213_vm7 = vcmp.gt.f32.partialorder %v181_v42, 0.0  ;;  %v437_v56 = vsel %vm412_vm2, %v407_v49, 0  ;;  %vm228_vm6 = vcmp.gt.f32.partialorder %v13675_v10, 0.0 }
  0x73   : > { %v586_v50 = vor.u32 %v584_v4, %v583_v43  ;;  %v587_v52 = vrot.slane %v583_v43, 4  ;;  %v594_v12 = vor.u32 %v592_v37, %v591_v44  ;;  %v596_v54 = vrot.slane %v591_v44, 4 }
  0x74   : > { %v1004_v53 = vld [vmem:[#allocation2 + $0x84] sm:$0x1]  ;;  %v1515_v29 = vrot.slane %v1514_v47, 4  ;;  %v1529_v55 = vrot.slane %v1527_v45, 5  ;;  %v484_v27 = vunpack.c.l.b16 %v437_v56  ;;  %v485_v15 = vunpack.c.h.b16 %v437_v56 }
  0x75   : > { %v1005_v58 = vsel %vm13405_vm15, 0, %v1004_v53  ;;  %v595_v62 = vsel %vm13414_vm1, %v587_v52, %v594_v12  ;;  %v877_v60 = vsel %vm13426_vm3, %v586_v50, %v876_v46  ;;  %v1418_v63 = vld [vmem:[#allocation2 + $0x88] sm:$0xf]  ;;  %v244_v19 = vmul.f32 0.1, %v13669_v35 }
  0x76   : > { %1006 = vst [vmem:[#allocation2 + $0x84] sm:$0x1] %v1005_v58  ;;  %v1520_v1 = vsel %vm13392_vm14, %v1515_v29, %v13657_v16  ;;  %v1530_v2 = vsel %vm13392_vm14, %v1525_v48, %v1529_v55  ;;  %v1053_v3 = vld [vmem:[#allocation2 + $0x8c] sm:$0x1]  ;;  %v1709_v6 = vshll.u32 %v1418_v63, 16  ;;  %v1713_v59 = vshrl.u32 %v1418_v63, 16 }
  0x77   : > { %878 = vst [vmem:[#allocation2 + $0x30] sm:$0xf] %v877_v60  ;;  %v1842_v13 = vunpack.c.l.b16 %v1520_v1  ;;  %v1843_v14 = vunpack.c.l.b16 %v1530_v2  ;;  %v1054_v51 = vsel %vm13473_vm8, 0, %v1053_v3  ;;  %v516_v41 = vpack.c.b16 %v484_v27, %v484_v27  ;;  %v936_v52 = vld [vmem:[#allocation2 + $0x98] sm:$0x1] }
  0x78   : > { %879 = vst [vmem:[#allocation2 + $0x34] sm:$0xf] %v595_v62  ;;  %v13692_v18 = vrot.slane %v1709_v6, 5  ;;  %v1715_v16 = vrot.slane %v1713_v59, 4  ;;  %v517_v20 = vpack.c.b16 %v485_v15, %v485_v15  ;;  %v245_v21 = vmul.f32 0.1, %v181_v42 }
  0x79   : > { %v1871_v61 = vpack.c.b16 %v1843_v14, %v1842_v13  ;;  %1055 = vst [vmem:[#allocation2 + $0x8c] sm:$0x1] %v1054_v51  ;;  %v881_v22 = vsel %vm13405_vm15, %v596_v54, %v880_v0  ;;  %v717_v25 = vshrl.u32 %v516_v41, 16  ;;  %v720_v26 = vshll.u32 %v516_v41, 16  ;;  %v13065_v62 = vld [vmem:[%s16703_s1 + $0x120] sm:$0xff]  ;;  %v13032_v60 = vld [vmem:[%s16703_s1 + $0x98] sm:$0xff] }
  0x7a   : > { %v1716_v24 = vor.u32 %v1715_v16, %v13692_v18  ;;  %v276_v28 = vsel %vm212_vm5, %v13669_v35, %v244_v19  ;;  %882 = vst [vmem:[#allocation2 + $0x38] sm:$0x1] %v881_v22  ;;  %v725_v30 = vshrl.u32 %v517_v20, 16  ;;  %v728_v31 = vshll.u32 %v517_v20, 16  ;;  %v13056_v3 = vld [vmem:[%s16703_s1 + $0xd8] sm:$0xff]  ;;  %3600 = vmatpush.bf16.msrb.mxu0 %v13065_v62  ;;  %2477 = vmatpush.bf16.msrb.mxu2 %v13032_v60 }
  0x7b   : > { %1971 = vmatmul.bf16.gmra.mxu1 %v1871_v61  ;;  %v277_v33 = vsel %vm213_vm7, %v181_v42, %v245_v21  ;;  %v308_v34 = vpack.c.bf16 %v276_v28, %v276_v28  ;;  %v719_v4 = vrot.slane %v717_v25, 7  ;;  %vm229_vm9 = vcmp.gt.f32.partialorder %v13698_v23, 0.0  ;;  %2855 = vmatpush.bf16.msrb.mxu3 %v13056_v3  ;;  %v13733_v61 = vld [vmem:[%s13351_s25 + $0x50] sm:$0xff]  ;;  %v183_v60 = vld [vmem:[%s13351_s25 + $0x58] sm:$0xff] }
  0x7c   : > { %v1717_v36 = vrot.slane %v1716_v24, 4  ;;  %v309_v37 = vpack.c.bf16 %v277_v33, %v277_v33  ;;  %v727_v39 = vrot.slane %v725_v30, 7  ;;  %v260_v32 = vmul.f32 0.1, %v13675_v10 }
  0x7d   : > { %v13008_v38 = vld [vmem:[#allocation2 + $0x84] sm:$0xff]  ;;  %v372_v40 = vunpack.c.l.b16 %v308_v34  ;;  %v722_v45 = vor.u32 %v720_v26, %v719_v4  ;;  %v723_v46 = vrot.slane %v719_v4, 4  ;;  %v261_v20 = vmul.f32 0.1, %v13698_v23 }
  0x7e   : > { %v1417_v7 = vld [vmem:[#allocation2 + $0x84] sm:$0xf]  ;;  %v983_v35 = vld [vmem:[#allocation2 + $0x30] sm:$0x1]  ;;  %1326 = vmatmul.bf16.gmra.mxu2 %v13008_v38  ;;  %v730_v47 = vor.u32 %v728_v31, %v727_v39  ;;  %v732_v48 = vrot.slane %v727_v39, 4  ;;  %v373_v49 = vunpack.c.l.b16 %v309_v37  ;;  %v292_v6 = vsel %vm228_vm6, %v13675_v10, %v260_v32 }
  0x7f   : > { %v1700_v43 = vshrl.u32 %v1417_v7, 16  ;;  %v1703_v44 = vshll.u32 %v1417_v7, 16  ;;  %v984_v42 = vsel %vm13405_vm15, 0, %v983_v35  ;;  %v1397_v50 = vld [vmem:[#allocation2 + $0x34] sm:$0xf]  ;;  %v933_v29 = vsel %vm13426_vm3, %v722_v45, %v932_v9 }
  0x80   : > { %985 = vst [vmem:[#allocation2 + $0x30] sm:$0x1] %v984_v42  ;;  %v1419_v12 = vld [vmem:[#allocation2 + $0x8c] sm:$0x1]  ;;  %v731_v56 = vsel %vm13414_vm1, %v723_v46, %v730_v47  ;;  %v400_v58 = vpack.c.b16 %v373_v49, %v372_v40  ;;  %v1541_v63 = vshll.u32 %v1397_v50, 16  ;;  %v1545_v1 = vshrl.u32 %v1397_v50, 16 }
  0x81   : > { %v1702_v53 = vrot.slane %v1700_v43, 4  ;;  %v1705_v54 = vrot.slane %v1703_v44, 5  ;;  %v1719_v55 = vshll.u32 %v1419_v12, 16  ;;  %934 = vst [vmem:[#allocation2 + $0x90] sm:$0xf] %v933_v29  ;;  %v937_v2 = vsel %vm13405_vm15, %v732_v48, %v936_v52 }
  0x82   : > { %935 = vst [vmem:[#allocation2 + $0x94] sm:$0xf] %v731_v56  ;;  %v1032_v0 = vld [vmem:[#allocation2 + $0x38] sm:$0x1]  ;;  %v423_v13 = vsel %vm412_vm2, %v400_v58, 0  ;;  %v13730_v51 = vrot.slane %v1541_v63, 5  ;;  %v324_v21 = vpack.c.bf16 %v292_v6, %v292_v6  ;;  %v293_v34 = vsel %vm229_vm9, %v13698_v23, %v261_v20 }
  0x83   : > { %v1706_v27 = vor.u32 %v1705_v54, %v1702_v53  ;;  %v1721_v59 = vrot.slane %v1719_v55, 5  ;;  %v1033_v14 = vsel %vm13473_vm8, 0, %v1032_v0  ;;  %938 = vst [vmem:[#allocation2 + $0x98] sm:$0x1] %v937_v2  ;;  %v470_v16 = vunpack.c.l.b16 %v423_v13  ;;  %v883_v39 = vld [vmem:[#allocation2 + $0x3c] sm:$0xf] }
  0x84   : > { %v471_v41 = vunpack.c.h.b16 %v423_v13  ;;  %1034 = vst [vmem:[#allocation2 + $0x38] sm:$0x1] %v1033_v14  ;;  %v1547_v19 = vrot.slane %v1545_v1, 4  ;;  %vm214_vm10 = vcmp.gt.f32.partialorder %v13733_v61, 0.0  ;;  %v325_v49 = vpack.c.bf16 %v293_v34, %v293_v34  ;;  %v887_v29 = vld [vmem:[#allocation2 + $0x44] sm:$0x1] }
  0x85   : > { %v1707_v15 = vrot.slane %v1706_v27, 4  ;;  %v1722_v10 = vsel %vm13392_vm14, %v1717_v36, %v1721_v59  ;;  %v502_v25 = vpack.c.b16 %v470_v16, %v470_v16  ;;  %v388_v50 = vunpack.c.l.b16 %v324_v21  ;;  %v198_v2 = vld [vmem:[%s13351_s25 + $0xd0] sm:$0xff]  ;;  %v13762_v14 = vld [vmem:[%s13351_s25 + $0xd8] sm:$0xff] }
  0x86   : > { %v1859_v24 = vunpack.c.l.b16 %v1722_v10  ;;  %v503_v26 = vpack.c.b16 %v471_v41, %v471_v41  ;;  %v1548_v33 = vor.u32 %v1547_v19, %v13730_v51  ;;  %v389_v1 = vunpack.c.l.b16 %v325_v49 }
  0x87   : > { %v1712_v22 = vsel %vm13392_vm14, %v1707_v15, %v13692_v18  ;;  %v13001_v28 = vld [vmem:[#allocation2 + $0x30] sm:$0xff]  ;;  %v598_v4 = vshrl.u32 %v502_v25, 16  ;;  %v601_v9 = vshll.u32 %v502_v25, 16  ;;  %v246_v59 = vmul.f32 0.1, %v13733_v61 }
  0x88   : > { %v1858_v30 = vunpack.c.l.b16 %v1712_v22  ;;  %v1396_v31 = vld [vmem:[#allocation2 + $0x30] sm:$0xf]  ;;  %v606_v37 = vshrl.u32 %v503_v26, 16  ;;  %v609_v38 = vshll.u32 %v503_v26, 16  ;;  %1291 = vmatmul.bf16.gmra.mxu0 %v13001_v28  ;;  %v1549_v23 = vrot.slane %v1548_v33, 4 }
  0x89   : > { %v1007_v36 = vld [vmem:[#allocation2 + $0x90] sm:$0x1]  ;;  %v1532_v40 = vshrl.u32 %v1396_v31, 16  ;;  %v1535_v32 = vshll.u32 %v1396_v31, 16  ;;  %v1421_v35 = vld [vmem:[#allocation2 + $0x94] sm:$0xf]  ;;  %v408_v16 = vpack.c.b16 %v389_v1, %v388_v50  ;;  %v278_v22 = vsel %vm214_vm10, %v13733_v61, %v246_v59 }
  0x8a   : > { %v1879_v18 = vpack.c.b16 %v1859_v24, %v1858_v30  ;;  %v1008_v7 = vsel %vm13405_vm15, 0, %v1007_v36  ;;  %v600_v43 = vrot.slane %v598_v4, 7  ;;  %v608_v44 = vrot.slane %v606_v37, 7  ;;  %v1056_v48 = vld [vmem:[#allocation2 + $0x98] sm:$0x1] }
  0x8b   : > { %1009 = vst [vmem:[#allocation2 + $0x90] sm:$0x1] %v1008_v7  ;;  %v1733_v45 = vshll.u32 %v1421_v35, 16  ;;  %v1398_v46 = vld [vmem:[#allocation2 + $0x38] sm:$0x1]  ;;  %v1534_v42 = vrot.slane %v1532_v40, 4  ;;  %v310_v33 = vpack.c.bf16 %v278_v22, %v278_v22 }
  0x8c   : > { %2011 = vmatmul.bf16.gmra.mxu3 %v1879_v18  ;;  %v1537_v47 = vrot.slane %v1535_v32, 5  ;;  %v603_v52 = vor.u32 %v601_v9, %v600_v43  ;;  %v604_v12 = vrot.slane %v600_v43, 4  ;;  %v611_v53 = vor.u32 %v609_v38, %v608_v44 }
  0x8d   : > { %v613_v54 = vrot.slane %v608_v44, 4  ;;  %v1551_v56 = vshll.u32 %v1398_v46, 16  ;;  %v1057_v58 = vsel %vm13473_vm8, 0, %v1056_v48  ;;  %v13750_v62 = vrot.slane %v1733_v45, 5 }
  0x8e   : > { %v1538_v55 = vor.u32 %v1537_v47, %v1534_v42  ;;  %v612_v63 = vsel %vm13414_vm1, %v604_v12, %v611_v53  ;;  %v884_v27 = vsel %vm13426_vm3, %v603_v52, %v883_v39  ;;  %1058 = vst [vmem:[#allocation2 + $0x98] sm:$0x1] %v1057_v58  ;;  %v1737_v0 = vshrl.u32 %v1421_v35, 16  ;;  %v13064_v53 = vld [vmem:[%s16703_s1 + $0x118] sm:$0xff] }
  0x8f   : > { %885 = vst [vmem:[#allocation2 + $0x3c] sm:$0xf] %v884_v27  ;;  %v1553_v6 = vrot.slane %v1551_v56, 5  ;;  %v888_v13 = vsel %vm13405_vm15, %v613_v54, %v887_v29  ;;  %vm215_vm11 = vcmp.gt.f32.partialorder %v183_v60, 0.0  ;;  %v247_v41 = vmul.f32 0.1, %v183_v60  ;;  %3601 = vmatpush.bf16.msrb.mxu0 %v13064_v53 }
  0x90   : > { %v1539_v3 = vrot.slane %v1538_v55, 4  ;;  %886 = vst [vmem:[#allocation2 + $0x40] sm:$0xf] %v612_v63  ;;  %v1739_v15 = vrot.slane %v1737_v0, 4  ;;  %vm230_vm12 = vcmp.gt.f32.partialorder %v198_v2, 0.0  ;;  %v439_v31 = vsel %vm412_vm2, %v408_v16, 0 }
  0x91   : > { %v1554_v20 = vsel %vm13392_vm14, %v1549_v23, %v1553_v6  ;;  %889 = vst [vmem:[#allocation2 + $0x44] sm:$0x1] %v888_v13  ;;  %v486_v9 = vunpack.c.l.b16 %v439_v31  ;;  %vm231_vm13 = vcmp.gt.f32.partialorder %v13762_v14, 0.0  ;;  %v487_v38 = vunpack.c.h.b16 %v439_v31  ;;  %v13031_v54 = vld [vmem:[%s16703_s1 + $0x90] sm:$0xff]  ;;  %v939_v6 = vld [vmem:[#allocation2 + $0x9c] sm:$0xf] }
  0x92   : > { %v13009_v19 = vld [vmem:[#allocation2 + $0x90] sm:$0xff]  ;;  %v1544_v10 = vsel %vm13392_vm14, %v1539_v3, %v13730_v51  ;;  %v1845_v25 = vunpack.c.l.b16 %v1554_v20  ;;  %v1740_v30 = vor.u32 %v1739_v15, %v13750_v62  ;;  %v279_v51 = vsel %vm215_vm11, %v183_v60, %v247_v41  ;;  %2478 = vmatpush.bf16.msrb.mxu2 %v13031_v54  ;;  %v943_v16 = vld [vmem:[#allocation2 + $0xa4] sm:$0x1] }
  0x93   : > { %v1420_v21 = vld [vmem:[#allocation2 + $0x90] sm:$0xf]  ;;  %v1844_v24 = vunpack.c.l.b16 %v1544_v10  ;;  %1331 = vmatmul.bf16.gmra.mxu2 %v13009_v19  ;;  %v311_v18 = vpack.c.bf16 %v279_v51, %v279_v51  ;;  %v374_v7 = vunpack.c.l.b16 %v310_v33  ;;  %v518_v35 = vpack.c.b16 %v486_v9, %v486_v9 }
  0x94   : > { %v1724_v26 = vshrl.u32 %v1420_v21, 16  ;;  %v1727_v28 = vshll.u32 %v1420_v21, 16  ;;  %v1741_v37 = vrot.slane %v1740_v30, 4  ;;  %v262_v43 = vmul.f32 0.1, %v198_v2  ;;  %v13055_v21 = vld [vmem:[%s16703_s1 + $0xd0] sm:$0xff] }
  0x95   : > { %v1872_v34 = vpack.c.b16 %v1845_v25, %v1844_v24  ;;  %v1422_v61 = vld [vmem:[#allocation2 + $0x98] sm:$0x1]  ;;  %v519_v23 = vpack.c.b16 %v487_v38, %v487_v38  ;;  %v375_v45 = vunpack.c.l.b16 %v311_v18  ;;  %v263_v46 = vmul.f32 0.1, %v13762_v14  ;;  %2856 = vmatpush.bf16.msrb.mxu3 %v13055_v21 }
  0x96   : > { %v1726_v36 = vrot.slane %v1724_v26, 4  ;;  %v1729_v4 = vrot.slane %v1727_v28, 5  ;;  %v986_v39 = vld [vmem:[#allocation2 + $0x3c] sm:$0x1]  ;;  %v1743_v32 = vshll.u32 %v1422_v61, 16  ;;  %v734_v48 = vshrl.u32 %v518_v35, 16 }
  0x97   : > { %1976 = vmatmul.bf16.gmra.mxu1 %v1872_v34  ;;  %v987_v44 = vsel %vm13405_vm15, 0, %v986_v39  ;;  %v737_v49 = vshll.u32 %v518_v35, 16  ;;  %v742_v50 = vshrl.u32 %v519_v23, 16  ;;  %v745_v52 = vshll.u32 %v519_v23, 16  ;;  %v1400_v27 = vld [vmem:[#allocation2 + $0x40] sm:$0xf] }
  0x98   : > { %v1730_v40 = vor.u32 %v1729_v4, %v1726_v36  ;;  %988 = vst [vmem:[#allocation2 + $0x3c] sm:$0x1] %v987_v44  ;;  %v1745_v47 = vrot.slane %v1743_v32, 5  ;;  %v401_v12 = vpack.c.b16 %v375_v45, %v374_v7  ;;  %v1035_v29 = vld [vmem:[#allocation2 + $0x44] sm:$0x1]  ;;  %v13786_v55 = vsel %vm230_vm12, %v198_v2, %v262_v43 }
  0x99   : > { %v736_v60 = vrot.slane %v734_v48, 7  ;;  %v1036_v63 = vsel %vm13473_vm8, 0, %v1035_v29  ;;  %v744_v3 = vrot.slane %v742_v50, 7  ;;  %v1565_v20 = vshll.u32 %v1400_v27, 16  ;;  %v13802_v28 = vld [vmem:[%s13351_s25 + $0x60] sm:$0xff] }
  0x9a   : > { %v1731_v42 = vrot.slane %v1730_v40, 4  ;;  %v1746_v58 = vsel %vm13392_vm14, %v1741_v37, %v1745_v47  ;;  %v425_v59 = vsel %vm412_vm2, %v401_v12, 0  ;;  %1037 = vst [vmem:[#allocation2 + $0x44] sm:$0x1] %v1036_v63  ;;  %v1569_v26 = vshrl.u32 %v1400_v27, 16  ;;  %v200_v63 = vld [vmem:[%s13351_s25 + $0xe0] sm:$0xff] }
  0x9b   : > { %v1861_v1 = vunpack.c.l.b16 %v1746_v58  ;;  %v739_v2 = vor.u32 %v737_v49, %v736_v60  ;;  %v472_v13 = vunpack.c.l.b16 %v425_v59  ;;  %v473_v15 = vunpack.c.h.b16 %v425_v59  ;;  %v201_v59 = vld [vmem:[%s13351_s25 + $0xe8] sm:$0xff] }
  0x9c   : > { %v1736_v56 = vsel %vm13392_vm14, %v1731_v42, %v13750_v62  ;;  %v740_v62 = vrot.slane %v736_v60, 4  ;;  %v747_v19 = vor.u32 %v745_v52, %v744_v3  ;;  %v749_v10 = vrot.slane %v744_v3, 4  ;;  %v185_v42 = vld [vmem:[%s13351_s25 + $0x68] sm:$0xff]  ;;  %v894_v52 = vld [vmem:[#allocation2 + $0x50] sm:$0x1] }
  0x9d   : > { %v1860_v0 = vunpack.c.l.b16 %v1736_v56  ;;  %v940_v22 = vsel %vm13426_vm3, %v739_v2, %v939_v6  ;;  %v504_v24 = vpack.c.b16 %v472_v13, %v472_v13  ;;  %v505_v25 = vpack.c.b16 %v473_v15, %v473_v15 }
  0x9e   : > { %v748_v31 = vsel %vm13414_vm1, %v740_v62, %v747_v19  ;;  %941 = vst [vmem:[#allocation2 + $0x9c] sm:$0xf] %v940_v22  ;;  %v1567_v33 = vrot.slane %v1565_v20, 5  ;;  %v944_v34 = vsel %vm13405_vm15, %v749_v10, %v943_v16  ;;  %v295_v36 = vsel %vm231_vm13, %v13762_v14, %v263_v46  ;;  %v890_v14 = vld [vmem:[#allocation2 + $0x48] sm:$0xf] }
  0x9f   : > { %v1880_v41 = vpack.c.b16 %v1861_v1, %v1860_v0  ;;  %v13002_v30 = vld [vmem:[#allocation2 + $0x3c] sm:$0xff]  ;;  %942 = vst [vmem:[#allocation2 + $0xa0] sm:$0xf] %v748_v31  ;;  %v615_v4 = vshrl.u32 %v504_v24, 16  ;;  %v618_v9 = vshll.u32 %v504_v24, 16  ;;  %v623_v61 = vshrl.u32 %v505_v25, 16 }
  0xa0   : > { %v1399_v51 = vld [vmem:[#allocation2 + $0x3c] sm:$0xf]  ;;  %v626_v37 = vshll.u32 %v505_v25, 16  ;;  %1296 = vmatmul.bf16.gmra.mxu0 %v13002_v30  ;;  %v1571_v7 = vrot.slane %v1569_v26, 4  ;;  %945 = vst [vmem:[#allocation2 + $0xa4] sm:$0x1] %v944_v34  ;;  %v326_v39 = vpack.c.bf16 %v13786_v55, %v13786_v55  ;;  %v327_v43 = vpack.c.bf16 %v295_v36, %v295_v36 }
  0xa1   : > { %2016 = vmatmul.bf16.gmra.mxu3 %v1880_v41  ;;  %v1556_v38 = vshrl.u32 %v1399_v51, 16  ;;  %v1559_v18 = vshll.u32 %v1399_v51, 16  ;;  %v617_v40 = vrot.slane %v615_v4, 7  ;;  %v625_v32 = vrot.slane %v623_v61, 7  ;;  %v1401_v35 = vld [vmem:[#allocation2 + $0x44] sm:$0x1] }
  0xa2   : > { %vm216_vm0 = vcmp.gt.f32.partialorder %v13802_v28, 0.0  ;;  %v1572_v45 = vor.u32 %v1571_v7, %v1567_v33  ;;  %v1575_v46 = vshll.u32 %v1401_v35, 16  ;;  %v390_v29 = vunpack.c.l.b16 %v326_v39 }
  0xa3   : > { %v1558_v44 = vrot.slane %v1556_v38, 4  ;;  %v1561_v23 = vrot.slane %v1559_v18, 5  ;;  %v620_v47 = vor.u32 %v618_v9, %v617_v40  ;;  %v621_v48 = vrot.slane %v617_v40, 4 }
  0xa4   : > { %v628_v49 = vor.u32 %v626_v37, %v625_v32  ;;  %v630_v50 = vrot.slane %v625_v32, 4  ;;  %v1573_v53 = vrot.slane %v1572_v45, 4  ;;  %v1577_v54 = vrot.slane %v1575_v46, 5 }
  0xa5   : > { %v1562_v12 = vor.u32 %v1561_v23, %v1558_v44  ;;  %v1010_v55 = vld [vmem:[#allocation2 + $0x9c] sm:$0x1]  ;;  %v891_v58 = vsel %vm13426_vm3, %v620_v47, %v890_v14  ;;  %v391_v60 = vunpack.c.l.b16 %v327_v43  ;;  %vm217_vm4 = vcmp.gt.f32.partialorder %v185_v42, 0.0 }
  0xa6   : > { %v629_v56 = vsel %vm13414_vm1, %v621_v48, %v628_v49  ;;  %v1011_v27 = vsel %vm13405_vm15, 0, %v1010_v55  ;;  %892 = vst [vmem:[#allocation2 + $0x48] sm:$0xf] %v891_v58  ;;  %v1578_v1 = vsel %vm13392_vm14, %v1573_v53, %v1577_v54  ;;  %v1424_v3 = vld [vmem:[#allocation2 + $0xa0] sm:$0xf]  ;;  %v895_v6 = vsel %vm13405_vm15, %v630_v50, %v894_v52 }
  0xa7   : > { %v1563_v0 = vrot.slane %v1562_v12, 4  ;;  %1012 = vst [vmem:[#allocation2 + $0x9c] sm:$0x1] %v1011_v27  ;;  %v1847_v2 = vunpack.c.l.b16 %v1578_v1  ;;  %v1059_v62 = vld [vmem:[#allocation2 + $0xa4] sm:$0x1]  ;;  %v1757_v13 = vshll.u32 %v1424_v3, 16  ;;  %v409_v16 = vpack.c.b16 %v391_v60, %v390_v29 }
  0xa8   : > { %v1761_v15 = vshrl.u32 %v1424_v3, 16  ;;  %893 = vst [vmem:[#allocation2 + $0x4c] sm:$0xf] %v629_v56  ;;  %v1060_v19 = vsel %vm13473_vm8, 0, %v1059_v62  ;;  %v248_v10 = vmul.f32 0.1, %v13802_v28 }
  0xa9   : > { %v1568_v41 = vsel %vm13392_vm14, %v1563_v0, %v1567_v33  ;;  %vm232_vm5 = vcmp.gt.f32.partialorder %v200_v63, 0.0  ;;  %1061 = vst [vmem:[#allocation2 + $0xa4] sm:$0x1] %v1060_v19  ;;  %v13832_v21 = vrot.slane %v1757_v13, 5  ;;  %v441_v24 = vsel %vm412_vm2, %v409_v16, 0  ;;  %v13063_v27 = vld [vmem:[%s16703_s1 + $0x110] sm:$0xff] }
  0xaa   : > { %v1846_v20 = vunpack.c.l.b16 %v1568_v41  ;;  %v1763_v22 = vrot.slane %v1761_v15, 4  ;;  %v488_v25 = vunpack.c.l.b16 %v441_v24  ;;  %v489_v26 = vunpack.c.h.b16 %v441_v24  ;;  %896 = vst [vmem:[#allocation2 + $0x50] sm:$0x1] %v895_v6  ;;  %v13030_v0 = vld [vmem:[%s16703_s1 + $0x88] sm:$0xff]  ;;  %v950_v3 = vld [vmem:[#allocation2 + $0xb0] sm:$0x1]  ;;  %3602 = vmatpush.bf16.msrb.mxu0 %v13063_v27 }
  0xab   : > { %v249_v30 = vmul.f32 0.1, %v185_v42  ;;  %v280_v31 = vsel %vm216_vm0, %v13802_v28, %v248_v10  ;;  %vm233_vm7 = vcmp.gt.f32.partialorder %v201_v59, 0.0  ;;  %v264_v61 = vmul.f32 0.1, %v200_v63  ;;  %v13054_v13 = vld [vmem:[%s16703_s1 + $0xc8] sm:$0xff]  ;;  %2479 = vmatpush.bf16.msrb.mxu2 %v13030_v0 }
  0xac   : > { %v1873_v51 = vpack.c.b16 %v1847_v2, %v1846_v20  ;;  %v1764_v33 = vor.u32 %v1763_v22, %v13832_v21  ;;  %v312_v34 = vpack.c.bf16 %v280_v31, %v280_v31  ;;  %v520_v36 = vpack.c.b16 %v488_v25, %v488_v25  ;;  %2857 = vmatpush.bf16.msrb.mxu3 %v13054_v13  ;;  %v13062_v25 = vld [vmem:[%s16703_s1 + $0x108] sm:$0xff] }
  0xad   : > { %v521_v4 = vpack.c.b16 %v489_v26, %v489_v26  ;;  %v281_v9 = vsel %vm217_vm4, %v185_v42, %v249_v30  ;;  %v989_v37 = vld [vmem:[#allocation2 + $0x48] sm:$0x1]  ;;  %v265_v39 = vmul.f32 0.1, %v201_v59  ;;  %v13843_v14 = vsel %vm232_vm5, %v200_v63, %v264_v61 }
  0xae   : > { %1981 = vmatmul.bf16.gmra.mxu1 %v1873_v51  ;;  %v1765_v38 = vrot.slane %v1764_v33, 4  ;;  %v313_v18 = vpack.c.bf16 %v281_v9, %v281_v9  ;;  %v376_v7 = vunpack.c.l.b16 %v312_v34  ;;  %v13010_v40 = vld [vmem:[#allocation2 + $0x9c] sm:$0xff]  ;;  %v990_v28 = vsel %vm13405_vm15, 0, %v989_v37  ;;  %v946_v42 = vld [vmem:[#allocation2 + $0xa8] sm:$0xf]  ;;  %3603 = vmatpush.bf16.msrb.mxu0 %v13062_v25 }
  0xaf   : > { %v1423_v32 = vld [vmem:[#allocation2 + $0x9c] sm:$0xf]  ;;  %v751_v35 = vshrl.u32 %v520_v36, 16  ;;  %v754_v43 = vshll.u32 %v520_v36, 16  ;;  %991 = vst [vmem:[#allocation2 + $0x48] sm:$0x1] %v990_v28  ;;  %1336 = vmatmul.bf16.gmra.mxu2 %v13010_v40  ;;  %v13846_v52 = vsel %vm233_vm7, %v201_v59, %v265_v39  ;;  %v328_v12 = vpack.c.bf16 %v13843_v14, %v13843_v14 }
  0xb0   : > { %v1748_v44 = vshrl.u32 %v1423_v32, 16  ;;  %v1751_v23 = vshll.u32 %v1423_v32, 16  ;;  %v759_v45 = vshrl.u32 %v521_v4, 16  ;;  %v762_v46 = vshll.u32 %v521_v4, 16  ;;  %v1425_v47 = vld [vmem:[#allocation2 + $0xa4] sm:$0x1] }
  0xb1   : > { %v753_v48 = vrot.slane %v751_v35, 7  ;;  %v377_v49 = vunpack.c.l.b16 %v313_v18  ;;  %v1403_v50 = vld [vmem:[#allocation2 + $0x4c] sm:$0xf]  ;;  %v1767_v29 = vshll.u32 %v1425_v47, 16  ;;  %v1038_v56 = vld [vmem:[#allocation2 + $0x50] sm:$0x1] }
  0xb2   : > { %v1750_v53 = vrot.slane %v1748_v44, 4  ;;  %v1753_v54 = vrot.slane %v1751_v23, 5  ;;  %v761_v55 = vrot.slane %v759_v45, 7  ;;  %v1039_v1 = vsel %vm13473_vm8, 0, %v1038_v56  ;;  %v3036_v47 = vld [vmem:[#allocation2 + $0xc] sm:$0xf] }
  0xb3   : > { %v756_v58 = vor.u32 %v754_v43, %v753_v48  ;;  %v757_v60 = vrot.slane %v753_v48, 4  ;;  %v402_v63 = vpack.c.b16 %v377_v49, %v376_v7  ;;  %v1769_v59 = vrot.slane %v1767_v29, 5  ;;  %1040 = vst [vmem:[#allocation2 + $0x50] sm:$0x1] %v1039_v1 }
  0xb4   : > { %v1754_v6 = vor.u32 %v1753_v54, %v1750_v53  ;;  %v764_v2 = vor.u32 %v762_v46, %v761_v55  ;;  %v766_v62 = vrot.slane %v761_v55, 4  ;;  %v1589_v41 = vshll.u32 %v1403_v50, 16 }
  0xb5   : > { %v947_v15 = vsel %vm13426_vm3, %v756_v58, %v946_v42  ;;  %v427_v16 = vsel %vm412_vm2, %v402_v63, 0  ;;  %v1593_v19 = vshrl.u32 %v1403_v50, 16  ;;  %v1770_v20 = vsel %vm13392_vm14, %v1765_v38, %v1769_v59  ;;  %v897_v50 = vld [vmem:[#allocation2 + $0x54] sm:$0xf] }
  0xb6   : > { %v1755_v10 = vrot.slane %v1754_v6, 4  ;;  %v765_v22 = vsel %vm13414_vm1, %v757_v60, %v764_v2  ;;  %948 = vst [vmem:[#allocation2 + $0xa8] sm:$0xf] %v947_v15  ;;  %v474_v24 = vunpack.c.l.b16 %v427_v16  ;;  %v13003_v26 = vld [vmem:[#allocation2 + $0x48] sm:$0xff]  ;;  %v1863_v30 = vunpack.c.l.b16 %v1770_v20  ;;  %v13061_v60 = vld [vmem:[%s16703_s1 + $0x100] sm:$0xff] }
  0xb7   : > { %949 = vst [vmem:[#allocation2 + $0xac] sm:$0xf] %v765_v22  ;;  %v475_v31 = vunpack.c.h.b16 %v427_v16  ;;  %v1402_v51 = vld [vmem:[#allocation2 + $0x48] sm:$0xf]  ;;  %v1591_v33 = vrot.slane %v1589_v41, 5  ;;  %v951_v34 = vsel %vm13405_vm15, %v766_v62, %v950_v3  ;;  %1301 = vmatmul.bf16.gmra.mxu0 %v13003_v26  ;;  %v1595_v18 = vrot.slane %v1593_v19, 4 }
  0xb8   : > { %v1760_v36 = vsel %vm13392_vm14, %v1755_v10, %v13832_v21  ;;  %v506_v4 = vpack.c.b16 %v474_v24, %v474_v24  ;;  %v1580_v9 = vshrl.u32 %v1402_v51, 16  ;;  %v1583_v61 = vshll.u32 %v1402_v51, 16  ;;  %952 = vst [vmem:[#allocation2 + $0xb0] sm:$0x1] %v951_v34  ;;  %3604 = vmatpush.bf16.msrb.mxu0 %v13061_v60  ;;  %v3037_v41 = vld [vmem:[#allocation2 + $0x10] sm:$0xf] }
  0xb9   : > { %v1862_v37 = vunpack.c.l.b16 %v1760_v36  ;;  %v507_v38 = vpack.c.b16 %v475_v31, %v475_v31  ;;  %v329_v7 = vpack.c.bf16 %v13846_v52, %v13846_v52  ;;  %v1596_v44 = vor.u32 %v1595_v18, %v1591_v33  ;;  %v901_v19 = vld [vmem:[#allocation2 + $0x5c] sm:$0x1]  ;;  %v13902_v36 = vpop.f32.mrf.mxu0 }
  0xba   : > { %v632_v39 = vshrl.u32 %v506_v4, 16  ;;  %v635_v40 = vshll.u32 %v506_v4, 16  ;;  %v1582_v28 = vrot.slane %v1580_v9, 4  ;;  %v1585_v32 = vrot.slane %v1583_v61, 5  ;;  %v1404_v21 = vld [vmem:[#allocation2 + $0x50] sm:$0x1] }
  0xbb   : > { %v1881_v35 = vpack.c.b16 %v1863_v30, %v1862_v37  ;;  %v640_v43 = vshrl.u32 %v507_v38, 16  ;;  %v643_v14 = vshll.u32 %v507_v38, 16  ;;  %v1599_v46 = vshll.u32 %v1404_v21, 16  ;;  %v13076_v51 = vld [vmem:[%s16703_s1 + $0x178] sm:$0xff]  ;;  %v3038_v4 = vld [vmem:[#allocation2 + $0x14] sm:$0x1] }
  0xbc   : > { %v634_v23 = vrot.slane %v632_v39, 7  ;;  %v1586_v45 = vor.u32 %v1585_v32, %v1582_v28  ;;  %v392_v42 = vunpack.c.l.b16 %v328_v12  ;;  %v1597_v52 = vrot.slane %v1596_v44, 4  ;;  %4119 = vmatpush.bf16.msrb.mxu1 %v13076_v51  ;;  %v13075_v39 = vld [vmem:[%s16703_s1 + $0x170] sm:$0xff] }
  0xbd   : > { %2021 = vmatmul.bf16.gmra.mxu3 %v1881_v35  ;;  %v1013_v48 = vld [vmem:[#allocation2 + $0xa8] sm:$0x1]  ;;  %v642_v49 = vrot.slane %v640_v43, 7  ;;  %v393_v53 = vunpack.c.l.b16 %v329_v7  ;;  %v1601_v63 = vrot.slane %v1599_v46, 5  ;;  %v3085_v1 = vshrl.u32 %v3036_v47, 16 }
  0xbe   : > { %v1014_v54 = vsel %vm13405_vm15, 0, %v1013_v48  ;;  %v637_v29 = vor.u32 %v635_v40, %v634_v23  ;;  %v638_v55 = vrot.slane %v634_v23, 4  ;;  %v1587_v56 = vrot.slane %v1586_v45, 4  ;;  %v1427_v58 = vld [vmem:[#allocation2 + $0xac] sm:$0xf] }
  0xbf   : > { %1015 = vst [vmem:[#allocation2 + $0xa8] sm:$0x1] %v1014_v54  ;;  %v645_v12 = vor.u32 %v643_v14, %v642_v49  ;;  %v1062_v27 = vld [vmem:[#allocation2 + $0xb0] sm:$0x1]  ;;  %v410_v0 = vpack.c.b16 %v393_v53, %v392_v42  ;;  %v1781_v2 = vshll.u32 %v1427_v58, 16  ;;  %v1602_v13 = vsel %vm13392_vm14, %v1597_v52, %v1601_v63 }
  0xc0   : > { %v898_v3 = vsel %vm13426_vm3, %v637_v29, %v897_v50  ;;  %v1592_v6 = vsel %vm13392_vm14, %v1587_v56, %v1591_v33  ;;  %v1063_v59 = vsel %vm13473_vm8, 0, %v1062_v27  ;;  %v1785_v16 = vshrl.u32 %v1427_v58, 16  ;;  %v13029_v33 = vld [vmem:[%s16703_s1 + $0x80] sm:$0xff]  ;;  %v953_v29 = vld [vmem:[#allocation2 + $0xb4] sm:$0xf]  ;;  %4120 = vmatpush.bf16.msrb.mxu1 %v13075_v39 }
  0xc1   : > { %v646_v62 = vsel %vm13414_vm1, %v638_v55, %v645_v12  ;;  %899 = vst [vmem:[#allocation2 + $0x54] sm:$0xf] %v898_v3  ;;  %v1848_v15 = vunpack.c.l.b16 %v1592_v6  ;;  %v647_v10 = vrot.slane %v642_v49, 4  ;;  %v1849_v20 = vunpack.c.l.b16 %v1602_v13  ;;  %2480 = vmatpush.bf16.msrb.mxu2 %v13029_v33 }
  0xc2   : > { %900 = vst [vmem:[#allocation2 + $0x58] sm:$0xf] %v646_v62  ;;  %v13893_v22 = vrot.slane %v1781_v2, 5  ;;  %v443_v24 = vsel %vm412_vm2, %v410_v0, 0  ;;  %v1787_v25 = vrot.slane %v1785_v16, 4  ;;  %v3088_v31 = vshll.u32 %v3036_v47, 16 }
  0xc3   : > { %1064 = vst [vmem:[#allocation2 + $0xb0] sm:$0x1] %v1063_v59  ;;  %v490_v26 = vunpack.c.l.b16 %v443_v24  ;;  %v491_v30 = vunpack.c.h.b16 %v443_v24  ;;  %v1874_v34 = vpack.c.b16 %v1849_v20, %v1848_v15  ;;  %v3087_v9 = vrot.slane %v3085_v1, 4  ;;  %v13053_v2 = vld [vmem:[%s16703_s1 + $0xc0] sm:$0xff]  ;;  %v13074_v62 = vld [vmem:[%s16703_s1 + $0x168] sm:$0xff]  ;;  %v13925_v20 = vpop.f32.mrf.mxu0 }
  0xc4   : > { %v3094_v61 = vshll.u32 %v3037_v41, 16  ;;  %v3098_v37 = vshrl.u32 %v3037_v41, 16  ;;  %v3090_v7 = vrot.slane %v3088_v31, 5  ;;  %v1788_v32 = vor.u32 %v1787_v25, %v13893_v22  ;;  %2858 = vmatpush.bf16.msrb.mxu3 %v13053_v2  ;;  %4121 = vmatpush.bf16.msrb.mxu1 %v13074_v62  ;;  %v2135_v2 = vld [vmem:[#allocation2 + $0x8] sm:$0x1] }
  0xc5   : > { %v522_v38 = vpack.c.b16 %v490_v26, %v490_v26  ;;  %v523_v18 = vpack.c.b16 %v491_v30, %v491_v30  ;;  %1986 = vmatmul.bf16.gmra.mxu1 %v1874_v34  ;;  %v902_v14 = vsel %vm13405_vm15, %v647_v10, %v901_v19  ;;  %v3104_v45 = vshll.u32 %v3038_v4, 16  ;;  %v957_v19 = vld [vmem:[#allocation2 + $0xbc] sm:$0x1] }
  0xc6   : > { %v13011_v40 = vld [vmem:[#allocation2 + $0xa8] sm:$0xff]  ;;  %v13908_v35 = vrot.slane %v3094_v61, 5  ;;  %v3100_v43 = vrot.slane %v3098_v37, 4  ;;  %903 = vst [vmem:[#allocation2 + $0x5c] sm:$0x1] %v902_v14  ;;  %v3091_v49 = vor.u32 %v3090_v7, %v3087_v9  ;;  %v1789_v56 = vrot.slane %v1788_v32, 4  ;;  %v13942_v32 = vpop.f32.mrf.mxu2 }
  0xc7   : > { %v1426_v28 = vld [vmem:[#allocation2 + $0xa8] sm:$0xf]  ;;  %v768_v23 = vshrl.u32 %v522_v38, 16  ;;  %1341 = vmatmul.bf16.gmra.mxu2 %v13011_v40  ;;  %v771_v42 = vshll.u32 %v522_v38, 16  ;;  %v776_v47 = vshrl.u32 %v523_v18, 16  ;;  %v779_v48 = vshll.u32 %v523_v18, 16 }
  0xc8   : > { %v1772_v21 = vshrl.u32 %v1426_v28, 16  ;;  %v1775_v44 = vshll.u32 %v1426_v28, 16  ;;  %v992_v46 = vld [vmem:[#allocation2 + $0x54] sm:$0x1]  ;;  %v3101_v60 = vor.u32 %v3100_v43, %v13908_v35  ;;  %v3092_v6 = vrot.slane %v3091_v49, 4  ;;  %v13073_v37 = vld [vmem:[%s16703_s1 + $0x160] sm:$0xff] }
  0xc9   : > { %v993_v50 = vsel %vm13405_vm15, 0, %v992_v46  ;;  %v770_v54 = vrot.slane %v768_v23, 7  ;;  %v778_v58 = vrot.slane %v776_v47, 7  ;;  %v1406_v1 = vld [vmem:[#allocation2 + $0x58] sm:$0xf]  ;;  %v3106_v59 = vrot.slane %v3104_v45, 5  ;;  %4122 = vmatpush.bf16.msrb.mxu1 %v13073_v37 }
  0xca   : > { %v1774_v52 = vrot.slane %v1772_v21, 4  ;;  %v1777_v53 = vrot.slane %v1775_v44, 5  ;;  %994 = vst [vmem:[#allocation2 + $0x54] sm:$0x1] %v993_v50  ;;  %v1428_v55 = vld [vmem:[#allocation2 + $0xb0] sm:$0x1]  ;;  %v3097_v39 = vsel %vm13392_vm14, %v3092_v6, %v13908_v35  ;;  %v1957_v44 = vpop.f32.mrf.mxu1 }
  0xcb   : > { %v1791_v63 = vshll.u32 %v1428_v55, 16  ;;  %v773_v27 = vor.u32 %v771_v42, %v770_v54  ;;  %v774_v0 = vrot.slane %v770_v54, 4  ;;  %v781_v3 = vor.u32 %v779_v48, %v778_v58  ;;  %v3039_v43 = vld [vmem:[#allocation2 + $0x18] sm:$0xf]  ;;  %v3040_v14 = vld [vmem:[#allocation2 + $0x1c] sm:$0xf]  ;;  %v13966_v6 = vpop.f32.mrf.mxu0 }
  0xcc   : > { %v1778_v12 = vor.u32 %v1777_v53, %v1774_v52  ;;  %v783_v16 = vrot.slane %v778_v58, 4  ;;  %v1613_v25 = vshll.u32 %v1406_v1, 16  ;;  %v1617_v26 = vshrl.u32 %v1406_v1, 16  ;;  %v13072_v21 = vld [vmem:[%s16703_s1 + $0x158] sm:$0xff]  ;;  %v13954_v49 = vld [vmem:[#allocation2 + $0x4] sm:$0xf] }
  0xcd   : > { %v1793_v15 = vrot.slane %v1791_v63, 5  ;;  %v954_v41 = vsel %vm13426_vm3, %v773_v27, %v953_v29  ;;  %v782_v10 = vsel %vm13414_vm1, %v774_v0, %v781_v3  ;;  %v1041_v24 = vld [vmem:[#allocation2 + $0x5c] sm:$0x1]  ;;  %v3102_v51 = vrot.slane %v3101_v60, 4  ;;  %4123 = vmatpush.bf16.msrb.mxu1 %v13072_v21  ;;  %v13070_v37 = vld [vmem:[%s16703_s1 + $0x148] sm:$0xff] }
  0xce   : > { %v1779_v13 = vrot.slane %v1778_v12, 4  ;;  %955 = vst [vmem:[#allocation2 + $0xb4] sm:$0xf] %v954_v41  ;;  %v1042_v33 = vsel %vm13473_vm8, 0, %v1041_v24  ;;  %v1615_v9 = vrot.slane %v1613_v25, 5  ;;  %v1619_v61 = vrot.slane %v1617_v26, 4 }
  0xcf   : > { %v1794_v31 = vsel %vm13392_vm14, %v1789_v56, %v1793_v15  ;;  %956 = vst [vmem:[#allocation2 + $0xb8] sm:$0xf] %v782_v10  ;;  %v13100_v23 = vld [vmem:[%s16703_s1 + $0x1b8] sm:$0xff]  ;;  %v3107_v35 = vsel %vm13392_vm14, %v3102_v51, %v3106_v59  ;;  %v13952_v48 = vunpack.c.l.b16 %v3097_v39  ;;  %v3109_v50 = vshrl.u32 %v3039_v43, 16  ;;  %v13071_v56 = vld [vmem:[%s16703_s1 + $0x150] sm:$0xff] }
  0xd0   : > { %v1784_v30 = vsel %vm13392_vm14, %v1779_v13, %v13893_v22  ;;  %v1865_v4 = vunpack.c.l.b16 %v1794_v31  ;;  %1043 = vst [vmem:[#allocation2 + $0x5c] sm:$0x1] %v1042_v33  ;;  %v958_v22 = vsel %vm13405_vm15, %v783_v16, %v957_v19  ;;  %v1620_v42 = vor.u32 %v1619_v61, %v1615_v9  ;;  %4498 = vmatpush.bf16.msra.mxu2 %v13100_v23  ;;  %v2133_v59 = vld [vmem:[#allocation2] sm:$0xe]  ;;  %v3041_v24 = vld [vmem:[#allocation2 + $0x20] sm:$0x1]  ;;  %v1997_v61 = vpop.f32.mrf.mxu3 }
  0xd1   : > { %v1864_v34 = vunpack.c.l.b16 %v1784_v30  ;;  %v13004_v38 = vld [vmem:[#allocation2 + $0x54] sm:$0xff]  ;;  %959 = vst [vmem:[#allocation2 + $0xbc] sm:$0x1] %v958_v22  ;;  %v3112_v52 = vshll.u32 %v3039_v43, 16  ;;  %vm2229_vm6 = vcmask 1042432   ;;  %v3118_v55 = vshll.u32 %v3040_v14, 16  ;;  %4124 = vmatpush.bf16.msrb.mxu1 %v13071_v56 }
  0xd2   : > { %v1405_v18 = vld [vmem:[#allocation2 + $0x54] sm:$0xf]  ;;  %1306 = vmatmul.bf16.gmra.mxu0 %v13004_v38  ;;  %v13961_v58 = vunpack.c.l.b16 %v3107_v35  ;;  %v13964_v27 = vadd.f32 %v1957_v44, %v13902_v36  ;;  %v1621_v1 = vrot.slane %v1620_v42, 4  ;;  %vm2230_vm9 = vcmask 1046532   ;;  %v13989_v39 = vpop.f32.mrf.mxu1  ;;  %v3042_v56 = vld [vmem:[#allocation2 + $0x24] sm:$0xf] }
  0xd3   : > { %v1882_v7 = vpack.c.b16 %v1865_v4, %v1864_v34  ;;  %v1604_v40 = vshrl.u32 %v1405_v18, 16  ;;  %v1607_v28 = vshll.u32 %v1405_v18, 16  ;;  %v2234_v13 = vrot.slane %v13954_v49, 5  ;;  %v13981_v4 = vpop.f32.mrf.mxu2  ;;  %vm13993_vm10 = vmor %vm2229_vm6, %vm2230_vm9 }
  0xd4   : > { %v3111_v15 = vrot.slane %v3109_v50, 4  ;;  %v3114_v16 = vrot.slane %v3112_v52, 5  ;;  %v3122_v41 = vshrl.u32 %v3040_v14, 16  ;;  %v13973_v25 = vrot.slane %v3118_v55, 5  ;;  %16718 = vst [vmem:[#allocation6_spill] sm:$0xff] %v13981_v4  ;;  %v14009_v55 = vpop.f32.mrf.mxu0 }
  0xd5   : > { %2026 = vmatmul.bf16.gmra.mxu3 %v1882_v7  ;;  %v1606_v45 = vrot.slane %v1604_v40, 4  ;;  %v1609_v46 = vrot.slane %v1607_v28, 5  ;;  %v1016_v47 = vld [vmem:[#allocation2 + $0xb4] sm:$0x1]  ;;  %v3517_v33 = vpack.c.b16 %v13961_v58, %v13952_v48  ;;  %v11825_v18 = vrot.slane %v2133_v59, 9  ;;  %4125 = vmatpush.bf16.msrb.mxu1 %v13070_v37 }
  0xd6   : > { %v1017_v53 = vsel %vm13405_vm15, 0, %v1016_v47  ;;  %v1430_v29 = vld [vmem:[#allocation2 + $0xb8] sm:$0xf]  ;;  %v3124_v51 = vrot.slane %v3122_v41, 4  ;;  %v2237_v22 = vrot.slane %v2135_v2, 5  ;;  %v3115_v7 = vor.u32 %v3114_v16, %v3111_v15  ;;  %v13069_v47 = vld [vmem:[%s16703_s1 + $0x140] sm:$0xff] }
  0xd7   : > { %v1610_v54 = vor.u32 %v1609_v46, %v1606_v45  ;;  %1018 = vst [vmem:[#allocation2 + $0xb4] sm:$0x1] %v1017_v53  ;;  %v1407_v60 = vld [vmem:[#allocation2 + $0x5c] sm:$0x1]  ;;  %v1805_v12 = vshll.u32 %v1430_v29, 16  ;;  %v1809_v63 = vshrl.u32 %v1430_v29, 16  ;;  %v13999_v23 = vadd.f32 %v1997_v61, %v13942_v32 }
  0xd8   : > { %v1623_v3 = vshll.u32 %v1407_v60, 16  ;;  %v1065_v62 = vld [vmem:[#allocation2 + $0xbc] sm:$0x1]  ;;  %v2236_v14 = vrot.slane %v2234_v13, 4  ;;  %v3125_v21 = vor.u32 %v3124_v51, %v13973_v25  ;;  %v3128_v44 = vshll.u32 %v3041_v24, 16  ;;  %v14014_v2 = vpop.f32.mrf.mxu3 }
  0xd9   : > { %v1611_v0 = vrot.slane %v1610_v54, 4  ;;  %v1066_v36 = vsel %vm13473_vm8, 0, %v1065_v62  ;;  %v13975_v30 = vrot.slane %v1805_v12, 5  ;;  %v1811_v31 = vrot.slane %v1809_v63, 4  ;;  %16721 = vst [vmem:[#allocation7_spill] sm:$0xff] %v13999_v23  ;;  %4126 = vmatpush.bf16.msrb.mxu1 %v13069_v47  ;;  %v13116_v63 = vld [vmem:[%s16703_s1 + $0x238] sm:$0xff] }
  0xda   : > { %v1625_v10 = vrot.slane %v1623_v3, 5  ;;  %1067 = vst [vmem:[#allocation2 + $0xbc] sm:$0x1] %v1066_v36  ;;  %v2235_v50 = vsel %vm13993_vm10, %v11825_v18, %v2234_v13  ;;  %v3116_v52 = vrot.slane %v3115_v7, 4  ;;  %v2238_v53 = vsel %vm13993_vm10, %v2236_v14, %v2237_v22  ;;  %v3783_v3 = vld [vmem:[#allocation2 + $0x10] sm:$0xf]  ;;  %5766 = vmatpush.bf16.msra.mxu0 %v13116_v63 }
  0xdb   : > { %v1616_v19 = vsel %vm13392_vm14, %v1611_v0, %v1615_v9  ;;  %v13108_v9 = vld [vmem:[%s16703_s1 + $0x1f8] sm:$0xff]  ;;  %v1812_v42 = vor.u32 %v1811_v31, %v13975_v30  ;;  %v3126_v54 = vrot.slane %v3125_v21, 4  ;;  %v3130_v29 = vrot.slane %v3128_v44, 5  ;;  %v3782_v0 = vld [vmem:[#allocation2 + $0xc] sm:$0xe]  ;;  %16722 = vst [vmem:[#allocation8_spill] sm:$0xff] %v14014_v2  ;;  %v1317_v36 = vpop.f32.mrf.mxu2 }
  0xdc   : > { %v1850_v26 = vunpack.c.l.b16 %v1616_v19  ;;  %v1626_v34 = vsel %vm13392_vm14, %v1621_v1, %v1625_v10  ;;  %5244 = vmatpush.bf16.msra.mxu3 %v13108_v9  ;;  %v2361_v1 = vunpack.c.l.b16 %v2235_v50  ;;  %v3784_v59 = vld [vmem:[#allocation2 + $0x14] sm:$0x1]  ;;  %v2362_v15 = vunpack.c.l.b16 %v2238_v53  ;;  %v3043_v41 = vld [vmem:[#allocation2 + $0x28] sm:$0xf]  ;;  %v1962_v19 = vpop.f32.mrf.mxu1  ;;  %v2136_v47 = vld [vmem:[#allocation2 + $0xc] sm:$0xe] }
  0xdd   : > { %v1851_v38 = vunpack.c.l.b16 %v1626_v34  ;;  %v1813_v60 = vrot.slane %v1812_v42, 4  ;;  %v3121_v16 = vsel %vm13392_vm14, %v3116_v52, %v13973_v25  ;;  %v3131_v10 = vsel %vm13392_vm14, %v3126_v54, %v3130_v29  ;;  %v2137_v34 = vld [vmem:[#allocation2 + $0x10] sm:$0xf]  ;;  %v1282_v42 = vpop.f32.mrf.mxu0  ;;  %v3044_v53 = vld [vmem:[#allocation2 + $0x2c] sm:$0x1] }
  0xde   : > { %v13012_v40 = vld [vmem:[#allocation2 + $0xb4] sm:$0xff]  ;;  %v3133_v24 = vshrl.u32 %v3042_v56, 16  ;;  %v12049_v31 = vrot.slane %v3782_v0, 9  ;;  %v3880_v9 = vrot.slane %v3783_v3, 5  ;;  %v3883_v25 = vrot.slane %v3784_v59, 5 }
  0xdf   : > { %v1429_v28 = vld [vmem:[#allocation2 + $0xb4] sm:$0xf]  ;;  %v1875_v35 = vpack.c.b16 %v1851_v38, %v1850_v26  ;;  %1346 = vmatmul.bf16.gmra.mxu2 %v13012_v40  ;;  %v3136_v26 = vshll.u32 %v3042_v56, 16  ;;  %v3142_v38 = vshll.u32 %v3043_v41, 16  ;;  %v3146_v18 = vshrl.u32 %v3043_v41, 16 }
  0xe0   : > { %v1796_v45 = vshrl.u32 %v1429_v28, 16  ;;  %v1799_v46 = vshll.u32 %v1429_v28, 16  ;;  %v3881_v22 = vsel %vm13993_vm10, %v12049_v31, %v3880_v9  ;;  %v3882_v7 = vrot.slane %v3880_v9, 4  ;;  %v3785_v0 = vld [vmem:[#allocation2 + $0x18] sm:$0xe] }
  0xe1   : > { %1991 = vmatmul.bf16.gmra.mxu1 %v1875_v35  ;;  %v1431_v32 = vld [vmem:[#allocation2 + $0xbc] sm:$0x1]  ;;  %v14029_v40 = vadd.f32 %v1962_v19, %v13966_v6  ;;  %v2393_v14 = vpack.c.b16 %v2362_v15, %v2361_v1  ;;  %v4007_v21 = vunpack.c.l.b16 %v3881_v22  ;;  %v3487_v44 = vunpack.c.l.b16 %v3121_v16  ;;  %v2138_v6 = vld [vmem:[#allocation2 + $0x14] sm:$0x1]  ;;  %v3787_v1 = vld [vmem:[#allocation2 + $0x20] sm:$0x1] }
  0xe2   : > { %v1798_v48 = vrot.slane %v1796_v45, 4  ;;  %v1801_v49 = vrot.slane %v1799_v46, 5  ;;  %3605 = vmatmul.bf16.vlgmr.msrb.gmra.mxu0 %v3517_v33  ;;  %v1815_v12 = vshll.u32 %v1431_v32, 16  ;;  %v3488_v35 = vunpack.c.l.b16 %v3131_v10  ;;  %v2002_v32 = vpop.f32.mrf.mxu3 }
  0xe3   : > { %v3135_v45 = vrot.slane %v3133_v24, 4  ;;  %v3884_v46 = vsel %vm13993_vm10, %v3882_v7, %v3883_v25  ;;  %v3148_v50 = vrot.slane %v3146_v18, 4  ;;  %v14033_v54 = vadd.f32 %v2002_v32, %v1317_v36  ;;  %v14037_v15 = vpop.f32.mrf.mxu2  ;;  %v13099_v24 = vld [vmem:[%s16703_s1 + $0x1b0] sm:$0xff] }
  0xe4   : > { %v1802_v58 = vor.u32 %v1801_v49, %v1798_v48  ;;  %v1817_v13 = vrot.slane %v1815_v12, 5  ;;  %v3138_v48 = vrot.slane %v3136_v26, 5  ;;  %v3144_v49 = vrot.slane %v3142_v38, 5  ;;  %v14035_v29 = vpop.f32.mrf.mxu1  ;;  %16724 = vst [vmem:[#allocation10_spill] sm:$0xff] %v14037_v15  ;;  %v3046_v25 = vld [vmem:[#allocation2 + $0x34] sm:$0xf]  ;;  %4499 = vmatpush.bf16.msra.mxu2 %v13099_v24 }
  0xe5   : > { %v4008_v52 = vunpack.c.l.b16 %v3884_v46  ;;  %16723 = vst [vmem:[#allocation9_spill] sm:$0xff] %v14033_v54  ;;  %v11826_v12 = vrot.slane %v2136_v47, 9  ;;  %v2244_v3 = vrot.slane %v2138_v6, 5  ;;  %v12050_v41 = vrot.slane %v3785_v0, 9  ;;  %v2140_v47 = vld [vmem:[#allocation2 + $0x1c] sm:$0xf] }
  0xe6   : > { %v1803_v62 = vrot.slane %v1802_v58, 4  ;;  %v1818_v33 = vsel %vm13392_vm14, %v1813_v60, %v1817_v13  ;;  %v3786_v58 = vld [vmem:[#allocation2 + $0x1c] sm:$0xf]  ;;  %v3518_v60 = vpack.c.b16 %v3488_v35, %v3487_v44  ;;  %v3139_v59 = vor.u32 %v3138_v48, %v3135_v45  ;;  %v2139_v6 = vld [vmem:[#allocation2 + $0x18] sm:$0xe] }
  0xe7   : > { %v1867_v37 = vunpack.c.l.b16 %v1818_v33  ;;  %v4039_v56 = vpack.c.b16 %v4008_v52, %v4007_v21  ;;  %v3152_v13 = vshll.u32 %v3044_v53, 16  ;;  %v3887_v16 = vrot.slane %v3786_v58, 5  ;;  %v13037_v21 = vld [vmem:[#allocation2 + $0xc] sm:$0xff]  ;;  %v3788_v24 = vld [vmem:[#allocation2 + $0x24] sm:$0xe] }
  0xe8   : > { %v1808_v51 = vsel %vm13392_vm14, %v1803_v62, %v13975_v30  ;;  %v2241_v30 = vrot.slane %v2137_v34, 5  ;;  %v3149_v62 = vor.u32 %v3148_v50, %v3144_v49  ;;  %v3890_v19 = vrot.slane %v3787_v1, 5  ;;  %v3045_v34 = vld [vmem:[#allocation2 + $0x30] sm:$0xf]  ;;  %v3789_v1 = vld [vmem:[#allocation2 + $0x28] sm:$0xf] }
  0xe9   : > { %v1866_v61 = vunpack.c.l.b16 %v1808_v51  ;;  %v3889_v36 = vrot.slane %v3887_v16, 4  ;;  %v3140_v31 = vrot.slane %v3139_v59, 4  ;;  %v3154_v33 = vrot.slane %v3152_v13, 5  ;;  %v3047_v59 = vld [vmem:[#allocation2 + $0x38] sm:$0x1] }
  0xea   : > { %v2243_v63 = vrot.slane %v2241_v30, 4  ;;  %v2242_v10 = vsel %vm13993_vm10, %v11826_v12, %v2241_v30  ;;  %v3150_v51 = vrot.slane %v3149_v62, 4  ;;  %v14046_v9 = vpop.f32.mrf.mxu3  ;;  %v3888_v38 = vsel %vm13993_vm10, %v12050_v41, %v3887_v16 }
  0xeb   : > { %v1883_v28 = vpack.c.b16 %v1867_v37, %v1866_v61  ;;  %16725 = vst [vmem:[#allocation11_spill] sm:$0xff] %v14046_v9  ;;  %v14048_v37 = vpop.f32.mrf.mxu0  ;;  %v3891_v18 = vsel %vm13993_vm10, %v3889_v36, %v3890_v19  ;;  %v2363_v7 = vunpack.c.l.b16 %v2242_v10  ;;  %v3160_v30 = vshll.u32 %v3045_v34, 16  ;;  %v1322_v52 = vpop.f32.mrf.mxu2 }
  0xec   : > { %v2245_v26 = vsel %vm13993_vm10, %v2243_v63, %v2244_v3  ;;  %v1967_v61 = vpop.f32.mrf.mxu1  ;;  %v3145_v44 = vsel %vm13392_vm14, %v3140_v31, %v3144_v49  ;;  %v3155_v35 = vsel %vm13392_vm14, %v3150_v51, %v3154_v33  ;;  %v3166_v45 = vshll.u32 %v3046_v25, 16  ;;  %v13107_v49 = vld [vmem:[%s16703_s1 + $0x1f0] sm:$0xff]  ;;  %v2141_v3 = vld [vmem:[#allocation2 + $0x20] sm:$0x1] }
  0xed   : > { %2031 = vmatmul.bf16.gmra.mxu3 %v1883_v28  ;;  %v14054_v22 = vadd.f32 %v1967_v61, %v1282_v42  ;;  %v2364_v28 = vunpack.c.l.b16 %v2245_v26  ;;  %v3170_v46 = vshrl.u32 %v3046_v25, 16  ;;  %v4009_v48 = vunpack.c.l.b16 %v3888_v38  ;;  %v3790_v26 = vld [vmem:[#allocation2 + $0x2c] sm:$0x1] }
  0xee   : > { %v4010_v50 = vunpack.c.l.b16 %v3891_v18  ;;  %v3489_v32 = vunpack.c.l.b16 %v3145_v44  ;;  %v3490_v42 = vunpack.c.l.b16 %v3155_v35  ;;  %v3168_v12 = vrot.slane %v3166_v45, 5  ;;  %5245 = vmatpush.bf16.msra.mxu3 %v13107_v49  ;;  %v3048_v45 = vld [vmem:[#allocation2 + $0x3c] sm:$0xf] }
  0xef   : > { %2481 = vmatmul.bf16.vlgmr.msrb.gmra.mxu2 %v2393_v14  ;;  %v3157_v14 = vshrl.u32 %v3045_v34, 16  ;;  %v2394_v58 = vpack.c.b16 %v2364_v28, %v2363_v7  ;;  %v3172_v63 = vrot.slane %v3170_v46, 4  ;;  %v3894_v41 = vrot.slane %v3789_v1, 5  ;;  %v13115_v28 = vld [vmem:[%s16703_s1 + $0x230] sm:$0xff] }
  0xf0   : > { %v4040_v62 = vpack.c.b16 %v4010_v50, %v4009_v48  ;;  %v3519_v19 = vpack.c.b16 %v3490_v42, %v3489_v32  ;;  %v11827_v10 = vrot.slane %v2139_v6, 9  ;;  %v2251_v33 = vrot.slane %v2141_v3, 5  ;;  %5767 = vmatpush.bf16.msra.mxu0 %v13115_v28 }
  0xf1   : > { %4127 = vmatmul.bf16.vlgmr.msrb.gmra.mxu1 %v4039_v56  ;;  %v3159_v53 = vrot.slane %v3157_v14, 4  ;;  %v3162_v56 = vrot.slane %v3160_v30, 5  ;;  %v3173_v34 = vor.u32 %v3172_v63, %v3168_v12  ;;  %v3176_v25 = vshll.u32 %v3047_v59, 16  ;;  %v2143_v63 = vld [vmem:[#allocation2 + $0x28] sm:$0xf] }
  0xf2   : > { %3610 = vmatmul.bf16.gmra.mxu0 %v3518_v60  ;;  %v2248_v60 = vrot.slane %v2140_v47, 5  ;;  %v2007_v0 = vpop.f32.mrf.mxu3  ;;  %v12051_v61 = vrot.slane %v3788_v24, 9  ;;  %v3896_v38 = vrot.slane %v3894_v41, 4  ;;  %v3897_v18 = vrot.slane %v3790_v26, 5  ;;  %v3049_v47 = vld [vmem:[#allocation2 + $0x40] sm:$0xf] }
  0xf3   : > { %v14063_v13 = vadd.f32 %v2007_v0, %v1322_v52  ;;  %v3163_v36 = vor.u32 %v3162_v56, %v3159_v53  ;;  %v1287_v31 = vpop.f32.mrf.mxu0  ;;  %v3178_v44 = vrot.slane %v3176_v25, 5  ;;  %v14074_v35 = vpop.f32.mrf.mxu2  ;;  %v3181_v56 = vshrl.u32 %v3048_v45, 16  ;;  %v3050_v25 = vld [vmem:[#allocation2 + $0x44] sm:$0x1] }
  0xf4   : > { %v14065_v16 = vpop.f32.mrf.mxu1  ;;  %v2250_v51 = vrot.slane %v2248_v60, 4  ;;  %v2249_v14 = vsel %vm13993_vm10, %v11827_v10, %v2248_v60  ;;  %16727 = vst [vmem:[#allocation13_spill] sm:$0xff] %v14074_v35  ;;  %v3895_v50 = vsel %vm13993_vm10, %v12051_v61, %v3894_v41  ;;  %v3898_v52 = vsel %vm13993_vm10, %v3896_v38, %v3897_v18  ;;  %v3803_v35 = vld [vmem:[#allocation2 + $0x60] sm:$0xe] }
  0xf5   : > { %16726 = vst [vmem:[#allocation12_spill] sm:$0xff] %v14063_v13  ;;  %v3164_v7 = vrot.slane %v3163_v36, 4  ;;  %v2365_v42 = vunpack.c.l.b16 %v2249_v14  ;;  %v3184_v49 = vshll.u32 %v3048_v45, 16  ;;  %v3190_v0 = vshll.u32 %v3049_v47, 16  ;;  %v2142_v36 = vld [vmem:[#allocation2 + $0x24] sm:$0xe] }
  0xf6   : > { %v2252_v30 = vsel %vm13993_vm10, %v2250_v51, %v2251_v33  ;;  %v3194_v1 = vshrl.u32 %v3049_v47, 16  ;;  %v4011_v3 = vunpack.c.l.b16 %v3895_v50  ;;  %v4012_v59 = vunpack.c.l.b16 %v3898_v52  ;;  %v3792_v33 = vld [vmem:[#allocation2 + $0x34] sm:$0xf]  ;;  %v3791_v45 = vld [vmem:[#allocation2 + $0x30] sm:$0xe] }
  0xf7   : > { %v2366_v6 = vunpack.c.l.b16 %v2252_v30  ;;  %v3169_v53 = vsel %vm13392_vm14, %v3164_v7, %v3168_v12  ;;  %v2255_v24 = vrot.slane %v2143_v63, 5  ;;  %v3183_v12 = vrot.slane %v3181_v56, 4  ;;  %v3793_v47 = vld [vmem:[#allocation2 + $0x38] sm:$0x1]  ;;  %v2159_v13 = vld [vmem:[#allocation2 + $0x68] sm:$0x1] }
  0xf8   : > { %v3186_v26 = vrot.slane %v3184_v49, 5  ;;  %v3196_v51 = vrot.slane %v3194_v1, 4  ;;  %v4041_v61 = vpack.c.b16 %v4012_v59, %v4011_v3  ;;  %v3901_v28 = vrot.slane %v3792_v33, 5  ;;  %v3051_v59 = vld [vmem:[#allocation2 + $0x48] sm:$0xf] }
  0xf9   : > { %v2395_v41 = vpack.c.b16 %v2366_v6, %v2365_v42  ;;  %v11828_v30 = vrot.slane %v2142_v36, 9  ;;  %v3200_v42 = vshll.u32 %v3050_v25, 16  ;;  %v12052_v6 = vrot.slane %v3791_v45, 9  ;;  %v2146_v45 = vld [vmem:[#allocation2 + $0x34] sm:$0xf] }
  0xfa   : > { %v14076_v46 = vpop.f32.mrf.mxu3  ;;  %v3187_v50 = vor.u32 %v3186_v26, %v3183_v12  ;;  %v3904_v56 = vrot.slane %v3793_v47, 5  ;;  %v3208_v33 = vshll.u32 %v3051_v59, 16 }
  0xfb   : > { %16728 = vst [vmem:[#allocation14_spill] sm:$0xff] %v14076_v46  ;;  %v3202_v3 = vrot.slane %v3200_v42, 5 }
  0xfc   : > { %v1972_v48 = vpop.f32.mrf.mxu1 }
  0xfd   : > { %2859 = vmatmul.bf16.vlgmr.msrb.gmra.mxu3 %v13037_v21  ;;  %v3174_v21 = vrot.slane %v3173_v34, 4  ;;  %v14082_v32 = vadd.f32 %v1972_v48, %v1287_v31  ;;  %v3192_v31 = vrot.slane %v3190_v0, 5  ;;  %v2144_v34 = vld [vmem:[#allocation2 + $0x2c] sm:$0x1]  ;;  %v3188_v0 = vrot.slane %v3187_v50, 4 }
  0xfe   : > { %v2258_v48 = vrot.slane %v2144_v34, 5  ;;  %v13039_v34 = vld [vmem:[#allocation2 + $0x24] sm:$0xff] }
  0xff   : > { %2486 = vmatmul.bf16.gmra.mxu2 %v2394_v58  ;;  %v13038_v58 = vld [vmem:[#allocation2 + $0x18] sm:$0xff]  ;;  %v3179_v60 = vsel %vm13392_vm14, %v3174_v21, %v3178_v44  ;;  %v2257_v21 = vrot.slane %v2255_v24, 4  ;;  %v3197_v52 = vor.u32 %v3196_v51, %v3192_v31  ;;  %v3205_v51 = vshrl.u32 %v3051_v59, 16 }
 0x100   : > { %v3492_v10 = vunpack.c.l.b16 %v3179_v60  ;;  %v13098_v60 = vld [vmem:[%s16703_s1 + $0x1a8] sm:$0xff]  ;;  %v3193_v25 = vsel %vm13392_vm14, %v3188_v0, %v3192_v31 }
 0x101   : > { %4132 = vmatmul.bf16.gmra.mxu1 %v4040_v62  ;;  %v14088_v62 = vpop.f32.mrf.mxu0  ;;  %v1327_v18 = vpop.f32.mrf.mxu2  ;;  %v2259_v49 = vsel %vm13993_vm10, %v2257_v21, %v2258_v48  ;;  %v3198_v1 = vrot.slane %v3197_v52, 4  ;;  %4500 = vmatpush.bf16.msra.mxu2 %v13098_v60  ;;  %v3493_v47 = vunpack.c.l.b16 %v3193_v25  ;;  %v3207_v50 = vrot.slane %v3205_v51, 4 }
 0x102   : > { %3615 = vmatmul.bf16.gmra.mxu0 %v3519_v19  ;;  %v3491_v19 = vunpack.c.l.b16 %v3169_v53  ;;  %v3903_v53 = vrot.slane %v3901_v28, 4  ;;  %v2368_v26 = vunpack.c.l.b16 %v2259_v49  ;;  %v3210_v52 = vrot.slane %v3208_v33, 5 }
 0x103   : > { %v2262_v60 = vrot.slane %v2146_v45, 5 }
 0x104   : > { %v14090_v38 = vpop.f32.mrf.mxu1  ;;  %v3520_v14 = vpack.c.b16 %v3492_v10, %v3491_v19  ;;  %v3902_v10 = vsel %vm13993_vm10, %v12052_v6, %v3901_v28  ;;  %v3905_v36 = vsel %vm13993_vm10, %v3903_v53, %v3904_v56  ;;  %v13106_v53 = vld [vmem:[%s16703_s1 + $0x1e8] sm:$0xff]  ;;  %v3795_v56 = vld [vmem:[#allocation2 + $0x40] sm:$0xf] }
 0x105   : > { %v4014_v21 = vunpack.c.l.b16 %v3905_v36  ;;  %5246 = vmatpush.bf16.msra.mxu3 %v13106_v53  ;;  %v2264_v51 = vrot.slane %v2262_v60, 4  ;;  %v3055_v53 = vld [vmem:[#allocation2 + $0x58] sm:$0xf] }
 0x109   : > { %v1292_v63 = vpop.f32.mrf.mxu0 }
 0x10d   : > { %2864 = vmatmul.bf16.gmra.mxu3 %v13038_v58  ;;  %v2256_v58 = vsel %vm13993_vm10, %v11828_v30, %v2255_v24  ;;  %v4013_v30 = vunpack.c.l.b16 %v3902_v10  ;;  %v3796_v10 = vld [vmem:[#allocation2 + $0x44] sm:$0x1] }
 0x10e   : > { %v2367_v12 = vunpack.c.l.b16 %v2256_v58  ;;  %v2145_v58 = vld [vmem:[#allocation2 + $0x30] sm:$0xe] }
 0x10f   : > { %v2012_v7 = vpop.f32.mrf.mxu3  ;;  %2491 = vmatmul.bf16.gmra.mxu2 %v2395_v41  ;;  %v3052_v41 = vld [vmem:[#allocation2 + $0x4c] sm:$0xf]  ;;  %v4042_v49 = vpack.c.b16 %v4014_v21, %v4013_v30  ;;  %v11829_v36 = vrot.slane %v2145_v58, 9  ;;  %v3911_v30 = vrot.slane %v3796_v10, 5 }
 0x110   : > { %v14092_v44 = vadd.f32 %v2012_v7, %v1327_v18  ;;  %v14111_v18 = vpop.f32.mrf.mxu2  ;;  %v3214_v7 = vshll.u32 %v3052_v41, 16  ;;  %v3218_v28 = vshrl.u32 %v3052_v41, 16  ;;  %v2396_v42 = vpack.c.b16 %v2368_v26, %v2367_v12 }
 0x111   : > { %4137 = vmatmul.bf16.gmra.mxu1 %v4041_v61  ;;  %v3203_v61 = vsel %vm13392_vm14, %v3198_v1, %v3202_v3  ;;  %16730 = vst [vmem:[#allocation16_spill] sm:$0xff] %v14111_v18  ;;  %v14118_v0 = vpop.f32.mrf.mxu0  ;;  %v2147_v1 = vld [vmem:[#allocation2 + $0x38] sm:$0x1]  ;;  %v3908_v3 = vrot.slane %v3795_v56, 5  ;;  %v3211_v41 = vor.u32 %v3210_v52, %v3207_v50 }
 0x112   : > { %16729 = vst [vmem:[#allocation15_spill] sm:$0xff] %v14092_v44  ;;  %3620 = vmatmul.bf16.gmra.mxu0 %v3520_v14  ;;  %v3494_v48 = vunpack.c.l.b16 %v3203_v61  ;;  %v3216_v6 = vrot.slane %v3214_v7, 5  ;;  %v3220_v31 = vrot.slane %v3218_v28, 4  ;;  %v2265_v33 = vrot.slane %v2147_v1, 5 }
 0x113   : > { %v3910_v28 = vrot.slane %v3908_v3, 4  ;;  %v3212_v21 = vrot.slane %v3211_v41, 4 }
 0x114   : > { %v1977_v19 = vpop.f32.mrf.mxu1  ;;  %v3521_v59 = vpack.c.b16 %v3494_v48, %v3493_v47  ;;  %v3221_v12 = vor.u32 %v3220_v31, %v3216_v6  ;;  %v13114_v47 = vld [vmem:[%s16703_s1 + $0x228] sm:$0xff]  ;;  %v2263_v48 = vsel %vm13993_vm10, %v11829_v36, %v2262_v60  ;;  %v2266_v31 = vsel %vm13993_vm10, %v2264_v51, %v2265_v33  ;;  %v2149_v36 = vld [vmem:[#allocation2 + $0x40] sm:$0xf] }
 0x115   : > { %v14105_v24 = vadd.f32 %v1977_v19, %v1292_v63  ;;  %v3053_v63 = vld [vmem:[#allocation2 + $0x50] sm:$0x1]  ;;  %v3794_v19 = vld [vmem:[#allocation2 + $0x3c] sm:$0xe]  ;;  %5768 = vmatpush.bf16.msra.mxu0 %v13114_v47  ;;  %v3912_v58 = vsel %vm13993_vm10, %v3910_v28, %v3911_v30 }
 0x116   : > { %v3224_v26 = vshll.u32 %v3053_v63, 16  ;;  %v12053_v7 = vrot.slane %v3794_v19, 9  ;;  %v3222_v50 = vrot.slane %v3221_v12, 4  ;;  %v2369_v63 = vunpack.c.l.b16 %v2263_v48 }
 0x117   : > { %v14113_v14 = vpop.f32.mrf.mxu3  ;;  %v2370_v19 = vunpack.c.l.b16 %v2266_v31  ;;  %v3238_v12 = vshll.u32 %v3055_v53, 16  ;;  %v3798_v31 = vld [vmem:[#allocation2 + $0x4c] sm:$0xf] }
 0x118   : > { %16731 = vst [vmem:[#allocation17_spill] sm:$0xff] %v14113_v14  ;;  %v1332_v25 = vpop.f32.mrf.mxu2  ;;  %v3226_v52 = vrot.slane %v3224_v26, 5  ;;  %v3909_v56 = vsel %vm13993_vm10, %v12053_v7, %v3908_v3  ;;  %v3242_v26 = vshrl.u32 %v3055_v53, 16  ;;  %v4016_v3 = vunpack.c.l.b16 %v3912_v58 }
 0x119   : > { %v4015_v51 = vunpack.c.l.b16 %v3909_v56  ;;  %v3240_v47 = vrot.slane %v3238_v12, 5  ;;  %v3915_v53 = vrot.slane %v3798_v31, 5 }
 0x11a   : > { %v3227_v10 = vsel %vm13392_vm14, %v3222_v50, %v3226_v52  ;;  %v3244_v48 = vrot.slane %v3242_v26, 4  ;;  %v2150_v50 = vld [vmem:[#allocation2 + $0x44] sm:$0x1]  ;;  %v3056_v52 = vld [vmem:[#allocation2 + $0x5c] sm:$0x1] }
 0x11b   : > { %v3917_v26 = vrot.slane %v3915_v53, 4 }
 0x11d   : > { %2869 = vmatmul.bf16.gmra.mxu3 %v13039_v34  ;;  %v14120_v34 = vpop.f32.mrf.mxu1  ;;  %v1297_v41 = vpop.f32.mrf.mxu0 }
 0x11f   : > { %2496 = vmatmul.bf16.gmra.mxu2 %v2396_v42  ;;  %v3054_v42 = vld [vmem:[#allocation2 + $0x54] sm:$0xf] }
 0x120   : > { %v3229_v1 = vshrl.u32 %v3054_v42, 16  ;;  %v3232_v60 = vshll.u32 %v3054_v42, 16 }
 0x121   : > { %4142 = vmatmul.bf16.gmra.mxu1 %v4042_v49  ;;  %v3217_v49 = vsel %vm13392_vm14, %v3212_v21, %v3216_v6  ;;  %v2397_v6 = vpack.c.b16 %v2370_v19, %v2369_v63  ;;  %v2148_v21 = vld [vmem:[#allocation2 + $0x3c] sm:$0xe]  ;;  %v3248_v63 = vshll.u32 %v3056_v52, 16  ;;  %v14141_v19 = vpop.f32.mrf.mxu2 }
 0x122   : > { %3625 = vmatmul.bf16.gmra.mxu0 %v3521_v59  ;;  %v13040_v59 = vld [vmem:[#allocation2 + $0x30] sm:$0xff]  ;;  %v3495_v33 = vunpack.c.l.b16 %v3217_v49  ;;  %v3231_v7 = vrot.slane %v3229_v1, 4  ;;  %v3234_v28 = vrot.slane %v3232_v60, 5  ;;  %v11830_v58 = vrot.slane %v2148_v21, 9  ;;  %16733 = vst [vmem:[#allocation19_spill] sm:$0xff] %v14141_v19 }
 0x123   : > { %v2272_v60 = vrot.slane %v2150_v50, 5  ;;  %v2151_v19 = vld [vmem:[#allocation2 + $0x48] sm:$0xe] }
 0x124   : > { %v2017_v61 = vpop.f32.mrf.mxu3  ;;  %v3235_v49 = vor.u32 %v3234_v28, %v3231_v7  ;;  %v3250_v7 = vrot.slane %v3248_v63, 5  ;;  %v3057_v28 = vld [vmem:[#allocation2 + $0x60] sm:$0xf]  ;;  %v2152_v63 = vld [vmem:[#allocation2 + $0x4c] sm:$0xf]  ;;  %v11831_v14 = vrot.slane %v2151_v19, 9 }
 0x125   : > { %v14122_v45 = vadd.f32 %v2017_v61, %v1332_v25  ;;  %v3496_v25 = vunpack.c.l.b16 %v3227_v10  ;;  %v2269_v61 = vrot.slane %v2149_v36, 5  ;;  %v3797_v10 = vld [vmem:[#allocation2 + $0x48] sm:$0xe]  ;;  %v3799_v36 = vld [vmem:[#allocation2 + $0x50] sm:$0x1]  ;;  %v3253_v52 = vshrl.u32 %v3057_v28, 16 }
 0x126   : > { %v12054_v12 = vrot.slane %v3797_v10, 9 }
 0x127   : > { %16732 = vst [vmem:[#allocation18_spill] sm:$0xff] %v14122_v45  ;;  %v4043_v45 = vpack.c.b16 %v4016_v3, %v4015_v51  ;;  %v3522_v56 = vpack.c.b16 %v3496_v25, %v3495_v33  ;;  %v2271_v1 = vrot.slane %v2269_v61, 4  ;;  %v3236_v51 = vrot.slane %v3235_v49, 4 }
 0x128   : > { %v2270_v3 = vsel %vm13993_vm10, %v11830_v58, %v2269_v61  ;;  %v3256_v49 = vshll.u32 %v3057_v28, 16  ;;  %v13105_v28 = vld [vmem:[%s16703_s1 + $0x1e0] sm:$0xff] }
 0x129   : > { %v2273_v33 = vsel %vm13993_vm10, %v2271_v1, %v2272_v60  ;;  %v2371_v31 = vunpack.c.l.b16 %v2270_v3  ;;  %v3241_v61 = vsel %vm13392_vm14, %v3236_v51, %v3240_v47  ;;  %5247 = vmatpush.bf16.msra.mxu3 %v13105_v28 }
 0x12a   : > { %v2372_v50 = vunpack.c.l.b16 %v2273_v33  ;;  %v3258_v33 = vrot.slane %v3256_v49, 5 }
 0x12b   : > { %v1982_v30 = vpop.f32.mrf.mxu1 }
 0x12c   : > { %v14139_v42 = vadd.f32 %v1982_v30, %v1297_v41  ;;  %v14143_v41 = vpop.f32.mrf.mxu0  ;;  %v3918_v30 = vrot.slane %v3799_v36, 5  ;;  %v14149_v21 = vpop.f32.mrf.mxu3  ;;  %v2398_v3 = vpack.c.b16 %v2372_v50, %v2371_v31 }
 0x12d   : > { %2874 = vmatmul.bf16.gmra.mxu3 %v13040_v59  ;;  %v3245_v59 = vor.u32 %v3244_v48, %v3240_v47  ;;  %16734 = vst [vmem:[#allocation20_spill] sm:$0xff] %v14149_v21  ;;  %v3497_v47 = vunpack.c.l.b16 %v3241_v61  ;;  %v2276_v21 = vrot.slane %v2152_v63, 5  ;;  %v3060_v63 = vld [vmem:[#allocation2 + $0x6c] sm:$0xf] }
 0x12e   : > { %v3919_v48 = vsel %vm13993_vm10, %v3917_v26, %v3918_v30  ;;  %v3255_v30 = vrot.slane %v3253_v52, 4  ;;  %v3800_v52 = vld [vmem:[#allocation2 + $0x54] sm:$0xe] }
 0x12f   : > { %2501 = vmatmul.bf16.gmra.mxu2 %v2397_v6  ;;  %v3246_v25 = vrot.slane %v3245_v59, 4  ;;  %v3058_v6 = vld [vmem:[#allocation2 + $0x64] sm:$0xf]  ;;  %v4018_v59 = vunpack.c.l.b16 %v3919_v48  ;;  %v2278_v18 = vrot.slane %v2276_v21, 4 }
 0x130   : > { %v3262_v10 = vshll.u32 %v3058_v6, 16  ;;  %v3266_v36 = vshrl.u32 %v3058_v6, 16  ;;  %v3801_v6 = vld [vmem:[#allocation2 + $0x58] sm:$0xf]  ;;  %v3259_v50 = vor.u32 %v3258_v33, %v3255_v30 }
 0x131   : > { %4147 = vmatmul.bf16.gmra.mxu1 %v4043_v45  ;;  %v3916_v45 = vsel %vm13993_vm10, %v12054_v12, %v3915_v53  ;;  %v3251_v58 = vsel %vm13392_vm14, %v3246_v25, %v3250_v7  ;;  %v13097_v53 = vld [vmem:[%s16703_s1 + $0x1a0] sm:$0xff]  ;;  %v3922_v61 = vrot.slane %v3801_v6, 5 }
 0x132   : > { %3630 = vmatmul.bf16.gmra.mxu0 %v3522_v56  ;;  %v13041_v56 = vld [vmem:[#allocation2 + $0x3c] sm:$0xff]  ;;  %v4017_v60 = vunpack.c.l.b16 %v3916_v45  ;;  %4501 = vmatpush.bf16.msra.mxu2 %v13097_v53  ;;  %v1337_v12 = vpop.f32.mrf.mxu2  ;;  %v3498_v26 = vunpack.c.l.b16 %v3251_v58  ;;  %v3264_v25 = vrot.slane %v3262_v10, 5  ;;  %v3268_v7 = vrot.slane %v3266_v36, 4  ;;  %v3059_v45 = vld [vmem:[#allocation2 + $0x68] sm:$0x1] }
 0x133   : > { %v14162_v1 = vpop.f32.mrf.mxu1  ;;  %v2153_v53 = vld [vmem:[#allocation2 + $0x50] sm:$0x1]  ;;  %v3272_v10 = vshll.u32 %v3059_v45, 16  ;;  %v3260_v30 = vrot.slane %v3259_v50, 4  ;;  %v3277_v45 = vshrl.u32 %v3060_v63, 16 }
 0x134   : > { %v1302_v51 = vpop.f32.mrf.mxu0  ;;  %v4044_v48 = vpack.c.b16 %v4018_v59, %v4017_v60  ;;  %v3523_v58 = vpack.c.b16 %v3498_v26, %v3497_v47  ;;  %v3269_v49 = vor.u32 %v3268_v7, %v3264_v25  ;;  %v2279_v44 = vrot.slane %v2153_v53, 5  ;;  %v3061_v47 = vld [vmem:[#allocation2 + $0x70] sm:$0xf]  ;;  %v13113_v26 = vld [vmem:[%s16703_s1 + $0x220] sm:$0xff] }
 0x135   : > { %v12055_v60 = vrot.slane %v3800_v52, 9  ;;  %v3924_v59 = vrot.slane %v3922_v61, 4  ;;  %v3274_v33 = vrot.slane %v3272_v10, 5  ;;  %v2277_v7 = vsel %vm13993_vm10, %v11831_v14, %v2276_v21  ;;  %5769 = vmatpush.bf16.msra.mxu0 %v13113_v26 }
 0x136   : > { %v2280_v6 = vsel %vm13993_vm10, %v2278_v18, %v2279_v44  ;;  %v3290_v52 = vshrl.u32 %v3061_v47, 16  ;;  %v2373_v50 = vunpack.c.l.b16 %v2277_v7  ;;  %v3265_v14 = vsel %vm13392_vm14, %v3260_v30, %v3264_v25 }
 0x137   : > { %v3279_v18 = vrot.slane %v3277_v45, 4 }
 0x13a   : > { %v14174_v19 = vpop.f32.mrf.mxu2 }
 0x13b   : > { %16736 = vst [vmem:[#allocation22_spill] sm:$0xff] %v14174_v19 }
 0x13c   : > { %v14180_v53 = vpop.f32.mrf.mxu0 }
 0x13d   : > { %2879 = vmatmul.bf16.gmra.mxu3 %v13041_v56  ;;  %v3802_v56 = vld [vmem:[#allocation2 + $0x5c] sm:$0x1] }
 0x13e   : > { %v3925_v46 = vrot.slane %v3802_v56, 5  ;;  %v3923_v56 = vsel %vm13993_vm10, %v12055_v60, %v3922_v61  ;;  %v3292_v61 = vrot.slane %v3290_v52, 4  ;;  %v3499_v60 = vunpack.c.l.b16 %v3265_v14 }
 0x13f   : > { %2506 = vmatmul.bf16.gmra.mxu2 %v2398_v3  ;;  %v3270_v3 = vrot.slane %v3269_v49, 4  ;;  %v2374_v49 = vunpack.c.l.b16 %v2280_v6  ;;  %v4019_v10 = vunpack.c.l.b16 %v3923_v56  ;;  %v2154_v6 = vld [vmem:[#allocation2 + $0x54] sm:$0xe] }
 0x140   : > { %v2022_v31 = vpop.f32.mrf.mxu3  ;;  %v11832_v14 = vrot.slane %v2154_v6, 9 }
 0x141   : > { %v14167_v36 = vadd.f32 %v2022_v31, %v1337_v12  ;;  %4152 = vmatmul.bf16.gmra.mxu1 %v4044_v48  ;;  %v3280_v48 = vshll.u32 %v3060_v63, 16  ;;  %v13042_v31 = vld [vmem:[#allocation2 + $0x48] sm:$0xff]  ;;  %v3275_v44 = vsel %vm13392_vm14, %v3270_v3, %v3274_v33  ;;  %v2156_v33 = vld [vmem:[#allocation2 + $0x5c] sm:$0x1] }
 0x142   : > { %3635 = vmatmul.bf16.gmra.mxu0 %v3523_v58  ;;  %v1987_v28 = vpop.f32.mrf.mxu1  ;;  %v3286_v58 = vshll.u32 %v3061_v47, 16  ;;  %v3062_v47 = vld [vmem:[#allocation2 + $0x74] sm:$0x1]  ;;  %v3500_v19 = vunpack.c.l.b16 %v3275_v44 }
 0x143   : > { %16735 = vst [vmem:[#allocation21_spill] sm:$0xff] %v14167_v36  ;;  %v14172_v12 = vadd.f32 %v1987_v28, %v1302_v51  ;;  %v3926_v51 = vsel %vm13993_vm10, %v3924_v59, %v3925_v46  ;;  %v3282_v21 = vrot.slane %v3280_v48, 5  ;;  %v2155_v28 = vld [vmem:[#allocation2 + $0x58] sm:$0xf]  ;;  %v2399_v46 = vpack.c.b16 %v2374_v49, %v2373_v50  ;;  %v3804_v59 = vld [vmem:[#allocation2 + $0x64] sm:$0xf] }
 0x144   : > { %v4020_v63 = vunpack.c.l.b16 %v3926_v51  ;;  %v3288_v26 = vrot.slane %v3286_v58, 5  ;;  %v2283_v25 = vrot.slane %v2155_v28, 5  ;;  %v3296_v36 = vshll.u32 %v3062_v47, 16  ;;  %v3805_v58 = vld [vmem:[#allocation2 + $0x68] sm:$0x1] }
 0x145   : > { %v3283_v30 = vor.u32 %v3282_v21, %v3279_v18  ;;  %v3929_v48 = vrot.slane %v3804_v59, 5  ;;  %v3524_v51 = vpack.c.b16 %v3500_v19, %v3499_v60  ;;  %v2286_v50 = vrot.slane %v2156_v33, 5  ;;  %v3064_v47 = vld [vmem:[#allocation2 + $0x7c] sm:$0xf] }
 0x146   : > { %v4045_v3 = vpack.c.b16 %v4020_v63, %v4019_v10  ;;  %v3293_v45 = vor.u32 %v3292_v61, %v3288_v26  ;;  %v3298_v44 = vrot.slane %v3296_v36, 5  ;;  %v12056_v28 = vrot.slane %v3803_v35, 9  ;;  %v3063_v63 = vld [vmem:[#allocation2 + $0x78] sm:$0xf] }
 0x147   : > { %v3284_v49 = vrot.slane %v3283_v30, 4  ;;  %v3931_v18 = vrot.slane %v3929_v48, 4  ;;  %v3932_v21 = vrot.slane %v3805_v58, 5  ;;  %v2284_v19 = vsel %vm13993_vm10, %v11832_v14, %v2283_v25  ;;  %v2158_v14 = vld [vmem:[#allocation2 + $0x64] sm:$0xf] }
 0x148   : > { %v14190_v7 = vpop.f32.mrf.mxu3  ;;  %v3930_v35 = vsel %vm13993_vm10, %v12056_v28, %v3929_v48  ;;  %v3301_v6 = vshrl.u32 %v3063_v63, 16  ;;  %v3304_v30 = vshll.u32 %v3063_v63, 16  ;;  %v2157_v28 = vld [vmem:[#allocation2 + $0x60] sm:$0xe] }
 0x149   : > { %16737 = vst [vmem:[#allocation23_spill] sm:$0xff] %v14190_v7  ;;  %v3294_v7 = vrot.slane %v3293_v45, 4  ;;  %v3289_v60 = vsel %vm13392_vm14, %v3284_v49, %v3288_v26  ;;  %v13043_v45 = vld [vmem:[#allocation2 + $0x54] sm:$0xff]  ;;  %v2375_v26 = vunpack.c.l.b16 %v2284_v19  ;;  %v2290_v19 = vrot.slane %v2158_v14, 5 }
 0x14a   : > { %v1342_v56 = vpop.f32.mrf.mxu2  ;;  %v14192_v10 = vpop.f32.mrf.mxu1  ;;  %v3501_v49 = vunpack.c.l.b16 %v3289_v60 }
 0x14b   : > { %16738 = vst [vmem:[#allocation24_spill] sm:$0xff] %v14192_v10  ;;  %v3299_v36 = vsel %vm13392_vm14, %v3294_v7, %v3298_v44  ;;  %v13096_v7 = vld [vmem:[%s16703_s1 + $0x198] sm:$0xff]  ;;  %v2292_v15 = vrot.slane %v2290_v19, 4  ;;  %v2070_v10 = vadd.f32 %v13989_v39, %v13925_v20 }
 0x14c   : > { %v3502_v44 = vunpack.c.l.b16 %v3299_v36  ;;  %4502 = vmatpush.bf16.msra.mxu2 %v13096_v7  ;;  %v11833_v36 = vrot.slane %v2157_v28, 9 }
 0x14d   : > { %2884 = vmatmul.bf16.gmra.mxu3 %v13042_v31  ;;  %v2285_v31 = vrot.slane %v2283_v25, 4  ;;  %v3314_v25 = vshrl.u32 %v3064_v47, 16 }
 0x14f   : > { %v1307_v52 = vpop.f32.mrf.mxu0  ;;  %2511 = vmatmul.bf16.gmra.mxu2 %v2399_v46  ;;  %v2287_v61 = vsel %vm13993_vm10, %v2285_v31, %v2286_v50  ;;  %v3933_v46 = vsel %vm13993_vm10, %v3931_v18, %v3932_v21  ;;  %v4021_v31 = vunpack.c.l.b16 %v3930_v35  ;;  %v3303_v18 = vrot.slane %v3301_v6, 4 }
 0x150   : > { %v2376_v58 = vunpack.c.l.b16 %v2287_v61  ;;  %v4022_v50 = vunpack.c.l.b16 %v3933_v46  ;;  %v3306_v21 = vrot.slane %v3304_v30, 5  ;;  %v3065_v61 = vld [vmem:[#allocation2 + $0x80] sm:$0x1]  ;;  %v3525_v46 = vpack.c.b16 %v3502_v44, %v3501_v49 }
 0x151   : > { %4157 = vmatmul.bf16.gmra.mxu1 %v4045_v3  ;;  %v3310_v3 = vshll.u32 %v3064_v47, 16  ;;  %v3316_v47 = vrot.slane %v3314_v25, 4 }
 0x152   : > { %3640 = vmatmul.bf16.gmra.mxu0 %v3524_v51  ;;  %v1344_v48 = vpop.f32.mrf.mxu2  ;;  %v4046_v35 = vpack.c.b16 %v4022_v50, %v4021_v31  ;;  %v2293_v31 = vrot.slane %v2159_v13, 5  ;;  %v3066_v13 = vld [vmem:[#allocation2 + $0x84] sm:$0xf] }
 0x153   : > { %v3312_v63 = vrot.slane %v3310_v3, 5  ;;  %v3307_v3 = vor.u32 %v3306_v21, %v3303_v18 }
 0x155   : > { %v3317_v25 = vor.u32 %v3316_v47, %v3312_v63  ;;  %v3308_v28 = vrot.slane %v3307_v3, 4  ;;  %v2294_v47 = vsel %vm13993_vm10, %v2292_v15, %v2293_v31  ;;  %v13044_v3 = vld [vmem:[#allocation2 + $0x60] sm:$0xff] }
 0x157   : > { %v14206_v33 = vpop.f32.mrf.mxu0  ;;  %v3318_v18 = vrot.slane %v3317_v25, 4  ;;  %v3313_v15 = vsel %vm13392_vm14, %v3308_v28, %v3312_v63  ;;  %v3325_v25 = vshrl.u32 %v3066_v13, 16 }
 0x158   : > { %v2027_v59 = vpop.f32.mrf.mxu3 }
 0x159   : > { %v14208_v51 = vadd.f32 %v2027_v59, %v1342_v56  ;;  %v2400_v56 = vpack.c.b16 %v2376_v58, %v2375_v26  ;;  %v13104_v59 = vld [vmem:[%s16703_s1 + $0x1d8] sm:$0xff]  ;;  %v3806_v26 = vld [vmem:[#allocation2 + $0x6c] sm:$0xe]  ;;  %v3808_v58 = vld [vmem:[#allocation2 + $0x74] sm:$0x1]  ;;  %v3327_v63 = vrot.slane %v3325_v25, 4 }
 0x15a   : > { %5248 = vmatpush.bf16.msra.mxu3 %v13104_v59  ;;  %v12057_v50 = vrot.slane %v3806_v26, 9  ;;  %v3939_v44 = vrot.slane %v3808_v58, 5 }
 0x15b   : > { %16739 = vst [vmem:[#allocation25_spill] sm:$0xff] %v14208_v51  ;;  %v3807_v51 = vld [vmem:[#allocation2 + $0x70] sm:$0xf] }
 0x15c   : > { %v3936_v7 = vrot.slane %v3807_v51, 5 }
 0x15d   : > { %2889 = vmatmul.bf16.gmra.mxu3 %v13043_v45  ;;  %v3320_v45 = vshll.u32 %v3065_v61, 16 }
 0x15e   : > { %v1992_v60 = vpop.f32.mrf.mxu1  ;;  %v3938_v49 = vrot.slane %v3936_v7, 4 }
 0x15f   : > { %v14216_v30 = vadd.f32 %v1992_v60, %v1307_v52  ;;  %2516 = vmatmul.bf16.gmra.mxu2 %v2400_v56  ;;  %v14218_v14 = vpop.f32.mrf.mxu0  ;;  %v2291_v52 = vsel %vm13993_vm10, %v11833_v36, %v2290_v19  ;;  %v3322_v21 = vrot.slane %v3320_v45, 5  ;;  %v3067_v56 = vld [vmem:[#allocation2 + $0x88] sm:$0xf]  ;;  %v2378_v60 = vunpack.c.l.b16 %v2294_v47  ;;  %v2160_v47 = vld [vmem:[#allocation2 + $0x6c] sm:$0xe] }
 0x160   : > { %v2029_v6 = vpop.f32.mrf.mxu3  ;;  %v2377_v59 = vunpack.c.l.b16 %v2291_v52  ;;  %v3940_v19 = vsel %vm13993_vm10, %v3938_v49, %v3939_v44  ;;  %v3328_v45 = vshll.u32 %v3066_v13, 16  ;;  %v3334_v26 = vshll.u32 %v3067_v56, 16  ;;  %v2162_v13 = vld [vmem:[#allocation2 + $0x74] sm:$0x1] }
 0x161   : > { %16740 = vst [vmem:[#allocation26_spill] sm:$0xff] %v14216_v30  ;;  %v14220_v9 = vadd.f32 %v2029_v6, %v1344_v48  ;;  %4162 = vmatmul.bf16.gmra.mxu1 %v4046_v35  ;;  %v13112_v48 = vld [vmem:[%s16703_s1 + $0x218] sm:$0xff]  ;;  %v3937_v35 = vsel %vm13993_vm10, %v12057_v50, %v3936_v7  ;;  %v3323_v36 = vsel %vm13392_vm14, %v3318_v18, %v3322_v21  ;;  %v3338_v7 = vshrl.u32 %v3067_v56, 16  ;;  %v2161_v50 = vld [vmem:[#allocation2 + $0x70] sm:$0xf] }
 0x162   : > { %v1347_v51 = vpop.f32.mrf.mxu2  ;;  %3645 = vmatmul.bf16.gmra.mxu0 %v3525_v46  ;;  %v4023_v58 = vunpack.c.l.b16 %v3937_v35  ;;  %v4024_v31 = vunpack.c.l.b16 %v3940_v19  ;;  %v3503_v44 = vunpack.c.l.b16 %v3313_v15  ;;  %v3504_v52 = vunpack.c.l.b16 %v3323_v36  ;;  %v3810_v21 = vld [vmem:[#allocation2 + $0x7c] sm:$0xf] }
 0x163   : > { %16741 = vst [vmem:[#allocation27_spill] sm:$0xff] %v14220_v9  ;;  %5770 = vmatpush.bf16.msra.mxu0 %v13112_v48  ;;  %v3330_v28 = vrot.slane %v3328_v45, 5  ;;  %v3336_v48 = vrot.slane %v3334_v26, 5  ;;  %v3340_v18 = vrot.slane %v3338_v7, 4  ;;  %v3068_v9 = vld [vmem:[#allocation2 + $0x8c] sm:$0x1] }
 0x164   : > { %v4047_v54 = vpack.c.b16 %v4024_v31, %v4023_v58  ;;  %v3943_v56 = vrot.slane %v3810_v21, 5  ;;  %v3526_v19 = vpack.c.b16 %v3504_v52, %v3503_v44  ;;  %v11834_v4 = vrot.slane %v2160_v47, 9  ;;  %v3069_v58 = vld [vmem:[#allocation2 + $0x90] sm:$0xf] }
 0x165   : > { %v3341_v25 = vor.u32 %v3340_v18, %v3336_v48  ;;  %v3344_v45 = vshll.u32 %v3068_v9, 16  ;;  %v2300_v7 = vrot.slane %v2162_v13, 5  ;;  %v13140_v9 = vld [vmem:[%s16704_s2 + $0x38] sm:$0xff]  ;;  %v3352_v18 = vshll.u32 %v3069_v58, 16 }
 0x166   : > { %v1994_v61 = vpop.f32.mrf.mxu1  ;;  %6839 = vmatpush.bf16.msra.mxu1 %v13140_v9 }
 0x167   : > { %v14234_v46 = vadd.f32 %v1994_v61, %v14206_v33  ;;  %v14240_v6 = vpop.f32.mrf.mxu0  ;;  %v2401_v33 = vpack.c.b16 %v2378_v60, %v2377_v59  ;;  %v2297_v61 = vrot.slane %v2161_v50, 5  ;;  %v3809_v59 = vld [vmem:[#allocation2 + $0x78] sm:$0xe]  ;;  %v3811_v60 = vld [vmem:[#allocation2 + $0x80] sm:$0x1]  ;;  %v3945_v50 = vrot.slane %v3943_v56, 4 }
 0x168   : > { %v12058_v31 = vrot.slane %v3809_v59, 9  ;;  %v3946_v21 = vrot.slane %v3811_v60, 5  ;;  %v3342_v52 = vrot.slane %v3341_v25, 4  ;;  %v3346_v47 = vrot.slane %v3344_v45, 5 }
 0x169   : > { %16742 = vst [vmem:[#allocation28_spill] sm:$0xff] %v14234_v46  ;;  %v2299_v26 = vrot.slane %v2297_v61, 4  ;;  %v2298_v44 = vsel %vm13993_vm10, %v11834_v4, %v2297_v61 }
 0x16a   : > { %v1349_v49 = vpop.f32.mrf.mxu2  ;;  %v3944_v4 = vsel %vm13993_vm10, %v12058_v31, %v3943_v56  ;;  %v2379_v61 = vunpack.c.l.b16 %v2298_v44  ;;  %v13095_v56 = vld [vmem:[%s16703_s1 + $0x190] sm:$0xff]  ;;  %v3354_v31 = vrot.slane %v3352_v18, 5  ;;  %v3813_v18 = vld [vmem:[#allocation2 + $0x88] sm:$0xf] }
 0x16b   : > { %4503 = vmatpush.bf16.msra.mxu2 %v13095_v56 }
 0x16d   : > { %2894 = vmatmul.bf16.gmra.mxu3 %v13044_v3  ;;  %v3331_v3 = vor.u32 %v3330_v28, %v3327_v63  ;;  %v3070_v63 = vld [vmem:[#allocation2 + $0x94] sm:$0xf]  ;;  %v3349_v28 = vshrl.u32 %v3069_v58, 16 }
 0x16e   : > { %v14242_v2 = vpop.f32.mrf.mxu1 }
 0x16f   : > { %2521 = vmatmul.bf16.gmra.mxu2 %v2401_v33  ;;  %v14246_v36 = vpop.f32.mrf.mxu0  ;;  %v3332_v33 = vrot.slane %v3331_v3, 4  ;;  %v13045_v3 = vld [vmem:[#allocation2 + $0x6c] sm:$0xff]  ;;  %v3351_v58 = vrot.slane %v3349_v28, 4 }
 0x170   : > { %v2032_v35 = vpop.f32.mrf.mxu3  ;;  %v13103_v28 = vld [vmem:[%s16703_s1 + $0x1d0] sm:$0xff] }
 0x171   : > { %v14244_v15 = vadd.f32 %v2032_v35, %v1347_v51  ;;  %4167 = vmatmul.bf16.gmra.mxu1 %v4047_v54  ;;  %v2301_v54 = vsel %vm13993_vm10, %v2299_v26, %v2300_v7  ;;  %v3358_v35 = vshll.u32 %v3070_v63, 16  ;;  %v3337_v45 = vsel %vm13392_vm14, %v3332_v33, %v3336_v48  ;;  %v2164_v7 = vld [vmem:[#allocation2 + $0x7c] sm:$0xf]  ;;  %5249 = vmatpush.bf16.msra.mxu3 %v13103_v28 }
 0x172   : > { %v2482_v23 = vpop.f32.mrf.mxu2  ;;  %3650 = vmatmul.bf16.gmra.mxu0 %v3526_v19  ;;  %v3362_v19 = vshrl.u32 %v3070_v63, 16  ;;  %v2380_v25 = vunpack.c.l.b16 %v2301_v54  ;;  %v3347_v26 = vsel %vm13392_vm14, %v3342_v52, %v3346_v47  ;;  %v3505_v9 = vunpack.c.l.b16 %v3337_v45  ;;  %v3071_v47 = vld [vmem:[#allocation2 + $0x98] sm:$0x1] }
 0x173   : > { %16743 = vst [vmem:[#allocation29_spill] sm:$0xff] %v14244_v15  ;;  %v2594_v51 = vadd.f32 %v2482_v23, %v13964_v27  ;;  %v3947_v27 = vsel %vm13993_vm10, %v3945_v50, %v3946_v21  ;;  %v4025_v50 = vunpack.c.l.b16 %v3944_v4  ;;  %v2163_v21 = vld [vmem:[#allocation2 + $0x78] sm:$0xe]  ;;  %v3506_v63 = vunpack.c.l.b16 %v3347_v26  ;;  %v2165_v4 = vld [vmem:[#allocation2 + $0x80] sm:$0x1] }
 0x174   : > { %v14273_v54 = vrot.slane %v3358_v35, 5  ;;  %v3364_v48 = vrot.slane %v3362_v19, 4  ;;  %v2402_v33 = vpack.c.b16 %v2380_v25, %v2379_v61  ;;  %v2304_v52 = vrot.slane %v2164_v7, 5  ;;  %v3812_v35 = vld [vmem:[#allocation2 + $0x84] sm:$0xe]  ;;  %v203_v15 = vld [vmem:[%s13351_s25 + $0xf8] sm:$0xff] }
 0x175   : > { %v3950_v19 = vrot.slane %v3813_v18, 5  ;;  %v3527_v61 = vpack.c.b16 %v3506_v63, %v3505_v9  ;;  %v3368_v26 = vshll.u32 %v3071_v47, 16  ;;  %v3814_v7 = vld [vmem:[#allocation2 + $0x8c] sm:$0x1]  ;;  %v12059_v28 = vrot.slane %v3812_v35, 9 }
 0x176   : > { %v14256_v13 = vpop.f32.mrf.mxu1  ;;  %v3365_v25 = vor.u32 %v3364_v48, %v14273_v54  ;;  %v3072_v63 = vld [vmem:[#allocation2 + $0x9c] sm:$0xf]  ;;  %v3953_v47 = vrot.slane %v3814_v7, 5  ;;  %vm235_vm12 = vcmp.gt.f32.partialorder %v203_v15, 0.0  ;;  %v3073_v35 = vld [vmem:[#allocation2 + $0xa0] sm:$0xf] }
 0x177   : > { %v14264_v60 = vpop.f32.mrf.mxu0  ;;  %v3952_v48 = vrot.slane %v3950_v19, 4  ;;  %v3370_v18 = vrot.slane %v3368_v26, 5 }
 0x178   : > { %v2034_v23 = vpop.f32.mrf.mxu3 }
 0x179   : > { %v14262_v59 = vadd.f32 %v2034_v23, %v1349_v49  ;;  %v4026_v49 = vunpack.c.l.b16 %v3947_v27  ;;  %v11835_v27 = vrot.slane %v2163_v21, 9  ;;  %v3355_v23 = vor.u32 %v3354_v31, %v3351_v58 }
 0x17a   : > { %v2484_v44 = vpop.f32.mrf.mxu2  ;;  %v2306_v21 = vrot.slane %v2304_v52, 4  ;;  %v2307_v58 = vrot.slane %v2165_v4, 5 }
 0x17b   : > { %16744 = vst [vmem:[#allocation30_spill] sm:$0xff] %v14262_v59  ;;  %v4048_v56 = vpack.c.b16 %v4026_v49, %v4025_v50  ;;  %v202_v59 = vld [vmem:[%s13351_s25 + $0xf0] sm:$0xff]  ;;  %v2305_v50 = vsel %vm13993_vm10, %v11835_v27, %v2304_v52  ;;  %v3356_v49 = vrot.slane %v3355_v23, 4  ;;  %v2595_v20 = vadd.f32 %v2484_v44, %v2070_v10 }
 0x17c   : > { %v266_v31 = vmul.f32 0.1, %v202_v59  ;;  %vm234_vm11 = vcmp.gt.f32.partialorder %v202_v59, 0.0  ;;  %v2381_v23 = vunpack.c.l.b16 %v2305_v50  ;;  %v13046_v50 = vld [vmem:[#allocation2 + $0x78] sm:$0xff] }
 0x17d   : > { %2899 = vmatmul.bf16.gmra.mxu3 %v13045_v3 }
 0x17e   : > { %v14278_v45 = vpop.f32.mrf.mxu1  ;;  %v298_v4 = vsel %vm234_vm11, %v202_v59, %v266_v31  ;;  %v3376_v59 = vshll.u32 %v3072_v63, 16 }
 0x17f   : > { %2526 = vmatmul.bf16.gmra.mxu2 %v2402_v33  ;;  %v14283_v30 = vpop.f32.mrf.mxu0  ;;  %v3366_v33 = vrot.slane %v3365_v25, 4  ;;  %v330_v26 = vpack.c.bf16 %v298_v4, %v298_v4 }
 0x180   : > { %v2860_v3 = vpop.f32.mrf.mxu3 }
 0x181   : > { %v2972_v46 = vadd.f32 %v2860_v3, %v2594_v51  ;;  %4172 = vmatmul.bf16.gmra.mxu1 %v4048_v56  ;;  %v267_v3 = vmul.f32 0.1, %v203_v15  ;;  %v2167_v56 = vld [vmem:[#allocation2 + $0x88] sm:$0xf] }
 0x182   : > { %v2487_v51 = vpop.f32.mrf.mxu2  ;;  %3655 = vmatmul.bf16.gmra.mxu0 %v3527_v61  ;;  %v3373_v61 = vshrl.u32 %v3072_v63, 16  ;;  %v3386_v63 = vshrl.u32 %v3073_v35, 16 }
 0x183   : > { %v3718_v9 = vadd.f32 %v14218_v14, %v2972_v46  ;;  %v2596_v27 = vadd.f32 %v2487_v51, %v14029_v40  ;;  %v2308_v14 = vsel %vm13993_vm10, %v2306_v21, %v2307_v58  ;;  %v13111_v46 = vld [vmem:[%s16703_s1 + $0x210] sm:$0xff]  ;;  %v299_v25 = vsel %vm235_vm12, %v203_v15, %v267_v3 }
 0x184   : > { %5771 = vmatpush.bf16.msra.mxu0 %v13111_v46  ;;  %v3954_v40 = vsel %vm13993_vm10, %v3952_v48, %v3953_v47  ;;  %v2382_v21 = vunpack.c.l.b16 %v2308_v14  ;;  %v3361_v58 = vsel %vm13392_vm14, %v3356_v49, %v14273_v54  ;;  %v3371_v15 = vsel %vm13392_vm14, %v3366_v33, %v3370_v18  ;;  %v2168_v14 = vld [vmem:[#allocation2 + $0x8c] sm:$0x1] }
 0x185   : > { %v14291_v52 = vadd.f32 %v14242_v2, %v3718_v9  ;;  %v3951_v2 = vsel %vm13993_vm10, %v12059_v28, %v3950_v19  ;;  %v331_v10 = vpack.c.bf16 %v299_v25, %v299_v25  ;;  %v2166_v9 = vld [vmem:[#allocation2 + $0x84] sm:$0xe]  ;;  %v2311_v19 = vrot.slane %v2167_v56, 5 }
 0x186   : > { %v14300_v39 = vpop.f32.mrf.mxu1  ;;  %v3382_v28 = vshll.u32 %v3073_v35, 16  ;;  %v3375_v48 = vrot.slane %v3373_v61, 4  ;;  %v3378_v47 = vrot.slane %v3376_v59, 5  ;;  %v4027_v51 = vunpack.c.l.b16 %v3951_v2  ;;  %v3816_v59 = vld [vmem:[#allocation2 + $0x94] sm:$0xf] }
 0x187   : > { %16745 = vst [vmem:[#allocation31_spill] sm:$0xff] %v14291_v52  ;;  %v14311_v31 = vpop.f32.mrf.mxu0  ;;  %v4028_v3 = vunpack.c.l.b16 %v3954_v40  ;;  %v394_v54 = vunpack.c.l.b16 %v330_v26  ;;  %v3507_v46 = vunpack.c.l.b16 %v3361_v58  ;;  %v3508_v33 = vunpack.c.l.b16 %v3371_v15  ;;  %v3815_v58 = vld [vmem:[#allocation2 + $0x90] sm:$0xe] }
 0x188   : > { %v2862_v7 = vpop.f32.mrf.mxu3  ;;  %v11836_v18 = vrot.slane %v2166_v9, 9  ;;  %v395_v25 = vunpack.c.l.b16 %v331_v10  ;;  %v2403_v56 = vpack.c.b16 %v2382_v21, %v2381_v23  ;;  %v14317_v35 = vrot.slane %v3382_v28, 5 }
 0x189   : > { %v2973_v44 = vadd.f32 %v2862_v7, %v2595_v20  ;;  %v3074_v7 = vld [vmem:[#allocation2 + $0xa4] sm:$0x1]  ;;  %v3388_v61 = vrot.slane %v3386_v63, 4  ;;  %v2313_v2 = vrot.slane %v2311_v19, 4  ;;  %v2314_v40 = vrot.slane %v2168_v14, 5 }
 0x18a   : > { %v2489_v49 = vpop.f32.mrf.mxu2  ;;  %v3957_v15 = vrot.slane %v3816_v59, 5  ;;  %v411_v9 = vpack.c.b16 %v395_v25, %v394_v54  ;;  %v3528_v52 = vpack.c.b16 %v3508_v33, %v3507_v46  ;;  %v14325_v21 = vsel %vm13993_vm10, %v11836_v18, %v2311_v19  ;;  %v3075_v59 = vld [vmem:[#allocation2 + $0xa8] sm:$0xf] }
 0x18b   : > { %v3719_v4 = vadd.f32 %v14240_v6, %v2973_v44  ;;  %v3379_v6 = vor.u32 %v3378_v47, %v3375_v48  ;;  %v4049_v44 = vpack.c.b16 %v4028_v3, %v4027_v51  ;;  %v3389_v28 = vor.u32 %v3388_v61, %v14317_v35 }
 0x18c   : > { %v445_v63 = vsel %vm412_vm2, %v411_v9, 0  ;;  %v2315_v48 = vsel %vm13993_vm10, %v2313_v2, %v2314_v40  ;;  %v12060_v51 = vrot.slane %v3815_v58, 9  ;;  %v3959_v14 = vrot.slane %v3957_v15, 4 }
 0x18d   : > { %v14315_v20 = vadd.f32 %v14256_v13, %v3719_v4  ;;  %2904 = vmatmul.bf16.gmra.mxu3 %v13046_v50  ;;  %v3392_v13 = vshll.u32 %v3074_v7, 16  ;;  %v3817_v4 = vld [vmem:[#allocation2 + $0x98] sm:$0x1]  ;;  %v3380_v47 = vrot.slane %v3379_v6, 4  ;;  %v492_v3 = vunpack.c.l.b16 %v445_v63 }
 0x18e   : > { %v14319_v26 = vpop.f32.mrf.mxu1  ;;  %v3960_v54 = vrot.slane %v3817_v4, 5  ;;  %v493_v46 = vunpack.c.h.b16 %v445_v63  ;;  %v2072_v19 = vadd.f32 %v14035_v29, %v14009_v55  ;;  %v3390_v7 = vrot.slane %v3389_v28, 4  ;;  %v3076_v29 = vld [vmem:[#allocation2 + $0xac] sm:$0xf]  ;;  %v13047_v28 = vld [vmem:[#allocation2 + $0x84] sm:$0xff] }
 0x18f   : > { %2531 = vmatmul.bf16.gmra.mxu2 %v2403_v56  ;;  %v14321_v23 = vpop.f32.mrf.mxu0  ;;  %v524_v18 = vpack.c.b16 %v492_v3, %v492_v3  ;;  %v3394_v61 = vrot.slane %v3392_v13, 5  ;;  %v2383_v2 = vunpack.c.l.b16 %v14325_v21  ;;  %v2384_v40 = vunpack.c.l.b16 %v2315_v48 }
 0x190   : > { %v2865_v10 = vpop.f32.mrf.mxu3  ;;  %v3385_v55 = vsel %vm13392_vm14, %v3380_v47, %v14317_v35  ;;  %v3961_v58 = vsel %vm13993_vm10, %v3959_v14, %v3960_v54  ;;  %v14355_v9 = vpack.c.b16 %v493_v46, %v493_v46  ;;  %v3397_v13 = vshrl.u32 %v3075_v59, 16  ;;  %v13094_v47 = vld [vmem:[%s16703_s1 + $0x188] sm:$0xff]  ;;  %v2169_v46 = vld [vmem:[#allocation2 + $0x90] sm:$0xe] }
 0x191   : > { %v2974_v50 = vadd.f32 %v2865_v10, %v2596_v27  ;;  %4177 = vmatmul.bf16.gmra.mxu1 %v4049_v44  ;;  %v3958_v44 = vsel %vm13993_vm10, %v12060_v51, %v3957_v15  ;;  %v3400_v4 = vshll.u32 %v3075_v59, 16  ;;  %v3395_v63 = vsel %vm13392_vm14, %v3390_v7, %v3394_v61  ;;  %4504 = vmatpush.bf16.msra.mxu2 %v13094_v47  ;;  %v3077_v61 = vld [vmem:[#allocation2 + $0xb0] sm:$0x1] }
 0x192   : > { %v2492_v33 = vpop.f32.mrf.mxu2  ;;  %3660 = vmatmul.bf16.gmra.mxu0 %v3528_v52  ;;  %v2597_v52 = vadd.f32 %v2489_v49, %v2072_v19  ;;  %v3406_v48 = vshll.u32 %v3076_v29, 16  ;;  %v3410_v15 = vshrl.u32 %v3076_v29, 16  ;;  %v4029_v3 = vunpack.c.l.b16 %v3958_v44  ;;  %v2171_v19 = vld [vmem:[#allocation2 + $0x98] sm:$0x1]  ;;  %v13102_v44 = vld [vmem:[%s16703_s1 + $0x1c8] sm:$0xff] }
 0x193   : > { %v3720_v27 = vadd.f32 %v14246_v36, %v2974_v50  ;;  %v14338_v56 = vadd.f32 %v2492_v33, %v14054_v22  ;;  %v13139_v36 = vld [vmem:[%s16704_s2 + $0x30] sm:$0xff]  ;;  %v788_v50 = vshll.u32 %v524_v18, 16  ;;  %v3509_v54 = vunpack.c.l.b16 %v3385_v55  ;;  %5250 = vmatpush.bf16.msra.mxu3 %v13102_v44 }
 0x194   : > { %v14349_v22 = vld [vmem:[#allocation2 + $0x94] sm:$0xf]  ;;  %6840 = vmatpush.bf16.msra.mxu1 %v13139_v36  ;;  %v793_v33 = vshrl.u32 %v14355_v9, 16  ;;  %v3510_v7 = vunpack.c.l.b16 %v3395_v63  ;;  %v3399_v36 = vrot.slane %v3397_v13, 4  ;;  %v3402_v59 = vrot.slane %v3400_v4, 5 }
 0x195   : > { %v14335_v25 = vadd.f32 %v14278_v45, %v3720_v27  ;;  %v785_v45 = vshrl.u32 %v524_v18, 16  ;;  %v2318_v51 = vrot.slane %v14349_v22, 5  ;;  %v4030_v27 = vunpack.c.l.b16 %v3961_v58  ;;  %v3819_v58 = vld [vmem:[#allocation2 + $0xa0] sm:$0xf] }
 0x196   : > { %v14347_v6 = vpop.f32.mrf.mxu1  ;;  %v2404_v22 = vpack.c.b16 %v2384_v40, %v2383_v2  ;;  %v3412_v55 = vrot.slane %v3410_v15, 4  ;;  %v2321_v13 = vrot.slane %v2171_v19, 5  ;;  %v795_v47 = vrot.slane %v793_v33, 7  ;;  %v3818_v15 = vld [vmem:[#allocation2 + $0x9c] sm:$0xe] }
 0x197   : > { %v14357_v35 = vrot.slane %v785_v45, 7  ;;  %v14359_v21 = vpop.f32.mrf.mxu0  ;;  %v960_v45 = vld [vmem:[#allocation2 + $0xc0] sm:$0xf]  ;;  %v4050_v4 = vpack.c.b16 %v4030_v27, %v4029_v3  ;;  %v796_v27 = vshll.u32 %v14355_v9, 16 }
 0x198   : > { %v2867_v10 = vpop.f32.mrf.mxu3 }
 0x199   : > { %v2975_v49 = vadd.f32 %v2867_v10, %v2597_v52  ;;  %v790_v29 = vor.u32 %v788_v50, %v14357_v35  ;;  %v11837_v10 = vrot.slane %v2169_v46, 9  ;;  %v3416_v50 = vshll.u32 %v3077_v61, 16  ;;  %v964_v61 = vld [vmem:[#allocation2 + $0xc8] sm:$0x1] }
 0x19a   : > { %v2494_v18 = vpop.f32.mrf.mxu2  ;;  %v798_v44 = vor.u32 %v796_v27, %v795_v47 }
 0x19b   : > { %v3721_v14 = vadd.f32 %v14264_v60, %v2975_v49  ;;  %v14373_v60 = vrot.slane %v3406_v48, 5  ;;  %v2320_v49 = vrot.slane %v2318_v51, 4  ;;  %v961_v2 = vsel %vm13426_vm3, %v790_v29, %v960_v45 }
 0x19c   : > { %v3403_v48 = vor.u32 %v3402_v59, %v3399_v36  ;;  %962 = vst [vmem:[#allocation2 + $0xc0] sm:$0xf] %v961_v2  ;;  %v2319_v33 = vsel %vm13993_vm10, %v11837_v10, %v2318_v51  ;;  %v800_v36 = vrot.slane %v795_v47, 4  ;;  %v12061_v59 = vrot.slane %v3818_v15, 9  ;;  %v2173_v15 = vld [vmem:[#allocation2 + $0xa0] sm:$0xf] }
 0x19d   : > { %v14371_v52 = vadd.f32 %v14300_v39, %v3721_v14  ;;  %2909 = vmatmul.bf16.gmra.mxu3 %v13047_v28  ;;  %v3964_v39 = vrot.slane %v3819_v58, 5  ;;  %v3529_v28 = vpack.c.b16 %v3510_v7, %v3509_v54  ;;  %v3820_v14 = vld [vmem:[#allocation2 + $0xa4] sm:$0x1]  ;;  %v3413_v3 = vor.u32 %v3412_v55, %v14373_v60 }
 0x19e   : > { %v14378_v63 = vpop.f32.mrf.mxu1  ;;  %v2322_v54 = vsel %vm13993_vm10, %v2320_v49, %v2321_v13  ;;  %v791_v7 = vrot.slane %v14357_v35, 4  ;;  %v3967_v45 = vrot.slane %v3820_v14, 5  ;;  %v3404_v55 = vrot.slane %v3403_v48, 4  ;;  %v3078_v49 = vld [vmem:[#allocation2 + $0xb4] sm:$0xf]  ;;  %v13110_v13 = vld [vmem:[%s16703_s1 + $0x208] sm:$0xff] }
 0x19f   : > { %2536 = vmatmul.bf16.gmra.mxu2 %v2404_v22  ;;  %v14383_v19 = vpop.f32.mrf.mxu0  ;;  %v3966_v29 = vrot.slane %v3964_v39, 4  ;;  %v3418_v9 = vrot.slane %v3416_v50, 5  ;;  %v965_v51 = vsel %vm13405_vm15, %v800_v36, %v964_v61  ;;  %v2074_v58 = vadd.f32 %v14065_v16, %v14048_v37  ;;  %v3079_v50 = vld [vmem:[#allocation2 + $0xb8] sm:$0xf]  ;;  %5772 = vmatpush.bf16.msra.mxu0 %v13110_v13 }
 0x1a0   : > { %v2870_v40 = vpop.f32.mrf.mxu3  ;;  %966 = vst [vmem:[#allocation2 + $0xc8] sm:$0x1] %v965_v51  ;;  %v799_v47 = vsel %vm13414_vm1, %v791_v7, %v798_v44  ;;  %v3965_v16 = vsel %vm13993_vm10, %v12061_v59, %v3964_v39  ;;  %v3409_v48 = vsel %vm13392_vm14, %v3404_v55, %v14373_v60  ;;  %v3421_v14 = vshrl.u32 %v3078_v49, 16  ;;  %v13048_v39 = vld [vmem:[#allocation2 + $0x90] sm:$0xff] }
 0x1a1   : > { %v2976_v46 = vadd.f32 %v2870_v40, %v14338_v56  ;;  %4182 = vmatmul.bf16.gmra.mxu1 %v4050_v4  ;;  %v2385_v4 = vunpack.c.l.b16 %v2319_v33  ;;  %v2599_v2 = vadd.f32 %v2494_v18, %v2074_v58  ;;  %v2386_v40 = vunpack.c.l.b16 %v2322_v54  ;;  %963 = vst [vmem:[#allocation2 + $0xc4] sm:$0xf] %v799_v47  ;;  %v3080_v47 = vld [vmem:[#allocation2 + $0xbc] sm:$0x1] }
 0x1a2   : > { %v2497_v22 = vpop.f32.mrf.mxu2  ;;  %3665 = vmatmul.bf16.gmra.mxu0 %v3529_v28  ;;  %v3424_v18 = vshll.u32 %v3078_v49, 16  ;;  %v3430_v33 = vshll.u32 %v3079_v50, 16  ;;  %v3434_v54 = vshrl.u32 %v3079_v50, 16  ;;  %v4031_v7 = vunpack.c.l.b16 %v3965_v16  ;;  %v3822_v50 = vld [vmem:[#allocation2 + $0xac] sm:$0xf] }
 0x1a3   : > { %v3722_v56 = vadd.f32 %v14283_v30, %v2976_v46  ;;  %v2600_v35 = vadd.f32 %v2497_v22, %v14082_v32  ;;  %v3414_v30 = vrot.slane %v3413_v3, 4  ;;  %v3968_v32 = vsel %vm13993_vm10, %v3966_v29, %v3967_v45  ;;  %v2172_v22 = vld [vmem:[#allocation2 + $0x9c] sm:$0xe] }
 0x1a4   : > { %v4032_v36 = vunpack.c.l.b16 %v3968_v32  ;;  %v3511_v29 = vunpack.c.l.b16 %v3409_v48  ;;  %v3423_v55 = vrot.slane %v3421_v14, 4  ;;  %v3426_v44 = vrot.slane %v3424_v18, 5  ;;  %v3823_v14 = vld [vmem:[#allocation2 + $0xb0] sm:$0x1] }
 0x1a5   : > { %v14398_v10 = vadd.f32 %v14319_v26, %v3722_v56  ;;  %v1019_v26 = vld [vmem:[#allocation2 + $0xc0] sm:$0x1]  ;;  %v3419_v61 = vsel %vm13392_vm14, %v3414_v30, %v3418_v9  ;;  %v2325_v56 = vrot.slane %v2173_v15, 5  ;;  %v2405_v9 = vpack.c.b16 %v2386_v40, %v2385_v4  ;;  %v2174_v30 = vld [vmem:[#allocation2 + $0xa4] sm:$0x1] }
 0x1a6   : > { %v14406_v37 = vpop.f32.mrf.mxu1  ;;  %v1020_v46 = vsel %vm13405_vm15, 0, %v1019_v26  ;;  %v3512_v45 = vunpack.c.l.b16 %v3419_v61  ;;  %v14425_v49 = vrot.slane %v3430_v33, 5  ;;  %v3436_v13 = vrot.slane %v3434_v54, 4  ;;  %v3821_v40 = vld [vmem:[#allocation2 + $0xa8] sm:$0xe] }
 0x1a7   : > { %v14417_v27 = vpop.f32.mrf.mxu0  ;;  %1021 = vst [vmem:[#allocation2 + $0xc0] sm:$0x1] %v1020_v46  ;;  %v1068_v51 = vld [vmem:[#allocation2 + $0xc8] sm:$0x1]  ;;  %v11838_v16 = vrot.slane %v2172_v22, 9  ;;  %v3971_v26 = vrot.slane %v3822_v50, 5  ;;  %v3427_v4 = vor.u32 %v3426_v44, %v3423_v55 }
 0x1a8   : > { %v2872_v28 = vpop.f32.mrf.mxu3  ;;  %v2327_v48 = vrot.slane %v2325_v56, 4  ;;  %v2328_v15 = vrot.slane %v2174_v30, 5  ;;  %v12062_v33 = vrot.slane %v3821_v40, 9 }
 0x1a9   : > { %v2977_v3 = vadd.f32 %v2872_v28, %v2599_v2  ;;  %v1069_v2 = vsel %vm13473_vm8, 0, %v1068_v51  ;;  %v3973_v54 = vrot.slane %v3971_v26, 4 }
 0x1aa   : > { %v2499_v59 = vpop.f32.mrf.mxu2  ;;  %1070 = vst [vmem:[#allocation2 + $0xc8] sm:$0x1] %v1069_v2 }
 0x1ab   : > { %v3723_v60 = vadd.f32 %v14311_v31, %v2977_v3  ;;  %v4051_v31 = vpack.c.b16 %v4032_v36, %v4031_v7  ;;  %v3437_v3 = vor.u32 %v3436_v13, %v14425_v49  ;;  %v3974_v7 = vrot.slane %v3823_v14, 5 }
 0x1ac   : > { %v2076_v36 = vadd.f32 %v14090_v38, %v14088_v62  ;;  %v13138_v62 = vld [vmem:[%s16704_s2 + $0x28] sm:$0xff]  ;;  %v3082_v38 = vld [vmem:[#allocation2 + $0xc4] sm:$0xf]  ;;  %v3972_v13 = vsel %vm13993_vm10, %v12062_v33, %v3971_v26 }
 0x1ad   : > { %v14423_v58 = vadd.f32 %v14347_v6, %v3723_v60  ;;  %2914 = vmatmul.bf16.gmra.mxu3 %v13048_v39  ;;  %v3530_v6 = vpack.c.b16 %v3512_v45, %v3511_v29  ;;  %v3440_v39 = vshll.u32 %v3080_v47, 16  ;;  %v2329_v29 = vsel %vm13993_vm10, %v2327_v48, %v2328_v15  ;;  %6841 = vmatpush.bf16.msra.mxu1 %v13138_v62  ;;  %v13093_v15 = vld [vmem:[%s16703_s1 + $0x180] sm:$0xff]  ;;  %v2177_v62 = vld [vmem:[#allocation2 + $0xb0] sm:$0x1] }
 0x1ae   : > { %v14429_v32 = vpop.f32.mrf.mxu1  ;;  %v3428_v45 = vrot.slane %v3427_v4, 4  ;;  %v3438_v55 = vrot.slane %v3437_v3, 4  ;;  %v3081_v51 = vld [vmem:[#allocation2 + $0xc0] sm:$0xf]  ;;  %v2388_v50 = vunpack.c.l.b16 %v2329_v29  ;;  %v3458_v2 = vshrl.u32 %v3082_v38, 16  ;;  %4505 = vmatpush.bf16.msra.mxu2 %v13093_v15 }
 0x1af   : > { %2541 = vmatmul.bf16.gmra.mxu2 %v2405_v9  ;;  %v14431_v46 = vpop.f32.mrf.mxu0  ;;  %v3442_v44 = vrot.slane %v3440_v39, 5  ;;  %v2601_v9 = vadd.f32 %v2499_v59, %v2076_v36  ;;  %v3445_v48 = vshrl.u32 %v3081_v51, 16  ;;  %v3448_v26 = vshll.u32 %v3081_v51, 16  ;;  %v3825_v29 = vld [vmem:[#allocation2 + $0xb8] sm:$0xf] }
 0x1b0   : > { %v2875_v28 = vpop.f32.mrf.mxu3  ;;  %v3433_v47 = vsel %vm13392_vm14, %v3428_v45, %v14425_v49  ;;  %v4033_v4 = vunpack.c.l.b16 %v3972_v13  ;;  %v2176_v49 = vld [vmem:[#allocation2 + $0xac] sm:$0xf]  ;;  %v3978_v51 = vrot.slane %v3825_v29, 5 }
 0x1b1   : > { %v2978_v18 = vadd.f32 %v2875_v28, %v2600_v35  ;;  %4187 = vmatmul.bf16.gmra.mxu1 %v4051_v31  ;;  %v2326_v35 = vsel %vm13993_vm10, %v11838_v16, %v2325_v56  ;;  %v3454_v31 = vshll.u32 %v3082_v38, 16  ;;  %v13049_v28 = vld [vmem:[#allocation2 + $0x9c] sm:$0xff]  ;;  %v3513_v3 = vunpack.c.l.b16 %v3433_v47 }
 0x1b2   : > { %v2502_v60 = vpop.f32.mrf.mxu2  ;;  %3670 = vmatmul.bf16.gmra.mxu0 %v3530_v6  ;;  %v2387_v30 = vunpack.c.l.b16 %v2326_v35  ;;  %v3443_v6 = vsel %vm13392_vm14, %v3438_v55, %v3442_v44  ;;  %v3450_v35 = vrot.slane %v3448_v26, 5  ;;  %v2332_v45 = vrot.slane %v2176_v49, 5  ;;  %v3083_v55 = vld [vmem:[#allocation2 + $0xc8] sm:$0x1] }
 0x1b3   : > { %v3724_v61 = vadd.f32 %v14321_v23, %v2978_v18  ;;  %v2602_v23 = vadd.f32 %v2502_v60, %v14105_v24  ;;  %v3514_v39 = vunpack.c.l.b16 %v3443_v6  ;;  %v14465_v33 = vrot.slane %v3454_v31, 5 }
 0x1b4   : > { %v2406_v36 = vpack.c.b16 %v2388_v50, %v2387_v30  ;;  %v3447_v60 = vrot.slane %v3445_v48, 4  ;;  %v3826_v50 = vld [vmem:[#allocation2 + $0xbc] sm:$0x1]  ;;  %v2335_v6 = vrot.slane %v2177_v62, 5  ;;  %v3980_v15 = vrot.slane %v3978_v51, 4 }
 0x1b5   : > { %v14442_v22 = vadd.f32 %v14378_v63, %v3724_v61  ;;  %v3975_v63 = vsel %vm13993_vm10, %v3973_v54, %v3974_v7  ;;  %v2175_v61 = vld [vmem:[#allocation2 + $0xa8] sm:$0xe]  ;;  %v3460_v54 = vrot.slane %v3458_v2, 4  ;;  %v3531_v30 = vpack.c.b16 %v3514_v39, %v3513_v3 }
 0x1b6   : > { %v14448_v56 = vpop.f32.mrf.mxu1  ;;  %v4034_v40 = vunpack.c.l.b16 %v3975_v63  ;;  %v11839_v13 = vrot.slane %v2175_v61, 9  ;;  %v3451_v2 = vor.u32 %v3450_v35, %v3447_v60 }
 0x1b7   : > { %v14457_v59 = vpop.f32.mrf.mxu0  ;;  %v3461_v63 = vor.u32 %v3460_v54, %v14465_v33 }
 0x1b8   : > { %v2877_v24 = vpop.f32.mrf.mxu3  ;;  %v4052_v44 = vpack.c.b16 %v4034_v40, %v4033_v4  ;;  %v3981_v4 = vrot.slane %v3826_v50, 5  ;;  %v2078_v40 = vadd.f32 %v14120_v34, %v14118_v0  ;;  %v3452_v61 = vrot.slane %v3451_v2, 4 }
 0x1b9   : > { %v2979_v16 = vadd.f32 %v2877_v24, %v2601_v9  ;;  %v3824_v24 = vld [vmem:[#allocation2 + $0xb4] sm:$0xe]  ;;  %v3462_v49 = vrot.slane %v3461_v63, 4 }
 0x1ba   : > { %v2504_v18 = vpop.f32.mrf.mxu2  ;;  %v12063_v26 = vrot.slane %v3824_v24, 9  ;;  %v3982_v34 = vsel %vm13993_vm10, %v3980_v15, %v3981_v4  ;;  %v3827_v15 = vld [vmem:[#allocation2 + $0xc0] sm:$0xe]  ;;  %v3829_v4 = vld [vmem:[#allocation2 + $0xc8] sm:$0x1] }
 0x1bb   : > { %v3725_v14 = vadd.f32 %v14359_v21, %v2979_v16  ;;  %v13101_v21 = vld [vmem:[%s16703_s1 + $0x1c0] sm:$0xff]  ;;  %v3464_v16 = vshll.u32 %v3083_v55, 16  ;;  %v3457_v55 = vsel %vm13392_vm14, %v3452_v61, %v14465_v33  ;;  %v4036_v62 = vunpack.c.l.b16 %v3982_v34 }
 0x1bc   : > { %5251 = vmatpush.bf16.msra.mxu3 %v13101_v21  ;;  %v3979_v0 = vsel %vm13993_vm10, %v12063_v26, %v3978_v51  ;;  %v3828_v33 = vld [vmem:[#allocation2 + $0xc4] sm:$0xf] }
 0x1bd   : > { %v14468_v7 = vadd.f32 %v14406_v37, %v3725_v14  ;;  %2919 = vmatmul.bf16.gmra.mxu3 %v13049_v28  ;;  %v13109_v37 = vld [vmem:[%s16703_s1 + $0x200] sm:$0xff]  ;;  %v2334_v28 = vrot.slane %v2332_v45, 4  ;;  %v3466_v54 = vrot.slane %v3464_v16, 5  ;;  %v5430_v16 = vld [vmem:[#allocation2 + $0x1c] sm:$0xf]  ;;  %v3985_v26 = vrot.slane %v3828_v33, 5 }
 0x1be   : > { %v14473_v38 = vpop.f32.mrf.mxu1  ;;  %5773 = vmatpush.bf16.msra.mxu0 %v13109_v37  ;;  %v2080_v37 = vadd.f32 %v14162_v1, %v14143_v41 }
 0x1bf   : > { %2546 = vmatmul.bf16.gmra.mxu2 %v2406_v36  ;;  %v14479_v31 = vpop.f32.mrf.mxu0  ;;  %v2603_v36 = vadd.f32 %v2504_v18, %v2078_v40  ;;  %v3467_v18 = vsel %vm13392_vm14, %v3462_v49, %v3466_v54  ;;  %v5527_v49 = vrot.slane %v5430_v16, 5  ;;  %v3987_v34 = vrot.slane %v3985_v26, 4 }
 0x1c0   : > { %v2880_v9 = vpop.f32.mrf.mxu3  ;;  %v3516_v63 = vunpack.c.l.b16 %v3467_v18 }
 0x1c1   : > { %v2980_v47 = vadd.f32 %v2880_v9, %v2602_v23  ;;  %4192 = vmatmul.bf16.gmra.mxu1 %v4052_v44  ;;  %v2333_v23 = vsel %vm13993_vm10, %v11839_v13, %v2332_v45  ;;  %v4035_v44 = vunpack.c.l.b16 %v3979_v0  ;;  %v2179_v9 = vld [vmem:[#allocation2 + $0xb8] sm:$0xf]  ;;  %v3515_v13 = vunpack.c.l.b16 %v3457_v55 }
 0x1c2   : > { %v2507_v14 = vpop.f32.mrf.mxu2  ;;  %3675 = vmatmul.bf16.gmra.mxu0 %v3531_v30  ;;  %v2389_v21 = vunpack.c.l.b16 %v2333_v23  ;;  %v2339_v2 = vrot.slane %v2179_v9, 5  ;;  %v5429_v23 = vld [vmem:[#allocation2 + $0x18] sm:$0xe]  ;;  %v12064_v0 = vrot.slane %v3827_v15, 9  ;;  %v5529_v55 = vrot.slane %v5527_v49, 4 }
 0x1c3   : > { %v3726_v48 = vadd.f32 %v14383_v19, %v2980_v47  ;;  %v2604_v39 = vadd.f32 %v2507_v14, %v14139_v42  ;;  %v2336_v19 = vsel %vm13993_vm10, %v2334_v28, %v2335_v6  ;;  %v13050_v42 = vld [vmem:[#allocation2 + $0xa8] sm:$0xff]  ;;  %v2178_v47 = vld [vmem:[#allocation2 + $0xb4] sm:$0xe]  ;;  %v4053_v28 = vpack.c.b16 %v4036_v62, %v4035_v44  ;;  %v2180_v6 = vld [vmem:[#allocation2 + $0xbc] sm:$0x1] }
 0x1c4   : > { %v2390_v45 = vunpack.c.l.b16 %v2336_v19  ;;  %v3532_v1 = vpack.c.b16 %v3516_v63, %v3515_v13  ;;  %v2341_v61 = vrot.slane %v2339_v2, 4  ;;  %v2342_v54 = vrot.slane %v2180_v6, 5  ;;  %v5431_v19 = vld [vmem:[#allocation2 + $0x20] sm:$0x1]  ;;  %v13051_v63 = vld [vmem:[#allocation2 + $0xb4] sm:$0xff] }
 0x1c5   : > { %v14487_v3 = vadd.f32 %v14429_v32, %v3726_v48  ;;  %v5530_v18 = vrot.slane %v5431_v19, 5 }
 0x1c6   : > { %v14492_v60 = vpop.f32.mrf.mxu1  ;;  %v2407_v50 = vpack.c.b16 %v2390_v45, %v2389_v21  ;;  %v2343_v44 = vsel %vm13993_vm10, %v2341_v61, %v2342_v54 }
 0x1c7   : > { %v14498_v29 = vpop.f32.mrf.mxu0  ;;  %v5531_v33 = vsel %vm13993_vm10, %v5529_v55, %v5530_v18 }
 0x1c8   : > { %v2882_v35 = vpop.f32.mrf.mxu3 }
 0x1c9   : > { %v2981_v32 = vadd.f32 %v2882_v35, %v2603_v36  ;;  %v3988_v35 = vrot.slane %v3829_v4, 5  ;;  %v5433_v4 = vld [vmem:[#allocation2 + $0x28] sm:$0xf] }
 0x1ca   : > { %v2509_v30 = vpop.f32.mrf.mxu2 }
 0x1cb   : > { %v14508_v51 = vadd.f32 %v14417_v27, %v2981_v32  ;;  %v2605_v24 = vadd.f32 %v2509_v30, %v2080_v37  ;;  %v11840_v27 = vrot.slane %v2178_v47, 9  ;;  %v3986_v37 = vsel %vm13993_vm10, %v12064_v0, %v3985_v26 }
 0x1cc   : > { %v5534_v0 = vrot.slane %v5433_v4, 5 }
 0x1cd   : > { %2924 = vmatmul.bf16.gmra.mxu3 %v13050_v42  ;;  %v2340_v32 = vsel %vm13993_vm10, %v11840_v27, %v2339_v2  ;;  %v4037_v2 = vunpack.c.l.b16 %v3986_v37 }
 0x1ce   : > { %v14510_v48 = vpop.f32.mrf.mxu1 }
 0x1cf   : > { %2551 = vmatmul.bf16.gmra.mxu2 %v2407_v50  ;;  %v14512_v14 = vpop.f32.mrf.mxu0  ;;  %v2392_v50 = vunpack.c.l.b16 %v2343_v44  ;;  %v5536_v44 = vrot.slane %v5534_v0, 4 }
 0x1d0   : > { %v2885_v41 = vpop.f32.mrf.mxu3 }
 0x1d1   : > { %v2982_v40 = vadd.f32 %v2885_v41, %v2604_v39  ;;  %4197 = vmatmul.bf16.gmra.mxu1 %v4053_v28  ;;  %v12273_v39 = vrot.slane %v5429_v23, 9  ;;  %v16746_v28 = vld [vmem:[#allocation24_spill] sm:$0xff] }
 0x1d2   : > { %v2512_v21 = vpop.f32.mrf.mxu2  ;;  %3680 = vmatmul.bf16.gmra.mxu0 %v3532_v1  ;;  %v2082_v6 = vadd.f32 %v16746_v28, %v14180_v53  ;;  %v5655_v1 = vunpack.c.l.b16 %v5531_v33 }
 0x1d3   : > { %v3728_v36 = vadd.f32 %v14431_v46, %v2982_v40  ;;  %v2606_v45 = vadd.f32 %v2512_v21, %v14172_v12  ;;  %v13137_v46 = vld [vmem:[%s16704_s2 + $0x20] sm:$0xff]  ;;  %v2391_v12 = vunpack.c.l.b16 %v2340_v32  ;;  %v5528_v47 = vsel %vm13993_vm10, %v12273_v39, %v5527_v49  ;;  %v4683_v40 = vld [vmem:[#allocation2 + $0x18] sm:$0xf]  ;;  %v4684_v49 = vld [vmem:[#allocation2 + $0x1c] sm:$0xf] }
 0x1d4   : > { %6842 = vmatpush.bf16.msra.mxu1 %v13137_v46  ;;  %v4732_v53 = vshrl.u32 %v4683_v40, 16  ;;  %v5434_v21 = vld [vmem:[#allocation2 + $0x2c] sm:$0x1]  ;;  %v4741_v32 = vshll.u32 %v4684_v49, 16  ;;  %v4745_v39 = vshrl.u32 %v4684_v49, 16  ;;  %v16748_v49 = vld [vmem:[#allocation28_spill] sm:$0xff] }
 0x1d5   : > { %v14518_v42 = vadd.f32 %v14473_v38, %v3728_v36  ;;  %v3989_v38 = vsel %vm13993_vm10, %v3987_v34, %v3988_v35  ;;  %v2408_v15 = vpack.c.b16 %v2392_v50, %v2391_v12  ;;  %v5432_v36 = vld [vmem:[#allocation2 + $0x24] sm:$0xe]  ;;  %v4735_v34 = vshll.u32 %v4683_v40, 16 }
 0x1d6   : > { %v14526_v62 = vpop.f32.mrf.mxu1  ;;  %v4038_v16 = vunpack.c.l.b16 %v3989_v38  ;;  %v12274_v18 = vrot.slane %v5432_v36, 9  ;;  %v5537_v37 = vrot.slane %v5434_v21, 5  ;;  %v4734_v38 = vrot.slane %v4732_v53, 4  ;;  %v4687_v21 = vld [vmem:[#allocation2 + $0x28] sm:$0xf] }
 0x1d7   : > { %v14532_v13 = vpop.f32.mrf.mxu0  ;;  %v4747_v50 = vrot.slane %v4745_v39, 4 }
 0x1d8   : > { %v2887_v9 = vpop.f32.mrf.mxu3  ;;  %v4054_v23 = vpack.c.b16 %v4038_v16, %v4037_v2  ;;  %v5538_v16 = vsel %vm13993_vm10, %v5536_v44, %v5537_v37  ;;  %v5435_v44 = vld [vmem:[#allocation2 + $0x30] sm:$0xe] }
 0x1d9   : > { %v2983_v30 = vadd.f32 %v2887_v9, %v2605_v24  ;;  %v5654_v24 = vunpack.c.l.b16 %v5528_v47  ;;  %v4737_v9 = vrot.slane %v4735_v34, 5  ;;  %v4685_v47 = vld [vmem:[#allocation2 + $0x20] sm:$0x1] }
 0x1da   : > { %v2514_v41 = vpop.f32.mrf.mxu2 }
 0x1db   : > { %v14541_v26 = vadd.f32 %v14457_v59, %v2983_v30  ;;  %v2607_v27 = vadd.f32 %v2514_v41, %v2082_v6  ;;  %v5686_v19 = vpack.c.b16 %v5655_v1, %v5654_v24  ;;  %v13052_v41 = vld [vmem:[#allocation2 + $0xc0] sm:$0xff]  ;;  %v4751_v1 = vshll.u32 %v4685_v47, 16 }
 0x1dc   : > { %v4769_v47 = vshrl.u32 %v4687_v21, 16 }
 0x1dd   : > { %2929 = vmatmul.bf16.gmra.mxu3 %v13051_v63  ;;  %v4743_v63 = vrot.slane %v4741_v32, 5  ;;  %v4753_v53 = vrot.slane %v4751_v1, 5 }
 0x1de   : > { %v14543_v61 = vpop.f32.mrf.mxu1 }
 0x1df   : > { %2556 = vmatmul.bf16.gmra.mxu2 %v2408_v15  ;;  %v14545_v35 = vpop.f32.mrf.mxu0  ;;  %v4748_v24 = vor.u32 %v4747_v50, %v4743_v63  ;;  %v4765_v50 = vshll.u32 %v4687_v21, 16 }
 0x1e0   : > { %v2890_v54 = vpop.f32.mrf.mxu3 }
 0x1e1   : > { %v2984_v59 = vadd.f32 %v2890_v54, %v2606_v45  ;;  %4202 = vmatmul.bf16.gmra.mxu1 %v4054_v23  ;;  %v16747_v45 = vld [vmem:[#allocation26_spill] sm:$0xff]  ;;  %v5657_v23 = vunpack.c.l.b16 %v5538_v16 }
 0x1e2   : > { %v2517_v46 = vpop.f32.mrf.mxu2  ;;  %5774 = vmatmul.bf16.vlgmr.msra.gmra.mxu0 %v5686_v19  ;;  %v13077_v19 = vld [vmem:[#allocation2 + $0x18] sm:$0xff] }
 0x1e3   : > { %v3730_v55 = vadd.f32 %v14479_v31, %v2984_v59  ;;  %v2608_v30 = vadd.f32 %v2517_v46, %v16747_v45  ;;  %v5535_v31 = vsel %vm13993_vm10, %v12274_v18, %v5534_v0  ;;  %v4749_v0 = vrot.slane %v4748_v24, 4  ;;  %v4686_v59 = vld [vmem:[#allocation2 + $0x24] sm:$0xf] }
 0x1e4   : > { %v5656_v40 = vunpack.c.l.b16 %v5535_v31  ;;  %v4759_v45 = vshll.u32 %v4686_v59, 16 }
 0x1e5   : > { %v14549_v12 = vadd.f32 %v14510_v48, %v3730_v55  ;;  %v4738_v48 = vor.u32 %v4737_v9, %v4734_v38  ;;  %v4754_v46 = vsel %vm13392_vm14, %v4749_v0, %v4753_v53  ;;  %v5437_v38 = vld [vmem:[#allocation2 + $0x38] sm:$0x1]  ;;  %v4756_v9 = vshrl.u32 %v4686_v59, 16 }
 0x1e6   : > { %v14552_v33 = vpop.f32.mrf.mxu1  ;;  %v5687_v39 = vpack.c.b16 %v5657_v23, %v5656_v40  ;;  %v5133_v16 = vunpack.c.l.b16 %v4754_v46  ;;  %v5544_v1 = vrot.slane %v5437_v38, 5  ;;  %v4761_v23 = vrot.slane %v4759_v45, 5  ;;  %v5439_v45 = vld [vmem:[#allocation2 + $0x40] sm:$0xf] }
 0x1e7   : > { %v14558_v6 = vpop.f32.mrf.mxu0  ;;  %v4739_v36 = vrot.slane %v4738_v48, 4  ;;  %v4758_v40 = vrot.slane %v4756_v9, 4  ;;  %v4689_v9 = vld [vmem:[#allocation2 + $0x30] sm:$0xf] }
 0x1e8   : > { %v2892_v2 = vpop.f32.mrf.mxu3 }
 0x1e9   : > { %v2985_v28 = vadd.f32 %v2892_v2, %v2607_v27  ;;  %v5436_v27 = vld [vmem:[#allocation2 + $0x34] sm:$0xf]  ;;  %v4744_v18 = vsel %vm13392_vm14, %v4739_v36, %v4743_v63  ;;  %v16749_v63 = vld [vmem:[#allocation7_spill] sm:$0xff]  ;;  %v4688_v36 = vld [vmem:[#allocation2 + $0x2c] sm:$0x1] }
 0x1ea   : > { %v2519_v4 = vpop.f32.mrf.mxu2  ;;  %v5541_v37 = vrot.slane %v5436_v27, 5 }
 0x1eb   : > { %v14561_v15 = vadd.f32 %v14498_v29, %v2985_v28  ;;  %v2609_v54 = vadd.f32 %v2519_v4, %v16748_v49  ;;  %v12275_v28 = vrot.slane %v5435_v44, 9  ;;  %v13136_v4 = vld [vmem:[%s16704_s2 + $0x18] sm:$0xff]  ;;  %v4767_v49 = vrot.slane %v4765_v50, 5  ;;  %v4690_v50 = vld [vmem:[#allocation2 + $0x34] sm:$0xf] }
 0x1ec   : > { %v5543_v24 = vrot.slane %v5541_v37, 4  ;;  %6843 = vmatpush.bf16.msra.mxu1 %v13136_v4  ;;  %v4793_v4 = vshrl.u32 %v4690_v50, 16 }
 0x1ed   : > { %2934 = vmatmul.bf16.gmra.mxu3 %v13052_v41  ;;  %v5542_v59 = vsel %vm13993_vm10, %v12275_v28, %v5541_v37 }
 0x1ee   : > { %v14564_v34 = vpop.f32.mrf.mxu1  ;;  %v5545_v21 = vsel %vm13993_vm10, %v5543_v24, %v5544_v1  ;;  %v5658_v44 = vunpack.c.l.b16 %v5542_v59  ;;  %v5438_v24 = vld [vmem:[#allocation2 + $0x3c] sm:$0xe]  ;;  %v4789_v1 = vshll.u32 %v4690_v50, 16  ;;  %v16753_v50 = vld [vmem:[#allocation9_spill] sm:$0xff] }
 0x1ef   : > { %v14566_v29 = vpop.f32.mrf.mxu0  ;;  %4506 = vmatmul.bf16.vlgmr.msra.gmra.mxu2 %v13077_v19  ;;  %v5659_v38 = vunpack.c.l.b16 %v5545_v21 }
 0x1f0   : > { %v2895_v32 = vpop.f32.mrf.mxu3 }
 0x1f1   : > { %v2986_v55 = vadd.f32 %v2895_v32, %v2608_v30  ;;  %v5132_v30 = vunpack.c.l.b16 %v4744_v18  ;;  %v4762_v32 = vor.u32 %v4761_v23, %v4758_v40 }
 0x1f2   : > { %v2522_v31 = vpop.f32.mrf.mxu2  ;;  %5779 = vmatmul.bf16.gmra.mxu0 %v5687_v39 }
 0x1f3   : > { %v3732_v2 = vadd.f32 %v14512_v14, %v2986_v55  ;;  %v2610_v48 = vadd.f32 %v2522_v31, %v16749_v63  ;;  %v4771_v14 = vrot.slane %v4769_v47, 4  ;;  %v5164_v27 = vpack.c.b16 %v5133_v16, %v5132_v30 }
 0x1f4   : > { %v4775_v55 = vshll.u32 %v4688_v36, 16  ;;  %v4763_v47 = vrot.slane %v4762_v32, 4  ;;  %v4780_v30 = vshrl.u32 %v4689_v9, 16  ;;  %v4783_v16 = vshll.u32 %v4689_v9, 16  ;;  %v16751_v36 = vld [vmem:[#allocation6_spill] sm:$0xff] }
 0x1f5   : > { %v14574_v41 = vadd.f32 %v14543_v61, %v3732_v2  ;;  %v4772_v39 = vor.u32 %v4771_v14, %v4767_v49  ;;  %v5688_v63 = vpack.c.b16 %v5659_v38, %v5658_v44  ;;  %v5440_v14 = vld [vmem:[#allocation2 + $0x44] sm:$0x1]  ;;  %v12276_v32 = vrot.slane %v5438_v24, 9 }
 0x1f6   : > { %v14580_v19 = vpop.f32.mrf.mxu1  ;;  %v4777_v37 = vrot.slane %v4775_v55, 5  ;;  %v4785_v55 = vrot.slane %v4783_v16, 5  ;;  %v5551_v38 = vrot.slane %v5440_v14, 5  ;;  %v4791_v9 = vrot.slane %v4789_v1, 5 }
 0x1f7   : > { %16750 = vst [vmem:[#allocation24_spill] sm:$0xff] %v14580_v19  ;;  %v14582_v61 = vpop.f32.mrf.mxu0  ;;  %v4773_v2 = vrot.slane %v4772_v39, 4  ;;  %v4782_v39 = vrot.slane %v4780_v30, 4 }
 0x1f8   : > { %v2897_v0 = vpop.f32.mrf.mxu3 }
 0x1f9   : > { %v2987_v53 = vadd.f32 %v2897_v0, %v2609_v54  ;;  %v13078_v54 = vld [vmem:[#allocation2 + $0x24] sm:$0xff]  ;;  %v4778_v59 = vsel %vm13392_vm14, %v4773_v2, %v4777_v37 }
 0x1fa   : > { %v2524_v46 = vpop.f32.mrf.mxu2  ;;  %v16752_v0 = vld [vmem:[#allocation8_spill] sm:$0xff] }
 0x1fb   : > { %v14589_v18 = vadd.f32 %v14532_v13, %v2987_v53  ;;  %v5548_v13 = vrot.slane %v5439_v45, 5  ;;  %v2086_v53 = vadd.f32 %v16752_v0, %v16751_v36  ;;  %v4691_v36 = vld [vmem:[#allocation2 + $0x38] sm:$0x1] }
 0x1fc   : > { %v4799_v1 = vshll.u32 %v4691_v36, 16 }
 0x1fd   : > { %5252 = vmatmul.bf16.vlgmr.msra.gmra.mxu3 %v5164_v27  ;;  %v4768_v27 = vsel %vm13392_vm14, %v4763_v47, %v4767_v49  ;;  %v5135_v47 = vunpack.c.l.b16 %v4778_v59  ;;  %v2611_v2 = vadd.f32 %v2524_v46, %v2086_v53  ;;  %v5549_v16 = vsel %vm13993_vm10, %v12276_v32, %v5548_v13  ;;  %v5442_v32 = vld [vmem:[#allocation2 + $0x4c] sm:$0xf] }
 0x1fe   : > { %v14591_v31 = vpop.f32.mrf.mxu1  ;;  %v5134_v49 = vunpack.c.l.b16 %v4768_v27  ;;  %v5660_v46 = vunpack.c.l.b16 %v5549_v16 }
 0x1ff   : > { %v14593_v23 = vpop.f32.mrf.mxu0  ;;  %4511 = vmatmul.bf16.gmra.mxu2 %v13078_v54  ;;  %v4795_v54 = vrot.slane %v4793_v4, 4 }
 0x200   : > { %v2900_v28 = vpop.f32.mrf.mxu3 }
 0x201   : > { %v2988_v40 = vadd.f32 %v2900_v28, %v2610_v48  ;;  %v5550_v48 = vrot.slane %v5548_v13, 4  ;;  %v4796_v24 = vor.u32 %v4795_v54, %v4791_v9  ;;  %v13079_v13 = vld [vmem:[#allocation2 + $0x30] sm:$0xff] }
 0x202   : > { %v2527_v44 = vpop.f32.mrf.mxu2  ;;  %5784 = vmatmul.bf16.gmra.mxu0 %v5688_v63 }
 0x203   : > { %v3734_v21 = vadd.f32 %v14545_v35, %v2988_v40  ;;  %v2612_v28 = vadd.f32 %v2527_v44, %v16753_v50  ;;  %v4786_v35 = vor.u32 %v4785_v55, %v4782_v39  ;;  %v5552_v63 = vsel %vm13993_vm10, %v5550_v48, %v5551_v38  ;;  %v4692_v39 = vld [vmem:[#allocation2 + $0x3c] sm:$0xf]  ;;  %v4693_v55 = vld [vmem:[#allocation2 + $0x40] sm:$0xf]  ;;  %v5441_v50 = vld [vmem:[#allocation2 + $0x48] sm:$0xe] }
 0x204   : > { %v5165_v40 = vpack.c.b16 %v5135_v47, %v5134_v49  ;;  %v5661_v0 = vunpack.c.l.b16 %v5552_v63  ;;  %v4797_v59 = vrot.slane %v4796_v24, 4  ;;  %v5555_v49 = vrot.slane %v5442_v32, 5  ;;  %v16755_v24 = vld [vmem:[#allocation10_spill] sm:$0xff] }
 0x205   : > { %v14603_v45 = vadd.f32 %v14564_v34, %v3734_v21  ;;  %v4787_v53 = vrot.slane %v4786_v35, 4  ;;  %v4801_v21 = vrot.slane %v4799_v1, 5  ;;  %v4804_v47 = vshrl.u32 %v4692_v39, 16  ;;  %v16756_v1 = vld [vmem:[#allocation11_spill] sm:$0xff] }
 0x206   : > { %v14606_v37 = vpop.f32.mrf.mxu1  ;;  %v5689_v44 = vpack.c.b16 %v5661_v0, %v5660_v46  ;;  %v4807_v36 = vshll.u32 %v4692_v39, 16  ;;  %v4813_v16 = vshll.u32 %v4693_v55, 16  ;;  %v4817_v63 = vshrl.u32 %v4693_v55, 16 }
 0x207   : > { %16754 = vst [vmem:[#allocation26_spill] sm:$0xff] %v14606_v37  ;;  %v14612_v4 = vpop.f32.mrf.mxu0  ;;  %v4792_v48 = vsel %vm13392_vm14, %v4787_v53, %v4791_v9  ;;  %v2088_v9 = vadd.f32 %v16756_v1, %v16755_v24  ;;  %v12277_v0 = vrot.slane %v5441_v50, 9  ;;  %v4806_v32 = vrot.slane %v4804_v47, 4 }
 0x208   : > { %v2902_v30 = vpop.f32.mrf.mxu3  ;;  %v4815_v55 = vrot.slane %v4813_v16, 5  ;;  %v4819_v37 = vrot.slane %v4817_v63, 4 }
 0x209   : > { %v2989_v34 = vadd.f32 %v2902_v30, %v2611_v2  ;;  %v5443_v30 = vld [vmem:[#allocation2 + $0x50] sm:$0x1]  ;;  %v5556_v47 = vsel %vm13993_vm10, %v12277_v0, %v5555_v49 }
 0x20a   : > { %v2529_v27 = vpop.f32.mrf.mxu2  ;;  %v4820_v63 = vor.u32 %v4819_v37, %v4815_v55 }
 0x20b   : > { %v14615_v14 = vadd.f32 %v14558_v6, %v2989_v34  ;;  %v4802_v6 = vsel %vm13392_vm14, %v4797_v59, %v4801_v21  ;;  %v5557_v59 = vrot.slane %v5555_v49, 4  ;;  %v5558_v21 = vrot.slane %v5443_v30, 5 }
 0x20c   : > { %v5137_v46 = vunpack.c.l.b16 %v4802_v6  ;;  %v2613_v6 = vadd.f32 %v2529_v27, %v2088_v9  ;;  %v5662_v9 = vunpack.c.l.b16 %v5556_v47 }
 0x20d   : > { %5257 = vmatmul.bf16.gmra.mxu3 %v5165_v40  ;;  %v5136_v40 = vunpack.c.l.b16 %v4792_v48  ;;  %v4694_v48 = vld [vmem:[#allocation2 + $0x44] sm:$0x1] }
 0x20e   : > { %v14619_v38 = vpop.f32.mrf.mxu1  ;;  %v4823_v24 = vshll.u32 %v4694_v48, 16 }
 0x20f   : > { %v14623_v35 = vpop.f32.mrf.mxu0  ;;  %4516 = vmatmul.bf16.gmra.mxu2 %v13079_v13  ;;  %v16758_v13 = vld [vmem:[#allocation12_spill] sm:$0xff] }
 0x210   : > { %v2905_v54 = vpop.f32.mrf.mxu3  ;;  %v4825_v0 = vrot.slane %v4823_v24, 5  ;;  %v16762_v24 = vld [vmem:[#allocation14_spill] sm:$0xff] }
 0x211   : > { %v2990_v2 = vadd.f32 %v2905_v54, %v2612_v28  ;;  %v4809_v28 = vrot.slane %v4807_v36, 5 }
 0x212   : > { %v2532_v53 = vpop.f32.mrf.mxu2  ;;  %5789 = vmatmul.bf16.gmra.mxu0 %v5689_v44  ;;  %v5166_v44 = vpack.c.b16 %v5137_v46, %v5136_v40  ;;  %v13080_v40 = vld [vmem:[#allocation2 + $0x3c] sm:$0xff]  ;;  %v4821_v46 = vrot.slane %v4820_v63, 4  ;;  %v16761_v63 = vld [vmem:[#allocation13_spill] sm:$0xff] }
 0x213   : > { %v3736_v34 = vadd.f32 %v14566_v29, %v2990_v2  ;;  %v2614_v54 = vadd.f32 %v2532_v53, %v16758_v13  ;;  %v13135_v29 = vld [vmem:[%s16704_s2 + $0x10] sm:$0xff]  ;;  %v4810_v16 = vor.u32 %v4809_v28, %v4806_v32  ;;  %v5445_v53 = vld [vmem:[#allocation2 + $0x58] sm:$0xf] }
 0x214   : > { %6844 = vmatpush.bf16.msra.mxu1 %v13135_v29  ;;  %v4826_v37 = vsel %vm13392_vm14, %v4821_v46, %v4825_v0  ;;  %v5444_v28 = vld [vmem:[#allocation2 + $0x54] sm:$0xe]  ;;  %v5562_v48 = vrot.slane %v5445_v53, 5  ;;  %v16764_v0 = vld [vmem:[#allocation15_spill] sm:$0xff] }
 0x215   : > { %v14629_v39 = vadd.f32 %v14591_v31, %v3736_v34  ;;  %v5559_v31 = vsel %vm13993_vm10, %v5557_v59, %v5558_v21  ;;  %v4811_v49 = vrot.slane %v4810_v16, 4  ;;  %v4695_v59 = vld [vmem:[#allocation2 + $0x48] sm:$0xf]  ;;  %v4696_v21 = vld [vmem:[#allocation2 + $0x4c] sm:$0xf] }
 0x216   : > { %v14639_v36 = vpop.f32.mrf.mxu1  ;;  %v5663_v34 = vunpack.c.l.b16 %v5559_v31  ;;  %v4828_v47 = vshrl.u32 %v4695_v59, 16  ;;  %v4831_v31 = vshll.u32 %v4695_v59, 16  ;;  %v4841_v16 = vshrl.u32 %v4696_v21, 16 }
 0x217   : > { %16757 = vst [vmem:[#allocation28_spill] sm:$0xff] %v14629_v39  ;;  %v14641_v30 = vpop.f32.mrf.mxu0 }
 0x218   : > { %v2907_v50 = vpop.f32.mrf.mxu3  ;;  %16759 = vst [vmem:[#allocation7_spill] sm:$0xff] %v14639_v36  ;;  %v5690_v29 = vpack.c.b16 %v5663_v34, %v5662_v9  ;;  %v2090_v9 = vadd.f32 %v16762_v24, %v16761_v63  ;;  %v4830_v59 = vrot.slane %v4828_v47, 4  ;;  %v4843_v39 = vrot.slane %v4841_v16, 4 }
 0x219   : > { %v2991_v2 = vadd.f32 %v2907_v50, %v2613_v6 }
 0x21a   : > { %v2534_v27 = vpop.f32.mrf.mxu2 }
 0x21b   : > { %v14644_v1 = vadd.f32 %v14582_v61, %v2991_v2  ;;  %v4816_v61 = vsel %vm13392_vm14, %v4811_v49, %v4815_v55  ;;  %v4837_v2 = vshll.u32 %v4696_v21, 16  ;;  %v12278_v49 = vrot.slane %v5444_v28, 9 }
 0x21c   : > { %v5138_v55 = vunpack.c.l.b16 %v4816_v61 }
 0x21d   : > { %16760 = vst [vmem:[#allocation6_spill] sm:$0xff] %v14644_v1  ;;  %5262 = vmatmul.bf16.gmra.mxu3 %v5166_v44  ;;  %v5446_v44 = vld [vmem:[#allocation2 + $0x5c] sm:$0x1]  ;;  %v4833_v1 = vrot.slane %v4831_v31, 5  ;;  %v4839_v21 = vrot.slane %v4837_v2, 5  ;;  %v5563_v61 = vsel %vm13993_vm10, %v12278_v49, %v5562_v48 }
 0x21e   : > { %v14652_v50 = vpop.f32.mrf.mxu1  ;;  %v5565_v36 = vrot.slane %v5446_v44, 5 }
 0x21f   : > { %v14646_v32 = vpop.f32.mrf.mxu0  ;;  %4521 = vmatmul.bf16.gmra.mxu2 %v13080_v40  ;;  %v5139_v40 = vunpack.c.l.b16 %v4826_v37  ;;  %v4834_v37 = vor.u32 %v4833_v1, %v4830_v59  ;;  %v4844_v28 = vor.u32 %v4843_v39, %v4839_v21 }
 0x220   : > { %v2910_v13 = vpop.f32.mrf.mxu3 }
 0x221   : > { %v2992_v6 = vadd.f32 %v2910_v13, %v2614_v54  ;;  %v5564_v13 = vrot.slane %v5562_v48, 4  ;;  %v4835_v48 = vrot.slane %v4834_v37, 4 }
 0x222   : > { %v2537_v34 = vpop.f32.mrf.mxu2  ;;  %5794 = vmatmul.bf16.gmra.mxu0 %v5690_v29  ;;  %v5167_v29 = vpack.c.b16 %v5139_v40, %v5138_v55  ;;  %v4845_v55 = vrot.slane %v4844_v28, 4 }
 0x223   : > { %v3738_v54 = vadd.f32 %v14593_v23, %v2992_v6  ;;  %v2616_v53 = vadd.f32 %v2537_v34, %v16764_v0  ;;  %v2615_v23 = vadd.f32 %v2534_v27, %v2090_v9  ;;  %v4697_v6 = vld [vmem:[#allocation2 + $0x50] sm:$0x1]  ;;  %v5664_v27 = vunpack.c.l.b16 %v5563_v61  ;;  %v5448_v9 = vld [vmem:[#allocation2 + $0x64] sm:$0xf]  ;;  %v4699_v34 = vld [vmem:[#allocation2 + $0x58] sm:$0xf] }
 0x224   : > { %v4847_v44 = vshll.u32 %v4697_v6, 16  ;;  %v5447_v0 = vld [vmem:[#allocation2 + $0x60] sm:$0xe]  ;;  %v4865_v59 = vshrl.u32 %v4699_v34, 16  ;;  %v16768_v61 = vld [vmem:[#allocation17_spill] sm:$0xff]  ;;  %v4840_v37 = vsel %vm13392_vm14, %v4835_v48, %v4839_v21 }
 0x225   : > { %v14658_v46 = vadd.f32 %v14619_v38, %v3738_v54  ;;  %v5566_v38 = vsel %vm13993_vm10, %v5564_v13, %v5565_v36  ;;  %v13081_v54 = vld [vmem:[#allocation2 + $0x48] sm:$0xff]  ;;  %v4861_v13 = vshll.u32 %v4699_v34, 16  ;;  %v5140_v21 = vunpack.c.l.b16 %v4840_v37 }
 0x226   : > { %v5665_v2 = vunpack.c.l.b16 %v5566_v38  ;;  %v14670_v16 = vpop.f32.mrf.mxu1  ;;  %v4849_v40 = vrot.slane %v4847_v44, 5 }
 0x227   : > { %16763 = vst [vmem:[#allocation8_spill] sm:$0xff] %v14658_v46  ;;  %v14661_v24 = vpop.f32.mrf.mxu0 }
 0x228   : > { %v2912_v19 = vpop.f32.mrf.mxu3  ;;  %16766 = vst [vmem:[#allocation10_spill] sm:$0xff] %v14670_v16  ;;  %v5691_v49 = vpack.c.b16 %v5665_v2, %v5664_v27  ;;  %v4850_v28 = vsel %vm13392_vm14, %v4845_v55, %v4849_v40  ;;  %v12279_v27 = vrot.slane %v5447_v0, 9 }
 0x229   : > { %v2993_v63 = vadd.f32 %v2912_v19, %v2615_v23  ;;  %v4698_v19 = vld [vmem:[#allocation2 + $0x54] sm:$0xf]  ;;  %v5141_v48 = vunpack.c.l.b16 %v4850_v28 }
 0x22a   : > { %v2539_v31 = vpop.f32.mrf.mxu2  ;;  %v4852_v36 = vshrl.u32 %v4698_v19, 16  ;;  %v4855_v1 = vshll.u32 %v4698_v19, 16 }
 0x22b   : > { %v14668_v47 = vadd.f32 %v14612_v4, %v2993_v63  ;;  %v5569_v4 = vrot.slane %v5448_v9, 5  ;;  %v5449_v63 = vld [vmem:[#allocation2 + $0x68] sm:$0x1] }
 0x22c   : > { %v4854_v2 = vrot.slane %v4852_v36, 4  ;;  %v4857_v19 = vrot.slane %v4855_v1, 5  ;;  %v5572_v34 = vrot.slane %v5449_v63, 5  ;;  %v5168_v63 = vpack.c.b16 %v5141_v48, %v5140_v21  ;;  %v5450_v21 = vld [vmem:[#allocation2 + $0x6c] sm:$0xe] }
 0x22d   : > { %16765 = vst [vmem:[#allocation9_spill] sm:$0xff] %v14668_v47  ;;  %5267 = vmatmul.bf16.gmra.mxu3 %v5167_v29  ;;  %v16767_v29 = vld [vmem:[#allocation16_spill] sm:$0xff]  ;;  %v4700_v47 = vld [vmem:[#allocation2 + $0x5c] sm:$0x1] }
 0x22e   : > { %v2092_v38 = vadd.f32 %v16768_v61, %v16767_v29  ;;  %v16770_v29 = vld [vmem:[#allocation18_spill] sm:$0xff]  ;;  %v4188_v55 = vpop.f32.mrf.mxu1  ;;  %v4858_v36 = vor.u32 %v4857_v19, %v4854_v2 }
 0x22f   : > { %v14672_v6 = vpop.f32.mrf.mxu0  ;;  %4526 = vmatmul.bf16.gmra.mxu2 %v13081_v54  ;;  %v4863_v54 = vrot.slane %v4861_v13, 5  ;;  %v4871_v13 = vshll.u32 %v4700_v47, 16 }
 0x230   : > { %v2915_v39 = vpop.f32.mrf.mxu3  ;;  %v2617_v40 = vadd.f32 %v2539_v31, %v2092_v38  ;;  %v4859_v38 = vrot.slane %v4858_v36, 4 }
 0x231   : > { %v2994_v23 = vadd.f32 %v2915_v39, %v2616_v53  ;;  %v5571_v53 = vrot.slane %v5569_v4, 4  ;;  %v4867_v39 = vrot.slane %v4865_v59, 4  ;;  %v4873_v19 = vrot.slane %v4871_v13, 5  ;;  %v16773_v13 = vld [vmem:[#allocation19_spill] sm:$0xff] }
 0x232   : > { %v2542_v9 = vpop.f32.mrf.mxu2  ;;  %5799 = vmatmul.bf16.gmra.mxu0 %v5691_v49  ;;  %v5570_v49 = vsel %vm13993_vm10, %v12279_v27, %v5569_v4  ;;  %v13082_v4 = vld [vmem:[#allocation2 + $0x54] sm:$0xff]  ;;  %v5451_v27 = vld [vmem:[#allocation2 + $0x70] sm:$0xf]  ;;  %v4864_v47 = vsel %vm13392_vm14, %v4859_v38, %v4863_v54  ;;  %v12280_v38 = vrot.slane %v5450_v21, 9 }
 0x233   : > { %v3740_v44 = vadd.f32 %v14623_v35, %v2994_v23  ;;  %v2618_v61 = vadd.f32 %v2542_v9, %v16770_v29  ;;  %v13134_v35 = vld [vmem:[%s16704_s2 + $0x8] sm:$0xff]  ;;  %v4868_v0 = vor.u32 %v4867_v39, %v4863_v54  ;;  %v5666_v28 = vunpack.c.l.b16 %v5570_v49  ;;  %v4701_v9 = vld [vmem:[#allocation2 + $0x60] sm:$0xf]  ;;  %v5452_v49 = vld [vmem:[#allocation2 + $0x74] sm:$0x1] }
 0x234   : > { %6845 = vmatpush.bf16.msra.mxu1 %v13134_v35  ;;  %v5576_v48 = vrot.slane %v5451_v27, 5  ;;  %v4876_v35 = vshrl.u32 %v4701_v9, 16  ;;  %v5579_v27 = vrot.slane %v5452_v49, 5  ;;  %v16777_v49 = vld [vmem:[#allocation23_spill] sm:$0xff] }
 0x235   : > { %v14682_v16 = vadd.f32 %v14652_v50, %v3740_v44  ;;  %v5573_v50 = vsel %vm13993_vm10, %v5571_v53, %v5572_v34  ;;  %v4869_v2 = vrot.slane %v4868_v0, 4  ;;  %v4702_v53 = vld [vmem:[#allocation2 + $0x64] sm:$0xf] }
 0x236   : > { %v5667_v31 = vunpack.c.l.b16 %v5573_v50  ;;  %v14699_v29 = vpop.f32.mrf.mxu1  ;;  %v4885_v50 = vshll.u32 %v4702_v53, 16  ;;  %v4889_v0 = vshrl.u32 %v4702_v53, 16 }
 0x237   : > { %16769 = vst [vmem:[#allocation11_spill] sm:$0xff] %v14682_v16  ;;  %v14692_v23 = vpop.f32.mrf.mxu0  ;;  %v4703_v16 = vld [vmem:[#allocation2 + $0x68] sm:$0x1] }
 0x238   : > { %v2917_v1 = vpop.f32.mrf.mxu3  ;;  %v5692_v34 = vpack.c.b16 %v5667_v31, %v5666_v28  ;;  %16772 = vst [vmem:[#allocation13_spill] sm:$0xff] %v14699_v29  ;;  %v5142_v28 = vunpack.c.l.b16 %v4864_v47  ;;  %v4891_v53 = vrot.slane %v4889_v0, 4 }
 0x239   : > { %v2995_v59 = vadd.f32 %v2917_v1, %v2617_v40  ;;  %v4879_v40 = vshll.u32 %v4701_v9, 16  ;;  %v4878_v9 = vrot.slane %v4876_v35, 4  ;;  %v4895_v35 = vshll.u32 %v4703_v16, 16 }
 0x23a   : > { %v2544_v44 = vpop.f32.mrf.mxu2 }
 0x23b   : > { %v14695_v37 = vadd.f32 %v14641_v30, %v2995_v59  ;;  %v4874_v30 = vsel %vm13392_vm14, %v4869_v2, %v4873_v19  ;;  %v16774_v59 = vld [vmem:[#allocation20_spill] sm:$0xff]  ;;  %v5578_v19 = vrot.slane %v5576_v48, 4 }
 0x23c   : > { %v2094_v54 = vadd.f32 %v16774_v59, %v16773_v13  ;;  %v5143_v31 = vunpack.c.l.b16 %v4874_v30 }
 0x23d   : > { %16771 = vst [vmem:[#allocation12_spill] sm:$0xff] %v14695_v37  ;;  %5272 = vmatmul.bf16.gmra.mxu3 %v5168_v63  ;;  %v4887_v37 = vrot.slane %v4885_v50, 5 }
 0x23e   : > { %v2619_v46 = vadd.f32 %v2544_v44, %v2094_v54  ;;  %v5169_v59 = vpack.c.b16 %v5143_v31, %v5142_v28  ;;  %v13083_v28 = vld [vmem:[#allocation2 + $0x60] sm:$0xff] }
 0x23f   : > { %v14703_v1 = vpop.f32.mrf.mxu0  ;;  %4531 = vmatmul.bf16.gmra.mxu2 %v13082_v4  ;;  %v16775_v4 = vld [vmem:[#allocation21_spill] sm:$0xff] }
 0x240   : > { %v2920_v39 = vpop.f32.mrf.mxu3 }
 0x241   : > { %v2996_v36 = vadd.f32 %v2920_v39, %v2618_v61  ;;  %v4881_v61 = vrot.slane %v4879_v40, 5  ;;  %v4193_v40 = vpop.f32.mrf.mxu1 }
 0x242   : > { %v2547_v2 = vpop.f32.mrf.mxu2  ;;  %5804 = vmatmul.bf16.gmra.mxu0 %v5692_v34  ;;  %v5580_v34 = vsel %vm13993_vm10, %v5578_v19, %v5579_v27  ;;  %v4704_v19 = vld [vmem:[#allocation2 + $0x6c] sm:$0xf]  ;;  %v4705_v27 = vld [vmem:[#allocation2 + $0x70] sm:$0xf] }
 0x243   : > { %v3742_v63 = vadd.f32 %v14646_v32, %v2996_v36  ;;  %v2620_v29 = vadd.f32 %v2547_v2, %v16775_v4  ;;  %v5577_v32 = vsel %vm13993_vm10, %v12280_v38, %v5576_v48  ;;  %v4882_v21 = vor.u32 %v4881_v61, %v4878_v9  ;;  %v16776_v36 = vld [vmem:[#allocation22_spill] sm:$0xff]  ;;  %v5454_v2 = vld [vmem:[#allocation2 + $0x7c] sm:$0xf] }
 0x244   : > { %v2096_v50 = vadd.f32 %v16777_v49, %v16776_v36  ;;  %v5668_v54 = vunpack.c.l.b16 %v5577_v32  ;;  %v4897_v38 = vrot.slane %v4895_v35, 5  ;;  %v5455_v32 = vld [vmem:[#allocation2 + $0x80] sm:$0x1] }
 0x245   : > { %v14708_v39 = vadd.f32 %v4188_v55, %v3742_v63  ;;  %v4892_v55 = vor.u32 %v4891_v53, %v4887_v37  ;;  %v5669_v63 = vunpack.c.l.b16 %v5580_v34  ;;  %v4883_v31 = vrot.slane %v4882_v21, 4 }
 0x246   : > { %v4900_v34 = vshrl.u32 %v4704_v19, 16  ;;  %v4909_v21 = vshll.u32 %v4705_v27, 16 }
 0x247   : > { %v14715_v30 = vpop.f32.mrf.mxu0  ;;  %v5693_v9 = vpack.c.b16 %v5669_v63, %v5668_v54  ;;  %v16781_v54 = vld [vmem:[#allocation25_spill] sm:$0xff] }
 0x248   : > { %v2922_v13 = vpop.f32.mrf.mxu3 }
 0x249   : > { %v2997_v47 = vadd.f32 %v2922_v13, %v2619_v46  ;;  %v4893_v46 = vrot.slane %v4892_v55, 4  ;;  %v5453_v13 = vld [vmem:[#allocation2 + $0x78] sm:$0xe]  ;;  %v4913_v55 = vshrl.u32 %v4705_v27, 16  ;;  %v4706_v27 = vld [vmem:[#allocation2 + $0x74] sm:$0x1] }
 0x24a   : > { %v2549_v0 = vpop.f32.mrf.mxu2 }
 0x24b   : > { %v14720_v44 = vadd.f32 %v14661_v24, %v2997_v47  ;;  %v2621_v48 = vadd.f32 %v2549_v0, %v2096_v50  ;;  %v4888_v24 = vsel %vm13392_vm14, %v4883_v31, %v4887_v37  ;;  %v4898_v53 = vsel %vm13392_vm14, %v4893_v46, %v4897_v38  ;;  %v13133_v46 = vld [vmem:[%s16704_s2] sm:$0xff] }
 0x24c   : > { %v4903_v47 = vshll.u32 %v4704_v19, 16  ;;  %v5144_v49 = vunpack.c.l.b16 %v4888_v24  ;;  %v5145_v50 = vunpack.c.l.b16 %v4898_v53  ;;  %v12281_v0 = vrot.slane %v5453_v13, 9  ;;  %6846 = vmatpush.bf16.msra.mxu1 %v13133_v46 }
 0x24d   : > { %16778 = vst [vmem:[#allocation14_spill] sm:$0xff] %v14720_v44  ;;  %5277 = vmatmul.bf16.gmra.mxu3 %v5169_v59  ;;  %v5583_v59 = vrot.slane %v5454_v2, 5  ;;  %v5586_v31 = vrot.slane %v5455_v32, 5  ;;  %v4902_v38 = vrot.slane %v4900_v34, 4  ;;  %v4915_v19 = vrot.slane %v4913_v55, 4 }
 0x24e   : > { %v4905_v2 = vrot.slane %v4903_v47, 5 }
 0x24f   : > { %v14722_v4 = vpop.f32.mrf.mxu0  ;;  %4536 = vmatmul.bf16.gmra.mxu2 %v13083_v28  ;;  %v5585_v28 = vrot.slane %v5583_v59, 4  ;;  %v5584_v24 = vsel %vm13993_vm10, %v12281_v0, %v5583_v59 }
 0x250   : > { %v2925_v16 = vpop.f32.mrf.mxu3  ;;  %v4906_v13 = vor.u32 %v4905_v2, %v4902_v38 }
 0x251   : > { %v2998_v61 = vadd.f32 %v2925_v16, %v2620_v29  ;;  %v14729_v29 = vpop.f32.mrf.mxu1  ;;  %v5587_v53 = vsel %vm13993_vm10, %v5585_v28, %v5586_v31  ;;  %v4708_v28 = vld [vmem:[#allocation2 + $0x7c] sm:$0xf] }
 0x252   : > { %v2552_v36 = vpop.f32.mrf.mxu2  ;;  %5809 = vmatmul.bf16.gmra.mxu0 %v5693_v9  ;;  %16779 = vst [vmem:[#allocation15_spill] sm:$0xff] %v14729_v29  ;;  %v5671_v55 = vunpack.c.l.b16 %v5587_v53  ;;  %v4907_v59 = vrot.slane %v4906_v13, 4  ;;  %v5458_v53 = vld [vmem:[#allocation2 + $0x8c] sm:$0x1] }
 0x253   : > { %v3744_v35 = vadd.f32 %v14672_v6, %v2998_v61  ;;  %v2622_v63 = vadd.f32 %v2552_v36, %v16781_v54  ;;  %v4911_v6 = vrot.slane %v4909_v21, 5  ;;  %v5670_v21 = vunpack.c.l.b16 %v5584_v24  ;;  %v4707_v36 = vld [vmem:[#allocation2 + $0x78] sm:$0xf]  ;;  %v5456_v24 = vld [vmem:[#allocation2 + $0x84] sm:$0xe] }
 0x254   : > { %v4924_v31 = vshrl.u32 %v4707_v36, 16  ;;  %v4927_v38 = vshll.u32 %v4707_v36, 16 }
 0x255   : > { %v14731_v37 = vadd.f32 %v4193_v40, %v3744_v35  ;;  %v5170_v40 = vpack.c.b16 %v5145_v50, %v5144_v49  ;;  %v4916_v32 = vor.u32 %v4915_v19, %v4911_v6  ;;  %v4919_v35 = vshll.u32 %v4706_v27, 16  ;;  %v13084_v49 = vld [vmem:[#allocation2 + $0x6c] sm:$0xff]  ;;  %v5457_v50 = vld [vmem:[#allocation2 + $0x88] sm:$0xf] }
 0x256   : > { %v5694_v19 = vpack.c.b16 %v5671_v55, %v5670_v21  ;;  %v4926_v36 = vrot.slane %v4924_v31, 4 }
 0x257   : > { %16780 = vst [vmem:[#allocation16_spill] sm:$0xff] %v14731_v37  ;;  %v14737_v61 = vpop.f32.mrf.mxu0  ;;  %v4917_v0 = vrot.slane %v4916_v32, 4  ;;  %v4933_v32 = vshll.u32 %v4708_v28, 16 }
 0x258   : > { %v2927_v16 = vpop.f32.mrf.mxu3 }
 0x259   : > { %v2999_v9 = vadd.f32 %v2927_v16, %v2621_v48  ;;  %v16783_v48 = vld [vmem:[#allocation27_spill] sm:$0xff]  ;;  %v4198_v46 = vpop.f32.mrf.mxu1  ;;  %v4921_v16 = vrot.slane %v4919_v35, 5  ;;  %v4937_v35 = vshrl.u32 %v4708_v28, 16 }
 0x25a   : > { %v2554_v47 = vpop.f32.mrf.mxu2 }
 0x25b   : > { %v14744_v34 = vadd.f32 %v14692_v23, %v2999_v9  ;;  %v2623_v54 = vadd.f32 %v2554_v47, %v16783_v48  ;;  %v5590_v23 = vrot.slane %v5457_v50, 5  ;;  %v4922_v13 = vsel %vm13392_vm14, %v4917_v0, %v4921_v16  ;;  %v4709_v0 = vld [vmem:[#allocation2 + $0x80] sm:$0x1] }
 0x25c   : > { %v4929_v48 = vrot.slane %v4927_v38, 5  ;;  %v4939_v37 = vrot.slane %v4937_v35, 4  ;;  %v13117_v35 = vld [vmem:[#allocation3] sm:$0xff] }
 0x25d   : > { %16782 = vst [vmem:[#allocation17_spill] sm:$0xff] %v14744_v34  ;;  %5282 = vmatmul.bf16.gmra.mxu3 %v5170_v40  ;;  %v4912_v40 = vsel %vm13392_vm14, %v4907_v59, %v4911_v6  ;;  %v5592_v55 = vrot.slane %v5590_v23, 4  ;;  %v5147_v6 = vunpack.c.l.b16 %v4922_v13  ;;  %v4935_v59 = vrot.slane %v4933_v32, 5  ;;  %6847 = vmatmul.bf16.vlgmr.msra.gmra.mxu1 %v13117_v35 }
 0x25e   : > { %v5146_v34 = vunpack.c.l.b16 %v4912_v40  ;;  %v4930_v16 = vor.u32 %v4929_v48, %v4926_v36  ;;  %v16787_v36 = vld [vmem:[#allocation30_spill] sm:$0xff] }
 0x25f   : > { %4541 = vmatmul.bf16.gmra.mxu2 %v13084_v49  ;;  %v14747_v9 = vpop.f32.mrf.mxu0  ;;  %v5593_v49 = vrot.slane %v5458_v53, 5 }
 0x260   : > { %v2930_v2 = vpop.f32.mrf.mxu3  ;;  %v4931_v32 = vrot.slane %v4930_v16, 4 }
 0x261   : > { %v3000_v27 = vadd.f32 %v2930_v2, %v2622_v63  ;;  %v12282_v63 = vrot.slane %v5456_v24, 9  ;;  %v16784_v2 = vld [vmem:[#allocation29_spill] sm:$0xff]  ;;  %v14757_v44 = vpop.f32.mrf.mxu1  ;;  %v5594_v31 = vsel %vm13993_vm10, %v5592_v55, %v5593_v49  ;;  %v4943_v24 = vshll.u32 %v4709_v0, 16 }
 0x262   : > { %v2557_v21 = vpop.f32.mrf.mxu2  ;;  %5814 = vmatmul.bf16.gmra.mxu0 %v5694_v19  ;;  %16785 = vst [vmem:[#allocation18_spill] sm:$0xff] %v14757_v44  ;;  %v5171_v19 = vpack.c.b16 %v5147_v6, %v5146_v34  ;;  %v5673_v13 = vunpack.c.l.b16 %v5594_v31  ;;  %v5460_v34 = vld [vmem:[#allocation2 + $0x94] sm:$0xf] }
 0x263   : > { %v3746_v47 = vadd.f32 %v14703_v1, %v3000_v27  ;;  %v2624_v29 = vadd.f32 %v2557_v21, %v16784_v2  ;;  %v5591_v1 = vsel %vm13993_vm10, %v12282_v63, %v5590_v23  ;;  %v4940_v27 = vor.u32 %v4939_v37, %v4935_v59  ;;  %v13085_v23 = vld [vmem:[#allocation2 + $0x78] sm:$0xff]  ;;  %v4710_v21 = vld [vmem:[#allocation2 + $0x84] sm:$0xf]  ;;  %v5459_v2 = vld [vmem:[#allocation2 + $0x90] sm:$0xe] }
 0x264   : > { %v5672_v40 = vunpack.c.l.b16 %v5591_v1  ;;  %v4945_v55 = vrot.slane %v4943_v24, 5  ;;  %v4948_v6 = vshrl.u32 %v4710_v21, 16  ;;  %v4951_v0 = vshll.u32 %v4710_v21, 16  ;;  %v5461_v24 = vld [vmem:[#allocation2 + $0x98] sm:$0x1] }
 0x265   : > { %v14754_v50 = vadd.f32 %v4198_v46, %v3746_v47  ;;  %v4941_v63 = vrot.slane %v4940_v27, 4 }
 0x266   : > { %v5695_v37 = vpack.c.b16 %v5673_v13, %v5672_v40  ;;  %v4950_v35 = vrot.slane %v4948_v6, 4 }
 0x267   : > { %v14763_v46 = vpop.f32.mrf.mxu0  ;;  %v4946_v27 = vsel %vm13392_vm14, %v4941_v63, %v4945_v55 }
 0x268   : > { %v2932_v28 = vpop.f32.mrf.mxu3 }
 0x269   : > { %v3001_v38 = vadd.f32 %v2932_v28, %v2623_v54  ;;  %v4711_v54 = vld [vmem:[#allocation2 + $0x88] sm:$0xf] }
 0x26a   : > { %v2559_v47 = vpop.f32.mrf.mxu2  ;;  %v4957_v16 = vshll.u32 %v4711_v54, 16  ;;  %v4961_v28 = vshrl.u32 %v4711_v54, 16 }
 0x26b   : > { %v14766_v53 = vadd.f32 %v14715_v30, %v3001_v38  ;;  %v2625_v48 = vadd.f32 %v2559_v47, %v16787_v36  ;;  %v4936_v30 = vsel %vm13392_vm14, %v4931_v32, %v4935_v59  ;;  %v5597_v38 = vrot.slane %v5460_v34, 5 }
 0x26c   : > { %v5148_v13 = vunpack.c.l.b16 %v4936_v30  ;;  %v12283_v59 = vrot.slane %v5459_v2, 9  ;;  %v4953_v47 = vrot.slane %v4951_v0, 5  ;;  %v4959_v36 = vrot.slane %v4957_v16, 5  ;;  %v5463_v0 = vld [vmem:[#allocation2 + $0xa0] sm:$0xf] }
 0x26d   : > { %16786 = vst [vmem:[#allocation19_spill] sm:$0xff] %v14766_v53  ;;  %5287 = vmatmul.bf16.gmra.mxu3 %v5171_v19  ;;  %v4203_v19 = vpop.f32.mrf.mxu1  ;;  %v4963_v21 = vrot.slane %v4961_v28, 4  ;;  %v5599_v54 = vrot.slane %v5597_v38, 4  ;;  %v5600_v34 = vrot.slane %v5461_v24, 5 }
 0x26e   : > { %v5598_v63 = vsel %vm13993_vm10, %v12283_v59, %v5597_v38  ;;  %v4954_v55 = vor.u32 %v4953_v47, %v4950_v35  ;;  %v13086_v35 = vld [vmem:[#allocation2 + $0x84] sm:$0xff] }
 0x26f   : > { %4546 = vmatmul.bf16.gmra.mxu2 %v13085_v23  ;;  %v14771_v31 = vpop.f32.mrf.mxu0  ;;  %v5149_v23 = vunpack.c.l.b16 %v4946_v27  ;;  %v5601_v6 = vsel %vm13993_vm10, %v5599_v54, %v5600_v34  ;;  %v5674_v28 = vunpack.c.l.b16 %v5598_v63  ;;  %v5464_v47 = vld [vmem:[#allocation2 + $0xa4] sm:$0x1]  ;;  %v4714_v34 = vld [vmem:[#allocation2 + $0x94] sm:$0xf] }
 0x270   : > { %v2935_v49 = vpop.f32.mrf.mxu3  ;;  %v5675_v24 = vunpack.c.l.b16 %v5601_v6  ;;  %v5607_v6 = vrot.slane %v5464_v47, 5 }
 0x271   : > { %v3002_v1 = vadd.f32 %v2935_v49, %v2624_v29  ;;  %v4712_v49 = vld [vmem:[#allocation2 + $0x8c] sm:$0x1] }
 0x272   : > { %v4507_v32 = vpop.f32.mrf.mxu2  ;;  %5819 = vmatmul.bf16.gmra.mxu0 %v5695_v37  ;;  %v4967_v30 = vshll.u32 %v4712_v49, 16  ;;  %v5172_v37 = vpack.c.b16 %v5149_v23, %v5148_v13  ;;  %v16790_v23 = vld [vmem:[#allocation31_spill] sm:$0xff] }
 0x273   : > { %v3748_v40 = vadd.f32 %v14722_v4, %v3002_v1  ;;  %v4964_v4 = vor.u32 %v4963_v21, %v4959_v36  ;;  %v4619_v54 = vadd.f32 %v4507_v32, %v16790_v23  ;;  %v4985_v32 = vshrl.u32 %v4714_v34, 16 }
 0x274   : > { %v4969_v59 = vrot.slane %v4967_v30, 5 }
 0x275   : > { %v14776_v29 = vadd.f32 %v4203_v19, %v3748_v40  ;;  %v4713_v19 = vld [vmem:[#allocation2 + $0x90] sm:$0xf]  ;;  %v4955_v40 = vrot.slane %v4954_v55, 4  ;;  %v4965_v38 = vrot.slane %v4964_v4, 4 }
 0x276   : > { %v4972_v13 = vshrl.u32 %v4713_v19, 16  ;;  %v4975_v21 = vshll.u32 %v4713_v19, 16 }
 0x277   : > { %16788 = vst [vmem:[#allocation20_spill] sm:$0xff] %v14776_v29  ;;  %v14780_v1 = vpop.f32.mrf.mxu0  ;;  %v4960_v63 = vsel %vm13392_vm14, %v4955_v40, %v4959_v36  ;;  %v4970_v55 = vsel %vm13392_vm14, %v4965_v38, %v4969_v59  ;;  %v13148_v36 = vld [vmem:[%s16704_s2 + $0x78] sm:$0xff] }
 0x278   : > { %v2937_v44 = vpop.f32.mrf.mxu3  ;;  %v4977_v19 = vrot.slane %v4975_v21, 5  ;;  %v5150_v40 = vunpack.c.l.b16 %v4960_v63  ;;  %v5151_v38 = vunpack.c.l.b16 %v4970_v55  ;;  %7521 = vmatpush.bf16.msrb.mxu2 %v13148_v36  ;;  %v4987_v21 = vrot.slane %v4985_v32, 4 }
 0x279   : > { %v3003_v2 = vadd.f32 %v2937_v44, %v2625_v48  ;;  %v5604_v44 = vrot.slane %v5463_v0, 5  ;;  %v5462_v48 = vld [vmem:[#allocation2 + $0x9c] sm:$0xe]  ;;  %v4974_v0 = vrot.slane %v4972_v13, 4 }
 0x27a   : > { %v4509_v27 = vpop.f32.mrf.mxu2  ;;  %v5173_v63 = vpack.c.b16 %v5151_v38, %v5150_v40  ;;  %v13087_v40 = vld [vmem:[#allocation2 + $0x90] sm:$0xff]  ;;  %v4716_v38 = vld [vmem:[#allocation2 + $0x9c] sm:$0xf] }
 0x27b   : > { %v14785_v16 = vadd.f32 %v14737_v61, %v3003_v2  ;;  %v5696_v61 = vpack.c.b16 %v5675_v24, %v5674_v28  ;;  %v12284_v2 = vrot.slane %v5462_v48, 9  ;;  %v13156_v24 = vld [vmem:[%s16704_s2 + $0xb8] sm:$0xff]  ;;  %v4978_v47 = vor.u32 %v4977_v19, %v4974_v0  ;;  %v5466_v19 = vld [vmem:[#allocation2 + $0xac] sm:$0xf] }
 0x27c   : > { %8043 = vmatpush.bf16.msrb.mxu3 %v13156_v24  ;;  %v4715_v48 = vld [vmem:[#allocation2 + $0x98] sm:$0x1] }
 0x27d   : > { %16789 = vst [vmem:[#allocation21_spill] sm:$0xff] %v14785_v16  ;;  %5292 = vmatmul.bf16.gmra.mxu3 %v5172_v37  ;;  %v5606_v37 = vrot.slane %v5604_v44, 4  ;;  %v4981_v16 = vshll.u32 %v4714_v34, 16 }
 0x27f   : > { %4551 = vmatmul.bf16.gmra.mxu2 %v13086_v35  ;;  %v14792_v30 = vpop.f32.mrf.mxu0  ;;  %v5605_v35 = vsel %vm13993_vm10, %v12284_v2, %v5604_v44  ;;  %v4983_v13 = vrot.slane %v4981_v16, 5  ;;  %v4991_v2 = vshll.u32 %v4715_v48, 16  ;;  %v13188_v16 = vld [vmem:[%s16704_s2 + $0x138] sm:$0xff]  ;;  %v4717_v48 = vld [vmem:[#allocation2 + $0xa0] sm:$0xf] }
 0x280   : > { %v5253_v49 = vpop.f32.mrf.mxu3  ;;  %v5676_v29 = vunpack.c.l.b16 %v5605_v35  ;;  %9167 = vmatpush.bf16.msrb.mxu1 %v13188_v16  ;;  %v5009_v16 = vshrl.u32 %v4717_v48, 16 }
 0x281   : > { %v5365_v4 = vadd.f32 %v5253_v49, %v4619_v54  ;;  %v4620_v54 = vadd.f32 %v4509_v27, %v14315_v20  ;;  %v4979_v20 = vrot.slane %v4978_v47, 4  ;;  %v4988_v27 = vor.u32 %v4987_v21, %v4983_v13 }
 0x282   : > { %v4512_v28 = vpop.f32.mrf.mxu2  ;;  %5824 = vmatmul.bf16.gmra.mxu0 %v5696_v61 }
 0x283   : > { %v5887_v23 = vadd.f32 %v14747_v9, %v5365_v4  ;;  %v5608_v9 = vsel %vm13993_vm10, %v5606_v37, %v5607_v6  ;;  %v13180_v37 = vld [vmem:[%s16704_s2 + $0xf8] sm:$0xff]  ;;  %v6432_v6 = vld [vmem:[#allocation3 + $0xc] sm:$0xf]  ;;  %v4989_v21 = vrot.slane %v4988_v27, 4 }
 0x284   : > { %v5677_v44 = vunpack.c.l.b16 %v5608_v9  ;;  %8421 = vmatpush.bf16.msrb.mxu0 %v13180_v37  ;;  %v4993_v9 = vrot.slane %v4991_v2, 5  ;;  %v4999_v37 = vshll.u32 %v4716_v38, 16  ;;  %v5005_v2 = vshll.u32 %v4717_v48, 16 }
 0x285   : > { %vm5983_vm13 = vcmp.gt.f32.partialorder %v5887_v23, 0.0  ;;  %v6015_v59 = vmul.f32 0.1, %v5887_v23 }
 0x286   : > { %v5697_v35 = vpack.c.b16 %v5677_v44, %v5676_v29 }
 0x287   : > { %v6047_v34 = vsel %vm5983_vm13, %v5887_v23, %v6015_v59  ;;  %v14806_v4 = vpop.f32.mrf.mxu0 }
 0x288   : > { %v6079_v49 = vpack.c.bf16 %v6047_v34, %v6047_v34  ;;  %v5255_v61 = vpop.f32.mrf.mxu3  ;;  %v5611_v34 = vrot.slane %v5466_v19, 5 }
 0x289   : > { %v5366_v55 = vadd.f32 %v5255_v61, %v4620_v54  ;;  %v5465_v54 = vld [vmem:[#allocation2 + $0xa8] sm:$0xe] }
 0x28a   : > { %v6112_v36 = vshrl.u32 %v6079_v49, 16  ;;  %v6115_v23 = vshll.u32 %v6079_v49, 16  ;;  %v4514_v24 = vpop.f32.mrf.mxu2  ;;  %v4621_v49 = vadd.f32 %v4512_v28, %v14335_v25  ;;  %v4994_v25 = vsel %vm13392_vm14, %v4989_v21, %v4993_v9 }
 0x28b   : > { %v5888_v0 = vadd.f32 %v14763_v46, %v5366_v55  ;;  %v4984_v46 = vsel %vm13392_vm14, %v4979_v20, %v4983_v13  ;;  %v5467_v55 = vld [vmem:[#allocation2 + $0xb0] sm:$0x1]  ;;  %v12285_v20 = vrot.slane %v5465_v54, 9  ;;  %v5613_v28 = vrot.slane %v5611_v34, 4  ;;  %v6436_v54 = vld [vmem:[#allocation3 + $0x14] sm:$0x1] }
 0x28c   : > { %v14815_v32 = vrot.slane %v6112_v36, 7  ;;  %v4996_v36 = vshrl.u32 %v4716_v38, 16  ;;  %v5152_v38 = vunpack.c.l.b16 %v4984_v46  ;;  %v5153_v53 = vunpack.c.l.b16 %v4994_v25 }
 0x28d   : > { %vm5984_vm0 = vcmp.gt.f32.partialorder %v5888_v0, 0.0  ;;  %v6016_v59 = vmul.f32 0.1, %v5888_v0  ;;  %5297 = vmatmul.bf16.gmra.mxu3 %v5173_v63  ;;  %v5612_v9 = vsel %vm13993_vm10, %v12285_v20, %v5611_v34 }
 0x28e   : > { %v6117_v47 = vor.u32 %v6115_v23, %v14815_v32 }
 0x28f   : > { %v6048_v61 = vsel %vm5984_vm0, %v5888_v0, %v6016_v59  ;;  %4556 = vmatmul.bf16.gmra.mxu2 %v13087_v40  ;;  %v14823_v13 = vpop.f32.mrf.mxu0  ;;  %v5614_v0 = vrot.slane %v5467_v55, 5  ;;  %v5001_v59 = vrot.slane %v4999_v37, 5  ;;  %v14828_v40 = vrot.slane %v5005_v2, 5 }
 0x290   : > { %v6433_v63 = vsel %vm13426_vm3, %v6117_v47, %v6432_v6  ;;  %v6080_v29 = vpack.c.bf16 %v6048_v61, %v6048_v61  ;;  %v5258_v44 = vpop.f32.mrf.mxu3  ;;  %v4998_v6 = vrot.slane %v4996_v36, 4 }
 0x291   : > { %6434 = vst [vmem:[#allocation3 + $0xc] sm:$0xf] %v6433_v63  ;;  %v5367_v23 = vadd.f32 %v5258_v44, %v4621_v49  ;;  %v4718_v49 = vld [vmem:[#allocation2 + $0xa4] sm:$0x1]  ;;  %v5011_v63 = vrot.slane %v5009_v16, 4  ;;  %v5615_v55 = vsel %vm13993_vm10, %v5613_v28, %v5614_v0  ;;  %v5678_v0 = vunpack.c.l.b16 %v5612_v9 }
 0x292   : > { %v6120_v27 = vshrl.u32 %v6080_v29, 16  ;;  %v6123_v61 = vshll.u32 %v6080_v29, 16  ;;  %v4517_v48 = vpop.f32.mrf.mxu2  ;;  %5829 = vmatmul.bf16.gmra.mxu0 %v5697_v35  ;;  %v4622_v35 = vadd.f32 %v4514_v24, %v14371_v52  ;;  %v5002_v37 = vor.u32 %v5001_v59, %v4998_v6  ;;  %v14845_v6 = vld [vmem:[#allocation2 + $0xb8] sm:$0xf]  ;;  %v6439_v59 = vld [vmem:[#allocation3 + $0x18] sm:$0xf] }
 0x293   : > { %v5889_v19 = vadd.f32 %v14771_v31, %v5367_v23  ;;  %v6118_v31 = vrot.slane %v14815_v32, 4  ;;  %v5015_v29 = vshll.u32 %v4718_v49, 16  ;;  %v5012_v32 = vor.u32 %v5011_v63, %v14828_v40  ;;  %v4719_v49 = vld [vmem:[#allocation2 + $0xa8] sm:$0xf] }
 0x294   : > { %v6122_v47 = vrot.slane %v6120_v27, 7  ;;  %v5174_v24 = vpack.c.b16 %v5153_v53, %v5152_v38  ;;  %v13088_v38 = vld [vmem:[#allocation2 + $0x9c] sm:$0xff]  ;;  %v5618_v9 = vrot.slane %v14845_v6, 5 }
 0x295   : > { %vm5985_vm4 = vcmp.gt.f32.partialorder %v5889_v19, 0.0  ;;  %v6017_v44 = vmul.f32 0.1, %v5889_v19 }
 0x296   : > { %v6125_v46 = vor.u32 %v6123_v61, %v6122_v47  ;;  %v6127_v21 = vrot.slane %v6122_v47, 4  ;;  %v5003_v61 = vrot.slane %v5002_v37, 4  ;;  %v5020_v37 = vshrl.u32 %v4719_v49, 16 }
 0x297   : > { %v6049_v36 = vsel %vm5985_vm4, %v5889_v19, %v6017_v44  ;;  %v14843_v52 = vpop.f32.mrf.mxu0  ;;  %v5679_v19 = vunpack.c.l.b16 %v5615_v55 }
 0x298   : > { %v6551_v2 = vld [vmem:[#allocation3 + $0xc] sm:$0x1]  ;;  %v6126_v16 = vsel %vm13414_vm1, %v6118_v31, %v6125_v46  ;;  %v6437_v23 = vsel %vm13405_vm15, %v6127_v21, %v6436_v54  ;;  %v6081_v34 = vpack.c.bf16 %v6049_v36, %v6049_v36  ;;  %v5260_v20 = vpop.f32.mrf.mxu3  ;;  %v5013_v31 = vrot.slane %v5012_v32, 4  ;;  %v4720_v21 = vld [vmem:[#allocation2 + $0xac] sm:$0xf] }
 0x299   : > { %v6552_v27 = vsel %vm13405_vm15, 0, %v6551_v2  ;;  %6435 = vst [vmem:[#allocation3 + $0x10] sm:$0xf] %v6126_v16  ;;  %v5368_v25 = vadd.f32 %v5260_v20, %v4622_v35  ;;  %v5017_v46 = vrot.slane %v5015_v29, 5  ;;  %v5698_v35 = vpack.c.b16 %v5679_v19, %v5678_v0  ;;  %v5468_v36 = vld [vmem:[#allocation2 + $0xb4] sm:$0xe] }
 0x29a   : > { %6553 = vst [vmem:[#allocation3 + $0xc] sm:$0x1] %v6552_v27  ;;  %v6129_v28 = vshrl.u32 %v6081_v34, 16  ;;  %v6132_v54 = vshll.u32 %v6081_v34, 16  ;;  %v4519_v44 = vpop.f32.mrf.mxu2  ;;  %v5023_v2 = vshll.u32 %v4719_v49, 16  ;;  %v4623_v16 = vadd.f32 %v4517_v48, %v14398_v10 }
 0x29b   : > { %6438 = vst [vmem:[#allocation3 + $0x14] sm:$0x1] %v6437_v23  ;;  %v5890_v47 = vadd.f32 %v14780_v1, %v5368_v25  ;;  %v5470_v1 = vld [vmem:[#allocation2 + $0xbc] sm:$0x1]  ;;  %v5029_v34 = vshll.u32 %v4720_v21, 16  ;;  %v5033_v20 = vshrl.u32 %v4720_v21, 16  ;;  %v5008_v25 = vsel %vm13392_vm14, %v5003_v61, %v14828_v40 }
 0x29c   : > { %v14848_v63 = vrot.slane %v6129_v28, 7  ;;  %v12286_v48 = vrot.slane %v5468_v36, 9  ;;  %v5620_v19 = vrot.slane %v5618_v9, 4  ;;  %v5621_v6 = vrot.slane %v5470_v1, 5  ;;  %v4721_v61 = vld [vmem:[#allocation2 + $0xb0] sm:$0x1] }
 0x29d   : > { %vm5986_vm5 = vcmp.gt.f32.partialorder %v5890_v47, 0.0  ;;  %v6018_v53 = vmul.f32 0.1, %v5890_v47  ;;  %5302 = vmatmul.bf16.gmra.mxu3 %v5174_v24  ;;  %v5018_v24 = vsel %vm13392_vm14, %v5013_v31, %v5017_v46  ;;  %v5022_v49 = vrot.slane %v5020_v37, 4  ;;  %v13147_v36 = vld [vmem:[%s16704_s2 + $0x70] sm:$0xff] }
 0x29e   : > { %v6134_v55 = vor.u32 %v6132_v54, %v14848_v63  ;;  %v5025_v54 = vrot.slane %v5023_v2, 5  ;;  %v14865_v31 = vrot.slane %v5029_v34, 5  ;;  %v5035_v46 = vrot.slane %v5033_v20, 4  ;;  %v13155_v1 = vld [vmem:[%s16704_s2 + $0xb0] sm:$0xff]  ;;  %v6443_v2 = vld [vmem:[#allocation3 + $0x20] sm:$0x1]  ;;  %7522 = vmatpush.bf16.msrb.mxu2 %v13147_v36 }
 0x29f   : > { %v6050_v23 = vsel %vm5986_vm5, %v5890_v47, %v6018_v53  ;;  %4561 = vmatmul.bf16.gmra.mxu2 %v13088_v38  ;;  %v14860_v0 = vpop.f32.mrf.mxu0  ;;  %v5154_v37 = vunpack.c.l.b16 %v5008_v25  ;;  %v5622_v34 = vsel %vm13993_vm10, %v5620_v19, %v5621_v6  ;;  %8044 = vmatpush.bf16.msrb.mxu3 %v13155_v1 }
 0x2a0   : > { %v6440_v29 = vsel %vm13426_vm3, %v6134_v55, %v6439_v59  ;;  %v6082_v32 = vpack.c.bf16 %v6050_v23, %v6050_v23  ;;  %v5263_v27 = vpop.f32.mrf.mxu3  ;;  %v5619_v23 = vsel %vm13993_vm10, %v12286_v48, %v5618_v9 }
 0x2a1   : > { %6441 = vst [vmem:[#allocation3 + $0x18] sm:$0xf] %v6440_v29  ;;  %v5369_v28 = vadd.f32 %v5263_v27, %v4623_v16  ;;  %v13118_v10 = vld [vmem:[#allocation3 + $0xc] sm:$0xff]  ;;  %v4624_v27 = vadd.f32 %v4519_v44, %v14423_v58  ;;  %v13179_v44 = vld [vmem:[%s16704_s2 + $0xf0] sm:$0xff] }
 0x2a2   : > { %v6599_v47 = vld [vmem:[#allocation3 + $0x14] sm:$0x1]  ;;  %v6137_v59 = vshrl.u32 %v6082_v32, 16  ;;  %6852 = vmatmul.bf16.gmra.mxu1 %v13118_v10  ;;  %v6140_v38 = vshll.u32 %v6082_v32, 16  ;;  %v4522_v55 = vpop.f32.mrf.mxu2  ;;  %5834 = vmatmul.bf16.gmra.mxu0 %v5698_v35  ;;  %v6135_v35 = vrot.slane %v14848_v63, 4  ;;  %v5039_v32 = vshll.u32 %v4721_v61, 16 }
 0x2a3   : > { %v6600_v21 = vsel %vm13473_vm8, 0, %v6599_v47  ;;  %v5891_v40 = vadd.f32 %v14792_v30, %v5369_v28  ;;  %v5155_v30 = vunpack.c.l.b16 %v5018_v24  ;;  %v5026_v24 = vor.u32 %v5025_v54, %v5022_v49  ;;  %v13187_v54 = vld [vmem:[%s16704_s2 + $0x130] sm:$0xff]  ;;  %v6446_v61 = vld [vmem:[#allocation3 + $0x24] sm:$0xf]  ;;  %8422 = vmatpush.bf16.msrb.mxu0 %v13179_v44 }
 0x2a4   : > { %6601 = vst [vmem:[#allocation3 + $0x14] sm:$0x1] %v6600_v21  ;;  %v6139_v53 = vrot.slane %v6137_v59, 7  ;;  %v5036_v28 = vor.u32 %v5035_v46, %v14865_v31  ;;  %v5680_v21 = vunpack.c.l.b16 %v5619_v23  ;;  %v5041_v36 = vrot.slane %v5039_v32, 5  ;;  %9168 = vmatpush.bf16.msrb.mxu1 %v13187_v54  ;;  %v4722_v23 = vld [vmem:[#allocation2 + $0xb4] sm:$0xf] }
 0x2a5   : > { %vm5987_vm7 = vcmp.gt.f32.partialorder %v5891_v40, 0.0  ;;  %v6019_v16 = vmul.f32 0.1, %v5891_v40  ;;  %v5175_v58 = vpack.c.b16 %v5155_v30, %v5154_v37  ;;  %v4625_v32 = vadd.f32 %v4522_v55, %v14442_v22 }
 0x2a6   : > { %v6142_v20 = vor.u32 %v6140_v38, %v6139_v53  ;;  %v6144_v29 = vrot.slane %v6139_v53, 4  ;;  %v5027_v53 = vrot.slane %v5026_v24, 4  ;;  %v5037_v38 = vrot.slane %v5036_v28, 4 }
 0x2a7   : > { %v6051_v25 = vsel %vm5987_vm7, %v5891_v40, %v6019_v16  ;;  %v14886_v59 = vpop.f32.mrf.mxu0  ;;  %v5681_v40 = vunpack.c.l.b16 %v5622_v34  ;;  %v14897_v16 = vld [vmem:[#allocation2 + $0xc4] sm:$0xf] }
 0x2a8   : > { %v6554_v10 = vld [vmem:[#allocation3 + $0x18] sm:$0x1]  ;;  %v6143_v9 = vsel %vm13414_vm1, %v6135_v35, %v6142_v20  ;;  %v6444_v48 = vsel %vm13405_vm15, %v6144_v29, %v6443_v2  ;;  %v6083_v19 = vpack.c.bf16 %v6051_v25, %v6051_v25  ;;  %v5265_v63 = vpop.f32.mrf.mxu3  ;;  %v13089_v2 = vld [vmem:[#allocation2 + $0xa8] sm:$0xff]  ;;  %v4723_v29 = vld [vmem:[#allocation2 + $0xb8] sm:$0xf]  ;;  %v5032_v25 = vsel %vm13392_vm14, %v5027_v53, %v14865_v31 }
 0x2a9   : > { %v6555_v6 = vsel %vm13405_vm15, 0, %v6554_v10  ;;  %6442 = vst [vmem:[#allocation3 + $0x1c] sm:$0xf] %v6143_v9  ;;  %v5370_v47 = vadd.f32 %v5265_v63, %v4624_v27  ;;  %v5699_v20 = vpack.c.b16 %v5681_v40, %v5680_v21  ;;  %v5042_v24 = vsel %vm13392_vm14, %v5037_v38, %v5041_v36  ;;  %v6450_v53 = vld [vmem:[#allocation3 + $0x2c] sm:$0x1] }
 0x2aa   : > { %6556 = vst [vmem:[#allocation3 + $0x18] sm:$0x1] %v6555_v6  ;;  %v6146_v49 = vshrl.u32 %v6083_v19, 16  ;;  %v6149_v37 = vshll.u32 %v6083_v19, 16  ;;  %v4524_v30 = vpop.f32.mrf.mxu2  ;;  %v5473_v19 = vld [vmem:[#allocation2 + $0xc8] sm:$0x1]  ;;  %v14914_v54 = vunpack.c.l.b16 %v5032_v25  ;;  %v14916_v21 = vunpack.c.l.b16 %v5042_v24 }
 0x2ab   : > { %6445 = vst [vmem:[#allocation3 + $0x20] sm:$0x1] %v6444_v48  ;;  %v5892_v46 = vadd.f32 %v14806_v4, %v5370_v47  ;;  %v13178_v4 = vld [vmem:[%s16704_s2 + $0xe8] sm:$0xff]  ;;  %v5471_v48 = vld [vmem:[#allocation2 + $0xc0] sm:$0xe]  ;;  %v5625_v63 = vrot.slane %v14897_v16, 5 }
 0x2ac   : > { %v14895_v1 = vrot.slane %v6146_v49, 7  ;;  %8423 = vmatpush.bf16.msrb.mxu0 %v13178_v4  ;;  %v5044_v6 = vshrl.u32 %v4722_v23, 16  ;;  %v5047_v47 = vshll.u32 %v4722_v23, 16  ;;  %v5057_v40 = vshrl.u32 %v4723_v29, 16 }
 0x2ad   : > { %vm5988_vm6 = vcmp.gt.f32.partialorder %v5892_v46, 0.0  ;;  %v6020_v35 = vmul.f32 0.1, %v5892_v46  ;;  %5307 = vmatmul.bf16.gmra.mxu3 %v5175_v58  ;;  %v5053_v58 = vshll.u32 %v4723_v29, 16  ;;  %v12287_v36 = vrot.slane %v5471_v48, 9 }
 0x2ae   : > { %v6151_v34 = vor.u32 %v6149_v37, %v14895_v1  ;;  %v5628_v37 = vrot.slane %v5473_v19, 5  ;;  %v5627_v23 = vrot.slane %v5625_v63, 4  ;;  %v5046_v4 = vrot.slane %v5044_v6, 4  ;;  %v4725_v6 = vld [vmem:[#allocation2 + $0xc0] sm:$0xf] }
 0x2af   : > { %v6052_v27 = vsel %vm5988_vm6, %v5892_v46, %v6020_v35  ;;  %4566 = vmatmul.bf16.gmra.mxu2 %v13089_v2  ;;  %v14912_v55 = vpop.f32.mrf.mxu0  ;;  %v5049_v29 = vrot.slane %v5047_v47, 5  ;;  %v5176_v48 = vpack.c.b16 %v14916_v21, %v14914_v54  ;;  %v5626_v19 = vsel %vm13993_vm10, %v12287_v36, %v5625_v63 }
 0x2b0   : > { %v6447_v28 = vsel %vm13426_vm3, %v6151_v34, %v6446_v61  ;;  %v6084_v10 = vpack.c.bf16 %v6052_v27, %v6052_v27  ;;  %v5268_v9 = vpop.f32.mrf.mxu3  ;;  %v13177_v61 = vld [vmem:[%s16704_s2 + $0xe0] sm:$0xff]  ;;  %v6152_v27 = vrot.slane %v14895_v1, 4  ;;  %v5071_v36 = vshll.u32 %v4725_v6, 16 }
 0x2b1   : > { %6448 = vst [vmem:[#allocation3 + $0x24] sm:$0xf] %v6447_v28  ;;  %v5371_v22 = vadd.f32 %v5268_v9, %v4625_v32  ;;  %v13119_v31 = vld [vmem:[#allocation3 + $0x18] sm:$0xff]  ;;  %v14926_v32 = vrot.slane %v5053_v58, 5  ;;  %8424 = vmatpush.bf16.msrb.mxu0 %v13177_v61  ;;  %v4724_v28 = vld [vmem:[#allocation2 + $0xbc] sm:$0x1]  ;;  %v5050_v54 = vor.u32 %v5049_v29, %v5046_v4 }
 0x2b2   : > { %v6602_v44 = vld [vmem:[#allocation3 + $0x20] sm:$0x1]  ;;  %v6154_v49 = vshrl.u32 %v6084_v10, 16  ;;  %6857 = vmatmul.bf16.gmra.mxu1 %v13119_v31  ;;  %v6157_v16 = vshll.u32 %v6084_v10, 16  ;;  %v14924_v35 = vpop.f32.mrf.mxu2  ;;  %5839 = vmatmul.bf16.gmra.mxu0 %v5699_v20  ;;  %v5059_v10 = vrot.slane %v5057_v40, 4  ;;  %v4626_v20 = vadd.f32 %v4524_v30, %v14468_v7  ;;  %v13175_v40 = vld [vmem:[%s16704_s2 + $0xd0] sm:$0xff] }
 0x2b3   : > { %v6603_v46 = vsel %vm13473_vm8, 0, %v6602_v44  ;;  %v5893_v38 = vadd.f32 %v14823_v13, %v5371_v22  ;;  %v13176_v13 = vld [vmem:[%s16704_s2 + $0xd8] sm:$0xff]  ;;  %v5629_v7 = vsel %vm13993_vm10, %v5627_v23, %v5628_v37  ;;  %v4726_v30 = vld [vmem:[#allocation2 + $0xc4] sm:$0xf]  ;;  %v5063_v21 = vshll.u32 %v4724_v28, 16 }
 0x2b4   : > { %6604 = vst [vmem:[#allocation3 + $0x20] sm:$0x1] %v6603_v46  ;;  %v6156_v2 = vrot.slane %v6154_v49, 7  ;;  %v13146_v46 = vld [vmem:[%s16704_s2 + $0x68] sm:$0xff]  ;;  %v5051_v28 = vrot.slane %v5050_v54, 4 }
 0x2b5   : > { %vm5989_vm9 = vcmp.gt.f32.partialorder %v5893_v38, 0.0  ;;  %v6021_v34 = vmul.f32 0.1, %v5893_v38  ;;  %8425 = vmatpush.bf16.msrb.mxu0 %v13176_v13  ;;  %v13090_v13 = vld [vmem:[#allocation2 + $0xb4] sm:$0xff]  ;;  %7523 = vmatpush.bf16.msrb.mxu2 %v13146_v46 }
 0x2b6   : > { %v6159_v25 = vor.u32 %v6157_v16, %v6156_v2  ;;  %v6161_v24 = vrot.slane %v6156_v2, 4  ;;  %v5077_v2 = vshll.u32 %v4726_v30, 16  ;;  %v5081_v16 = vshrl.u32 %v4726_v30, 16 }
 0x2b7   : > { %v6053_v9 = vsel %vm5989_vm9, %v5893_v38, %v6021_v34  ;;  %v14945_v63 = vpop.f32.mrf.mxu0  ;;  %v5068_v38 = vshrl.u32 %v4725_v6, 16  ;;  %v6453_v34 = vld [vmem:[#allocation3 + $0x30] sm:$0xf]  ;;  %v14963_v6 = vld [vmem:[#allocation2 + $0xd0] sm:$0xf]  ;;  %v4249_v30 = vadd.f32 %v14448_v56, %v14508_v51  ;;  %v5056_v46 = vsel %vm13392_vm14, %v5051_v28, %v14926_v32 }
 0x2b8   : > { %v6557_v22 = vld [vmem:[#allocation3 + $0x24] sm:$0x1]  ;;  %v6160_v31 = vsel %vm13414_vm1, %v6152_v27, %v6159_v25  ;;  %v6451_v1 = vsel %vm13405_vm15, %v6161_v24, %v6450_v53  ;;  %v6085_v47 = vpack.c.bf16 %v6053_v9, %v6053_v9  ;;  %v5270_v58 = vpop.f32.mrf.mxu3  ;;  %v5060_v53 = vor.u32 %v5059_v10, %v14926_v32 }
 0x2b9   : > { %v6558_v44 = vsel %vm13405_vm15, 0, %v6557_v22  ;;  %6449 = vst [vmem:[#allocation3 + $0x28] sm:$0xf] %v6160_v31  ;;  %v5372_v49 = vadd.f32 %v5270_v58, %v4626_v20  ;;  %v5682_v27 = vunpack.c.l.b16 %v5626_v19  ;;  %v5683_v25 = vunpack.c.l.b16 %v5629_v7  ;;  %8426 = vmatpush.bf16.msrb.mxu0 %v13175_v40  ;;  %v13145_v19 = vld [vmem:[%s16704_s2 + $0x60] sm:$0xff]  ;;  %v4727_v40 = vld [vmem:[#allocation2 + $0xc8] sm:$0x1] }
 0x2ba   : > { %6559 = vst [vmem:[#allocation3 + $0x24] sm:$0x1] %v6558_v44  ;;  %v6163_v61 = vshrl.u32 %v6085_v47, 16  ;;  %v6166_v4 = vshll.u32 %v6085_v47, 16  ;;  %v14957_v29 = vpop.f32.mrf.mxu2  ;;  %v5065_v10 = vrot.slane %v5063_v21, 5  ;;  %v5061_v9 = vrot.slane %v5060_v53, 4  ;;  %7524 = vmatpush.bf16.msrb.mxu2 %v13145_v19 }
 0x2bb   : > { %6452 = vst [vmem:[#allocation3 + $0x2c] sm:$0x1] %v6451_v1  ;;  %v5894_v37 = vadd.f32 %v14843_v52, %v5372_v49  ;;  %v13174_v52 = vld [vmem:[%s16704_s2 + $0xc8] sm:$0xff]  ;;  %v5070_v22 = vrot.slane %v5068_v38, 4  ;;  %v5073_v31 = vrot.slane %v5071_v36, 5  ;;  %v14972_v58 = vrot.slane %v5077_v2, 5 }
 0x2bc   : > { %v14955_v23 = vrot.slane %v6163_v61, 7  ;;  %v14970_v47 = vld [vmem:[#allocation2 + $0xcc] sm:$0xe]  ;;  %v5083_v7 = vrot.slane %v5081_v16, 4  ;;  %v5700_v21 = vpack.c.b16 %v5683_v25, %v5682_v27  ;;  %v5476_v53 = vld [vmem:[#allocation2 + $0xd4] sm:$0x1]  ;;  %v5066_v36 = vsel %vm13392_vm14, %v5061_v9, %v5065_v10 }
 0x2bd   : > { %vm5990_vm11 = vcmp.gt.f32.partialorder %v5894_v37, 0.0  ;;  %v6022_v24 = vmul.f32 0.1, %v5894_v37  ;;  %5312 = vmatmul.bf16.gmra.mxu3 %v5176_v48  ;;  %v4627_v48 = vadd.f32 %v14924_v35, %v14487_v3  ;;  %v5632_v56 = vrot.slane %v14963_v6, 5  ;;  %8427 = vmatpush.bf16.msrb.mxu0 %v13174_v52  ;;  %v13173_v16 = vld [vmem:[%s16704_s2 + $0xc0] sm:$0xff]  ;;  %v13144_v32 = vld [vmem:[%s16704_s2 + $0x58] sm:$0xff] }
 0x2be   : > { %v6168_v20 = vor.u32 %v6166_v4, %v14955_v23  ;;  %v5074_v2 = vor.u32 %v5073_v31, %v5070_v22  ;;  %v5087_v27 = vshll.u32 %v4727_v40, 16  ;;  %v13154_v10 = vld [vmem:[%s16704_s2 + $0xa8] sm:$0xff]  ;;  %v5158_v52 = vunpack.c.l.b16 %v5056_v46  ;;  %7525 = vmatpush.bf16.msrb.mxu2 %v13144_v32  ;;  %v6457_v9 = vld [vmem:[#allocation3 + $0x38] sm:$0x1] }
 0x2bf   : > { %v6054_v1 = vsel %vm5990_vm11, %v5894_v37, %v6022_v24  ;;  %4571 = vmatmul.bf16.gmra.mxu2 %v13090_v13  ;;  %v14978_v3 = vpop.f32.mrf.mxu0  ;;  %v12288_v37 = vrot.slane %v14970_v47, 9  ;;  %v5084_v13 = vor.u32 %v5083_v7, %v14972_v58  ;;  %v5159_v6 = vunpack.c.l.b16 %v5066_v36  ;;  %8045 = vmatpush.bf16.msrb.mxu3 %v13154_v10  ;;  %v13143_v47 = vld [vmem:[%s16704_s2 + $0x50] sm:$0xff]  ;;  %v4728_v36 = vld [vmem:[#allocation2 + $0xcc] sm:$0xf] }
 0x2c0   : > { %v6454_v44 = vsel %vm13426_vm3, %v6168_v20, %v6453_v34  ;;  %v6086_v49 = vpack.c.bf16 %v6054_v1, %v6054_v1  ;;  %v5273_v54 = vpop.f32.mrf.mxu3  ;;  %v5635_v20 = vrot.slane %v5476_v53, 5  ;;  %v5634_v22 = vrot.slane %v5632_v56, 4 }
 0x2c1   : > { %6455 = vst [vmem:[#allocation3 + $0x30] sm:$0xf] %v6454_v44  ;;  %v5373_v61 = vadd.f32 %v5273_v54, %v4627_v48  ;;  %v13120_v35 = vld [vmem:[#allocation3 + $0x24] sm:$0xff]  ;;  %8428 = vmatpush.bf16.msrb.mxu0 %v13173_v16  ;;  %v6169_v31 = vrot.slane %v14955_v23, 4  ;;  %v5075_v1 = vrot.slane %v5074_v2, 4  ;;  %v4628_v7 = vadd.f32 %v14957_v29, %v4249_v30  ;;  %v13186_v16 = vld [vmem:[%s16704_s2 + $0x128] sm:$0xff] }
 0x2c2   : > { %v6605_v51 = vld [vmem:[#allocation3 + $0x2c] sm:$0x1]  ;;  %v6171_v38 = vshrl.u32 %v6086_v49, 16  ;;  %6862 = vmatmul.bf16.gmra.mxu1 %v13120_v35  ;;  %v6174_v24 = vshll.u32 %v6086_v49, 16  ;;  %v14997_v28 = vpop.f32.mrf.mxu2  ;;  %5844 = vmatmul.bf16.gmra.mxu0 %v5700_v21  ;;  %v5085_v49 = vrot.slane %v5084_v13, 4  ;;  %v5089_v54 = vrot.slane %v5087_v27, 5 }
 0x2c3   : > { %v6606_v4 = vsel %vm13473_vm8, 0, %v6605_v51  ;;  %v5895_v34 = vadd.f32 %v14860_v0, %v5373_v61  ;;  %v5633_v46 = vsel %vm13993_vm10, %v12288_v37, %v5632_v56  ;;  %7526 = vmatpush.bf16.msrb.mxu2 %v13143_v47  ;;  %v5177_v51 = vpack.c.b16 %v5159_v6, %v5158_v52  ;;  %v13153_v56 = vld [vmem:[%s16704_s2 + $0xa0] sm:$0xff]  ;;  %9169 = vmatpush.bf16.msrb.mxu1 %v13186_v16  ;;  %v4729_v52 = vld [vmem:[#allocation2 + $0xd0] sm:$0xf]  ;;  %v6464_v16 = vld [vmem:[#allocation3 + $0x44] sm:$0x1] }
 0x2c4   : > { %6607 = vst [vmem:[#allocation3 + $0x2c] sm:$0x1] %v6606_v4  ;;  %v6173_v25 = vrot.slane %v6171_v38, 7  ;;  %v5636_v38 = vsel %vm13993_vm10, %v5634_v22, %v5635_v20  ;;  %v5080_v32 = vsel %vm13392_vm14, %v5075_v1, %v14972_v58  ;;  %v5090_v4 = vsel %vm13392_vm14, %v5085_v49, %v5089_v54  ;;  %8046 = vmatpush.bf16.msrb.mxu3 %v13153_v56  ;;  %v13091_v20 = vld [vmem:[#allocation2 + $0xc0] sm:$0xff] }
 0x2c5   : > { %vm5991_vm12 = vcmp.gt.f32.partialorder %v5895_v34, 0.0  ;;  %v6023_v0 = vmul.f32 0.1, %v5895_v34  ;;  %v5684_v10 = vunpack.c.l.b16 %v5633_v46  ;;  %v15039_v6 = vunpack.c.l.b16 %v5080_v32 }
 0x2c6   : > { %v6176_v19 = vor.u32 %v6174_v24, %v6173_v25  ;;  %v6178_v48 = vrot.slane %v6173_v25, 4  ;;  %v6460_v25 = vld [vmem:[#allocation3 + $0x3c] sm:$0xf]  ;;  %v15041_v22 = vunpack.c.l.b16 %v5090_v4  ;;  %v5095_v47 = vshll.u32 %v4728_v36, 16 }
 0x2c7   : > { %v6055_v44 = vsel %vm5991_vm12, %v5895_v34, %v6023_v0  ;;  %v15015_v30 = vpop.f32.mrf.mxu0  ;;  %v13142_v34 = vld [vmem:[%s16704_s2 + $0x48] sm:$0xff] }
 0x2c8   : > { %v6560_v21 = vld [vmem:[#allocation3 + $0x30] sm:$0x1]  ;;  %v6177_v40 = vsel %vm13414_vm1, %v6169_v31, %v6176_v19  ;;  %v6458_v23 = vsel %vm13405_vm15, %v6178_v48, %v6457_v9  ;;  %v6087_v61 = vpack.c.bf16 %v6055_v44, %v6055_v44  ;;  %v5275_v35 = vpop.f32.mrf.mxu3  ;;  %7527 = vmatpush.bf16.msrb.mxu2 %v13142_v34  ;;  %v5092_v9 = vshrl.u32 %v4728_v36, 16  ;;  %v13152_v31 = vld [vmem:[%s16704_s2 + $0x98] sm:$0xff]  ;;  %v13141_v19 = vld [vmem:[%s16704_s2 + $0x40] sm:$0xff] }
 0x2c9   : > { %v6561_v53 = vsel %vm13405_vm15, 0, %v6560_v21  ;;  %6456 = vst [vmem:[#allocation3 + $0x34] sm:$0xf] %v6177_v40  ;;  %v5374_v29 = vadd.f32 %v5275_v35, %v4628_v7  ;;  %v4629_v48 = vadd.f32 %v14997_v28, %v14518_v42  ;;  %v5101_v7 = vshll.u32 %v4729_v52, 16  ;;  %8047 = vmatpush.bf16.msrb.mxu3 %v13152_v31  ;;  %v13151_v36 = vld [vmem:[%s16704_s2 + $0x90] sm:$0xff] }
 0x2ca   : > { %6562 = vst [vmem:[#allocation3 + $0x30] sm:$0x1] %v6561_v53  ;;  %v6180_v2 = vshrl.u32 %v6087_v61, 16  ;;  %v6183_v27 = vshll.u32 %v6087_v61, 16  ;;  %v15036_v24 = vpop.f32.mrf.mxu2  ;;  %v5105_v40 = vshrl.u32 %v4729_v52, 16  ;;  %v5094_v46 = vrot.slane %v5092_v9, 4 }
 0x2cb   : > { %6459 = vst [vmem:[#allocation3 + $0x38] sm:$0x1] %v6458_v23  ;;  %v5896_v37 = vadd.f32 %v14886_v59, %v5374_v29  ;;  %v5685_v59 = vunpack.c.l.b16 %v5636_v38  ;;  %v6960_v53 = vld [vmem:[#allocation3] sm:$0xf]  ;;  %v4251_v42 = vadd.f32 %v14492_v60, %v14541_v26  ;;  %v6961_v38 = vld [vmem:[#allocation3 + $0x4] sm:$0xf] }
 0x2cc   : > { %v15034_v13 = vrot.slane %v6180_v2, 7  ;;  %7528 = vmatpush.bf16.msrb.mxu2 %v13141_v19  ;;  %v5097_v60 = vrot.slane %v5095_v47, 5  ;;  %v15065_v26 = vrot.slane %v5101_v7, 5  ;;  %v7018_v52 = vshll.u32 %v6961_v38, 16 }
 0x2cd   : > { %vm5992_vm13 = vcmp.gt.f32.partialorder %v5896_v37, 0.0  ;;  %v6024_v58 = vmul.f32 0.1, %v5896_v37  ;;  %5317 = vmatmul.bf16.gmra.mxu3 %v5177_v51  ;;  %v5701_v21 = vpack.c.b16 %v5685_v59, %v5684_v10  ;;  %v5178_v51 = vpack.c.b16 %v15041_v22, %v15039_v6  ;;  %v13157_v22 = vld [vmem:[#allocation3 + $0xc] sm:$0xff] }
 0x2ce   : > { %v6185_v0 = vor.u32 %v6183_v27, %v15034_v13  ;;  %v5107_v27 = vrot.slane %v5105_v40, 4  ;;  %8048 = vmatpush.bf16.msrb.mxu3 %v13151_v36  ;;  %v7012_v59 = vshll.u32 %v6960_v53, 16  ;;  %v7022_v9 = vshrl.u32 %v6961_v38, 16 }
 0x2cf   : > { %v6056_v1 = vsel %vm5992_vm13, %v5896_v37, %v6024_v58  ;;  %4576 = vmatmul.bf16.gmra.mxu2 %v13091_v20  ;;  %v15053_v61 = vpop.f32.mrf.mxu0  ;;  %v4730_v37 = vld [vmem:[#allocation2 + $0xd4] sm:$0x1]  ;;  %v6186_v58 = vrot.slane %v15034_v13, 4  ;;  %v4630_v31 = vadd.f32 %v15036_v24, %v4251_v42  ;;  %v15083_v42 = vrot.slane %v7018_v52, 5 }
 0x2d0   : > { %v6461_v44 = vsel %vm13426_vm3, %v6185_v0, %v6460_v25  ;;  %v6088_v49 = vpack.c.bf16 %v6056_v1, %v6056_v1  ;;  %v5278_v54 = vpop.f32.mrf.mxu3  ;;  %v7009_v25 = vshrl.u32 %v6960_v53, 16  ;;  %v13150_v0 = vld [vmem:[%s16704_s2 + $0x88] sm:$0xff]  ;;  %v5111_v1 = vshll.u32 %v4730_v37, 16 }
 0x2d1   : > { %6462 = vst [vmem:[#allocation3 + $0x3c] sm:$0xf] %v6461_v44  ;;  %v5375_v23 = vadd.f32 %v5278_v54, %v4629_v48  ;;  %v13121_v35 = vld [vmem:[#allocation3 + $0x30] sm:$0xff]  ;;  %v5098_v48 = vor.u32 %v5097_v60, %v5094_v46  ;;  %v5108_v54 = vor.u32 %v5107_v27, %v15065_v26  ;;  %v15081_v46 = vld [vmem:[#allocation3 + $0xc] sm:$0xf] }
 0x2d2   : > { %v6608_v28 = vld [vmem:[#allocation3 + $0x38] sm:$0x1]  ;;  %v6188_v29 = vshrl.u32 %v6088_v49, 16  ;;  %6867 = vmatmul.bf16.gmra.mxu1 %v13121_v35  ;;  %v6191_v4 = vshll.u32 %v6088_v49, 16  ;;  %v4537_v34 = vpop.f32.mrf.mxu2  ;;  %5849 = vmatmul.bf16.gmra.mxu0 %v5701_v21  ;;  %v7014_v35 = vrot.slane %v7012_v59, 5 }
 0x2d3   : > { %v6609_v2 = vsel %vm13473_vm8, 0, %v6608_v28  ;;  %v5897_v56 = vadd.f32 %v14912_v55, %v5375_v23  ;;  %8049 = vmatpush.bf16.msrb.mxu3 %v13150_v0  ;;  %v7011_v23 = vrot.slane %v7009_v25, 4  ;;  %v7024_v28 = vrot.slane %v7022_v9, 4  ;;  %v13092_v25 = vld [vmem:[#allocation2 + $0xcc] sm:$0xff] }
 0x2d4   : > { %6610 = vst [vmem:[#allocation3 + $0x38] sm:$0x1] %v6609_v2  ;;  %v6190_v32 = vrot.slane %v6188_v29, 7  ;;  %v13149_v29 = vld [vmem:[%s16704_s2 + $0x80] sm:$0xff]  ;;  %v5099_v36 = vrot.slane %v5098_v48, 4  ;;  %v5109_v60 = vrot.slane %v5108_v54, 4 }
 0x2d5   : > { %vm5993_vm0 = vcmp.gt.f32.partialorder %v5897_v56, 0.0  ;;  %v6025_v10 = vmul.f32 0.1, %v5897_v56  ;;  %v6962_v2 = vld [vmem:[#allocation3 + $0x8] sm:$0x1]  ;;  %v7025_v59 = vor.u32 %v7024_v28, %v15083_v42 }
 0x2d6   : > { %v6193_v55 = vor.u32 %v6191_v4, %v6190_v32  ;;  %v6195_v20 = vrot.slane %v6190_v32, 4  ;;  %v5113_v32 = vrot.slane %v5111_v1, 5  ;;  %v6467_v4 = vld [vmem:[#allocation3 + $0x48] sm:$0xf]  ;;  %v7028_v52 = vshll.u32 %v6962_v2, 16 }
 0x2d7   : > { %v6057_v19 = vsel %vm5993_vm0, %v5897_v56, %v6025_v10  ;;  %v15079_v40 = vpop.f32.mrf.mxu0  ;;  %8050 = vmatpush.bf16.msrb.mxu3 %v13149_v29  ;;  %v7015_v10 = vor.u32 %v7014_v35, %v7011_v23  ;;  %v6471_v29 = vld [vmem:[#allocation3 + $0x50] sm:$0x1] }
 0x2d8   : > { %v6563_v47 = vld [vmem:[#allocation3 + $0x3c] sm:$0x1]  ;;  %v6194_v7 = vsel %vm13414_vm1, %v6186_v58, %v6193_v55  ;;  %v6465_v44 = vsel %vm13405_vm15, %v6195_v20, %v6464_v16  ;;  %v6089_v13 = vpack.c.bf16 %v6057_v19, %v6057_v19  ;;  %v5280_v49 = vpop.f32.mrf.mxu3  ;;  %v15096_v58 = vld [vmem:[#allocation3 + $0x10] sm:$0xf]  ;;  %v7033_v55 = vshrl.u32 %v15081_v46, 16 }
 0x2d9   : > { %v6564_v21 = vsel %vm13405_vm15, 0, %v6563_v47  ;;  %6463 = vst [vmem:[#allocation3 + $0x40] sm:$0xf] %v6194_v7  ;;  %v5376_v24 = vadd.f32 %v5280_v49, %v4630_v31  ;;  %v4631_v20 = vadd.f32 %v4537_v34, %v14549_v12  ;;  %v5114_v19 = vsel %vm13392_vm14, %v5109_v60, %v5113_v32 }
 0x2da   : > { %6565 = vst [vmem:[#allocation3 + $0x3c] sm:$0x1] %v6564_v21  ;;  %v6197_v53 = vshrl.u32 %v6089_v13, 16  ;;  %v6200_v56 = vshll.u32 %v6089_v13, 16  ;;  %v4539_v37 = vpop.f32.mrf.mxu2  ;;  %v7016_v34 = vrot.slane %v7015_v10, 4  ;;  %v7036_v47 = vshll.u32 %v15081_v46, 16 }
 0x2db   : > { %6466 = vst [vmem:[#allocation3 + $0x44] sm:$0x1] %v6465_v44  ;;  %v5898_v38 = vadd.f32 %v14945_v63, %v5376_v24  ;;  %v7042_v7 = vshll.u32 %v15096_v58, 16  ;;  %v7026_v49 = vrot.slane %v7025_v59, 4  ;;  %v7030_v54 = vrot.slane %v7028_v52, 5 }
 0x2dc   : > { %v15089_v16 = vrot.slane %v6197_v53, 7  ;;  %v15111_v21 = vrot.slane %v7033_v55, 4  ;;  %v5163_v35 = vunpack.c.l.b16 %v5114_v19  ;;  %v4253_v53 = vadd.f32 %v14526_v62, %v14561_v15  ;;  %v6965_v19 = vld [vmem:[#allocation3 + $0x14] sm:$0x1] }
 0x2dd   : > { %vm5994_vm4 = vcmp.gt.f32.partialorder %v5898_v38, 0.0  ;;  %v6026_v27 = vmul.f32 0.1, %v5898_v38  ;;  %5322 = vmatmul.bf16.gmra.mxu3 %v5178_v51  ;;  %v5104_v51 = vsel %vm13392_vm14, %v5099_v36, %v15065_v26  ;;  %v7021_v2 = vsel %vm13392_vm14, %v7016_v34, %v15083_v42 }
 0x2de   : > { %v6202_v63 = vor.u32 %v6200_v56, %v15089_v16  ;;  %v5162_v23 = vunpack.c.l.b16 %v5104_v51  ;;  %v7707_v56 = vld [vmem:[#allocation3 + $0x4] sm:$0xf]  ;;  %v6203_v60 = vrot.slane %v15089_v16, 4  ;;  %v7031_v62 = vsel %vm13392_vm14, %v7026_v49, %v7030_v54  ;;  %v7706_v16 = vld [vmem:[#allocation3] sm:$0xe]  ;;  %v13185_v51 = vld [vmem:[%s16704_s2 + $0x120] sm:$0xff] }
 0x2df   : > { %v6058_v9 = vsel %vm5994_vm4, %v5898_v38, %v6026_v27  ;;  %4581 = vmatmul.bf16.gmra.mxu2 %v13092_v25  ;;  %v15107_v1 = vpop.f32.mrf.mxu0  ;;  %v4632_v15 = vadd.f32 %v4539_v37, %v4253_v53  ;;  %v7046_v10 = vshrl.u32 %v15096_v58, 16  ;;  %v7410_v58 = vunpack.c.l.b16 %v7031_v62  ;;  %9170 = vmatpush.bf16.msrb.mxu1 %v13185_v51 }
 0x2e0   : > { %v6468_v0 = vsel %vm13426_vm3, %v6202_v63, %v6467_v4  ;;  %v6090_v31 = vpack.c.bf16 %v6058_v9, %v6058_v9  ;;  %v5283_v6 = vpop.f32.mrf.mxu3  ;;  %v5179_v25 = vpack.c.b16 %v5163_v35, %v5162_v23  ;;  %v15137_v34 = vrot.slane %v7042_v7, 5 }
 0x2e1   : > { %6469 = vst [vmem:[#allocation3 + $0x48] sm:$0xf] %v6468_v0  ;;  %v5377_v48 = vadd.f32 %v5283_v6, %v4631_v20  ;;  %v13122_v12 = vld [vmem:[#allocation3 + $0x3c] sm:$0xff]  ;;  %v7804_v20 = vrot.slane %v7707_v56, 5  ;;  %v7708_v6 = vld [vmem:[#allocation3 + $0x8] sm:$0x1] }
 0x2e2   : > { %v6611_v44 = vld [vmem:[#allocation3 + $0x44] sm:$0x1]  ;;  %v6205_v13 = vshrl.u32 %v6090_v31, 16  ;;  %6872 = vmatmul.bf16.gmra.mxu1 %v13122_v12  ;;  %v6208_v28 = vshll.u32 %v6090_v31, 16  ;;  %v4542_v38 = vpop.f32.mrf.mxu2  ;;  %8429 = vmatmul.bf16.vlgmr.msrb.gmra.mxu0 %v13157_v22  ;;  %v7409_v31 = vunpack.c.l.b16 %v7021_v2  ;;  %v12481_v12 = vrot.slane %v7706_v16, 9 }
 0x2e3   : > { %v6612_v26 = vsel %vm13473_vm8, 0, %v6611_v44  ;;  %v5899_v24 = vadd.f32 %v14978_v3, %v5377_v48  ;;  %v7038_v3 = vrot.slane %v7036_v47, 5  ;;  %v7048_v47 = vrot.slane %v7046_v10, 4 }
 0x2e4   : > { %6613 = vst [vmem:[#allocation3 + $0x44] sm:$0x1] %v6612_v26  ;;  %v6207_v46 = vrot.slane %v6205_v13, 7  ;;  %v7806_v54 = vrot.slane %v7804_v20, 4  ;;  %v7807_v26 = vrot.slane %v7708_v6, 5  ;;  %v7441_v35 = vpack.c.b16 %v7410_v58, %v7409_v31 }
 0x2e5   : > { %vm5995_vm5 = vcmp.gt.f32.partialorder %v5899_v24, 0.0  ;;  %v6027_v36 = vmul.f32 0.1, %v5899_v24  ;;  %v7039_v53 = vor.u32 %v7038_v3, %v15111_v21 }
 0x2e6   : > { %v6210_v32 = vor.u32 %v6208_v28, %v6207_v46  ;;  %v6212_v4 = vrot.slane %v6207_v46, 4  ;;  %v7052_v28 = vshll.u32 %v6965_v19, 16  ;;  %v6967_v19 = vld [vmem:[#allocation3 + $0x1c] sm:$0xf] }
 0x2e7   : > { %v6059_v27 = vsel %vm5995_vm5, %v5899_v24, %v6027_v36  ;;  %v15131_v0 = vpop.f32.mrf.mxu0  ;;  %v6474_v24 = vld [vmem:[#allocation3 + $0x54] sm:$0xf] }
 0x2e8   : > { %v6566_v63 = vld [vmem:[#allocation3 + $0x48] sm:$0x1]  ;;  %v6211_v59 = vsel %vm13414_vm1, %v6203_v60, %v6210_v32  ;;  %v6472_v42 = vsel %vm13405_vm15, %v6212_v4, %v6471_v29  ;;  %v6091_v52 = vpack.c.bf16 %v6059_v27, %v6059_v27  ;;  %v5285_v55 = vpop.f32.mrf.mxu3  ;;  %v7049_v29 = vor.u32 %v7048_v47, %v15137_v34 }
 0x2e9   : > { %v6567_v9 = vsel %vm13405_vm15, 0, %v6566_v63  ;;  %6470 = vst [vmem:[#allocation3 + $0x4c] sm:$0xf] %v6211_v59  ;;  %v5378_v37 = vadd.f32 %v5285_v55, %v4632_v15  ;;  %v7805_v60 = vsel %vm13993_vm10, %v12481_v12, %v7804_v20  ;;  %v7808_v32 = vsel %vm13993_vm10, %v7806_v54, %v7807_v26  ;;  %v13158_v15 = vld [vmem:[#allocation3 + $0x18] sm:$0xff] }
 0x2ea   : > { %6568 = vst [vmem:[#allocation3 + $0x48] sm:$0x1] %v6567_v9  ;;  %v6214_v22 = vshrl.u32 %v6091_v52, 16  ;;  %v6217_v13 = vshll.u32 %v6091_v52, 16  ;;  %v4544_v49 = vpop.f32.mrf.mxu2  ;;  %v7054_v27 = vrot.slane %v7052_v28, 5  ;;  %v7931_v63 = vunpack.c.l.b16 %v7805_v60 }
 0x2eb   : > { %6473 = vst [vmem:[#allocation3 + $0x50] sm:$0x1] %v6472_v42  ;;  %v5900_v48 = vadd.f32 %v15015_v30, %v5378_v37  ;;  %v4633_v30 = vadd.f32 %v4542_v38, %v14574_v41  ;;  %v7040_v38 = vrot.slane %v7039_v53, 4  ;;  %v7932_v59 = vunpack.c.l.b16 %v7808_v32  ;;  %v6966_v42 = vld [vmem:[#allocation3 + $0x18] sm:$0xf] }
 0x2ec   : > { %v6216_v44 = vrot.slane %v6214_v22, 7  ;;  %v7050_v20 = vrot.slane %v7049_v29, 4  ;;  %v4255_v9 = vadd.f32 %v14552_v33, %v14589_v18  ;;  %v6478_v37 = vld [vmem:[#allocation3 + $0x5c] sm:$0x1]  ;;  %v7057_v54 = vshrl.u32 %v6966_v42, 16 }
 0x2ed   : > { %vm5996_vm7 = vcmp.gt.f32.partialorder %v5900_v48, 0.0  ;;  %v6028_v23 = vmul.f32 0.1, %v5900_v48  ;;  %5327 = vmatmul.bf16.gmra.mxu3 %v5179_v25  ;;  %v7963_v47 = vpack.c.b16 %v7932_v59, %v7931_v63  ;;  %v7070_v28 = vshrl.u32 %v6967_v19, 16  ;;  %v7709_v29 = vld [vmem:[#allocation3 + $0xc] sm:$0xe] }
 0x2ee   : > { %v6219_v46 = vor.u32 %v6217_v13, %v6216_v44  ;;  %v6220_v58 = vrot.slane %v6216_v44, 4  ;;  %v7055_v51 = vsel %vm13392_vm14, %v7050_v20, %v7054_v27  ;;  %v7710_v13 = vld [vmem:[#allocation3 + $0x10] sm:$0xf]  ;;  %v6968_v32 = vld [vmem:[#allocation3 + $0x20] sm:$0x1]  ;;  %v12482_v59 = vrot.slane %v7709_v29, 9  ;;  %v15189_v29 = vpop.f32.mrf.mxu1 }
 0x2ef   : > { %v6060_v7 = vsel %vm5996_vm7, %v5900_v48, %v6028_v23  ;;  %v15148_v3 = vpop.f32.mrf.mxu0  ;;  %7529 = vmatmul.bf16.vlgmr.msrb.gmra.mxu2 %v7441_v35  ;;  %v4634_v48 = vadd.f32 %v4544_v49, %v4255_v9  ;;  %v7060_v23 = vshll.u32 %v6966_v42, 16  ;;  %v7076_v20 = vshll.u32 %v6968_v32, 16 }
 0x2f0   : > { %v6475_v36 = vsel %vm13426_vm3, %v6219_v46, %v6474_v24  ;;  %v6092_v2 = vpack.c.bf16 %v6060_v7, %v6060_v7  ;;  %v5288_v56 = vpop.f32.mrf.mxu3  ;;  %v7711_v24 = vld [vmem:[#allocation3 + $0x14] sm:$0x1]  ;;  %v7066_v46 = vshll.u32 %v6967_v19, 16  ;;  %v7412_v7 = vunpack.c.l.b16 %v7055_v51  ;;  %v16791_v19 = vld [vmem:[#allocation24_spill] sm:$0xff] }
 0x2f1   : > { %6476 = vst [vmem:[#allocation3 + $0x54] sm:$0xf] %v6475_v36  ;;  %v5379_v21 = vadd.f32 %v5288_v56, %v4633_v30  ;;  %v13123_v41 = vld [vmem:[#allocation3 + $0x48] sm:$0xff]  ;;  %v7811_v56 = vrot.slane %v7710_v13, 5  ;;  %v7814_v60 = vrot.slane %v7711_v24, 5 }
 0x2f2   : > { %v6614_v4 = vld [vmem:[#allocation3 + $0x50] sm:$0x1]  ;;  %v6222_v62 = vshrl.u32 %v6092_v2, 16  ;;  %6877 = vmatmul.bf16.gmra.mxu1 %v13123_v41  ;;  %v6225_v55 = vshll.u32 %v6092_v2, 16  ;;  %v4547_v16 = vpop.f32.mrf.mxu2  ;;  %8434 = vmatmul.bf16.gmra.mxu0 %v13158_v15  ;;  %v7062_v15 = vrot.slane %v7060_v23, 5  ;;  %v13159_v13 = vld [vmem:[#allocation3 + $0x24] sm:$0xff] }
 0x2f3   : > { %v6615_v25 = vsel %vm13473_vm8, 0, %v6614_v4  ;;  %v5901_v10 = vadd.f32 %v15053_v61, %v5379_v21  ;;  %v7045_v61 = vsel %vm13392_vm14, %v7040_v38, %v15137_v34  ;;  %v6481_v38 = vld [vmem:[#allocation3 + $0x60] sm:$0xf]  ;;  %v4635_v42 = vadd.f32 %v4547_v16, %v14603_v45  ;;  %v6970_v24 = vld [vmem:[#allocation3 + $0x28] sm:$0xf] }
 0x2f4   : > { %6616 = vst [vmem:[#allocation3 + $0x50] sm:$0x1] %v6615_v25  ;;  %v6224_v52 = vrot.slane %v6222_v62, 7  ;;  %v7411_v2 = vunpack.c.l.b16 %v7045_v61  ;;  %v7059_v62 = vrot.slane %v7057_v54, 4  ;;  %v15171_v25 = vrot.slane %v7066_v46, 5 }
 0x2f5   : > { %vm5997_vm6 = vcmp.gt.f32.partialorder %v5901_v10, 0.0  ;;  %v6029_v31 = vmul.f32 0.1, %v5901_v10  ;;  %v7812_v61 = vsel %vm13993_vm10, %v12482_v59, %v7811_v56  ;;  %v6969_v54 = vld [vmem:[#allocation3 + $0x24] sm:$0xf]  ;;  %v7094_v59 = vshrl.u32 %v6970_v24, 16 }
 0x2f6   : > { %v6227_v6 = vor.u32 %v6225_v55, %v6224_v52  ;;  %v6229_v22 = vrot.slane %v6224_v52, 4  ;;  %v7813_v55 = vrot.slane %v7811_v56, 4  ;;  %v15192_v56 = vld [vmem:[#allocation3 + $0x1c] sm:$0xf] }
 0x2f7   : > { %v6061_v12 = vsel %vm5997_vm6, %v5901_v10, %v6029_v31  ;;  %v15166_v53 = vpop.f32.mrf.mxu0  ;;  %v7072_v10 = vrot.slane %v7070_v28, 4 }
 0x2f8   : > { %v6569_v33 = vld [vmem:[#allocation3 + $0x54] sm:$0x1]  ;;  %v6228_v18 = vsel %vm13414_vm1, %v6220_v58, %v6227_v6  ;;  %v6479_v26 = vsel %vm13405_vm15, %v6229_v22, %v6478_v37  ;;  %v6093_v34 = vpack.c.bf16 %v6061_v12, %v6061_v12  ;;  %v5290_v44 = vpop.f32.mrf.mxu3  ;;  %v7063_v58 = vor.u32 %v7062_v15, %v7059_v62  ;;  %v7714_v62 = vld [vmem:[#allocation3 + $0x20] sm:$0x1] }
 0x2f9   : > { %v6570_v35 = vsel %vm13405_vm15, 0, %v6569_v33  ;;  %6477 = vst [vmem:[#allocation3 + $0x58] sm:$0xf] %v6228_v18  ;;  %v5380_v49 = vadd.f32 %v5290_v44, %v4634_v48  ;;  %v7815_v45 = vsel %vm13993_vm10, %v7813_v55, %v7814_v60  ;;  %v7073_v16 = vor.u32 %v7072_v10, %v15171_v25  ;;  %v6485_v18 = vld [vmem:[#allocation3 + $0x68] sm:$0x1] }
 0x2fa   : > { %6571 = vst [vmem:[#allocation3 + $0x54] sm:$0x1] %v6570_v35  ;;  %v6231_v30 = vshrl.u32 %v6093_v34, 16  ;;  %v6234_v41 = vshll.u32 %v6093_v34, 16  ;;  %v4549_v4 = vpop.f32.mrf.mxu2  ;;  %v4257_v48 = vadd.f32 %v16791_v19, %v14615_v14  ;;  %v7933_v34 = vunpack.c.l.b16 %v7812_v61 }
 0x2fb   : > { %6480 = vst [vmem:[#allocation3 + $0x5c] sm:$0x1] %v6479_v26  ;;  %v5902_v36 = vadd.f32 %v15079_v40, %v5380_v49  ;;  %v7442_v40 = vpack.c.b16 %v7412_v7, %v7411_v2  ;;  %v7078_v44 = vrot.slane %v7076_v20, 5  ;;  %v7934_v14 = vunpack.c.l.b16 %v7815_v45 }
 0x2fc   : > { %v15169_v21 = vrot.slane %v6231_v30, 7  ;;  %v7064_v46 = vrot.slane %v7063_v58, 4  ;;  %v7074_v30 = vrot.slane %v7073_v16, 4  ;;  %v7081_v7 = vshrl.u32 %v6969_v54, 16 }
 0x2fd   : > { %vm5998_vm9 = vcmp.gt.f32.partialorder %v5902_v36, 0.0  ;;  %v6030_v27 = vmul.f32 0.1, %v5902_v36  ;;  %8051 = vmatmul.bf16.vlgmr.msrb.gmra.mxu3 %v7963_v47  ;;  %v7084_v60 = vshll.u32 %v6969_v54, 16  ;;  %v4636_v32 = vadd.f32 %v4549_v4, %v4257_v48 }
 0x2fe   : > { %v6236_v63 = vor.u32 %v6234_v41, %v15169_v21  ;;  %v7090_v15 = vshll.u32 %v6970_v24, 16  ;;  %v7818_v55 = vrot.slane %v15192_v56, 5  ;;  %v7821_v61 = vrot.slane %v7714_v62, 5  ;;  %v16792_v24 = vld [vmem:[#allocation28_spill] sm:$0xff] }
 0x2ff   : > { %v6062_v52 = vsel %vm5998_vm9, %v5902_v36, %v6030_v27  ;;  %v15179_v22 = vpop.f32.mrf.mxu0  ;;  %7534 = vmatmul.bf16.gmra.mxu2 %v7442_v40  ;;  %v6237_v36 = vrot.slane %v15169_v21, 4  ;;  %v7083_v45 = vrot.slane %v7081_v7, 4  ;;  %v7086_v16 = vrot.slane %v7084_v60, 5 }
 0x300   : > { %v6482_v9 = vsel %vm13426_vm3, %v6236_v63, %v6481_v38  ;;  %v6094_v37 = vpack.c.bf16 %v6062_v52, %v6062_v52  ;;  %v5293_v31 = vpop.f32.mrf.mxu3  ;;  %v7079_v38 = vsel %vm13392_vm14, %v7074_v30, %v7078_v44 }
 0x301   : > { %6483 = vst [vmem:[#allocation3 + $0x60] sm:$0xf] %v6482_v9  ;;  %v5381_v6 = vadd.f32 %v5293_v31, %v4635_v42  ;;  %v13124_v51 = vld [vmem:[#allocation3 + $0x54] sm:$0xff]  ;;  %v7964_v9 = vpack.c.b16 %v7934_v14, %v7933_v34  ;;  %v13184_v31 = vld [vmem:[%s16704_s2 + $0x118] sm:$0xff] }
 0x302   : > { %v6617_v12 = vld [vmem:[#allocation3 + $0x5c] sm:$0x1]  ;;  %v6239_v47 = vshrl.u32 %v6094_v37, 16  ;;  %6882 = vmatmul.bf16.gmra.mxu1 %v13124_v51  ;;  %v6242_v35 = vshll.u32 %v6094_v37, 16  ;;  %v4552_v49 = vpop.f32.mrf.mxu2  ;;  %8439 = vmatmul.bf16.gmra.mxu0 %v13159_v13  ;;  %v7069_v37 = vsel %vm13392_vm14, %v7064_v46, %v15171_v25  ;;  %v6971_v51 = vld [vmem:[#allocation3 + $0x2c] sm:$0x1] }
 0x303   : > { %v6618_v33 = vsel %vm13473_vm8, 0, %v6617_v12  ;;  %v5903_v26 = vadd.f32 %v15107_v1, %v5381_v6  ;;  %v7414_v6 = vunpack.c.l.b16 %v7079_v38  ;;  %9171 = vmatpush.bf16.msrb.mxu1 %v13184_v31  ;;  %v7096_v25 = vrot.slane %v7094_v59, 4  ;;  %v6488_v13 = vld [vmem:[#allocation3 + $0x6c] sm:$0xf]  ;;  %v7712_v34 = vld [vmem:[#allocation3 + $0x18] sm:$0xe] }
 0x304   : > { %6619 = vst [vmem:[#allocation3 + $0x5c] sm:$0x1] %v6618_v33  ;;  %v6241_v23 = vrot.slane %v6239_v47, 7  ;;  %v15214_v47 = vrot.slane %v7090_v15, 5  ;;  %v7413_v33 = vunpack.c.l.b16 %v7069_v37  ;;  %v7100_v44 = vshll.u32 %v6971_v51, 16  ;;  %v16794_v38 = vld [vmem:[#allocation26_spill] sm:$0xff] }
 0x305   : > { %vm5999_vm11 = vcmp.gt.f32.partialorder %v5903_v26, 0.0  ;;  %v6031_v28 = vmul.f32 0.1, %v5903_v26 }
 0x306   : > { %v6244_v1 = vor.u32 %v6242_v35, %v6241_v23  ;;  %v6246_v2 = vrot.slane %v6241_v23, 4  ;;  %v4637_v23 = vadd.f32 %v4552_v49, %v16792_v24  ;;  %v7443_v14 = vpack.c.b16 %v7414_v6, %v7413_v33  ;;  %v13160_v49 = vld [vmem:[#allocation3 + $0x30] sm:$0xff] }
 0x307   : > { %v6063_v41 = vsel %vm5999_vm11, %v5903_v26, %v6031_v28  ;;  %v15202_v52 = vpop.f32.mrf.mxu0  ;;  %v15217_v26 = vpop.f32.mrf.mxu1 }
 0x308   : > { %v6572_v27 = vld [vmem:[#allocation3 + $0x60] sm:$0x1]  ;;  %v6245_v10 = vsel %vm13414_vm1, %v6237_v36, %v6244_v1  ;;  %v6486_v63 = vsel %vm13405_vm15, %v6246_v2, %v6485_v18  ;;  %v6095_v21 = vpack.c.bf16 %v6063_v41, %v6063_v41  ;;  %v5295_v40 = vpop.f32.mrf.mxu3  ;;  %v7820_v18 = vrot.slane %v7818_v55, 4  ;;  %v16793_v41 = vld [vmem:[#allocation6_spill] sm:$0xff] }
 0x309   : > { %v6573_v42 = vsel %vm13405_vm15, 0, %v6572_v27  ;;  %6484 = vst [vmem:[#allocation3 + $0x64] sm:$0xf] %v6245_v10  ;;  %v5382_v4 = vadd.f32 %v5295_v40, %v4636_v32  ;;  %v7087_v36 = vor.u32 %v7086_v16, %v7083_v45  ;;  %v7097_v1 = vor.u32 %v7096_v25, %v15214_v47  ;;  %v6492_v40 = vld [vmem:[#allocation3 + $0x74] sm:$0x1] }
 0x30a   : > { %6574 = vst [vmem:[#allocation3 + $0x60] sm:$0x1] %v6573_v42  ;;  %v6248_v20 = vshrl.u32 %v6095_v21, 16  ;;  %v6251_v48 = vshll.u32 %v6095_v21, 16  ;;  %v4554_v12 = vpop.f32.mrf.mxu2  ;;  %v7822_v46 = vsel %vm13993_vm10, %v7820_v18, %v7821_v61  ;;  %v12483_v32 = vrot.slane %v7712_v34, 9 }
 0x30b   : > { %6487 = vst [vmem:[#allocation3 + $0x68] sm:$0x1] %v6486_v63  ;;  %v5904_v58 = vadd.f32 %v15131_v0, %v5382_v4  ;;  %v4259_v62 = vadd.f32 %v16794_v38, %v16793_v41  ;;  %v7102_v10 = vrot.slane %v7100_v44, 5  ;;  %v6972_v63 = vld [vmem:[#allocation3 + $0x30] sm:$0xf]  ;;  %v7936_v4 = vunpack.c.l.b16 %v7822_v46 }
 0x30c   : > { %v15212_v19 = vrot.slane %v6248_v20, 7  ;;  %v7819_v42 = vsel %vm13993_vm10, %v12483_v32, %v7818_v55  ;;  %v6973_v20 = vld [vmem:[#allocation3 + $0x34] sm:$0xf]  ;;  %v7088_v61 = vrot.slane %v7087_v36, 4  ;;  %v7105_v51 = vshrl.u32 %v6972_v63, 16 }
 0x30d   : > { %vm6000_vm12 = vcmp.gt.f32.partialorder %v5904_v58, 0.0  ;;  %v6032_v54 = vmul.f32 0.1, %v5904_v58  ;;  %8056 = vmatmul.bf16.gmra.mxu3 %v7964_v9  ;;  %v7108_v45 = vshll.u32 %v6972_v63, 16  ;;  %v15237_v25 = vld [vmem:[#allocation3 + $0x28] sm:$0xf] }
 0x30e   : > { %v6253_v0 = vor.u32 %v6251_v48, %v15212_v19  ;;  %v6254_v16 = vrot.slane %v15212_v19, 4  ;;  %v7114_v33 = vshll.u32 %v6973_v20, 16  ;;  %v7118_v18 = vshrl.u32 %v6973_v20, 16  ;;  %v7715_v20 = vld [vmem:[#allocation3 + $0x24] sm:$0xe] }
 0x30f   : > { %v6064_v35 = vsel %vm6000_vm12, %v5904_v58, %v6032_v54  ;;  %v15225_v56 = vpop.f32.mrf.mxu0  ;;  %7539 = vmatmul.bf16.gmra.mxu2 %v7443_v14  ;;  %v7098_v58 = vrot.slane %v7097_v1, 4  ;;  %v15243_v19 = vpop.f32.mrf.mxu1  ;;  %v7110_v41 = vrot.slane %v7108_v45, 5 }
 0x310   : > { %v6489_v28 = vsel %vm13426_vm3, %v6253_v0, %v6488_v13  ;;  %v6096_v30 = vpack.c.bf16 %v6064_v35, %v6064_v35  ;;  %v5298_v7 = vpop.f32.mrf.mxu3  ;;  %v4638_v13 = vadd.f32 %v4554_v12, %v4259_v62  ;;  %v7935_v35 = vunpack.c.l.b16 %v7819_v42 }
 0x311   : > { %6490 = vst [vmem:[#allocation3 + $0x6c] sm:$0xf] %v6489_v28  ;;  %v5383_v2 = vadd.f32 %v5298_v7, %v4637_v23  ;;  %v13125_v60 = vld [vmem:[#allocation3 + $0x60] sm:$0xff]  ;;  %v7103_v55 = vsel %vm13392_vm14, %v7098_v58, %v7102_v10  ;;  %v7093_v28 = vsel %vm13392_vm14, %v7088_v61, %v15214_v47  ;;  %v7825_v7 = vrot.slane %v15237_v25, 5 }
 0x312   : > { %v6620_v15 = vld [vmem:[#allocation3 + $0x68] sm:$0x1]  ;;  %v6256_v27 = vshrl.u32 %v6096_v30, 16  ;;  %6887 = vmatmul.bf16.gmra.mxu1 %v13125_v60  ;;  %v6259_v37 = vshll.u32 %v6096_v30, 16  ;;  %v4557_v31 = vpop.f32.mrf.mxu2  ;;  %8444 = vmatmul.bf16.gmra.mxu0 %v13160_v49  ;;  %v7717_v30 = vld [vmem:[#allocation3 + $0x2c] sm:$0x1]  ;;  %v7965_v1 = vpack.c.b16 %v7936_v4, %v7935_v35  ;;  %v7415_v10 = vunpack.c.l.b16 %v7093_v28 }
 0x313   : > { %v6621_v21 = vsel %vm13473_vm8, 0, %v6620_v15  ;;  %v5905_v59 = vadd.f32 %v15148_v3, %v5383_v2  ;;  %v7416_v2 = vunpack.c.l.b16 %v7103_v55  ;;  %v6974_v60 = vld [vmem:[#allocation3 + $0x38] sm:$0x1]  ;;  %v7107_v49 = vrot.slane %v7105_v51, 4 }
 0x314   : > { %6622 = vst [vmem:[#allocation3 + $0x68] sm:$0x1] %v6621_v21  ;;  %v6258_v9 = vrot.slane %v6256_v27, 7  ;;  %v15254_v38 = vrot.slane %v7114_v33, 5  ;;  %v7120_v62 = vrot.slane %v7118_v18, 4  ;;  %v7828_v63 = vrot.slane %v7717_v30, 5 }
 0x315   : > { %vm6001_vm13 = vcmp.gt.f32.partialorder %v5905_v59, 0.0  ;;  %v6033_v6 = vmul.f32 0.1, %v5905_v59  ;;  %v6495_v21 = vld [vmem:[#allocation3 + $0x78] sm:$0xf]  ;;  %v7444_v4 = vpack.c.b16 %v7416_v2, %v7415_v10  ;;  %v7111_v58 = vor.u32 %v7110_v41, %v7107_v49  ;;  %v16796_v33 = vld [vmem:[#allocation9_spill] sm:$0xff] }
 0x316   : > { %v6261_v3 = vor.u32 %v6259_v37, %v6258_v9  ;;  %v6263_v48 = vrot.slane %v6258_v9, 4  ;;  %v16795_v9 = vld [vmem:[#allocation8_spill] sm:$0xff]  ;;  %v16797_v18 = vld [vmem:[#allocation7_spill] sm:$0xff] }
 0x317   : > { %v6065_v54 = vsel %vm6001_vm13, %v5905_v59, %v6033_v6  ;;  %v15247_v46 = vpop.f32.mrf.mxu0  ;;  %v7124_v59 = vshll.u32 %v6974_v60, 16  ;;  %v4639_v37 = vadd.f32 %v4557_v31, %v16795_v9  ;;  %v7121_v6 = vor.u32 %v7120_v62, %v15254_v38  ;;  %v6976_v49 = vld [vmem:[#allocation3 + $0x40] sm:$0xf] }
 0x318   : > { %v6575_v0 = vld [vmem:[#allocation3 + $0x6c] sm:$0x1]  ;;  %v6262_v34 = vsel %vm13414_vm1, %v6254_v16, %v6261_v3  ;;  %v6493_v44 = vsel %vm13405_vm15, %v6263_v48, %v6492_v40  ;;  %v6097_v24 = vpack.c.bf16 %v6065_v54, %v6065_v54  ;;  %v5300_v23 = vpop.f32.mrf.mxu3 }
 0x319   : > { %v6576_v14 = vsel %vm13405_vm15, 0, %v6575_v0  ;;  %6491 = vst [vmem:[#allocation3 + $0x70] sm:$0xf] %v6262_v34  ;;  %v5384_v12 = vadd.f32 %v5300_v23, %v4638_v13  ;;  %v12484_v13 = vrot.slane %v7715_v20, 9  ;;  %v7126_v54 = vrot.slane %v7124_v59, 5 }
 0x31a   : > { %6577 = vst [vmem:[#allocation3 + $0x6c] sm:$0x1] %v6576_v14  ;;  %v6265_v36 = vshrl.u32 %v6097_v24, 16  ;;  %v6268_v27 = vshll.u32 %v6097_v24, 16  ;;  %v4559_v47 = vpop.f32.mrf.mxu2  ;;  %v4261_v0 = vadd.f32 %v16797_v18, %v16796_v33  ;;  %v13161_v24 = vld [vmem:[#allocation3 + $0x3c] sm:$0xff]  ;;  %v7122_v28 = vrot.slane %v7121_v6, 4 }
 0x31b   : > { %6494 = vst [vmem:[#allocation3 + $0x74] sm:$0x1] %v6493_v44  ;;  %v5906_v32 = vadd.f32 %v15166_v53, %v5384_v12  ;;  %v7827_v53 = vrot.slane %v7825_v7, 4  ;;  %v6975_v23 = vld [vmem:[#allocation3 + $0x3c] sm:$0xf]  ;;  %v7112_v12 = vrot.slane %v7111_v58, 4  ;;  %v7826_v2 = vsel %vm13993_vm10, %v12484_v13, %v7825_v7 }
 0x31c   : > { %v15256_v15 = vrot.slane %v6265_v36, 7  ;;  %v7127_v62 = vsel %vm13392_vm14, %v7122_v28, %v7126_v54  ;;  %v7937_v58 = vunpack.c.l.b16 %v7826_v2  ;;  %v13183_v33 = vld [vmem:[%s16704_s2 + $0x110] sm:$0xff]  ;;  %v6977_v18 = vld [vmem:[#allocation3 + $0x44] sm:$0x1] }
 0x31d   : > { %vm6002_vm0 = vcmp.gt.f32.partialorder %v5906_v32, 0.0  ;;  %v6034_v40 = vmul.f32 0.1, %v5906_v32  ;;  %8061 = vmatmul.bf16.gmra.mxu3 %v7965_v1  ;;  %v7829_v31 = vsel %vm13993_vm10, %v7827_v53, %v7828_v63  ;;  %v7418_v54 = vunpack.c.l.b16 %v7127_v62  ;;  %9172 = vmatpush.bf16.msrb.mxu1 %v13183_v33  ;;  %v6502_v28 = vld [vmem:[#allocation3 + $0x84] sm:$0xf] }
 0x31e   : > { %v6270_v42 = vor.u32 %v6268_v27, %v15256_v15  ;;  %v7938_v60 = vunpack.c.l.b16 %v7829_v31  ;;  %v6271_v27 = vrot.slane %v15256_v15, 4  ;;  %v7719_v15 = vld [vmem:[#allocation3 + $0x34] sm:$0xf] }
 0x31f   : > { %v6066_v61 = vsel %vm6002_vm0, %v5906_v32, %v6034_v40  ;;  %v15263_v3 = vpop.f32.mrf.mxu1  ;;  %v15265_v55 = vpop.f32.mrf.mxu0  ;;  %7544 = vmatmul.bf16.gmra.mxu2 %v7444_v4  ;;  %v6499_v32 = vld [vmem:[#allocation3 + $0x80] sm:$0x1]  ;;  %v4640_v40 = vadd.f32 %v4559_v47, %v4261_v0  ;;  %v7142_v4 = vshrl.u32 %v6976_v49, 16 }
 0x320   : > { %v6496_v51 = vsel %vm13426_vm3, %v6270_v42, %v6495_v21  ;;  %v6098_v45 = vpack.c.bf16 %v6066_v61, %v6066_v61  ;;  %v5303_v16 = vpop.f32.mrf.mxu3  ;;  %v7132_v21 = vshll.u32 %v6975_v23, 16  ;;  %v7138_v42 = vshll.u32 %v6976_v49, 16 }
 0x321   : > { %6497 = vst [vmem:[#allocation3 + $0x78] sm:$0xf] %v6496_v51  ;;  %v5385_v48 = vadd.f32 %v5303_v16, %v4639_v37  ;;  %v13126_v25 = vld [vmem:[#allocation3 + $0x6c] sm:$0xff]  ;;  %v7966_v31 = vpack.c.b16 %v7938_v60, %v7937_v58 }
 0x322   : > { %v6623_v34 = vld [vmem:[#allocation3 + $0x74] sm:$0x1]  ;;  %v6273_v44 = vshrl.u32 %v6098_v45, 16  ;;  %6892 = vmatmul.bf16.gmra.mxu1 %v13126_v25  ;;  %v6276_v36 = vshll.u32 %v6098_v45, 16  ;;  %v4562_v1 = vpop.f32.mrf.mxu2  ;;  %8449 = vmatmul.bf16.gmra.mxu0 %v13161_v24  ;;  %v7117_v45 = vsel %vm13392_vm14, %v7112_v12, %v15254_v38  ;;  %v7718_v16 = vld [vmem:[#allocation3 + $0x30] sm:$0xe] }
 0x323   : > { %v6624_v35 = vsel %vm13473_vm8, 0, %v6623_v34  ;;  %v5907_v14 = vadd.f32 %v15179_v22, %v5385_v48  ;;  %v7129_v22 = vshrl.u32 %v6975_v23, 16  ;;  %v7720_v48 = vld [vmem:[#allocation3 + $0x38] sm:$0x1]  ;;  %v7134_v34 = vrot.slane %v7132_v21, 5 }
 0x324   : > { %6625 = vst [vmem:[#allocation3 + $0x74] sm:$0x1] %v6624_v35  ;;  %v6275_v30 = vrot.slane %v6273_v44, 7  ;;  %v15296_v44 = vrot.slane %v7138_v42, 5  ;;  %v7144_v24 = vrot.slane %v7142_v4, 4  ;;  %v7832_v12 = vrot.slane %v7719_v15, 5 }
 0x325   : > { %vm6003_vm4 = vcmp.gt.f32.partialorder %v5907_v14, 0.0  ;;  %v6035_v41 = vmul.f32 0.1, %v5907_v14  ;;  %v7131_v25 = vrot.slane %v7129_v22, 4  ;;  %v7835_v49 = vrot.slane %v7720_v48, 5  ;;  %v16799_v48 = vld [vmem:[#allocation12_spill] sm:$0xff] }
 0x326   : > { %v6278_v10 = vor.u32 %v6276_v36, %v6275_v30  ;;  %v6280_v63 = vrot.slane %v6275_v30, 4  ;;  %v7148_v36 = vshll.u32 %v6977_v18, 16  ;;  %v6979_v15 = vld [vmem:[#allocation3 + $0x4c] sm:$0xf] }
 0x327   : > { %v6067_v59 = vsel %vm6003_vm4, %v5907_v14, %v6035_v41  ;;  %v15283_v61 = vpop.f32.mrf.mxu1  ;;  %v15287_v51 = vpop.f32.mrf.mxu0  ;;  %v7417_v14 = vunpack.c.l.b16 %v7117_v45  ;;  %v7135_v22 = vor.u32 %v7134_v34, %v7131_v25  ;;  %v16800_v25 = vld [vmem:[#allocation10_spill] sm:$0xff]  ;;  %v6506_v34 = vld [vmem:[#allocation3 + $0x8c] sm:$0x1] }
 0x328   : > { %v6578_v20 = vld [vmem:[#allocation3 + $0x78] sm:$0x1]  ;;  %v6279_v7 = vsel %vm13414_vm1, %v6271_v27, %v6278_v10  ;;  %v6500_v53 = vsel %vm13405_vm15, %v6280_v63, %v6499_v32  ;;  %v6099_v9 = vpack.c.bf16 %v6067_v59, %v6067_v59  ;;  %v5305_v37 = vpop.f32.mrf.mxu3  ;;  %v16798_v32 = vld [vmem:[#allocation11_spill] sm:$0xff]  ;;  %v7145_v27 = vor.u32 %v7144_v24, %v15296_v44 }
 0x329   : > { %v6579_v6 = vsel %vm13405_vm15, 0, %v6578_v20  ;;  %6498 = vst [vmem:[#allocation3 + $0x7c] sm:$0xf] %v6279_v7  ;;  %v5386_v47 = vadd.f32 %v5305_v37, %v4640_v40  ;;  %v7445_v60 = vpack.c.b16 %v7418_v54, %v7417_v14  ;;  %v4641_v41 = vadd.f32 %v4562_v1, %v16798_v32  ;;  %v13162_v37 = vld [vmem:[#allocation3 + $0x48] sm:$0xff] }
 0x32a   : > { %6580 = vst [vmem:[#allocation3 + $0x78] sm:$0x1] %v6579_v6  ;;  %v6282_v13 = vshrl.u32 %v6099_v9, 16  ;;  %v6285_v23 = vshll.u32 %v6099_v9, 16  ;;  %v4564_v35 = vpop.f32.mrf.mxu2  ;;  %v7834_v59 = vrot.slane %v7832_v12, 4  ;;  %v7150_v7 = vrot.slane %v7148_v36, 5 }
 0x32b   : > { %6501 = vst [vmem:[#allocation3 + $0x80] sm:$0x1] %v6500_v53  ;;  %v5908_v0 = vadd.f32 %v15202_v52, %v5386_v47  ;;  %v12485_v52 = vrot.slane %v7718_v16, 9  ;;  %v7136_v45 = vrot.slane %v7135_v22, 4  ;;  %v7146_v16 = vrot.slane %v7145_v27, 4 }
 0x32c   : > { %v15298_v38 = vrot.slane %v6282_v13, 7  ;;  %v7836_v58 = vsel %vm13993_vm10, %v7834_v59, %v7835_v49  ;;  %v4263_v13 = vadd.f32 %v16800_v25, %v16799_v48  ;;  %v7162_v14 = vshll.u32 %v6979_v15, 16  ;;  %v7722_v36 = vld [vmem:[#allocation3 + $0x40] sm:$0xf] }
 0x32d   : > { %vm6004_vm5 = vcmp.gt.f32.partialorder %v5908_v0, 0.0  ;;  %v6036_v30 = vmul.f32 0.1, %v5908_v0  ;;  %8066 = vmatmul.bf16.gmra.mxu3 %v7966_v31  ;;  %v7833_v1 = vsel %vm13993_vm10, %v12485_v52, %v7832_v12  ;;  %v7723_v52 = vld [vmem:[#allocation3 + $0x44] sm:$0x1]  ;;  %v7166_v32 = vshrl.u32 %v6979_v15, 16 }
 0x32e   : > { %v6287_v2 = vor.u32 %v6285_v23, %v15298_v38  ;;  %v7939_v18 = vunpack.c.l.b16 %v7833_v1  ;;  %v7940_v23 = vunpack.c.l.b16 %v7836_v58  ;;  %v7721_v15 = vld [vmem:[#allocation3 + $0x3c] sm:$0xe] }
 0x32f   : > { %v6068_v62 = vsel %vm6004_vm5, %v5908_v0, %v6036_v30  ;;  %v15305_v40 = vpop.f32.mrf.mxu1  ;;  %v15307_v4 = vpop.f32.mrf.mxu0  ;;  %7549 = vmatmul.bf16.gmra.mxu2 %v7445_v60  ;;  %v6978_v0 = vld [vmem:[#allocation3 + $0x48] sm:$0xf]  ;;  %v7151_v30 = vsel %vm13392_vm14, %v7146_v16, %v7150_v7  ;;  %v7141_v7 = vsel %vm13392_vm14, %v7136_v45, %v15296_v44 }
 0x330   : > { %v6503_v10 = vsel %vm13426_vm3, %v6287_v2, %v6502_v28  ;;  %v6100_v63 = vpack.c.bf16 %v6068_v62, %v6068_v62  ;;  %v5308_v21 = vpop.f32.mrf.mxu3  ;;  %v4642_v2 = vadd.f32 %v4564_v35, %v4263_v13  ;;  %v7153_v49 = vshrl.u32 %v6978_v0, 16 }
 0x331   : > { %6504 = vst [vmem:[#allocation3 + $0x84] sm:$0xf] %v6503_v10  ;;  %v5387_v42 = vadd.f32 %v5308_v21, %v4641_v41  ;;  %v13127_v20 = vld [vmem:[#allocation3 + $0x78] sm:$0xff]  ;;  %v7967_v1 = vpack.c.b16 %v7940_v23, %v7939_v18  ;;  %v7420_v58 = vunpack.c.l.b16 %v7151_v30  ;;  %v7419_v44 = vunpack.c.l.b16 %v7141_v7 }
 0x332   : > { %v6626_v53 = vld [vmem:[#allocation3 + $0x80] sm:$0x1]  ;;  %v6290_v9 = vshrl.u32 %v6100_v63, 16  ;;  %6897 = vmatmul.bf16.gmra.mxu1 %v13127_v20  ;;  %v6293_v54 = vshll.u32 %v6100_v63, 16  ;;  %v4567_v33 = vpop.f32.mrf.mxu2  ;;  %8454 = vmatmul.bf16.gmra.mxu0 %v13162_v37  ;;  %v7156_v63 = vshll.u32 %v6978_v0, 16  ;;  %v7155_v13 = vrot.slane %v7153_v49, 4 }
 0x333   : > { %v6627_v6 = vsel %vm13473_vm8, 0, %v6626_v53  ;;  %v5909_v47 = vadd.f32 %v15225_v56, %v5387_v42  ;;  %v6288_v56 = vrot.slane %v15298_v38, 4  ;;  %v7839_v42 = vrot.slane %v7722_v36, 5 }
 0x334   : > { %6628 = vst [vmem:[#allocation3 + $0x80] sm:$0x1] %v6627_v6  ;;  %v6292_v31 = vrot.slane %v6290_v9, 7  ;;  %v7842_v53 = vrot.slane %v7723_v52, 5  ;;  %v6980_v9 = vld [vmem:[#allocation3 + $0x50] sm:$0x1] }
 0x335   : > { %vm6005_vm7 = vcmp.gt.f32.partialorder %v5909_v47, 0.0  ;;  %v6037_v24 = vmul.f32 0.1, %v5909_v47  ;;  %v15335_v6 = vrot.slane %v7162_v14, 5  ;;  %v7172_v45 = vshll.u32 %v6980_v9, 16 }
 0x336   : > { %v6295_v12 = vor.u32 %v6293_v54, %v6292_v31  ;;  %v6297_v28 = vrot.slane %v6292_v31, 4  ;;  %v7158_v31 = vrot.slane %v7156_v63, 5  ;;  %v6509_v54 = vld [vmem:[#allocation3 + $0x90] sm:$0xf]  ;;  %v7446_v14 = vpack.c.b16 %v7420_v58, %v7419_v44  ;;  %v15357_v58 = vld [vmem:[#allocation3 + $0x4c] sm:$0xf] }
 0x337   : > { %v6069_v60 = vsel %vm6005_vm7, %v5909_v47, %v6037_v24  ;;  %v15325_v10 = vpop.f32.mrf.mxu1  ;;  %v15329_v59 = vpop.f32.mrf.mxu0  ;;  %v7168_v47 = vrot.slane %v7166_v32, 4  ;;  %v4643_v24 = vadd.f32 %v4567_v33, %v14708_v39  ;;  %v7174_v32 = vrot.slane %v7172_v45, 5  ;;  %v7726_v44 = vld [vmem:[#allocation3 + $0x50] sm:$0x1] }
 0x338   : > { %v6581_v41 = vld [vmem:[#allocation3 + $0x84] sm:$0x1]  ;;  %v6296_v62 = vsel %vm13414_vm1, %v6288_v56, %v6295_v12  ;;  %v6507_v22 = vsel %vm13405_vm15, %v6297_v28, %v6506_v34  ;;  %v6101_v27 = vpack.c.bf16 %v6069_v60, %v6069_v60  ;;  %v5310_v38 = vpop.f32.mrf.mxu3  ;;  %v7841_v34 = vrot.slane %v7839_v42, 4 }
 0x339   : > { %v6582_v21 = vsel %vm13405_vm15, 0, %v6581_v41  ;;  %6505 = vst [vmem:[#allocation3 + $0x88] sm:$0xf] %v6296_v62  ;;  %v5388_v35 = vadd.f32 %v5310_v38, %v4642_v2  ;;  %v7169_v56 = vor.u32 %v7168_v47, %v15335_v6  ;;  %v7159_v49 = vor.u32 %v7158_v31, %v7155_v13  ;;  %v16802_v38 = vld [vmem:[#allocation13_spill] sm:$0xff]  ;;  %v6513_v47 = vld [vmem:[#allocation3 + $0x98] sm:$0x1] }
 0x33a   : > { %6583 = vst [vmem:[#allocation3 + $0x84] sm:$0x1] %v6582_v21  ;;  %v6299_v20 = vshrl.u32 %v6101_v27, 16  ;;  %v6302_v48 = vshll.u32 %v6101_v27, 16  ;;  %v4569_v25 = vpop.f32.mrf.mxu2  ;;  %v7843_v33 = vsel %vm13993_vm10, %v7841_v34, %v7842_v53  ;;  %v16801_v27 = vld [vmem:[#allocation14_spill] sm:$0xff] }
 0x33b   : > { %6508 = vst [vmem:[#allocation3 + $0x8c] sm:$0x1] %v6507_v22  ;;  %v5910_v37 = vadd.f32 %v15247_v46, %v5388_v35  ;;  %v12486_v46 = vrot.slane %v7721_v15, 9  ;;  %v13163_v22 = vld [vmem:[#allocation3 + $0x54] sm:$0xff]  ;;  %v4265_v63 = vadd.f32 %v16802_v38, %v16801_v27  ;;  %v7160_v13 = vrot.slane %v7159_v49, 4 }
 0x33c   : > { %v15337_v16 = vrot.slane %v6299_v20, 7  ;;  %v6982_v20 = vld [vmem:[#allocation3 + $0x58] sm:$0xf]  ;;  %v6981_v15 = vld [vmem:[#allocation3 + $0x54] sm:$0xf] }
 0x33d   : > { %vm6006_vm6 = vcmp.gt.f32.partialorder %v5910_v37, 0.0  ;;  %v6038_v18 = vmul.f32 0.1, %v5910_v37  ;;  %8071 = vmatmul.bf16.gmra.mxu3 %v7967_v1  ;;  %v7840_v2 = vsel %vm13993_vm10, %v12486_v46, %v7839_v42  ;;  %v7170_v42 = vrot.slane %v7169_v56, 4 }
 0x33e   : > { %v6304_v0 = vor.u32 %v6302_v48, %v15337_v16  ;;  %v7941_v9 = vunpack.c.l.b16 %v7840_v2  ;;  %v6305_v31 = vrot.slane %v15337_v16, 4  ;;  %v7186_v45 = vshll.u32 %v6982_v20, 16 }
 0x33f   : > { %v6070_v23 = vsel %vm6006_vm6, %v5910_v37, %v6038_v18  ;;  %v15344_v36 = vpop.f32.mrf.mxu1  ;;  %v15348_v52 = vpop.f32.mrf.mxu0  ;;  %7554 = vmatmul.bf16.gmra.mxu2 %v7446_v14  ;;  %v7942_v37 = vunpack.c.l.b16 %v7843_v33  ;;  %v7177_v34 = vshrl.u32 %v6981_v15, 16  ;;  %v7180_v16 = vshll.u32 %v6981_v15, 16 }
 0x340   : > { %v6510_v12 = vsel %vm13426_vm3, %v6304_v0, %v6509_v54  ;;  %v6102_v28 = vpack.c.bf16 %v6070_v23, %v6070_v23  ;;  %v5313_v30 = vpop.f32.mrf.mxu3  ;;  %v4644_v0 = vadd.f32 %v4569_v25, %v4265_v63  ;;  %v7849_v33 = vrot.slane %v7726_v44, 5  ;;  %v7724_v63 = vld [vmem:[#allocation3 + $0x48] sm:$0xe] }
 0x341   : > { %6511 = vst [vmem:[#allocation3 + $0x90] sm:$0xf] %v6510_v12  ;;  %v5389_v60 = vadd.f32 %v5313_v30, %v4643_v24  ;;  %v13128_v39 = vld [vmem:[#allocation3 + $0x84] sm:$0xff]  ;;  %v7190_v24 = vshrl.u32 %v6982_v20, 16 }
 0x342   : > { %v6629_v41 = vld [vmem:[#allocation3 + $0x8c] sm:$0x1]  ;;  %v6307_v62 = vshrl.u32 %v6102_v28, 16  ;;  %6902 = vmatmul.bf16.gmra.mxu1 %v13128_v39  ;;  %v6310_v7 = vshll.u32 %v6102_v28, 16  ;;  %v4572_v53 = vpop.f32.mrf.mxu2  ;;  %8459 = vmatmul.bf16.gmra.mxu0 %v13163_v22  ;;  %v7846_v39 = vrot.slane %v15357_v58, 5 }
 0x343   : > { %v6630_v21 = vsel %vm13473_vm8, 0, %v6629_v41  ;;  %v5911_v35 = vadd.f32 %v15265_v55, %v5389_v60  ;;  %v7175_v55 = vsel %vm13392_vm14, %v7170_v42, %v7174_v32  ;;  %v7968_v32 = vpack.c.b16 %v7942_v37, %v7941_v9  ;;  %v6983_v22 = vld [vmem:[#allocation3 + $0x5c] sm:$0x1] }
 0x344   : > { %6631 = vst [vmem:[#allocation3 + $0x8c] sm:$0x1] %v6630_v21  ;;  %v6309_v1 = vrot.slane %v6307_v62, 7  ;;  %v7165_v41 = vsel %vm13392_vm14, %v7160_v13, %v15335_v6  ;;  %v13182_v62 = vld [vmem:[%s16704_s2 + $0x108] sm:$0xff]  ;;  %v7422_v38 = vunpack.c.l.b16 %v7175_v55  ;;  %v15380_v21 = vrot.slane %v7186_v45, 5  ;;  %v16803_v13 = vld [vmem:[#allocation16_spill] sm:$0xff] }
 0x345   : > { %vm6007_vm9 = vcmp.gt.f32.partialorder %v5911_v35, 0.0  ;;  %v6039_v48 = vmul.f32 0.1, %v5911_v35  ;;  %9173 = vmatpush.bf16.msrb.mxu1 %v13182_v62  ;;  %v7182_v6 = vrot.slane %v7180_v16, 5  ;;  %v6516_v9 = vld [vmem:[#allocation3 + $0x9c] sm:$0xf]  ;;  %v7421_v58 = vunpack.c.l.b16 %v7165_v41 }
 0x346   : > { %v6312_v54 = vor.u32 %v6310_v7, %v6309_v1  ;;  %v6314_v18 = vrot.slane %v6309_v1, 4  ;;  %v7179_v7 = vrot.slane %v7177_v34, 4  ;;  %v7196_v15 = vshll.u32 %v6983_v22, 16  ;;  %v6985_v22 = vld [vmem:[#allocation3 + $0x64] sm:$0xf] }
 0x347   : > { %v6071_v46 = vsel %vm6007_vm9, %v5911_v35, %v6039_v48  ;;  %v15366_v30 = vpop.f32.mrf.mxu1  ;;  %v15370_v60 = vpop.f32.mrf.mxu0  ;;  %v7192_v35 = vrot.slane %v7190_v24, 4  ;;  %v7848_v48 = vrot.slane %v7846_v39, 4  ;;  %v4645_v55 = vadd.f32 %v4572_v53, %v16803_v13 }
 0x348   : > { %v6584_v23 = vld [vmem:[#allocation3 + $0x90] sm:$0x1]  ;;  %v6313_v14 = vsel %vm13414_vm1, %v6305_v31, %v6312_v54  ;;  %v6514_v56 = vsel %vm13405_vm15, %v6314_v18, %v6513_v47  ;;  %v6103_v12 = vpack.c.bf16 %v6071_v46, %v6071_v46  ;;  %v5315_v28 = vpop.f32.mrf.mxu3  ;;  %v12487_v47 = vrot.slane %v7724_v63, 9 }
 0x349   : > { %v6585_v2 = vsel %vm13405_vm15, 0, %v6584_v23  ;;  %6512 = vst [vmem:[#allocation3 + $0x94] sm:$0xf] %v6313_v14  ;;  %v5390_v25 = vadd.f32 %v5315_v28, %v4644_v0  ;;  %v7447_v54 = vpack.c.b16 %v7422_v38, %v7421_v58  ;;  %v7193_v18 = vor.u32 %v7192_v35, %v15380_v21 }
 0x34a   : > { %6586 = vst [vmem:[#allocation3 + $0x90] sm:$0x1] %v6585_v2  ;;  %v6316_v49 = vshrl.u32 %v6103_v12, 16  ;;  %v6319_v20 = vshll.u32 %v6103_v12, 16  ;;  %v4574_v1 = vpop.f32.mrf.mxu2  ;;  %v7847_v34 = vsel %vm13993_vm10, %v12487_v47, %v7846_v39  ;;  %v7850_v14 = vsel %vm13993_vm10, %v7848_v48, %v7849_v33  ;;  %v13164_v2 = vld [vmem:[#allocation3 + $0x60] sm:$0xff] }
 0x34b   : > { %6515 = vst [vmem:[#allocation3 + $0x98] sm:$0x1] %v6514_v56  ;;  %v5912_v27 = vadd.f32 %v15287_v51, %v5390_v25  ;;  %v7183_v56 = vor.u32 %v7182_v6, %v7179_v7  ;;  %v7198_v12 = vrot.slane %v7196_v15, 5  ;;  %v16804_v25 = vld [vmem:[#allocation17_spill] sm:$0xff]  ;;  %v7194_v62 = vrot.slane %v7193_v18, 4 }
 0x34c   : > { %v15382_v42 = vrot.slane %v6316_v49, 7  ;;  %v16805_v49 = vld [vmem:[#allocation15_spill] sm:$0xff]  ;;  %v7943_v63 = vunpack.c.l.b16 %v7847_v34  ;;  %v7944_v35 = vunpack.c.l.b16 %v7850_v14 }
 0x34d   : > { %vm6008_vm11 = vcmp.gt.f32.partialorder %v5912_v27, 0.0  ;;  %v6040_v37 = vmul.f32 0.1, %v5912_v27  ;;  %8076 = vmatmul.bf16.gmra.mxu3 %v7968_v32  ;;  %v4267_v32 = vadd.f32 %v16805_v49, %v16804_v25  ;;  %v6520_v7 = vld [vmem:[#allocation3 + $0xa4] sm:$0x1] }
 0x34e   : > { %v6321_v51 = vor.u32 %v6319_v20, %v15382_v42  ;;  %v6984_v20 = vld [vmem:[#allocation3 + $0x60] sm:$0xf]  ;;  %v7729_v25 = vld [vmem:[#allocation3 + $0x5c] sm:$0x1] }
 0x34f   : > { %v6072_v31 = vsel %vm6008_vm11, %v5912_v27, %v6040_v37  ;;  %v15389_v46 = vpop.f32.mrf.mxu1  ;;  %v15393_v23 = vpop.f32.mrf.mxu0  ;;  %7559 = vmatmul.bf16.gmra.mxu2 %v7447_v54  ;;  %v7199_v37 = vsel %vm13392_vm14, %v7194_v62, %v7198_v12  ;;  %v4646_v47 = vadd.f32 %v4574_v1, %v4267_v32  ;;  %v7201_v13 = vshrl.u32 %v6984_v20, 16 }
 0x350   : > { %v6517_v44 = vsel %vm13426_vm3, %v6321_v51, %v6516_v9  ;;  %v6104_v45 = vpack.c.bf16 %v6072_v31, %v6072_v31  ;;  %v5318_v0 = vpop.f32.mrf.mxu3  ;;  %v7184_v9 = vrot.slane %v7183_v56, 4  ;;  %v7210_v51 = vshll.u32 %v6985_v22, 16 }
 0x351   : > { %6518 = vst [vmem:[#allocation3 + $0x9c] sm:$0xf] %v6517_v44  ;;  %v5391_v24 = vadd.f32 %v5318_v0, %v4645_v55  ;;  %v13129_v53 = vld [vmem:[#allocation3 + $0x90] sm:$0xff]  ;;  %v7214_v55 = vshrl.u32 %v6985_v22, 16  ;;  %v7204_v34 = vshll.u32 %v6984_v20, 16  ;;  %v7969_v56 = vpack.c.b16 %v7944_v35, %v7943_v63 }
 0x352   : > { %v6632_v28 = vld [vmem:[#allocation3 + $0x98] sm:$0x1]  ;;  %v6324_v16 = vshrl.u32 %v6104_v45, 16  ;;  %6907 = vmatmul.bf16.gmra.mxu1 %v13129_v53  ;;  %v6327_v38 = vshll.u32 %v6104_v45, 16  ;;  %v4577_v33 = vpop.f32.mrf.mxu2  ;;  %8464 = vmatmul.bf16.gmra.mxu0 %v13164_v2  ;;  %v7727_v53 = vld [vmem:[#allocation3 + $0x54] sm:$0xe]  ;;  %v7189_v12 = vsel %vm13392_vm14, %v7184_v9, %v15380_v21  ;;  %v7424_v2 = vunpack.c.l.b16 %v7199_v37 }
 0x353   : > { %v6633_v39 = vsel %vm13473_vm8, 0, %v6632_v28  ;;  %v5913_v41 = vadd.f32 %v15307_v4, %v5391_v24  ;;  %v6322_v4 = vrot.slane %v15382_v42, 4  ;;  %v7728_v28 = vld [vmem:[#allocation3 + $0x58] sm:$0xf]  ;;  %v15419_v49 = vrot.slane %v7210_v51, 5 }
 0x354   : > { %6634 = vst [vmem:[#allocation3 + $0x98] sm:$0x1] %v6633_v39  ;;  %v6326_v27 = vrot.slane %v6324_v16, 7  ;;  %v7216_v32 = vrot.slane %v7214_v55, 4  ;;  %v6986_v22 = vld [vmem:[#allocation3 + $0x68] sm:$0x1]  ;;  %v7423_v21 = vunpack.c.l.b16 %v7189_v12 }
 0x355   : > { %vm6009_vm12 = vcmp.gt.f32.partialorder %v5913_v41, 0.0  ;;  %v6041_v6 = vmul.f32 0.1, %v5913_v41  ;;  %v6523_v63 = vld [vmem:[#allocation3 + $0xa8] sm:$0xf]  ;;  %v7853_v20 = vrot.slane %v7728_v28, 5 }
 0x356   : > { %v6329_v58 = vor.u32 %v6327_v38, %v6326_v27  ;;  %v6331_v15 = vrot.slane %v6326_v27, 4  ;;  %v7203_v27 = vrot.slane %v7201_v13, 4  ;;  %v7206_v38 = vrot.slane %v7204_v34, 5  ;;  %v15424_v9 = vld [vmem:[#allocation3 + $0x60] sm:$0xe] }
 0x357   : > { %v6073_v48 = vsel %vm6009_vm12, %v5913_v41, %v6041_v6  ;;  %v15409_v0 = vpop.f32.mrf.mxu1  ;;  %v15413_v24 = vpop.f32.mrf.mxu0  ;;  %v7856_v6 = vrot.slane %v7729_v25, 5  ;;  %v15426_v37 = vld [vmem:[#allocation3 + $0xc] sm:$0xf]  ;;  %v7217_v51 = vor.u32 %v7216_v32, %v15419_v49 }
 0x358   : > { %v6587_v31 = vld [vmem:[#allocation3 + $0x9c] sm:$0x1]  ;;  %v6330_v54 = vsel %vm13414_vm1, %v6322_v4, %v6329_v58  ;;  %v6521_v18 = vsel %vm13405_vm15, %v6331_v15, %v6520_v7  ;;  %v6105_v44 = vpack.c.bf16 %v6073_v48, %v6073_v48  ;;  %v5320_v45 = vpop.f32.mrf.mxu3  ;;  %v12488_v7 = vrot.slane %v7727_v53, 9  ;;  %v13165_v53 = vld [vmem:[#allocation3 + $0x6c] sm:$0xff] }
 0x359   : > { %v6588_v42 = vsel %vm13405_vm15, 0, %v6587_v31  ;;  %6519 = vst [vmem:[#allocation3 + $0xa0] sm:$0xf] %v6330_v54  ;;  %v5392_v1 = vadd.f32 %v5320_v45, %v4646_v47  ;;  %v4647_v4 = vadd.f32 %v4577_v33, %v14754_v50  ;;  %v7448_v15 = vpack.c.b16 %v7424_v2, %v7423_v21  ;;  %v6527_v21 = vld [vmem:[#allocation3 + $0xb0] sm:$0x1] }
 0x35a   : > { %6589 = vst [vmem:[#allocation3 + $0x9c] sm:$0x1] %v6588_v42  ;;  %v6333_v14 = vshrl.u32 %v6105_v44, 16  ;;  %v6336_v41 = vshll.u32 %v6105_v44, 16  ;;  %v4579_v62 = vpop.f32.mrf.mxu2  ;;  %v7207_v31 = vor.u32 %v7206_v38, %v7203_v27  ;;  %v7220_v54 = vshll.u32 %v6986_v22, 16  ;;  %v16806_v38 = vld [vmem:[#allocation19_spill] sm:$0xff] }
 0x35b   : > { %6522 = vst [vmem:[#allocation3 + $0xa4] sm:$0x1] %v6521_v18  ;;  %v5914_v16 = vadd.f32 %v15329_v59, %v5392_v1  ;;  %v7855_v50 = vrot.slane %v7853_v20, 4  ;;  %v12489_v33 = vrot.slane %v15424_v9, 9  ;;  %v8655_v34 = vshrl.u32 %v15426_v37, 16  ;;  %v13166_v9 = vld [vmem:[#allocation3 + $0x78] sm:$0xff] }
 0x35c   : > { %v15421_v39 = vrot.slane %v6333_v14, 7  ;;  %v7854_v14 = vsel %vm13993_vm10, %v12488_v7, %v7853_v20  ;;  %v7218_v2 = vrot.slane %v7217_v51, 4  ;;  %v7208_v22 = vrot.slane %v7207_v31, 4 }
 0x35d   : > { %vm6010_vm13 = vcmp.gt.f32.partialorder %v5914_v16, 0.0  ;;  %v6042_v35 = vmul.f32 0.1, %v5914_v16  ;;  %8081 = vmatmul.bf16.gmra.mxu3 %v7969_v56  ;;  %v6988_v56 = vld [vmem:[#allocation3 + $0x70] sm:$0xf]  ;;  %v7222_v27 = vrot.slane %v7220_v54, 5 }
 0x35e   : > { %v6338_v59 = vor.u32 %v6336_v41, %v15421_v39 }
 0x35f   : > { %v6074_v58 = vsel %vm6010_vm13, %v5914_v16, %v6042_v35  ;;  %v15432_v55 = vpop.f32.mrf.mxu1  ;;  %7564 = vmatmul.bf16.gmra.mxu2 %v7448_v15  ;;  %v15434_v44 = vpop.f32.mrf.mxu0  ;;  %v7857_v16 = vsel %vm13993_vm10, %v7855_v50, %v7856_v6 }
 0x360   : > { %v6524_v47 = vsel %vm13426_vm3, %v6338_v59, %v6523_v63  ;;  %v6106_v48 = vpack.c.bf16 %v6074_v58, %v6074_v58  ;;  %v5323_v13 = vpop.f32.mrf.mxu3  ;;  %v16807_v63 = vld [vmem:[#allocation18_spill] sm:$0xff]  ;;  %v6339_v59 = vrot.slane %v15421_v39, 4  ;;  %v7238_v58 = vshrl.u32 %v6988_v56, 16 }
 0x361   : > { %6525 = vst [vmem:[#allocation3 + $0xa8] sm:$0xf] %v6524_v47  ;;  %v5393_v18 = vadd.f32 %v5323_v13, %v4647_v4  ;;  %v13130_v45 = vld [vmem:[#allocation3 + $0x9c] sm:$0xff]  ;;  %v4269_v35 = vadd.f32 %v16807_v63, %v16806_v38  ;;  %v6987_v4 = vld [vmem:[#allocation3 + $0x6c] sm:$0xf]  ;;  %v7945_v47 = vunpack.c.l.b16 %v7854_v14  ;;  %v7223_v39 = vsel %vm13392_vm14, %v7218_v2, %v7222_v27 }
 0x362   : > { %v6635_v42 = vld [vmem:[#allocation3 + $0xa4] sm:$0x1]  ;;  %v6341_v1 = vshrl.u32 %v6106_v48, 16  ;;  %6912 = vmatmul.bf16.gmra.mxu1 %v13130_v45  ;;  %v6344_v32 = vshll.u32 %v6106_v48, 16  ;;  %v15445_v41 = vpop.f32.mrf.mxu2  ;;  %8469 = vmatmul.bf16.gmra.mxu0 %v13165_v53  ;;  %v7946_v48 = vunpack.c.l.b16 %v7857_v16  ;;  %v7213_v16 = vsel %vm13392_vm14, %v7208_v22, %v15419_v49  ;;  %v13181_v2 = vld [vmem:[%s16704_s2 + $0x100] sm:$0xff] }
 0x363   : > { %v6636_v12 = vsel %vm13473_vm8, 0, %v6635_v42  ;;  %v5915_v28 = vadd.f32 %v15348_v52, %v5393_v18  ;;  %v7234_v52 = vshll.u32 %v6988_v56, 16  ;;  %v4648_v15 = vadd.f32 %v4579_v62, %v4269_v35  ;;  %v7731_v42 = vld [vmem:[#allocation3 + $0x64] sm:$0xf]  ;;  %9174 = vmatpush.bf16.msrb.mxu1 %v13181_v2  ;;  %v6989_v22 = vld [vmem:[#allocation3 + $0x74] sm:$0x1] }
 0x364   : > { %6637 = vst [vmem:[#allocation3 + $0xa4] sm:$0x1] %v6636_v12  ;;  %v6343_v25 = vrot.slane %v6341_v1, 7  ;;  %v7732_v1 = vld [vmem:[#allocation3 + $0x68] sm:$0x1]  ;;  %v7225_v56 = vshrl.u32 %v6987_v4, 16  ;;  %v7970_v38 = vpack.c.b16 %v7946_v48, %v7945_v47  ;;  %v7426_v63 = vunpack.c.l.b16 %v7223_v39 }
 0x365   : > { %vm6011_vm0 = vcmp.gt.f32.partialorder %v5915_v28, 0.0  ;;  %v6043_v20 = vmul.f32 0.1, %v5915_v28  ;;  %v7228_v12 = vshll.u32 %v6987_v4, 16  ;;  %v15471_v35 = vrot.slane %v8655_v34, 4 }
 0x366   : > { %v6346_v7 = vor.u32 %v6344_v32, %v6343_v25  ;;  %v6348_v6 = vrot.slane %v6343_v25, 4  ;;  %v15468_v25 = vrot.slane %v7234_v52, 5  ;;  %v7240_v32 = vrot.slane %v7238_v58, 4  ;;  %v6530_v52 = vld [vmem:[#allocation3 + $0xb4] sm:$0xf] }
 0x367   : > { %v6075_v51 = vsel %vm6011_vm0, %v5915_v28, %v6043_v20  ;;  %v15454_v50 = vpop.f32.mrf.mxu1  ;;  %v15460_v14 = vpop.f32.mrf.mxu0  ;;  %v7860_v49 = vrot.slane %v7731_v42, 5  ;;  %v7425_v4 = vunpack.c.l.b16 %v7213_v16  ;;  %v7227_v34 = vrot.slane %v7225_v56, 4  ;;  %v15480_v47 = vld [vmem:[#allocation3 + $0x6c] sm:$0xe]  ;;  %v15482_v48 = vld [vmem:[#allocation3 + $0x10] sm:$0xf] }
 0x368   : > { %v6590_v13 = vld [vmem:[#allocation3 + $0xa8] sm:$0x1]  ;;  %v6347_v31 = vsel %vm13414_vm1, %v6339_v59, %v6346_v7  ;;  %v6528_v54 = vsel %vm13405_vm15, %v6348_v6, %v6527_v21  ;;  %v6107_v18 = vpack.c.bf16 %v6075_v51, %v6075_v51  ;;  %v5325_v45 = vpop.f32.mrf.mxu3  ;;  %v8658_v7 = vshll.u32 %v15426_v37, 16 }
 0x369   : > { %v6591_v62 = vsel %vm13405_vm15, 0, %v6590_v13  ;;  %6526 = vst [vmem:[#allocation3 + $0xac] sm:$0xf] %v6347_v31  ;;  %v5394_v53 = vadd.f32 %v5325_v45, %v4648_v15  ;;  %v7230_v15 = vrot.slane %v7228_v12, 5  ;;  %v7241_v51 = vor.u32 %v7240_v32, %v15468_v25  ;;  %v16808_v13 = vld [vmem:[#allocation20_spill] sm:$0xff] }
 0x36a   : > { %6592 = vst [vmem:[#allocation3 + $0xa8] sm:$0x1] %v6591_v62  ;;  %v6350_v28 = vshrl.u32 %v6107_v18, 16  ;;  %v6353_v20 = vshll.u32 %v6107_v18, 16  ;;  %v15475_v59 = vpop.f32.mrf.mxu2  ;;  %v4649_v31 = vadd.f32 %v15445_v41, %v16808_v13  ;;  %v7244_v18 = vshll.u32 %v6989_v22, 16 }
 0x36b   : > { %6529 = vst [vmem:[#allocation3 + $0xb0] sm:$0x1] %v6528_v54  ;;  %v5916_v27 = vadd.f32 %v15370_v60, %v5394_v53  ;;  %v7863_v60 = vrot.slane %v7732_v1, 5  ;;  %v7449_v54 = vpack.c.b16 %v7426_v63, %v7425_v4  ;;  %v15494_v62 = vsel %vm13993_vm10, %v12489_v33, %v7860_v49 }
 0x36c   : > { %v15473_v21 = vrot.slane %v6350_v28, 7  ;;  %v7862_v53 = vrot.slane %v7860_v49, 4  ;;  %v12490_v28 = vrot.slane %v15480_v47, 9  ;;  %v15499_v16 = vrot.slane %v8658_v7, 5  ;;  %v15507_v7 = vld [vmem:[#allocation3 + $0x78] sm:$0xf] }
 0x36d   : > { %vm6012_vm4 = vcmp.gt.f32.partialorder %v5916_v27, 0.0  ;;  %v6044_v6 = vmul.f32 0.1, %v5916_v27  ;;  %8086 = vmatmul.bf16.gmra.mxu3 %v7970_v38  ;;  %v8664_v2 = vshll.u32 %v15482_v48, 16  ;;  %v7231_v38 = vor.u32 %v7230_v15, %v7227_v34  ;;  %v13228_v34 = vld [vmem:[%s16704_s2 + $0x1f8] sm:$0xff] }
 0x36e   : > { %v6355_v58 = vor.u32 %v6353_v20, %v15473_v21  ;;  %v7864_v33 = vsel %vm13993_vm10, %v7862_v53, %v7863_v60  ;;  %v7242_v63 = vrot.slane %v7241_v51, 4  ;;  %v13196_v60 = vld [vmem:[%s16704_s2 + $0x178] sm:$0xff]  ;;  %v6534_v15 = vld [vmem:[#allocation3 + $0xbc] sm:$0x1]  ;;  %v7947_v51 = vunpack.c.l.b16 %v15494_v62  ;;  %10814 = vmatpush.bf16.msra.mxu0 %v13228_v34 }
 0x36f   : > { %v6076_v37 = vsel %vm6012_vm4, %v5916_v27, %v6044_v6  ;;  %v15488_v1 = vpop.f32.mrf.mxu1  ;;  %7569 = vmatmul.bf16.gmra.mxu2 %v7449_v54  ;;  %v15496_v41 = vpop.f32.mrf.mxu0  ;;  %v16809_v6 = vld [vmem:[#allocation21_spill] sm:$0xff]  ;;  %v6356_v54 = vrot.slane %v15473_v21, 4  ;;  %v8668_v62 = vshrl.u32 %v15482_v48, 16 }
 0x370   : > { %v6531_v45 = vsel %vm13426_vm3, %v6355_v58, %v6530_v52  ;;  %v6108_v39 = vpack.c.bf16 %v6076_v37, %v6076_v37  ;;  %v5328_v42 = vpop.f32.mrf.mxu3  ;;  %v7246_v52 = vrot.slane %v7244_v18, 5  ;;  %v4271_v4 = vadd.f32 %v15189_v29, %v16809_v6  ;;  %v13236_v37 = vld [vmem:[%s16704_s2 + $0x238] sm:$0xff]  ;;  %9689 = vmatpush.bf16.msra.mxu2 %v13196_v60  ;;  %v8608_v60 = vld [vmem:[#allocation3 + $0x14] sm:$0x1] }
 0x371   : > { %6532 = vst [vmem:[#allocation3 + $0xb4] sm:$0xf] %v6531_v45  ;;  %v5395_v56 = vadd.f32 %v5328_v42, %v4649_v31  ;;  %v13131_v12 = vld [vmem:[#allocation3 + $0xa8] sm:$0xff]  ;;  %v7948_v31 = vunpack.c.l.b16 %v7864_v33  ;;  %11336 = vmatpush.bf16.msra.mxu1 %v13236_v37  ;;  %v7735_v37 = vld [vmem:[#allocation3 + $0x74] sm:$0x1] }
 0x372   : > { %v6638_v32 = vld [vmem:[#allocation3 + $0xb0] sm:$0x1]  ;;  %v6358_v27 = vshrl.u32 %v6108_v39, 16  ;;  %v6361_v49 = vshll.u32 %v6108_v39, 16  ;;  %6917 = vmatmul.bf16.gmra.mxu1 %v13131_v12  ;;  %v15511_v13 = vpop.f32.mrf.mxu2  ;;  %8474 = vmatmul.bf16.gmra.mxu0 %v13166_v9  ;;  %v7232_v39 = vrot.slane %v7231_v38, 4  ;;  %v4650_v42 = vadd.f32 %v15475_v59, %v4271_v4 }
 0x373   : > { %v6639_v20 = vsel %vm13473_vm8, 0, %v6638_v32  ;;  %v5917_v22 = vadd.f32 %v15393_v23, %v5395_v56  ;;  %v13220_v23 = vld [vmem:[%s16704_s2 + $0x1b8] sm:$0xff]  ;;  %v7247_v56 = vsel %vm13392_vm14, %v7242_v63, %v7246_v52  ;;  %v6991_v12 = vld [vmem:[#allocation3 + $0x7c] sm:$0xf]  ;;  %v7249_v59 = vshrl.u32 %v15507_v7, 16 }
 0x374   : > { %6640 = vst [vmem:[#allocation3 + $0xb0] sm:$0x1] %v6639_v20  ;;  %v6360_v58 = vrot.slane %v6358_v27, 7  ;;  %10068 = vmatpush.bf16.msra.mxu3 %v13220_v23  ;;  %v7237_v6 = vsel %vm13392_vm14, %v7232_v39, %v15468_v25  ;;  %v7258_v4 = vshll.u32 %v6991_v12, 16  ;;  %v7971_v34 = vpack.c.b16 %v7948_v31, %v7947_v51  ;;  %v6537_v39 = vld [vmem:[#allocation3 + $0xc0] sm:$0xf] }
 0x375   : > { %vm6013_vm5 = vcmp.gt.f32.partialorder %v5917_v22, 0.0  ;;  %v6045_v29 = vmul.f32 0.1, %v5917_v22  ;;  %v8670_v25 = vrot.slane %v8668_v62, 4 }
 0x376   : > { %v6363_v18 = vor.u32 %v6361_v49, %v6360_v58  ;;  %v6365_v45 = vrot.slane %v6360_v58, 4  ;;  %v7252_v49 = vshll.u32 %v15507_v7, 16  ;;  %v7262_v58 = vshrl.u32 %v6991_v12, 16 }
 0x377   : > { %v6077_v53 = vsel %vm6013_vm5, %v5917_v22, %v6045_v29  ;;  %v15535_v38 = vpop.f32.mrf.mxu1  ;;  %v15540_v48 = vpop.f32.mrf.mxu0  ;;  %v15543_v22 = vrot.slane %v8664_v2, 5  ;;  %v7734_v29 = vld [vmem:[#allocation3 + $0x70] sm:$0xf]  ;;  %v8661_v2 = vor.u32 %v15499_v16, %v15471_v35  ;;  %v7427_v12 = vunpack.c.l.b16 %v7237_v6 }
 0x378   : > { %v6593_v32 = vld [vmem:[#allocation3 + $0xb4] sm:$0x1]  ;;  %v6364_v21 = vsel %vm13414_vm1, %v6356_v54, %v6363_v18  ;;  %v6535_v27 = vsel %vm13405_vm15, %v6365_v45, %v6534_v15  ;;  %v6109_v9 = vpack.c.bf16 %v6077_v53, %v6077_v53  ;;  %v5330_v33 = vpop.f32.mrf.mxu3  ;;  %v7428_v15 = vunpack.c.l.b16 %v7247_v56  ;;  %v6992_v45 = vld [vmem:[#allocation3 + $0x80] sm:$0x1] }
 0x379   : > { %v6594_v63 = vsel %vm13405_vm15, 0, %v6593_v32  ;;  %6533 = vst [vmem:[#allocation3 + $0xb8] sm:$0xf] %v6364_v21  ;;  %v5396_v20 = vadd.f32 %v5330_v33, %v4650_v42  ;;  %v7251_v42 = vrot.slane %v7249_v59, 4  ;;  %v7867_v31 = vrot.slane %v7734_v29, 5 }
 0x37a   : > { %6595 = vst [vmem:[#allocation3 + $0xb4] sm:$0x1] %v6594_v63  ;;  %v6367_v52 = vshrl.u32 %v6109_v9, 16  ;;  %v6370_v54 = vshll.u32 %v6109_v9, 16  ;;  %v7532_v18 = vpop.f32.mrf.mxu2  ;;  %v15554_v56 = vrot.slane %v7258_v4, 5  ;;  %v7264_v32 = vrot.slane %v7262_v58, 4 }
 0x37b   : > { %6536 = vst [vmem:[#allocation3 + $0xbc] sm:$0x1] %v6535_v27  ;;  %v5918_v23 = vadd.f32 %v15413_v24, %v5396_v20  ;;  %v7254_v24 = vrot.slane %v7252_v49, 5  ;;  %v7642_v35 = vadd.f32 %v15511_v13, %v15217_v26  ;;  %v7450_v21 = vpack.c.b16 %v7428_v15, %v7427_v12 }
 0x37c   : > { %v15551_v7 = vrot.slane %v6367_v52, 7  ;;  %v8674_v27 = vshll.u32 %v8608_v60, 16  ;;  %v7870_v63 = vrot.slane %v7735_v37, 5  ;;  %v7268_v20 = vshll.u32 %v6992_v45, 16  ;;  %v13167_v60 = vld [vmem:[#allocation3 + $0x84] sm:$0xff] }
 0x37d   : > { %vm6014_vm7 = vcmp.gt.f32.partialorder %v5918_v23, 0.0  ;;  %v6046_v53 = vmul.f32 0.1, %v5918_v23  ;;  %8091 = vmatmul.bf16.gmra.mxu3 %v7971_v34  ;;  %v7255_v26 = vor.u32 %v7254_v24, %v7251_v42  ;;  %v15566_v13 = vrot.slane %v8661_v2, 4 }
 0x37e   : > { %v6372_v51 = vor.u32 %v6370_v54, %v15551_v7  ;;  %v8671_v4 = vor.u32 %v8670_v25, %v15543_v22  ;;  %v7265_v34 = vor.u32 %v7264_v32, %v15554_v56  ;;  %v7868_v29 = vsel %vm13993_vm10, %v12490_v28, %v7867_v31  ;;  %v8610_v28 = vld [vmem:[#allocation3 + $0x1c] sm:$0xf] }
 0x37f   : > { %v6078_v16 = vsel %vm6014_vm7, %v5918_v23, %v6046_v53  ;;  %v15560_v59 = vpop.f32.mrf.mxu1  ;;  %7574 = vmatmul.bf16.gmra.mxu2 %v7450_v21  ;;  %v15564_v52 = vpop.f32.mrf.mxu0  ;;  %v7869_v23 = vrot.slane %v7867_v31, 4  ;;  %v8676_v37 = vrot.slane %v8674_v27, 5  ;;  %v7270_v25 = vrot.slane %v7268_v20, 5 }
 0x380   : > { %v6538_v62 = vsel %vm13426_vm3, %v6372_v51, %v6537_v39  ;;  %v6110_v9 = vpack.c.bf16 %v6078_v16, %v6078_v16  ;;  %v8052_v33 = vpop.f32.mrf.mxu3  ;;  %v6541_v39 = vld [vmem:[#allocation3 + $0xc8] sm:$0x1]  ;;  %v7256_v53 = vrot.slane %v7255_v26, 4  ;;  %v8667_v47 = vsel %vm13392_vm14, %v15566_v13, %v15543_v22 }
 0x381   : > { %6539 = vst [vmem:[#allocation3 + $0xc0] sm:$0xf] %v6538_v62  ;;  %v15562_v49 = vadd.f32 %v8052_v33, %v7642_v35  ;;  %v13132_v6 = vld [vmem:[#allocation3 + $0xb4] sm:$0xff]  ;;  %v7871_v42 = vsel %vm13993_vm10, %v7869_v23, %v7870_v63  ;;  %v8672_v12 = vrot.slane %v8671_v4, 4  ;;  %v6373_v24 = vrot.slane %v15551_v7, 4 }
 0x382   : > { %v6641_v17 = vld [vmem:[#allocation3 + $0xbc] sm:$0x1]  ;;  %v6375_v58 = vshrl.u32 %v6110_v9, 16  ;;  %6922 = vmatmul.bf16.gmra.mxu1 %v13132_v6  ;;  %v6378_v54 = vshll.u32 %v6110_v9, 16  ;;  %v15576_v45 = vpop.f32.mrf.mxu2  ;;  %8479 = vmatmul.bf16.gmra.mxu0 %v13167_v60  ;;  %v7266_v32 = vrot.slane %v7265_v34, 4  ;;  %v7643_v35 = vadd.f32 %v7532_v18, %v15243_v19 }
 0x383   : > { %v6642_v15 = vsel %vm13473_vm8, 0, %v6641_v17  ;;  %v7949_v16 = vunpack.c.l.b16 %v7868_v29  ;;  %v7950_v21 = vunpack.c.l.b16 %v7871_v42  ;;  %v8677_v27 = vsel %vm13392_vm14, %v8672_v12, %v8676_v37  ;;  %v6993_v62 = vld [vmem:[#allocation3 + $0x84] sm:$0xf]  ;;  %v6994_v9 = vld [vmem:[#allocation3 + $0x88] sm:$0xf]  ;;  %v13195_v60 = vld [vmem:[%s16704_s2 + $0x170] sm:$0xff] }
 0x384   : > { %6643 = vst [vmem:[#allocation3 + $0xbc] sm:$0x1] %v6642_v15  ;;  %v6377_v2 = vrot.slane %v6375_v58, 7  ;;  %v8609_v33 = vld [vmem:[#allocation3 + $0x18] sm:$0xf]  ;;  %v7271_v19 = vsel %vm13392_vm14, %v7266_v32, %v7270_v25  ;;  %v8688_v26 = vshll.u32 %v8610_v28, 16  ;;  %v7261_v17 = vsel %vm13392_vm14, %v7256_v53, %v15554_v56  ;;  %9690 = vmatpush.bf16.msra.mxu2 %v13195_v60 }
 0x385   : > { %v15596_v18 = vld [vmem:[#allocation3 + $0x7c] sm:$0xf]  ;;  %v8692_v58 = vshrl.u32 %v8610_v28, 16  ;;  %v7273_v5 = vshrl.u32 %v6993_v62, 16  ;;  %v7276_v34 = vshll.u32 %v6993_v62, 16  ;;  %v7282_v15 = vshll.u32 %v6994_v9, 16 }
 0x386   : > { %v6380_v51 = vor.u32 %v6378_v54, %v6377_v2  ;;  %v6382_v31 = vrot.slane %v6377_v2, 4  ;;  %v13219_v23 = vld [vmem:[%s16704_s2 + $0x1b0] sm:$0xff]  ;;  %v7286_v29 = vshrl.u32 %v6994_v9, 16  ;;  %v7972_v37 = vpack.c.b16 %v7950_v21, %v7949_v16  ;;  %v13168_v60 = vld [vmem:[#allocation3 + $0x90] sm:$0xff] }
 0x387   : > { %v15592_v6 = vpop.f32.mrf.mxu1  ;;  %v15602_v11 = vpop.f32.mrf.mxu0  ;;  %v7430_v2 = vunpack.c.l.b16 %v7271_v19  ;;  %v8679_v54 = vshrl.u32 %v8609_v33, 16  ;;  %v8682_v42 = vshll.u32 %v8609_v33, 16  ;;  %10069 = vmatpush.bf16.msra.mxu3 %v13219_v23  ;;  %v9055_v25 = vunpack.c.l.b16 %v8667_v47 }
 0x388   : > { %v6596_v63 = vld [vmem:[#allocation3 + $0xc0] sm:$0x1]  ;;  %v6381_v22 = vsel %vm13414_vm1, %v6373_v24, %v6380_v51  ;;  %v6542_v7 = vsel %vm13405_vm15, %v6382_v31, %v6541_v39  ;;  %v8054_v20 = vpop.f32.mrf.mxu3  ;;  %16810 = vst [vmem:[#allocation22_spill] sm:$0xff] %v15602_v11  ;;  %v15613_v53 = vrot.slane %v8688_v26, 5  ;;  %v7429_v12 = vunpack.c.l.b16 %v7261_v17  ;;  %v6995_v31 = vld [vmem:[#allocation3 + $0x8c] sm:$0x1] }
 0x389   : > { %v6597_v13 = vsel %vm13405_vm15, 0, %v6596_v63  ;;  %6540 = vst [vmem:[#allocation3 + $0xc4] sm:$0xf] %v6381_v22  ;;  %v15600_v4 = vadd.f32 %v8054_v20, %v7643_v35  ;;  %v8611_v39 = vld [vmem:[#allocation3 + $0x20] sm:$0x1]  ;;  %v9056_v28 = vunpack.c.l.b16 %v8677_v27  ;;  %v7874_v51 = vrot.slane %v15596_v18, 5 }
 0x38a   : > { %6598 = vst [vmem:[#allocation3 + $0xc0] sm:$0x1] %v6597_v13  ;;  %v7537_v56 = vpop.f32.mrf.mxu2  ;;  %v7738_v24 = vld [vmem:[#allocation3 + $0x80] sm:$0x1]  ;;  %v8694_v32 = vrot.slane %v8692_v58, 4  ;;  %v7275_v35 = vrot.slane %v7273_v5, 4  ;;  %v7644_v9 = vadd.f32 %v15576_v45, %v15263_v3  ;;  %v7451_v47 = vpack.c.b16 %v7430_v2, %v7429_v12 }
 0x38b   : > { %6543 = vst [vmem:[#allocation3 + $0xc8] sm:$0x1] %v6542_v7  ;;  %v7278_v16 = vrot.slane %v7276_v34, 5  ;;  %v15616_v21 = vrot.slane %v7282_v15, 5  ;;  %v7288_v62 = vrot.slane %v7286_v29, 4  ;;  %v8681_v33 = vrot.slane %v8679_v54, 4 }
 0x38c   : > { %v8684_v63 = vrot.slane %v8682_v42, 5  ;;  %v7877_v27 = vrot.slane %v7738_v24, 5  ;;  %v7292_v20 = vshll.u32 %v6995_v31, 16  ;;  %v8698_v19 = vshll.u32 %v8611_v39, 16  ;;  %v7736_v17 = vld [vmem:[#allocation3 + $0x78] sm:$0xe] }
 0x38d   : > { %8096 = vmatmul.bf16.gmra.mxu3 %v7972_v37  ;;  %v9087_v13 = vpack.c.b16 %v9056_v28, %v9055_v25  ;;  %v7876_v23 = vrot.slane %v7874_v51, 4  ;;  %v7279_v3 = vor.u32 %v7278_v16, %v7275_v35  ;;  %v7289_v45 = vor.u32 %v7288_v62, %v15616_v21  ;;  %v13227_v34 = vld [vmem:[%s16704_s2 + $0x1f0] sm:$0xff]  ;;  %v8612_v37 = vld [vmem:[#allocation3 + $0x24] sm:$0xf]  ;;  %v8613_v28 = vld [vmem:[#allocation3 + $0x28] sm:$0xf] }
 0x38e   : > { %v8695_v5 = vor.u32 %v8694_v32, %v15613_v53  ;;  %v8685_v29 = vor.u32 %v8684_v63, %v8681_v33  ;;  %v13235_v2 = vld [vmem:[%s16704_s2 + $0x230] sm:$0xff]  ;;  %v12491_v42 = vrot.slane %v7736_v17, 9  ;;  %v7294_v39 = vrot.slane %v7292_v20, 5  ;;  %10815 = vmatpush.bf16.msra.mxu0 %v13227_v34  ;;  %v6996_v35 = vld [vmem:[#allocation3 + $0x90] sm:$0xf] }
 0x38f   : > { %v15620_v7 = vpop.f32.mrf.mxu1  ;;  %7579 = vmatmul.bf16.gmra.mxu2 %v7451_v47  ;;  %v15624_v26 = vpop.f32.mrf.mxu0  ;;  %v7878_v25 = vsel %vm13993_vm10, %v7876_v23, %v7877_v27  ;;  %v8700_v12 = vrot.slane %v8698_v19, 5  ;;  %11337 = vmatpush.bf16.msra.mxu1 %v13235_v2  ;;  %v7280_v24 = vrot.slane %v7279_v3, 4  ;;  %v7290_v31 = vrot.slane %v7289_v45, 4  ;;  %v6997_v47 = vld [vmem:[#allocation3 + $0x94] sm:$0xf] }
 0x390   : > { %v8057_v22 = vpop.f32.mrf.mxu3  ;;  %16811 = vst [vmem:[#allocation23_spill] sm:$0xff] %v15624_v26  ;;  %v7875_v8 = vsel %vm13993_vm10, %v12491_v42, %v7874_v51  ;;  %v8696_v32 = vrot.slane %v8695_v5, 4  ;;  %v7645_v16 = vadd.f32 %v7537_v56, %v15283_v61  ;;  %v7952_v62 = vunpack.c.l.b16 %v7878_v25  ;;  %v8614_v2 = vld [vmem:[#allocation3 + $0x2c] sm:$0x1]  ;;  %v7007_v11 = vld [vmem:[#allocation3 + $0xbc] sm:$0x1] }
 0x391   : > { %v15622_v18 = vadd.f32 %v8057_v22, %v7644_v9  ;;  %v8686_v9 = vrot.slane %v8685_v29, 4  ;;  %v8703_v33 = vshrl.u32 %v8612_v37, 16  ;;  %v7295_v27 = vsel %vm13392_vm14, %v7290_v31, %v7294_v39 }
 0x392   : > { %v6644_v58 = vld [vmem:[#allocation3 + $0xc8] sm:$0x1]  ;;  %9175 = vmatmul.bf16.vlgmr.msrb.gmra.mxu1 %v9087_v13  ;;  %v7540_v54 = vpop.f32.mrf.mxu2  ;;  %8484 = vmatmul.bf16.gmra.mxu0 %v13168_v60  ;;  %v8701_v20 = vsel %vm13392_vm14, %v8696_v32, %v8700_v12  ;;  %v8706_v51 = vshll.u32 %v8612_v37, 16  ;;  %v8712_v19 = vshll.u32 %v8613_v28, 16  ;;  %v7951_v61 = vunpack.c.l.b16 %v7875_v8 }
 0x393   : > { %v6645_v15 = vsel %vm13473_vm8, 0, %v6644_v58  ;;  %v7297_v56 = vshrl.u32 %v6996_v35, 16  ;;  %v7300_v58 = vshll.u32 %v6996_v35, 16  ;;  %v7285_v60 = vsel %vm13392_vm14, %v7280_v24, %v15616_v21  ;;  %v7741_v21 = vld [vmem:[#allocation3 + $0x8c] sm:$0x1] }
 0x394   : > { %6646 = vst [vmem:[#allocation3 + $0xc8] sm:$0x1] %v6645_v15  ;;  %v7306_v23 = vshll.u32 %v6997_v47, 16  ;;  %v7310_v3 = vshrl.u32 %v6997_v47, 16  ;;  %v8716_v45 = vshrl.u32 %v8613_v28, 16  ;;  %v7973_v5 = vpack.c.b16 %v7952_v62, %v7951_v61 }
 0x395   : > { %v7432_v34 = vunpack.c.l.b16 %v7295_v27  ;;  %v7740_v15 = vld [vmem:[#allocation3 + $0x88] sm:$0xf]  ;;  %v8691_v37 = vsel %vm13392_vm14, %v8686_v9, %v15613_v53  ;;  %v8705_v42 = vrot.slane %v8703_v33, 4  ;;  %v8708_v25 = vrot.slane %v8706_v51, 5  ;;  %v6998_v24 = vld [vmem:[#allocation3 + $0x98] sm:$0x1] }
 0x396   : > { %v15657_v39 = vrot.slane %v8712_v19, 5  ;;  %v7431_v12 = vunpack.c.l.b16 %v7285_v60  ;;  %v9058_v8 = vunpack.c.l.b16 %v8701_v20  ;;  %v7299_v31 = vrot.slane %v7297_v56, 4  ;;  %v7739_v60 = vld [vmem:[#allocation3 + $0x84] sm:$0xe] }
 0x397   : > { %v15641_v22 = vpop.f32.mrf.mxu1  ;;  %v15649_v17 = vpop.f32.mrf.mxu0  ;;  %v7302_v28 = vrot.slane %v7300_v58, 5  ;;  %v7881_v32 = vrot.slane %v7740_v15, 5  ;;  %v15659_v35 = vrot.slane %v7306_v23, 5  ;;  %v8718_v62 = vrot.slane %v8716_v45, 4 }
 0x398   : > { %v8059_v63 = vpop.f32.mrf.mxu3  ;;  %16812 = vst [vmem:[#allocation25_spill] sm:$0xff] %v15649_v17  ;;  %v7646_v47 = vadd.f32 %v7540_v54, %v15305_v40  ;;  %v7452_v53 = vpack.c.b16 %v7432_v34, %v7431_v12  ;;  %v9057_v9 = vunpack.c.l.b16 %v8691_v37  ;;  %v8722_v33 = vshll.u32 %v8614_v2, 16 }
 0x399   : > { %v15647_v13 = vadd.f32 %v8059_v63, %v7645_v16  ;;  %v7312_v16 = vrot.slane %v7310_v3, 4  ;;  %v7884_v51 = vrot.slane %v7741_v21, 5  ;;  %v7316_v19 = vshll.u32 %v6998_v24, 16  ;;  %v13169_v3 = vld [vmem:[#allocation3 + $0x9c] sm:$0xff] }
 0x39a   : > { %v7542_v29 = vpop.f32.mrf.mxu2  ;;  %v8709_v20 = vor.u32 %v8708_v25, %v8705_v42  ;;  %v9088_v58 = vpack.c.b16 %v9058_v8, %v9057_v9  ;;  %v7303_v23 = vor.u32 %v7302_v28, %v7299_v31  ;;  %v7883_v45 = vrot.slane %v7881_v32, 4  ;;  %v8615_v25 = vld [vmem:[#allocation3 + $0x30] sm:$0xf]  ;;  %v8616_v8 = vld [vmem:[#allocation3 + $0x34] sm:$0xf] }
 0x39b   : > { %v7313_v40 = vor.u32 %v7312_v16, %v15659_v35  ;;  %v8719_v54 = vor.u32 %v8718_v62, %v15657_v39  ;;  %v12492_v15 = vrot.slane %v7739_v60, 9  ;;  %v7318_v2 = vrot.slane %v7316_v19, 5  ;;  %v6999_v62 = vld [vmem:[#allocation3 + $0x9c] sm:$0xf] }
 0x39c   : > { %v7885_v37 = vsel %vm13993_vm10, %v7883_v45, %v7884_v51  ;;  %v8710_v42 = vrot.slane %v8709_v20, 4  ;;  %v7304_v12 = vrot.slane %v7303_v23, 4  ;;  %v7647_v28 = vadd.f32 %v7542_v29, %v15325_v10  ;;  %v13194_v23 = vld [vmem:[%s16704_s2 + $0x168] sm:$0xff] }
 0x39d   : > { %8101 = vmatmul.bf16.gmra.mxu3 %v7973_v5  ;;  %v8724_v5 = vrot.slane %v8722_v33, 5  ;;  %v7882_v21 = vsel %vm13993_vm10, %v12492_v15, %v7881_v32  ;;  %v7314_v24 = vrot.slane %v7313_v40, 4  ;;  %v8720_v31 = vrot.slane %v8719_v54, 4  ;;  %9691 = vmatpush.bf16.msra.mxu2 %v13194_v23 }
 0x39e   : > { %v7954_v16 = vunpack.c.l.b16 %v7885_v37  ;;  %v8730_v9 = vshll.u32 %v8615_v25, 16  ;;  %v8715_v19 = vsel %vm13392_vm14, %v8710_v42, %v15657_v39  ;;  %v8736_v20 = vshll.u32 %v8616_v8, 16  ;;  %v13218_v39 = vld [vmem:[%s16704_s2 + $0x1a8] sm:$0xff] }
 0x39f   : > { %v15662_v27 = vpop.f32.mrf.mxu1  ;;  %7584 = vmatmul.bf16.gmra.mxu2 %v7452_v53  ;;  %v15666_v56 = vpop.f32.mrf.mxu0  ;;  %v8727_v53 = vshrl.u32 %v8615_v25, 16  ;;  %v7319_v51 = vsel %vm13392_vm14, %v7314_v24, %v7318_v2  ;;  %v8725_v32 = vsel %vm13392_vm14, %v8720_v31, %v8724_v5  ;;  %v7953_v29 = vunpack.c.l.b16 %v7882_v21  ;;  %10070 = vmatpush.bf16.msra.mxu3 %v13218_v39  ;;  %v8618_v24 = vld [vmem:[#allocation3 + $0x3c] sm:$0xf] }
 0x3a0   : > { %v8062_v63 = vpop.f32.mrf.mxu3  ;;  %16813 = vst [vmem:[#allocation27_spill] sm:$0xff] %v15666_v56  ;;  %v8740_v60 = vshrl.u32 %v8616_v8, 16  ;;  %v7321_v45 = vshrl.u32 %v6999_v62, 16  ;;  %v7324_v40 = vshll.u32 %v6999_v62, 16  ;;  %v7434_v2 = vunpack.c.l.b16 %v7319_v51  ;;  %v7744_v62 = vld [vmem:[#allocation3 + $0x98] sm:$0x1] }
 0x3a1   : > { %v15664_v61 = vadd.f32 %v8062_v63, %v7646_v47  ;;  %v7000_v47 = vld [vmem:[#allocation3 + $0xa0] sm:$0xf]  ;;  %v7974_v37 = vpack.c.b16 %v7954_v16, %v7953_v29  ;;  %v9059_v25 = vunpack.c.l.b16 %v8715_v19  ;;  %v8732_v8 = vrot.slane %v8730_v9, 5 }
 0x3a2   : > { %9180 = vmatmul.bf16.gmra.mxu1 %v9088_v58  ;;  %v7545_v34 = vpop.f32.mrf.mxu2  ;;  %8489 = vmatmul.bf16.gmra.mxu0 %v13169_v3  ;;  %v7309_v58 = vsel %vm13392_vm14, %v7304_v12, %v15659_v35  ;;  %v15695_v3 = vld [vmem:[#allocation3 + $0x94] sm:$0xf]  ;;  %v7330_v54 = vshll.u32 %v7000_v47, 16  ;;  %v7334_v5 = vshrl.u32 %v7000_v47, 16  ;;  %v8617_v35 = vld [vmem:[#allocation3 + $0x38] sm:$0x1] }
 0x3a3   : > { %v8729_v12 = vrot.slane %v8727_v53, 4  ;;  %v15699_v21 = vrot.slane %v8736_v20, 5  ;;  %v7433_v31 = vunpack.c.l.b16 %v7309_v58  ;;  %v7888_v47 = vrot.slane %v15695_v3, 5  ;;  %v13226_v53 = vld [vmem:[%s16704_s2 + $0x1e8] sm:$0xff] }
 0x3a4   : > { %v7323_v16 = vrot.slane %v7321_v45, 4  ;;  %v7326_v51 = vrot.slane %v7324_v40, 5  ;;  %v15702_v29 = vrot.slane %v7330_v54, 5  ;;  %v7336_v23 = vrot.slane %v7334_v5, 4  ;;  %10816 = vmatpush.bf16.msra.mxu0 %v13226_v53  ;;  %v7742_v54 = vld [vmem:[#allocation3 + $0x90] sm:$0xe] }
 0x3a5   : > { %v7648_v9 = vadd.f32 %v7545_v34, %v15344_v36  ;;  %v7453_v19 = vpack.c.b16 %v7434_v2, %v7433_v31  ;;  %v8746_v20 = vshll.u32 %v8617_v35, 16  ;;  %v8751_v58 = vshrl.u32 %v8618_v24, 16  ;;  %v13170_v5 = vld [vmem:[#allocation3 + $0xa8] sm:$0xff] }
 0x3a6   : > { %v7891_v3 = vrot.slane %v7744_v62, 5  ;;  %v7890_v56 = vrot.slane %v7888_v47, 4  ;;  %v7327_v17 = vor.u32 %v7326_v51, %v7323_v16  ;;  %v7337_v36 = vor.u32 %v7336_v23, %v15702_v29  ;;  %v13225_v2 = vld [vmem:[%s16704_s2 + $0x1e0] sm:$0xff]  ;;  %v8619_v23 = vld [vmem:[#allocation3 + $0x40] sm:$0xf] }
 0x3a7   : > { %v15675_v63 = vpop.f32.mrf.mxu1  ;;  %v15697_v15 = vpop.f32.mrf.mxu0  ;;  %v8733_v35 = vor.u32 %v8732_v8, %v8729_v12  ;;  %v8748_v31 = vrot.slane %v8746_v20, 5  ;;  %v12493_v62 = vrot.slane %v7742_v54, 9  ;;  %v13224_v12 = vld [vmem:[%s16704_s2 + $0x1d8] sm:$0xff]  ;;  %v7002_v20 = vld [vmem:[#allocation3 + $0xa8] sm:$0xf] }
 0x3a8   : > { %v8064_v33 = vpop.f32.mrf.mxu3  ;;  %16814 = vst [vmem:[#allocation29_spill] sm:$0xff] %v15697_v15  ;;  %v8742_v15 = vrot.slane %v8740_v60, 4  ;;  %v8754_v60 = vshll.u32 %v8618_v24, 16  ;;  %v8753_v24 = vrot.slane %v8751_v58, 4  ;;  %10817 = vmatpush.bf16.msra.mxu0 %v13225_v2  ;;  %v7328_v53 = vrot.slane %v7327_v17, 4 }
 0x3a9   : > { %v15684_v10 = vadd.f32 %v8064_v33, %v7647_v28  ;;  %v9060_v28 = vunpack.c.l.b16 %v8725_v32  ;;  %v7001_v33 = vld [vmem:[#allocation3 + $0xa4] sm:$0x1]  ;;  %v7889_v8 = vsel %vm13993_vm10, %v12493_v62, %v7888_v47  ;;  %v8760_v47 = vshll.u32 %v8619_v23, 16 }
 0x3aa   : > { %v7547_v42 = vpop.f32.mrf.mxu2  ;;  %v8743_v34 = vor.u32 %v8742_v15, %v15699_v21  ;;  %v8756_v15 = vrot.slane %v8754_v60, 5  ;;  %v7348_v2 = vshll.u32 %v7002_v20, 16  ;;  %v8764_v62 = vshrl.u32 %v8619_v23, 16  ;;  %v7004_v23 = vld [vmem:[#allocation3 + $0xb0] sm:$0x1] }
 0x3ab   : > { %v9089_v40 = vpack.c.b16 %v9060_v28, %v9059_v25  ;;  %v13234_v25 = vld [vmem:[%s16704_s2 + $0x228] sm:$0xff] }
 0x3ac   : > { %11338 = vmatpush.bf16.msra.mxu1 %v13234_v25  ;;  %10818 = vmatpush.bf16.msra.mxu0 %v13224_v12  ;;  %v8620_v12 = vld [vmem:[#allocation3 + $0x44] sm:$0x1] }
 0x3ad   : > { %8106 = vmatmul.bf16.gmra.mxu3 %v7974_v37  ;;  %v7340_v37 = vshll.u32 %v7001_v33, 16  ;;  %v7892_v33 = vsel %vm13993_vm10, %v7890_v56, %v7891_v3  ;;  %v7649_v56 = vadd.f32 %v7547_v42, %v15366_v30  ;;  %v7003_v3 = vld [vmem:[#allocation3 + $0xac] sm:$0xf]  ;;  %v13223_v30 = vld [vmem:[%s16704_s2 + $0x1d0] sm:$0xff]  ;;  %v7333_v42 = vsel %vm13392_vm14, %v7328_v53, %v15702_v29 }
 0x3ae   : > { %v7956_v58 = vunpack.c.l.b16 %v7892_v33  ;;  %v7358_v25 = vshrl.u32 %v7003_v3, 16  ;;  %v15744_v33 = vld [vmem:[#allocation3 + $0xa0] sm:$0xf]  ;;  %v7435_v29 = vunpack.c.l.b16 %v7333_v42 }
 0x3af   : > { %v15708_v39 = vpop.f32.mrf.mxu1  ;;  %7589 = vmatmul.bf16.gmra.mxu2 %v7453_v19  ;;  %v7342_v16 = vrot.slane %v7340_v37, 5  ;;  %v15722_v51 = vpop.f32.mrf.mxu0  ;;  %v8744_v19 = vrot.slane %v8743_v34, 4  ;;  %v7345_v34 = vshrl.u32 %v7002_v20, 16  ;;  %v7747_v20 = vld [vmem:[#allocation3 + $0xa4] sm:$0x1] }
 0x3b0   : > { %v8067_v32 = vpop.f32.mrf.mxu3  ;;  %16816 = vst [vmem:[#allocation31_spill] sm:$0xff] %v15722_v51  ;;  %10819 = vmatpush.bf16.msra.mxu0 %v13223_v30  ;;  %v7898_v42 = vrot.slane %v7747_v20, 5  ;;  %v7745_v51 = vld [vmem:[#allocation3 + $0x9c] sm:$0xe]  ;;  %v13221_v20 = vld [vmem:[%s16704_s2 + $0x1c0] sm:$0xff] }
 0x3b1   : > { %v15710_v45 = vadd.f32 %v8067_v32, %v7648_v9  ;;  %v7338_v9 = vrot.slane %v7337_v36, 4  ;;  %v8734_v32 = vrot.slane %v8733_v35, 4  ;;  %v8749_v54 = vsel %vm13392_vm14, %v8744_v19, %v8748_v31  ;;  %v15751_v19 = vld [vmem:[#allocation3 + $0x48] sm:$0xf] }
 0x3b2   : > { %9185 = vmatmul.bf16.gmra.mxu1 %v9089_v40  ;;  %v7550_v28 = vpop.f32.mrf.mxu2  ;;  %8494 = vmatmul.bf16.gmra.mxu0 %v13170_v5  ;;  %v8757_v5 = vor.u32 %v8756_v15, %v8753_v24  ;;  %v7955_v36 = vunpack.c.l.b16 %v7889_v8  ;;  %v7354_v35 = vshll.u32 %v7003_v3, 16  ;;  %v9062_v53 = vunpack.c.l.b16 %v8749_v54 }
 0x3b3   : > { %16815 = vst [vmem:[#allocation30_spill] sm:$0xff] %v15710_v45  ;;  %v7343_v40 = vsel %vm13392_vm14, %v7338_v9, %v7342_v16  ;;  %v8739_v15 = vsel %vm13392_vm14, %v8734_v32, %v15699_v21  ;;  %v8762_v9 = vrot.slane %v8760_v47, 5  ;;  %v7895_v3 = vrot.slane %v15744_v33, 5  ;;  %v13222_v21 = vld [vmem:[%s16704_s2 + $0x1c8] sm:$0xff]  ;;  %v13193_v32 = vld [vmem:[%s16704_s2 + $0x160] sm:$0xff] }
 0x3b4   : > { %v7975_v31 = vpack.c.b16 %v7956_v58, %v7955_v36  ;;  %v7436_v24 = vunpack.c.l.b16 %v7343_v40  ;;  %v8758_v8 = vrot.slane %v8757_v5, 4  ;;  %v7350_v58 = vrot.slane %v7348_v2, 5  ;;  %9692 = vmatpush.bf16.msra.mxu2 %v13193_v32  ;;  %10820 = vmatpush.bf16.msra.mxu0 %v13222_v21  ;;  %v7750_v45 = vld [vmem:[#allocation3 + $0xb0] sm:$0x1] }
 0x3b5   : > { %v7360_v40 = vrot.slane %v7358_v25, 4  ;;  %v8766_v36 = vrot.slane %v8764_v62, 4  ;;  %v7650_v54 = vadd.f32 %v7550_v28, %v15389_v46  ;;  %v8770_v25 = vshll.u32 %v8620_v12, 16  ;;  %v15767_v62 = vld [vmem:[#allocation3 + $0x4c] sm:$0xf]  ;;  %v13171_v28 = vld [vmem:[#allocation3 + $0xb4] sm:$0xff] }
 0x3b6   : > { %v7454_v47 = vpack.c.b16 %v7436_v24, %v7435_v29  ;;  %v8775_v46 = vshrl.u32 %v15751_v19, 16  ;;  %v7897_v24 = vrot.slane %v7895_v3, 4  ;;  %v8763_v29 = vsel %vm13392_vm14, %v8758_v8, %v8762_v9 }
 0x3b7   : > { %v15730_v60 = vpop.f32.mrf.mxu1  ;;  %v15763_v5 = vpop.f32.mrf.mxu0  ;;  %v8767_v12 = vor.u32 %v8766_v36, %v8762_v9  ;;  %v8772_v36 = vrot.slane %v8770_v25, 5  ;;  %v15787_v32 = vunpack.c.l.b16 %v8763_v29  ;;  %v7005_v25 = vld [vmem:[#allocation3 + $0xb4] sm:$0xf] }
 0x3b8   : > { %v8069_v37 = vpop.f32.mrf.mxu3  ;;  %16818 = vst [vmem:[#allocation28_spill] sm:$0xff] %v15763_v5  ;;  %v7899_v8 = vsel %vm13993_vm10, %v7897_v24, %v7898_v42  ;;  %10821 = vmatpush.bf16.msra.mxu0 %v13221_v20 }
 0x3b9   : > { %v15736_v17 = vadd.f32 %v8069_v37, %v7649_v56  ;;  %v7347_v56 = vrot.slane %v7345_v34, 4  ;;  %v15754_v37 = vrot.slane %v7354_v35, 5  ;;  %v9061_v34 = vunpack.c.l.b16 %v8739_v15 }
 0x3ba   : > { %v15746_v16 = vpop.f32.mrf.mxu2  ;;  %v7364_v35 = vshll.u32 %v7004_v23, 16  ;;  %v8778_v23 = vshll.u32 %v15751_v19, 16  ;;  %v13191_v19 = vld [vmem:[%s16704_s2 + $0x150] sm:$0xff] }
 0x3bb   : > { %16817 = vst [vmem:[#allocation24_spill] sm:$0xff] %v15736_v17  ;;  %v9090_v33 = vpack.c.b16 %v9062_v53, %v9061_v34  ;;  %v7351_v17 = vor.u32 %v7350_v58, %v7347_v56  ;;  %v7361_v15 = vor.u32 %v7360_v40, %v15754_v37  ;;  %v13192_v53 = vld [vmem:[%s16704_s2 + $0x158] sm:$0xff]  ;;  %v8784_v56 = vshll.u32 %v15767_v62, 16 }
 0x3bc   : > { %v12494_v40 = vrot.slane %v7745_v51, 9  ;;  %v7366_v9 = vrot.slane %v7364_v35, 5  ;;  %9693 = vmatpush.bf16.msra.mxu2 %v13192_v53  ;;  %v8768_v51 = vrot.slane %v8767_v12, 4  ;;  %v7651_v42 = vadd.f32 %v15746_v16, %v15409_v0 }
 0x3bd   : > { %8111 = vmatmul.bf16.gmra.mxu3 %v7975_v31  ;;  %v7352_v21 = vrot.slane %v7351_v17, 4  ;;  %v7362_v34 = vrot.slane %v7361_v15, 4  ;;  %v7958_v35 = vunpack.c.l.b16 %v7899_v8  ;;  %v7006_v17 = vld [vmem:[#allocation3 + $0xb8] sm:$0xf]  ;;  %v15803_v15 = vrot.slane %v8784_v56, 5  ;;  %v13217_v8 = vld [vmem:[%s16704_s2 + $0x1a0] sm:$0xff] }
 0x3be   : > { %v13190_v56 = vld [vmem:[%s16704_s2 + $0x148] sm:$0xff]  ;;  %10071 = vmatpush.bf16.msra.mxu3 %v13217_v8 }
 0x3bf   : > { %v15765_v30 = vpop.f32.mrf.mxu1  ;;  %7594 = vmatmul.bf16.gmra.mxu2 %v7454_v47  ;;  %v7896_v47 = vsel %vm13993_vm10, %v12494_v40, %v7895_v3  ;;  %v7367_v20 = vsel %vm13392_vm14, %v7362_v34, %v7366_v9  ;;  %v8773_v3 = vsel %vm13392_vm14, %v8768_v51, %v8772_v36  ;;  %v15805_v0 = vpop.f32.mrf.mxu0  ;;  %v15818_v9 = vld [vmem:[#allocation3 + $0xac] sm:$0xf]  ;;  %v7369_v36 = vshrl.u32 %v7005_v25, 16 }
 0x3c0   : > { %v8072_v2 = vpop.f32.mrf.mxu3  ;;  %9694 = vmatpush.bf16.msra.mxu2 %v13191_v19  ;;  %16820 = vst [vmem:[#allocation26_spill] sm:$0xff] %v15805_v0  ;;  %v7957_v53 = vunpack.c.l.b16 %v7896_v47  ;;  %v7372_v19 = vshll.u32 %v7005_v25, 16  ;;  %v7378_v34 = vshll.u32 %v7006_v17, 16  ;;  %v7382_v47 = vshrl.u32 %v7006_v17, 16 }
 0x3c1   : > { %v15769_v31 = vadd.f32 %v8072_v2, %v7650_v54  ;;  %v10253_v54 = vld [vmem:[#allocation3 + $0x18] sm:$0xf]  ;;  %v8777_v2 = vrot.slane %v8775_v46, 4  ;;  %v10254_v46 = vld [vmem:[#allocation3 + $0x1c] sm:$0xf]  ;;  %v9064_v26 = vunpack.c.l.b16 %v8773_v3  ;;  %v7902_v25 = vrot.slane %v15818_v9, 5 }
 0x3c2   : > { %9190 = vmatmul.bf16.gmra.mxu1 %v9090_v33  ;;  %v15783_v58 = vpop.f32.mrf.mxu2  ;;  %8499 = vmatmul.bf16.gmra.mxu0 %v13171_v28  ;;  %v8780_v33 = vrot.slane %v8778_v23, 5  ;;  %v8788_v28 = vshrl.u32 %v15767_v62, 16  ;;  %v10302_v12 = vshrl.u32 %v10253_v54, 16  ;;  %v7357_v62 = vsel %vm13392_vm14, %v7352_v21, %v15754_v37  ;;  %v8623_v23 = vld [vmem:[#allocation3 + $0x50] sm:$0x1] }
 0x3c3   : > { %16819 = vst [vmem:[#allocation6_spill] sm:$0xff] %v15769_v31  ;;  %v10305_v40 = vshll.u32 %v10253_v54, 16  ;;  %v7976_v51 = vpack.c.b16 %v7958_v35, %v7957_v53  ;;  %v8794_v54 = vshll.u32 %v8623_v23, 16  ;;  %v10311_v5 = vshll.u32 %v10254_v46, 16  ;;  %v10255_v23 = vld [vmem:[#allocation3 + $0x20] sm:$0x1] }
 0x3c4   : > { %v8790_v37 = vrot.slane %v8788_v28, 4  ;;  %v10304_v0 = vrot.slane %v10302_v12, 4  ;;  %9695 = vmatpush.bf16.msra.mxu2 %v13190_v56  ;;  %v7437_v31 = vunpack.c.l.b16 %v7357_v62  ;;  %v7371_v35 = vrot.slane %v7369_v36, 4  ;;  %v13216_v28 = vld [vmem:[%s16704_s2 + $0x198] sm:$0xff] }
 0x3c5   : > { %v10307_v17 = vrot.slane %v10305_v40, 5  ;;  %v7652_v3 = vadd.f32 %v15783_v58, %v15432_v55  ;;  %v7905_v56 = vrot.slane %v7750_v45, 5  ;;  %v7388_v9 = vshll.u32 %v7007_v11, 16  ;;  %10072 = vmatpush.bf16.msra.mxu3 %v13216_v28 }
 0x3c6   : > { %v8791_v62 = vor.u32 %v8790_v37, %v15803_v15  ;;  %v15836_v36 = vrot.slane %v10311_v5, 5  ;;  %v9091_v55 = vpack.c.b16 %v9064_v26, %v15787_v32  ;;  %v8796_v58 = vrot.slane %v8794_v54, 5  ;;  %v13233_v26 = vld [vmem:[%s16704_s2 + $0x220] sm:$0xff] }
 0x3c7   : > { %v15797_v29 = vpop.f32.mrf.mxu1  ;;  %v7904_v45 = vrot.slane %v7902_v25, 4  ;;  %11339 = vmatpush.bf16.msra.mxu1 %v13233_v26 }
 0x3c8   : > { %v8074_v24 = vpop.f32.mrf.mxu3  ;;  %v8792_v37 = vrot.slane %v8791_v62, 4 }
 0x3c9   : > { %v15807_v16 = vadd.f32 %v8074_v24, %v7651_v42  ;;  %v7438_v42 = vunpack.c.l.b16 %v7367_v20  ;;  %v8781_v24 = vor.u32 %v8780_v33, %v8777_v2  ;;  %v7374_v20 = vrot.slane %v7372_v19, 5 }
 0x3ca   : > { %v15820_v21 = vpop.f32.mrf.mxu2  ;;  %v15823_v2 = vrot.slane %v7378_v34, 5  ;;  %v7384_v33 = vrot.slane %v7382_v47, 4  ;;  %v10308_v47 = vor.u32 %v10307_v17, %v10304_v0  ;;  %v7906_v54 = vsel %vm13993_vm10, %v7904_v45, %v7905_v56 }
 0x3cb   : > { %16821 = vst [vmem:[#allocation8_spill] sm:$0xff] %v15807_v16  ;;  %v10315_v16 = vshrl.u32 %v10254_v46, 16  ;;  %v13189_v46 = vld [vmem:[%s16704_s2 + $0x140] sm:$0xff]  ;;  %v7455_v12 = vpack.c.b16 %v7438_v42, %v7437_v31  ;;  %v8782_v53 = vrot.slane %v8781_v24, 4  ;;  %v13172_v42 = vld [vmem:[#allocation3 + $0xc0] sm:$0xff]  ;;  %v7375_v11 = vor.u32 %v7374_v20, %v7371_v35  ;;  %v15845_v24 = vpop.f32.mrf.mxu0 }
 0x3cc   : > { %9696 = vmatpush.bf16.msra.mxu2 %v13189_v46  ;;  %v7748_v31 = vld [vmem:[#allocation3 + $0xa8] sm:$0xe]  ;;  %v7385_v5 = vor.u32 %v7384_v33, %v15823_v2  ;;  %16823 = vst [vmem:[#allocation7_spill] sm:$0xff] %v15845_v24  ;;  %v7390_v17 = vrot.slane %v7388_v9, 5  ;;  %v8797_v33 = vsel %vm13392_vm14, %v8792_v37, %v8796_v58  ;;  %v10309_v28 = vrot.slane %v10308_v47, 4  ;;  %v13214_v46 = vld [vmem:[%s16704_s2 + $0x188] sm:$0xff] }
 0x3cd   : > { %8116 = vmatmul.bf16.gmra.mxu3 %v7976_v51  ;;  %v10317_v19 = vrot.slane %v10315_v16, 4  ;;  %v13215_v51 = vld [vmem:[%s16704_s2 + $0x190] sm:$0xff]  ;;  %v10321_v16 = vshll.u32 %v10255_v23, 16  ;;  %v12495_v0 = vrot.slane %v7748_v31, 9  ;;  %v8787_v20 = vsel %vm13392_vm14, %v8782_v53, %v15803_v15  ;;  %v10256_v15 = vld [vmem:[#allocation3 + $0x24] sm:$0xf] }
 0x3ce   : > { %10073 = vmatpush.bf16.msra.mxu3 %v13215_v51  ;;  %v7386_v62 = vrot.slane %v7385_v5, 4  ;;  %v7960_v56 = vunpack.c.l.b16 %v7906_v54  ;;  %v8624_v58 = vld [vmem:[#allocation3 + $0x54] sm:$0xf]  ;;  %v9065_v51 = vunpack.c.l.b16 %v8787_v20  ;;  %v10257_v5 = vld [vmem:[#allocation3 + $0x28] sm:$0xf]  ;;  %v10329_v37 = vshll.u32 %v10256_v15, 16 }
 0x3cf   : > { %v15834_v8 = vpop.f32.mrf.mxu1  ;;  %7599 = vmatmul.bf16.gmra.mxu2 %v7455_v12  ;;  %v10318_v35 = vor.u32 %v10317_v19, %v15836_v36  ;;  %v7376_v12 = vrot.slane %v7375_v11, 4  ;;  %v10323_v23 = vrot.slane %v10321_v16, 5  ;;  %v10326_v16 = vshrl.u32 %v10256_v15, 16  ;;  %v7752_v54 = vld [vmem:[#allocation3 + $0xb8] sm:$0xf] }
 0x3d0   : > { %v8077_v40 = vpop.f32.mrf.mxu3  ;;  %v7391_v19 = vsel %vm13392_vm14, %v7386_v62, %v7390_v17  ;;  %v8799_v17 = vshrl.u32 %v8624_v58, 16  ;;  %v9353_v62 = vld [vmem:[#allocation3 + $0x10] sm:$0xf] }
 0x3d1   : > { %v15838_v34 = vadd.f32 %v8077_v40, %v7652_v3  ;;  %v7903_v3 = vsel %vm13993_vm10, %v12495_v0, %v7902_v25  ;;  %v7653_v40 = vadd.f32 %v15820_v21, %v15454_v50  ;;  %v10319_v31 = vrot.slane %v10318_v35, 4  ;;  %v8625_v21 = vld [vmem:[#allocation3 + $0x58] sm:$0xf] }
 0x3d2   : > { %9195 = vmatmul.bf16.gmra.mxu1 %v9091_v55  ;;  %v7560_v32 = vpop.f32.mrf.mxu2  ;;  %8504 = vmatmul.bf16.gmra.mxu0 %v13172_v42  ;;  %v9066_v55 = vunpack.c.l.b16 %v8797_v33  ;;  %v7959_v25 = vunpack.c.l.b16 %v7903_v3  ;;  %v10314_v50 = vsel %vm13392_vm14, %v10309_v28, %v15836_v36  ;;  %v13213_v42 = vld [vmem:[%s16704_s2 + $0x180] sm:$0xff]  ;;  %v7381_v45 = vsel %vm13392_vm14, %v7376_v12, %v15823_v2  ;;  %v7753_v12 = vld [vmem:[#allocation3 + $0xbc] sm:$0x1] }
 0x3d3   : > { %16822 = vst [vmem:[#allocation9_spill] sm:$0xff] %v15838_v34  ;;  %10074 = vmatpush.bf16.msra.mxu3 %v13214_v46  ;;  %v10324_v11 = vsel %vm13392_vm14, %v10319_v31, %v10323_v23  ;;  %v7440_v0 = vunpack.c.l.b16 %v7391_v19  ;;  %v8802_v36 = vshll.u32 %v8624_v58, 16  ;;  %v8808_v33 = vshll.u32 %v8625_v21, 16  ;;  %v15882_v46 = vpop.f32.mrf.mxu0 }
 0x3d4   : > { %v7977_v26 = vpack.c.b16 %v7960_v56, %v7959_v25  ;;  %v9092_v20 = vpack.c.b16 %v9066_v55, %v9065_v51  ;;  %v8812_v28 = vshrl.u32 %v8625_v21, 16  ;;  %16825 = vst [vmem:[#allocation12_spill] sm:$0xff] %v15882_v46  ;;  %v7439_v2 = vunpack.c.l.b16 %v7381_v45  ;;  %v9352_v25 = vld [vmem:[#allocation3 + $0xc] sm:$0xe]  ;;  %v8626_v51 = vld [vmem:[#allocation3 + $0x5c] sm:$0x1] }
 0x3d5   : > { %v10702_v3 = vunpack.c.l.b16 %v10314_v50  ;;  %v10335_v23 = vshll.u32 %v10257_v5, 16  ;;  %v10703_v15 = vunpack.c.l.b16 %v10324_v11  ;;  %v7909_v56 = vrot.slane %v7752_v54, 5  ;;  %v10258_v11 = vld [vmem:[#allocation3 + $0x2c] sm:$0x1] }
 0x3d6   : > { %v10328_v19 = vrot.slane %v10326_v16, 4  ;;  %v10331_v31 = vrot.slane %v10329_v37, 5  ;;  %v7654_v58 = vadd.f32 %v7560_v32, %v15488_v1  ;;  %v7456_v55 = vpack.c.b16 %v7440_v0, %v7439_v2  ;;  %v7751_v16 = vld [vmem:[#allocation3 + $0xb4] sm:$0xe] }
 0x3d7   : > { %v15865_v9 = vpop.f32.mrf.mxu1  ;;  %10075 = vmatpush.bf16.msra.mxu3 %v13213_v42  ;;  %v8801_v21 = vrot.slane %v8799_v17, 4  ;;  %v8804_v42 = vrot.slane %v8802_v36, 5  ;;  %v7912_v50 = vrot.slane %v7753_v12, 5  ;;  %v9450_v45 = vrot.slane %v9353_v62, 5 }
 0x3d8   : > { %v8079_v53 = vpop.f32.mrf.mxu3  ;;  %v15887_v24 = vrot.slane %v8808_v33, 5  ;;  %v10337_v1 = vrot.slane %v10335_v23, 5  ;;  %v10734_v0 = vpack.c.b16 %v10703_v15, %v10702_v3  ;;  %v7911_v2 = vrot.slane %v7909_v56, 4 }
 0x3d9   : > { %v15869_v47 = vadd.f32 %v8079_v53, %v7653_v40  ;;  %v10339_v40 = vshrl.u32 %v10257_v5, 16  ;;  %v9354_v53 = vld [vmem:[#allocation3 + $0x14] sm:$0x1]  ;;  %v8814_v5 = vrot.slane %v8812_v28, 4  ;;  %v8818_v17 = vshll.u32 %v8626_v51, 16 }
 0x3da   : > { %v7562_v35 = vpop.f32.mrf.mxu2  ;;  %v9453_v37 = vrot.slane %v9354_v53, 5  ;;  %v10332_v36 = vor.u32 %v10331_v31, %v10328_v19  ;;  %v8805_v34 = vor.u32 %v8804_v42, %v8801_v21  ;;  %v10345_v12 = vshll.u32 %v10258_v11, 16  ;;  %v10260_v21 = vld [vmem:[#allocation3 + $0x34] sm:$0xf] }
 0x3db   : > { %16824 = vst [vmem:[#allocation11_spill] sm:$0xff] %v15869_v47  ;;  %v10341_v32 = vrot.slane %v10339_v40, 4  ;;  %v12705_v47 = vrot.slane %v9352_v25, 9  ;;  %v12496_v33 = vrot.slane %v7751_v16, 9  ;;  %v7913_v28 = vsel %vm13993_vm10, %v7911_v2, %v7912_v50  ;;  %v15900_v19 = vpop.f32.mrf.mxu0 }
 0x3dc   : > { %v8820_v15 = vrot.slane %v8818_v17, 5  ;;  %v10333_v53 = vrot.slane %v10332_v36, 4  ;;  %16826 = vst [vmem:[#allocation10_spill] sm:$0xff] %v15900_v19  ;;  %v7655_v31 = vadd.f32 %v7562_v35, %v15535_v38  ;;  %v8806_v25 = vrot.slane %v8805_v34, 4 }
 0x3dd   : > { %8121 = vmatmul.bf16.gmra.mxu3 %v7977_v26  ;;  %v9451_v23 = vsel %vm13993_vm10, %v12705_v47, %v9450_v45  ;;  %v10342_v3 = vor.u32 %v10341_v32, %v10337_v1  ;;  %v7910_v40 = vsel %vm13993_vm10, %v12496_v33, %v7909_v56  ;;  %v10347_v51 = vrot.slane %v10345_v12, 5  ;;  %v8628_v32 = vld [vmem:[#allocation3 + $0x64] sm:$0xf]  ;;  %v15916_v12 = vld [vmem:[#allocation3 + $0x1c] sm:$0xf] }
 0x3de   : > { %v7961_v56 = vunpack.c.l.b16 %v7910_v40  ;;  %v9577_v11 = vunpack.c.l.b16 %v9451_v23  ;;  %v10338_v34 = vsel %vm13392_vm14, %v10333_v53, %v10337_v1  ;;  %v10359_v35 = vshll.u32 %v10260_v21, 16 }
 0x3df   : > { %v15885_v26 = vpop.f32.mrf.mxu1  ;;  %7604 = vmatmul.bf16.gmra.mxu2 %v7456_v55  ;;  %v7962_v55 = vunpack.c.l.b16 %v7913_v28  ;;  %v10343_v16 = vrot.slane %v10342_v3, 4  ;;  %v8811_v17 = vsel %vm13392_vm14, %v8806_v25, %v15887_v24  ;;  %v8832_v23 = vshll.u32 %v8628_v32, 16 }
 0x3e0   : > { %v8082_v46 = vpop.f32.mrf.mxu3  ;;  %v8836_v3 = vshrl.u32 %v8628_v32, 16  ;;  %v10704_v53 = vunpack.c.l.b16 %v10338_v34  ;;  %v9067_v25 = vunpack.c.l.b16 %v8811_v17 }
 0x3e1   : > { %v15889_v54 = vadd.f32 %v8082_v46, %v7654_v58  ;;  %v9452_v46 = vrot.slane %v9450_v45, 4  ;;  %v8815_v58 = vor.u32 %v8814_v5, %v15887_v24  ;;  %v10259_v45 = vld [vmem:[#allocation3 + $0x30] sm:$0xf]  ;;  %v7978_v2 = vpack.c.b16 %v7962_v55, %v7961_v56 }
 0x3e2   : > { %9200 = vmatmul.bf16.gmra.mxu1 %v9092_v20  ;;  %v7565_v62 = vpop.f32.mrf.mxu2  ;;  %10822 = vmatmul.bf16.vlgmr.msra.gmra.mxu0 %v10734_v0  ;;  %v10348_v36 = vsel %vm13392_vm14, %v10343_v16, %v10347_v51  ;;  %v10350_v33 = vshrl.u32 %v10259_v45, 16  ;;  %v10353_v1 = vshll.u32 %v10259_v45, 16  ;;  %v9457_v24 = vrot.slane %v15916_v12, 5  ;;  %v9357_v51 = vld [vmem:[#allocation3 + $0x20] sm:$0x1] }
 0x3e3   : > { %v9454_v20 = vsel %vm13993_vm10, %v9452_v46, %v9453_v37  ;;  %v8816_v47 = vrot.slane %v8815_v58, 4  ;;  %v8627_v37 = vld [vmem:[#allocation3 + $0x60] sm:$0xf]  ;;  %v7656_v55 = vadd.f32 %v7565_v62, %v15560_v59  ;;  %v15920_v56 = vrot.slane %v10359_v35, 5 }
 0x3e4   : > { %v9578_v0 = vunpack.c.l.b16 %v9454_v20  ;;  %v8823_v46 = vshrl.u32 %v8627_v37, 16  ;;  %v8826_v58 = vshll.u32 %v8627_v37, 16  ;;  %v10363_v20 = vshrl.u32 %v10260_v21, 16 }
 0x3e5   : > { %v8821_v38 = vsel %vm13392_vm14, %v8816_v47, %v8820_v15  ;;  %v10352_v47 = vrot.slane %v10350_v33, 4  ;;  %v15924_v45 = vrot.slane %v8832_v23, 5  ;;  %v8838_v21 = vrot.slane %v8836_v3, 4  ;;  %v13232_v33 = vld [vmem:[%s16704_s2 + $0x218] sm:$0xff] }
 0x3e6   : > { %v9068_v40 = vunpack.c.l.b16 %v8821_v38  ;;  %v9609_v15 = vpack.c.b16 %v9578_v0, %v9577_v11  ;;  %v8825_v32 = vrot.slane %v8823_v46, 4  ;;  %v8828_v38 = vrot.slane %v8826_v58, 5  ;;  %v10261_v11 = vld [vmem:[#allocation3 + $0x38] sm:$0x1]  ;;  %v15926_v0 = vpop.f32.mrf.mxu0  ;;  %v9355_v58 = vld [vmem:[#allocation3 + $0x18] sm:$0xe]  ;;  %11340 = vmatpush.bf16.msra.mxu1 %v13232_v33 }
 0x3e7   : > { %v15903_v50 = vpop.f32.mrf.mxu1  ;;  %16827 = vst [vmem:[#allocation14_spill] sm:$0xff] %v15926_v0  ;;  %v10355_v62 = vrot.slane %v10353_v1, 5  ;;  %v10369_v12 = vshll.u32 %v10261_v11, 16  ;;  %v8839_v3 = vor.u32 %v8838_v21, %v15924_v45  ;;  %v8630_v21 = vld [vmem:[#allocation3 + $0x6c] sm:$0xf]  ;;  %v13197_v33 = vld [vmem:[#allocation3 + $0x18] sm:$0xff] }
 0x3e8   : > { %v8084_v42 = vpop.f32.mrf.mxu3  ;;  %v9093_v59 = vpack.c.b16 %v9068_v40, %v9067_v25  ;;  %v8829_v23 = vor.u32 %v8828_v38, %v8825_v32  ;;  %v9360_v0 = vld [vmem:[#allocation3 + $0x2c] sm:$0x1] }
 0x3e9   : > { %v15905_v5 = vadd.f32 %v8084_v42, %v7655_v31  ;;  %v10705_v31 = vunpack.c.l.b16 %v10348_v36  ;;  %v8629_v42 = vld [vmem:[#allocation3 + $0x68] sm:$0x1]  ;;  %v9460_v36 = vrot.slane %v9357_v51, 5  ;;  %v10371_v25 = vrot.slane %v10369_v12, 5  ;;  %v10262_v51 = vld [vmem:[#allocation3 + $0x3c] sm:$0xf] }
 0x3ea   : > { %v7567_v28 = vpop.f32.mrf.mxu2  ;;  %v8842_v35 = vshll.u32 %v8629_v42, 16  ;;  %v8830_v32 = vrot.slane %v8829_v23, 4  ;;  %v8840_v38 = vrot.slane %v8839_v3, 4  ;;  %v8847_v23 = vshrl.u32 %v8630_v21, 16 }
 0x3eb   : > { %v10735_v17 = vpack.c.b16 %v10705_v31, %v10704_v53  ;;  %v12706_v53 = vrot.slane %v9355_v58, 9  ;;  %v8850_v3 = vshll.u32 %v8630_v21, 16 }
 0x3ec   : > { %v8844_v1 = vrot.slane %v8842_v35, 5  ;;  %v10374_v35 = vshrl.u32 %v10262_v51, 16 }
 0x3ed   : > { %8126 = vmatmul.bf16.gmra.mxu3 %v7978_v2  ;;  %v10365_v2 = vrot.slane %v10363_v20, 4  ;;  %v7657_v20 = vadd.f32 %v7567_v28, %v15592_v6  ;;  %v8631_v6 = vld [vmem:[#allocation3 + $0x70] sm:$0xf] }
 0x3ee   : > { %v15946_v12 = vpop.f32.mrf.mxu0  ;;  %v10376_v21 = vrot.slane %v10374_v35, 4 }
 0x3ef   : > { %v15922_v37 = vpop.f32.mrf.mxu1  ;;  %9697 = vmatmul.bf16.vlgmr.msra.gmra.mxu2 %v9609_v15  ;;  %v10356_v15 = vor.u32 %v10355_v62, %v10352_v47  ;;  %v10366_v40 = vor.u32 %v10365_v2, %v15920_v56  ;;  %v9458_v47 = vsel %vm13993_vm10, %v12706_v53, %v9457_v24  ;;  %v8845_v2 = vsel %vm13392_vm14, %v8840_v38, %v8844_v1 }
 0x3f0   : > { %v8087_v16 = vpop.f32.mrf.mxu3  ;;  %16830 = vst [vmem:[#allocation17_spill] sm:$0xff] %v15946_v12  ;;  %v9070_v1 = vunpack.c.l.b16 %v8845_v2 }
 0x3f1   : > { %v15928_v34 = vadd.f32 %v8087_v16, %v7656_v55  ;;  %v9459_v55 = vrot.slane %v9457_v24, 4  ;;  %v10367_v62 = vrot.slane %v10366_v40, 4  ;;  %v9579_v24 = vunpack.c.l.b16 %v9458_v47 }
 0x3f2   : > { %9205 = vmatmul.bf16.gmra.mxu1 %v9093_v59  ;;  %v7570_v46 = vpop.f32.mrf.mxu2  ;;  %10827 = vmatmul.bf16.gmra.mxu0 %v10735_v17  ;;  %v10357_v59 = vrot.slane %v10356_v15, 4  ;;  %v10263_v17 = vld [vmem:[#allocation3 + $0x40] sm:$0xf]  ;;  %v8835_v15 = vsel %vm13392_vm14, %v8830_v32, %v15924_v45  ;;  %v8856_v40 = vshll.u32 %v8631_v6, 16  ;;  %v8632_v45 = vld [vmem:[#allocation3 + $0x74] sm:$0x1] }
 0x3f3   : > { %16828 = vst [vmem:[#allocation13_spill] sm:$0xff] %v15928_v34  ;;  %v9461_v31 = vsel %vm13993_vm10, %v9459_v55, %v9460_v36  ;;  %v10377_v36 = vshll.u32 %v10262_v51, 16  ;;  %v10372_v58 = vsel %vm13392_vm14, %v10367_v62, %v10371_v25  ;;  %v10383_v51 = vshll.u32 %v10263_v17, 16 }
 0x3f4   : > { %v9580_v28 = vunpack.c.l.b16 %v9461_v31  ;;  %v10362_v53 = vsel %vm13392_vm14, %v10357_v59, %v15920_v56  ;;  %v9359_v31 = vld [vmem:[#allocation3 + $0x28] sm:$0xf]  ;;  %v10707_v38 = vunpack.c.l.b16 %v10372_v58  ;;  %v7658_v47 = vadd.f32 %v7570_v46, %v15620_v7 }
 0x3f5   : > { %v10379_v62 = vrot.slane %v10377_v36, 5  ;;  %v9069_v12 = vunpack.c.l.b16 %v8835_v15  ;;  %v8849_v32 = vrot.slane %v8847_v23, 4  ;;  %v10706_v19 = vunpack.c.l.b16 %v10362_v53  ;;  %v9358_v36 = vld [vmem:[#allocation3 + $0x24] sm:$0xe]  ;;  %v15963_v53 = vld [vmem:[#allocation3 + $0x34] sm:$0xf] }
 0x3f6   : > { %v9610_v25 = vpack.c.b16 %v9580_v28, %v9579_v24  ;;  %v15959_v56 = vrot.slane %v8856_v40, 5  ;;  %v10385_v7 = vrot.slane %v10383_v51, 5  ;;  %v9467_v24 = vrot.slane %v9360_v0, 5 }
 0x3f7   : > { %v15938_v16 = vpop.f32.mrf.mxu1  ;;  %v9094_v35 = vpack.c.b16 %v9070_v1, %v9069_v12  ;;  %v10736_v58 = vpack.c.b16 %v10707_v38, %v10706_v19  ;;  %v8866_v23 = vshll.u32 %v8632_v45, 16  ;;  %v10380_v15 = vor.u32 %v10379_v62, %v10376_v21  ;;  %v10266_v45 = vld [vmem:[#allocation3 + $0x4c] sm:$0xf] }
 0x3f8   : > { %v8089_v42 = vpop.f32.mrf.mxu3  ;;  %v16706_v51 = vrot.slane %v15963_v53, 5 }
 0x3f9   : > { %v15940_v11 = vadd.f32 %v8089_v42, %v7657_v20  ;;  %v8860_v20 = vshrl.u32 %v8631_v6, 16  ;;  %v10387_v42 = vshrl.u32 %v10263_v17, 16  ;;  %v8852_v6 = vrot.slane %v8850_v3, 5  ;;  %v10264_v17 = vld [vmem:[#allocation3 + $0x44] sm:$0x1] }
 0x3fa   : > { %v7572_v55 = vpop.f32.mrf.mxu2  ;;  %v10393_v34 = vshll.u32 %v10264_v17, 16  ;;  %v8868_v1 = vrot.slane %v8866_v23, 5  ;;  %v10381_v21 = vrot.slane %v10380_v15, 4  ;;  %v10411_v23 = vshrl.u32 %v10266_v45, 16 }
 0x3fb   : > { %16829 = vst [vmem:[#allocation16_spill] sm:$0xff] %v15940_v11  ;;  %v9464_v11 = vrot.slane %v9359_v31, 5  ;;  %v8862_v59 = vrot.slane %v8860_v20, 4  ;;  %v10389_v46 = vrot.slane %v10387_v42, 4  ;;  %v8853_v3 = vor.u32 %v8852_v6, %v8849_v32 }
 0x3fc   : > { %v12707_v20 = vrot.slane %v9358_v36, 9  ;;  %v7659_v42 = vadd.f32 %v7572_v55, %v15641_v22  ;;  %v10395_v62 = vrot.slane %v10393_v34, 5  ;;  %v9363_v22 = vld [vmem:[#allocation3 + $0x38] sm:$0x1]  ;;  %v9473_v34 = vrot.slane %v16706_v51, 4 }
 0x3fd   : > { %10076 = vmatmul.bf16.vlgmr.msra.gmra.mxu3 %v13197_v33  ;;  %v9466_v31 = vrot.slane %v9464_v11, 4  ;;  %v10390_v12 = vor.u32 %v10389_v46, %v10385_v7  ;;  %v8854_v38 = vrot.slane %v8853_v3, 4  ;;  %v8633_v46 = vld [vmem:[#allocation3 + $0x78] sm:$0xf]  ;;  %v10407_v55 = vshll.u32 %v10266_v45, 16  ;;  %v13198_v3 = vld [vmem:[#allocation3 + $0x24] sm:$0xff] }
 0x3fe   : > { %v9465_v19 = vsel %vm13993_vm10, %v12707_v20, %v9464_v11  ;;  %v10386_v20 = vsel %vm13392_vm14, %v10381_v21, %v10385_v7 }
 0x3ff   : > { %v15957_v2 = vpop.f32.mrf.mxu1  ;;  %9702 = vmatmul.bf16.gmra.mxu2 %v9610_v25  ;;  %v15966_v25 = vpop.f32.mrf.mxu0  ;;  %v9468_v0 = vsel %vm13993_vm10, %v9466_v31, %v9467_v24  ;;  %v9581_v11 = vunpack.c.l.b16 %v9465_v19  ;;  %v10391_v36 = vrot.slane %v10390_v12, 4  ;;  %v8859_v15 = vsel %vm13392_vm14, %v8854_v38, %v15959_v56 }
 0x400   : > { %v8092_v33 = vpop.f32.mrf.mxu3  ;;  %16831 = vst [vmem:[#allocation15_spill] sm:$0xff] %v15966_v25  ;;  %v8871_v19 = vshrl.u32 %v8633_v46, 16  ;;  %v10708_v25 = vunpack.c.l.b16 %v10386_v20  ;;  %v10413_v38 = vrot.slane %v10411_v23, 4  ;;  %v10267_v20 = vld [vmem:[#allocation3 + $0x50] sm:$0x1] }
 0x401   : > { %v15961_v28 = vadd.f32 %v8092_v33, %v7658_v47  ;;  %v8863_v47 = vor.u32 %v8862_v59, %v15959_v56  ;;  %v10265_v59 = vld [vmem:[#allocation3 + $0x48] sm:$0xf]  ;;  %v10396_v31 = vsel %vm13392_vm14, %v10391_v36, %v10395_v62  ;;  %v15989_v56 = vrot.slane %v10407_v55, 5 }
 0x402   : > { %9210 = vmatmul.bf16.gmra.mxu1 %v9094_v35  ;;  %v7575_v40 = vpop.f32.mrf.mxu2  ;;  %10832 = vmatmul.bf16.gmra.mxu0 %v10736_v58  ;;  %v9582_v35 = vunpack.c.l.b16 %v9468_v0  ;;  %v8634_v58 = vld [vmem:[#allocation3 + $0x7c] sm:$0xf]  ;;  %v8874_v0 = vshll.u32 %v8633_v46, 16  ;;  %v10401_v51 = vshll.u32 %v10265_v59, 16  ;;  %v8542_v62 = vadd.f32 %v15434_v44, %v15562_v49  ;;  %v9361_v46 = vld [vmem:[#allocation3 + $0x30] sm:$0xe] }
 0x403   : > { %v8864_v33 = vrot.slane %v8863_v47, 4  ;;  %v10398_v47 = vshrl.u32 %v10265_v59, 16  ;;  %v7660_v21 = vadd.f32 %v7575_v40, %v15662_v27  ;;  %v9071_v36 = vunpack.c.l.b16 %v8859_v15 }
 0x404   : > { %v8876_v59 = vrot.slane %v8874_v0, 5  ;;  %v10403_v40 = vrot.slane %v10401_v51, 5  ;;  %v12708_v15 = vrot.slane %v9361_v46, 9  ;;  %v13231_v0 = vld [vmem:[%s16704_s2 + $0x210] sm:$0xff] }
 0x405   : > { %v8869_v24 = vsel %vm13392_vm14, %v8864_v33, %v8868_v1  ;;  %v8880_v1 = vshll.u32 %v8634_v58, 16  ;;  %v9474_v33 = vrot.slane %v9363_v22, 5  ;;  %11341 = vmatpush.bf16.msra.mxu1 %v13231_v0 }
 0x406   : > { %v9072_v45 = vunpack.c.l.b16 %v8869_v24  ;;  %v8873_v24 = vrot.slane %v8871_v19, 4  ;;  %v10417_v19 = vshll.u32 %v10267_v20, 16 }
 0x407   : > { %v15974_v6 = vpop.f32.mrf.mxu1  ;;  %v15991_v7 = vpop.f32.mrf.mxu0  ;;  %v15996_v22 = vrot.slane %v8880_v1, 5 }
 0x408   : > { %v8094_v32 = vpop.f32.mrf.mxu3  ;;  %16833 = vst [vmem:[#allocation18_spill] sm:$0xff] %v15991_v7  ;;  %v9095_v27 = vpack.c.b16 %v9072_v45, %v9071_v36  ;;  %v8543_v36 = vadd.f32 %v15460_v14, %v15600_v4  ;;  %v10419_v46 = vrot.slane %v10417_v19, 5  ;;  %v10269_v14 = vld [vmem:[#allocation3 + $0x58] sm:$0xf]  ;;  %v13199_v19 = vld [vmem:[#allocation3 + $0x30] sm:$0xff] }
 0x409   : > { %v15976_v17 = vadd.f32 %v8094_v32, %v7659_v42  ;;  %v8884_v42 = vshrl.u32 %v8634_v58, 16  ;;  %v9611_v32 = vpack.c.b16 %v9582_v35, %v9581_v11  ;;  %v8635_v58 = vld [vmem:[#allocation3 + $0x80] sm:$0x1] }
 0x40a   : > { %v7577_v12 = vpop.f32.mrf.mxu2  ;;  %v8890_v49 = vshll.u32 %v8635_v58, 16 }
 0x40b   : > { %16832 = vst [vmem:[#allocation19_spill] sm:$0xff] %v15976_v17  ;;  %v10709_v17 = vunpack.c.l.b16 %v10396_v31  ;;  %v8886_v55 = vrot.slane %v8884_v42, 4  ;;  %v8877_v42 = vor.u32 %v8876_v59, %v8873_v24 }
 0x40d   : > { %10081 = vmatmul.bf16.gmra.mxu3 %v13198_v3  ;;  %v10400_v3 = vrot.slane %v10398_v47, 4  ;;  %v10737_v44 = vpack.c.b16 %v10709_v17, %v10708_v25  ;;  %v9475_v47 = vsel %vm13993_vm10, %v9473_v34, %v9474_v33  ;;  %v16834_v25 = vrot.slane %v15963_v53, 5 }
 0x40e   : > { %v10414_v34 = vor.u32 %v10413_v38, %v15989_v56  ;;  %v9584_v45 = vunpack.c.l.b16 %v9475_v47  ;;  %v8892_v33 = vrot.slane %v8890_v49, 5  ;;  %v8878_v59 = vrot.slane %v8877_v42, 4  ;;  %v9366_v49 = vld [vmem:[#allocation3 + $0x44] sm:$0x1] }
 0x40f   : > { %v9176_v35 = vpop.f32.mrf.mxu1  ;;  %9707 = vmatmul.bf16.gmra.mxu2 %v9611_v32  ;;  %v16008_v32 = vld [vmem:[#allocation3 + $0x40] sm:$0xf]  ;;  %v9472_v51 = vsel %vm13993_vm10, %v12708_v15, %v16834_v25  ;;  %v10404_v17 = vor.u32 %v10403_v40, %v10400_v3  ;;  %v8636_v3 = vld [vmem:[#allocation3 + $0x84] sm:$0xf]  ;;  %v16019_v20 = vpop.f32.mrf.mxu0  ;;  %v8637_v40 = vld [vmem:[#allocation3 + $0x88] sm:$0xf] }
 0x410   : > { %v8097_v11 = vpop.f32.mrf.mxu3  ;;  %v16000_v31 = vadd.f32 %v9176_v35, %v8542_v62  ;;  %v7661_v62 = vadd.f32 %v7577_v12, %v15675_v63  ;;  %v16707_v58 = vrot.slane %v16008_v32, 5  ;;  %v9583_v24 = vunpack.c.l.b16 %v9472_v51  ;;  %16835 = vst [vmem:[#allocation20_spill] sm:$0xff] %v16019_v20 }
 0x411   : > { %v15998_v23 = vadd.f32 %v8097_v11, %v7660_v21  ;;  %v8887_v21 = vor.u32 %v8886_v55, %v15996_v22  ;;  %v10268_v11 = vld [vmem:[#allocation3 + $0x54] sm:$0xf]  ;;  %v10405_v63 = vrot.slane %v10404_v17, 4  ;;  %v10415_v12 = vrot.slane %v10414_v34, 4 }
 0x412   : > { %9215 = vmatmul.bf16.gmra.mxu1 %v9095_v27  ;;  %v7580_v1 = vpop.f32.mrf.mxu2  ;;  %10837 = vmatmul.bf16.gmra.mxu0 %v10737_v44  ;;  %v9612_v4 = vpack.c.b16 %v9584_v45, %v9583_v24  ;;  %v10422_v15 = vshrl.u32 %v10268_v11, 16  ;;  %v10425_v47 = vshll.u32 %v10268_v11, 16  ;;  %v9480_v42 = vrot.slane %v16707_v58, 4 }
 0x413   : > { %v8888_v55 = vrot.slane %v8887_v21, 4  ;;  %v10420_v0 = vsel %vm13392_vm14, %v10415_v12, %v10419_v46  ;;  %v8895_v21 = vshrl.u32 %v8636_v3, 16  ;;  %v8898_v25 = vshll.u32 %v8636_v3, 16  ;;  %v8638_v12 = vld [vmem:[#allocation3 + $0x8c] sm:$0x1] }
 0x414   : > { %v8883_v17 = vsel %vm13392_vm14, %v8878_v59, %v15996_v22  ;;  %v8904_v34 = vshll.u32 %v8637_v40, 16  ;;  %v8908_v45 = vshrl.u32 %v8637_v40, 16  ;;  %v9481_v46 = vrot.slane %v9366_v49, 5  ;;  %v9364_v59 = vld [vmem:[#allocation3 + $0x3c] sm:$0xe] }
 0x415   : > { %v8893_v44 = vsel %vm13392_vm14, %v8888_v55, %v8892_v33  ;;  %v10431_v33 = vshll.u32 %v10269_v14, 16  ;;  %v10435_v11 = vshrl.u32 %v10269_v14, 16  ;;  %v10424_v24 = vrot.slane %v10422_v15, 4 }
 0x416   : > { %v10427_v55 = vrot.slane %v10425_v47, 5  ;;  %v7662_v3 = vadd.f32 %v7580_v1, %v15708_v39  ;;  %v9073_v22 = vunpack.c.l.b16 %v8883_v17  ;;  %v8897_v40 = vrot.slane %v8895_v21, 4 }
 0x417   : > { %v9178_v53 = vpop.f32.mrf.mxu1  ;;  %v16040_v7 = vrot.slane %v8904_v34, 5  ;;  %v10433_v14 = vrot.slane %v10431_v33, 5  ;;  %v10437_v39 = vrot.slane %v10435_v11, 4  ;;  %v8914_v15 = vshll.u32 %v8638_v12, 16 }
 0x418   : > { %v8099_v35 = vpop.f32.mrf.mxu3  ;;  %v16023_v27 = vadd.f32 %v9178_v53, %v8543_v36  ;;  %v10410_v36 = vsel %vm13392_vm14, %v10405_v63, %v15989_v56  ;;  %v10711_v53 = vunpack.c.l.b16 %v10420_v0  ;;  %v8910_v56 = vrot.slane %v8908_v45, 4  ;;  %v10270_v63 = vld [vmem:[#allocation3 + $0x5c] sm:$0x1]  ;;  %v16046_v0 = vpop.f32.mrf.mxu0 }
 0x419   : > { %v16021_v38 = vadd.f32 %v8099_v35, %v7661_v62  ;;  %v9074_v62 = vunpack.c.l.b16 %v8893_v44  ;;  %v8544_v35 = vadd.f32 %v15496_v41, %v15622_v18  ;;  %v10710_v20 = vunpack.c.l.b16 %v10410_v36 }
 0x41a   : > { %v7582_v51 = vpop.f32.mrf.mxu2  ;;  %v10428_v47 = vor.u32 %v10427_v55, %v10424_v24  ;;  %v12709_v21 = vrot.slane %v9364_v59, 9  ;;  %v10441_v34 = vshll.u32 %v10270_v63, 16  ;;  %v10438_v33 = vor.u32 %v10437_v39, %v10433_v14  ;;  %v10271_v24 = vld [vmem:[#allocation3 + $0x60] sm:$0xf]  ;;  %v10272_v55 = vld [vmem:[#allocation3 + $0x64] sm:$0xf] }
 0x41b   : > { %v9096_v18 = vpack.c.b16 %v9074_v62, %v9073_v22  ;;  %v10738_v1 = vpack.c.b16 %v10711_v53, %v10710_v20  ;;  %v8916_v36 = vrot.slane %v8914_v15, 5  ;;  %v13200_v39 = vld [vmem:[#allocation3 + $0x3c] sm:$0xff] }
 0x41c   : > { %v10429_v11 = vrot.slane %v10428_v47, 4  ;;  %v10443_v53 = vrot.slane %v10441_v34, 5 }
 0x41d   : > { %10086 = vmatmul.bf16.gmra.mxu3 %v13199_v19  ;;  %v8900_v19 = vrot.slane %v8898_v25, 5  ;;  %v9482_v25 = vsel %vm13993_vm10, %v9480_v42, %v9481_v46  ;;  %v8545_v42 = vadd.f32 %v15540_v48, %v15647_v13  ;;  %v16064_v48 = vld [vmem:[#allocation3 + $0x4c] sm:$0xf]  ;;  %v9369_v13 = vld [vmem:[#allocation3 + $0x50] sm:$0x1] }
 0x41e   : > { %v9586_v62 = vunpack.c.l.b16 %v9482_v25  ;;  %v10434_v15 = vsel %vm13392_vm14, %v10429_v11, %v10433_v14 }
 0x41f   : > { %v9181_v58 = vpop.f32.mrf.mxu1  ;;  %9712 = vmatmul.bf16.gmra.mxu2 %v9612_v4  ;;  %v8901_v17 = vor.u32 %v8900_v19, %v8897_v40  ;;  %v16836_v4 = vrot.slane %v16008_v32, 5  ;;  %v10439_v19 = vrot.slane %v10438_v33, 4 }
 0x420   : > { %v8102_v44 = vpop.f32.mrf.mxu3  ;;  %v16044_v41 = vadd.f32 %v9181_v58, %v8544_v35  ;;  %v8911_v58 = vor.u32 %v8910_v56, %v16040_v7  ;;  %v7663_v35 = vadd.f32 %v7582_v51, %v15730_v60  ;;  %v8640_v56 = vld [vmem:[#allocation3 + $0x94] sm:$0xf]  ;;  %v10446_v51 = vshrl.u32 %v10271_v24, 16 }
 0x421   : > { %v16042_v49 = vadd.f32 %v8102_v44, %v7662_v3  ;;  %v9479_v20 = vsel %vm13993_vm10, %v12709_v21, %v16836_v4  ;;  %v8902_v46 = vrot.slane %v8901_v17, 4  ;;  %v8639_v44 = vld [vmem:[#allocation3 + $0x90] sm:$0xf]  ;;  %v10444_v47 = vsel %vm13392_vm14, %v10439_v19, %v10443_v53 }
 0x422   : > { %9220 = vmatmul.bf16.gmra.mxu1 %v9096_v18  ;;  %v7585_v45 = vpop.f32.mrf.mxu2  ;;  %10842 = vmatmul.bf16.gmra.mxu0 %v10738_v1  ;;  %v9585_v59 = vunpack.c.l.b16 %v9479_v20  ;;  %v8912_v32 = vrot.slane %v8911_v58, 4  ;;  %v10455_v18 = vshll.u32 %v10272_v55, 16  ;;  %v10449_v21 = vshll.u32 %v10271_v24, 16  ;;  %v16073_v20 = vpop.f32.mrf.mxu0 }
 0x423   : > { %v8907_v1 = vsel %vm13392_vm14, %v8902_v46, %v16040_v7  ;;  %v8919_v17 = vshrl.u32 %v8639_v44, 16  ;;  %v8922_v34 = vshll.u32 %v8639_v44, 16  ;;  %v8928_v58 = vshll.u32 %v8640_v56, 16 }
 0x424   : > { %v9613_v63 = vpack.c.b16 %v9586_v62, %v9585_v59  ;;  %v8917_v60 = vsel %vm13392_vm14, %v8912_v32, %v8916_v36  ;;  %v8932_v4 = vshrl.u32 %v8640_v56, 16  ;;  %v9485_v62 = vrot.slane %v16064_v48, 5 }
 0x425   : > { %v9076_v33 = vunpack.c.l.b16 %v8917_v60  ;;  %v9488_v36 = vrot.slane %v9369_v13, 5  ;;  %v10459_v7 = vshrl.u32 %v10272_v55, 16  ;;  %v10448_v14 = vrot.slane %v10446_v51, 4  ;;  %v10273_v60 = vld [vmem:[#allocation3 + $0x68] sm:$0x1] }
 0x426   : > { %v16076_v11 = vrot.slane %v10455_v18, 5  ;;  %v7664_v46 = vadd.f32 %v7585_v45, %v15765_v30  ;;  %v8546_v53 = vadd.f32 %v15564_v52, %v15664_v61  ;;  %v9075_v24 = vunpack.c.l.b16 %v8907_v1  ;;  %v9367_v52 = vld [vmem:[#allocation3 + $0x48] sm:$0xe]  ;;  %v13230_v1 = vld [vmem:[%s16704_s2 + $0x208] sm:$0xff] }
 0x427   : > { %v9183_v22 = vpop.f32.mrf.mxu1  ;;  %v8921_v19 = vrot.slane %v8919_v17, 4  ;;  %v8924_v44 = vrot.slane %v8922_v34, 5  ;;  %v16081_v56 = vrot.slane %v8928_v58, 5  ;;  %v8934_v55 = vrot.slane %v8932_v4, 4  ;;  %11342 = vmatpush.bf16.msra.mxu1 %v13230_v1 }
 0x428   : > { %v8104_v3 = vpop.f32.mrf.mxu3  ;;  %v16060_v40 = vadd.f32 %v9183_v22, %v8545_v42  ;;  %v10713_v42 = vunpack.c.l.b16 %v10444_v47  ;;  %v10451_v22 = vrot.slane %v10449_v21, 5  ;;  %v9097_v30 = vpack.c.b16 %v9076_v33, %v9075_v24  ;;  %v10274_v24 = vld [vmem:[#allocation3 + $0x6c] sm:$0xf] }
 0x429   : > { %v16058_v12 = vadd.f32 %v8104_v3, %v7663_v35  ;;  %v10712_v35 = vunpack.c.l.b16 %v10434_v15  ;;  %v8641_v3 = vld [vmem:[#allocation3 + $0x98] sm:$0x1]  ;;  %v10461_v45 = vrot.slane %v10459_v7, 4  ;;  %v9487_v18 = vrot.slane %v9485_v62, 4 }
 0x42a   : > { %v7587_v25 = vpop.f32.mrf.mxu2  ;;  %v8938_v61 = vshll.u32 %v8641_v3, 16  ;;  %v8925_v47 = vor.u32 %v8924_v44, %v8921_v19  ;;  %v8935_v21 = vor.u32 %v8934_v55, %v16081_v56  ;;  %v12710_v17 = vrot.slane %v9367_v52, 9  ;;  %v16094_v33 = vpop.f32.mrf.mxu0  ;;  %v8642_v19 = vld [vmem:[#allocation3 + $0x9c] sm:$0xf]  ;;  %v13201_v52 = vld [vmem:[#allocation3 + $0x48] sm:$0xff] }
 0x42b   : > { %v10739_v51 = vpack.c.b16 %v10713_v42, %v10712_v35  ;;  %v10452_v34 = vor.u32 %v10451_v22, %v10448_v14  ;;  %v10462_v58 = vor.u32 %v10461_v45, %v16076_v11  ;;  %v7665_v7 = vadd.f32 %v7587_v25, %v15797_v29  ;;  %v16837_v35 = vld [vmem:[#allocation22_spill] sm:$0xff] }
 0x42c   : > { %v8940_v4 = vrot.slane %v8938_v61, 5  ;;  %v8547_v42 = vadd.f32 %v16837_v35, %v15684_v10  ;;  %v8926_v14 = vrot.slane %v8925_v47, 4  ;;  %v8936_v22 = vrot.slane %v8935_v21, 4  ;;  %v8643_v10 = vld [vmem:[#allocation3 + $0xa0] sm:$0xf] }
 0x42d   : > { %10091 = vmatmul.bf16.gmra.mxu3 %v13200_v39  ;;  %v10465_v39 = vshll.u32 %v10273_v60, 16  ;;  %v10453_v29 = vrot.slane %v10452_v34, 4  ;;  %v10463_v25 = vrot.slane %v10462_v58, 4  ;;  %v10275_v60 = vld [vmem:[#allocation3 + $0x70] sm:$0xf]  ;;  %v10470_v45 = vshrl.u32 %v10274_v24, 16 }
 0x42e   : > { %v8946_v1 = vshll.u32 %v8642_v19, 16  ;;  %v8931_v21 = vsel %vm13392_vm14, %v8926_v14, %v16081_v56  ;;  %v10479_v34 = vshll.u32 %v10275_v60, 16  ;;  %v10483_v35 = vshrl.u32 %v10275_v60, 16  ;;  %v9372_v14 = vld [vmem:[#allocation3 + $0x5c] sm:$0x1] }
 0x42f   : > { %v9186_v32 = vpop.f32.mrf.mxu1  ;;  %9717 = vmatmul.bf16.gmra.mxu2 %v9613_v63  ;;  %v9489_v63 = vsel %vm13993_vm10, %v9487_v18, %v9488_v36  ;;  %v9077_v56 = vunpack.c.l.b16 %v8931_v21 }
 0x430   : > { %v8107_v59 = vpop.f32.mrf.mxu3  ;;  %v16085_v13 = vadd.f32 %v9186_v32, %v8546_v53  ;;  %v10467_v53 = vrot.slane %v10465_v39, 5  ;;  %v9588_v36 = vunpack.c.l.b16 %v9489_v63  ;;  %v16101_v32 = vld [vmem:[#allocation3 + $0x58] sm:$0xf]  ;;  %v8943_v39 = vshrl.u32 %v8642_v19, 16 }
 0x431   : > { %v16083_v48 = vadd.f32 %v8107_v59, %v7664_v46  ;;  %v9486_v46 = vsel %vm13993_vm10, %v12710_v17, %v9485_v62  ;;  %v8941_v62 = vsel %vm13392_vm14, %v8936_v22, %v8940_v4  ;;  %v9492_v18 = vrot.slane %v16101_v32, 5  ;;  %v8644_v32 = vld [vmem:[#allocation3 + $0xa4] sm:$0x1] }
 0x432   : > { %9225 = vmatmul.bf16.gmra.mxu1 %v9097_v30  ;;  %v7590_v15 = vpop.f32.mrf.mxu2  ;;  %10847 = vmatmul.bf16.gmra.mxu0 %v10739_v51  ;;  %v9587_v30 = vunpack.c.l.b16 %v9486_v46  ;;  %v10473_v51 = vshll.u32 %v10274_v24, 16  ;;  %v10468_v61 = vsel %vm13392_vm14, %v10463_v25, %v10467_v53  ;;  %v8952_v17 = vshll.u32 %v8643_v10, 16  ;;  %v16839_v46 = vld [vmem:[#allocation23_spill] sm:$0xff] }
 0x433   : > { %v8956_v63 = vshrl.u32 %v8643_v10, 16  ;;  %v9078_v4 = vunpack.c.l.b16 %v8941_v62  ;;  %v10715_v24 = vunpack.c.l.b16 %v10468_v61  ;;  %v7666_v22 = vadd.f32 %v7590_v15, %v15834_v8  ;;  %v9370_v15 = vld [vmem:[#allocation3 + $0x54] sm:$0xe] }
 0x434   : > { %v9614_v58 = vpack.c.b16 %v9588_v36, %v9587_v30  ;;  %v8945_v19 = vrot.slane %v8943_v39, 4  ;;  %v8948_v25 = vrot.slane %v8946_v1, 5  ;;  %v16121_v62 = vrot.slane %v8952_v17, 5 }
 0x435   : > { %v10481_v60 = vrot.slane %v10479_v34, 5  ;;  %v9098_v8 = vpack.c.b16 %v9078_v4, %v9077_v56  ;;  %v9495_v1 = vrot.slane %v9372_v14, 5  ;;  %v8962_v21 = vshll.u32 %v8644_v32, 16 }
 0x436   : > { %v8949_v17 = vor.u32 %v8948_v25, %v8945_v19  ;;  %v12711_v34 = vrot.slane %v9370_v15, 9  ;;  %v10277_v19 = vld [vmem:[#allocation3 + $0x78] sm:$0xf] }
 0x437   : > { %v9188_v59 = vpop.f32.mrf.mxu1 }
 0x438   : > { %v8109_v3 = vpop.f32.mrf.mxu3  ;;  %v16105_v55 = vadd.f32 %v9188_v59, %v8547_v42  ;;  %v16838_v42 = vld [vmem:[#allocation30_spill] sm:$0xff]  ;;  %v10475_v59 = vrot.slane %v10473_v51, 5  ;;  %v10485_v51 = vrot.slane %v10483_v35, 4  ;;  %v8964_v35 = vrot.slane %v8962_v21, 5 }
 0x439   : > { %v16103_v44 = vadd.f32 %v8109_v3, %v7665_v7  ;;  %v10458_v7 = vsel %vm13392_vm14, %v10453_v29, %v16076_v11  ;;  %v8548_v53 = vadd.f32 %v16839_v46, %v16838_v42  ;;  %v10472_v3 = vrot.slane %v10470_v45, 4  ;;  %v10276_v29 = vld [vmem:[#allocation3 + $0x74] sm:$0x1] }
 0x43a   : > { %v7592_v47 = vpop.f32.mrf.mxu2  ;;  %v10714_v30 = vunpack.c.l.b16 %v10458_v7  ;;  %v8958_v11 = vrot.slane %v8956_v63, 4  ;;  %v10489_v7 = vshll.u32 %v10276_v29, 16  ;;  %v9494_v46 = vrot.slane %v9492_v18, 4 }
 0x43b   : > { %v10476_v42 = vor.u32 %v10475_v59, %v10472_v3  ;;  %v16842_v3 = vld [vmem:[#allocation24_spill] sm:$0xff]  ;;  %v16843_v59 = vld [vmem:[#allocation25_spill] sm:$0xff]  ;;  %v8950_v14 = vrot.slane %v8949_v17, 4  ;;  %v10494_v21 = vshrl.u32 %v10277_v19, 16 }
 0x43c   : > { %v10740_v39 = vpack.c.b16 %v10715_v24, %v10714_v30  ;;  %v9496_v4 = vsel %vm13993_vm10, %v9494_v46, %v9495_v1  ;;  %v7667_v24 = vadd.f32 %v7592_v47, %v15865_v9  ;;  %v8549_v56 = vadd.f32 %v16843_v59, %v16842_v3  ;;  %v9374_v47 = vld [vmem:[#allocation3 + $0x64] sm:$0xf] }
 0x43d   : > { %10096 = vmatmul.bf16.gmra.mxu3 %v13201_v52  ;;  %v16123_v52 = vpop.f32.mrf.mxu0  ;;  %v10491_v32 = vrot.slane %v10489_v7, 5  ;;  %v13202_v7 = vld [vmem:[#allocation3 + $0x54] sm:$0xff] }
 0x43e   : > { %16840 = vst [vmem:[#allocation21_spill] sm:$0xff] %v16123_v52  ;;  %v9375_v52 = vld [vmem:[#allocation3 + $0x68] sm:$0x1] }
 0x43f   : > { %v9191_v10 = vpop.f32.mrf.mxu1  ;;  %9722 = vmatmul.bf16.gmra.mxu2 %v9614_v58  ;;  %v9493_v58 = vsel %vm13993_vm10, %v12711_v34, %v9492_v18  ;;  %v8955_v34 = vsel %vm13392_vm14, %v8950_v14, %v16121_v62  ;;  %v10496_v14 = vrot.slane %v10494_v21, 4 }
 0x440   : > { %v8112_v36 = vpop.f32.mrf.mxu3  ;;  %v16127_v45 = vadd.f32 %v9191_v10, %v8548_v53  ;;  %v10477_v53 = vrot.slane %v10476_v42, 4  ;;  %v9589_v1 = vunpack.c.l.b16 %v9493_v58  ;;  %v10497_v42 = vshll.u32 %v10277_v19, 16 }
 0x441   : > { %v16125_v61 = vadd.f32 %v8112_v36, %v7666_v22  ;;  %v8959_v22 = vor.u32 %v8958_v11, %v16121_v62  ;;  %v10486_v36 = vor.u32 %v10485_v51, %v10481_v60  ;;  %v10278_v11 = vld [vmem:[#allocation3 + $0x7c] sm:$0xf]  ;;  %v8645_v51 = vld [vmem:[#allocation3 + $0xa8] sm:$0xf]  ;;  %v9499_v19 = vrot.slane %v9374_v47, 5 }
 0x442   : > { %9230 = vmatmul.bf16.gmra.mxu1 %v9098_v8  ;;  %v7595_v63 = vpop.f32.mrf.mxu2  ;;  %10852 = vmatmul.bf16.gmra.mxu0 %v10740_v39  ;;  %v9590_v8 = vunpack.c.l.b16 %v9496_v4  ;;  %v8646_v39 = vld [vmem:[#allocation3 + $0xac] sm:$0xf]  ;;  %v10482_v46 = vsel %vm13392_vm14, %v10477_v53, %v10481_v60  ;;  %v8967_v4 = vshrl.u32 %v8645_v51, 16  ;;  %v9373_v62 = vld [vmem:[#allocation3 + $0x60] sm:$0xe]  ;;  %v16846_v53 = vld [vmem:[#allocation6_spill] sm:$0xff] }
 0x443   : > { %16841 = vst [vmem:[#allocation22_spill] sm:$0xff] %v16125_v61  ;;  %v8960_v30 = vrot.slane %v8959_v22, 4  ;;  %v10487_v15 = vrot.slane %v10486_v36, 4  ;;  %v10503_v36 = vshll.u32 %v10278_v11, 16  ;;  %v8980_v3 = vshrl.u32 %v8646_v39, 16 }
 0x444   : > { %v9615_v59 = vpack.c.b16 %v9590_v8, %v9589_v1  ;;  %v7668_v60 = vadd.f32 %v7595_v63, %v15885_v26  ;;  %v8969_v1 = vrot.slane %v8967_v4, 4  ;;  %v13229_v4 = vld [vmem:[%s16704_s2 + $0x200] sm:$0xff] }
 0x445   : > { %v8965_v9 = vsel %vm13392_vm14, %v8960_v30, %v8964_v35  ;;  %v16143_v17 = vpop.f32.mrf.mxu0  ;;  %v10492_v22 = vsel %vm13392_vm14, %v10487_v15, %v10491_v32  ;;  %v8970_v35 = vshll.u32 %v8645_v51, 16  ;;  %v16847_v32 = vld [vmem:[#allocation27_spill] sm:$0xff]  ;;  %v8647_v51 = vld [vmem:[#allocation3 + $0xb0] sm:$0x1]  ;;  %v16155_v61 = vrot.slane %v10503_v36, 5  ;;  %11343 = vmatpush.bf16.msra.mxu1 %v13229_v4 }
 0x446   : > { %16845 = vst [vmem:[#allocation23_spill] sm:$0xff] %v16143_v17  ;;  %v10717_v30 = vunpack.c.l.b16 %v10492_v22  ;;  %v10499_v17 = vrot.slane %v10497_v42, 5  ;;  %v8550_v15 = vadd.f32 %v16847_v32, %v16846_v53  ;;  %v8982_v47 = vrot.slane %v8980_v3, 4  ;;  %v13203_v4 = vld [vmem:[#allocation3 + $0x60] sm:$0xff] }
 0x447   : > { %v9193_v10 = vpop.f32.mrf.mxu1  ;;  %v8986_v22 = vshll.u32 %v8647_v51, 16  ;;  %v12712_v53 = vrot.slane %v9373_v62, 9  ;;  %v16851_v62 = vld [vmem:[#allocation29_spill] sm:$0xff]  ;;  %v10280_v51 = vld [vmem:[#allocation3 + $0x84] sm:$0xf] }
 0x448   : > { %v8114_v25 = vpop.f32.mrf.mxu3  ;;  %v16139_v18 = vadd.f32 %v9193_v10, %v8549_v56  ;;  %v9080_v56 = vunpack.c.l.b16 %v8965_v9  ;;  %v10716_v10 = vunpack.c.l.b16 %v10482_v46  ;;  %v8972_v9 = vrot.slane %v8970_v35, 5 }
 0x449   : > { %v16137_v29 = vadd.f32 %v8114_v25, %v7667_v24  ;;  %v8976_v24 = vshll.u32 %v8646_v39, 16  ;;  %v10507_v25 = vshrl.u32 %v10278_v11, 16  ;;  %v9502_v46 = vrot.slane %v9375_v52, 5 }
 0x44a   : > { %v7597_v58 = vpop.f32.mrf.mxu2  ;;  %v10500_v36 = vor.u32 %v10499_v17, %v10496_v14  ;;  %v8973_v3 = vor.u32 %v8972_v9, %v8969_v1  ;;  %v9500_v52 = vsel %vm13993_vm10, %v12712_v53, %v9499_v19  ;;  %v10518_v53 = vshrl.u32 %v10280_v51, 16 }
 0x44b   : > { %16844 = vst [vmem:[#allocation30_spill] sm:$0xff] %v16137_v29  ;;  %v9079_v29 = vunpack.c.l.b16 %v8955_v34  ;;  %v16157_v11 = vrot.slane %v8976_v24, 5  ;;  %v10509_v63 = vrot.slane %v10507_v25, 4  ;;  %v10741_v34 = vpack.c.b16 %v10717_v30, %v10716_v10  ;;  %v16850_v30 = vld [vmem:[#allocation8_spill] sm:$0xff] }
 0x44c   : > { %v9501_v24 = vrot.slane %v9499_v19, 4  ;;  %v10501_v25 = vrot.slane %v10500_v36, 4  ;;  %v7669_v10 = vadd.f32 %v7597_v58, %v15903_v50  ;;  %v8551_v14 = vadd.f32 %v16851_v62, %v16850_v30  ;;  %v9377_v36 = vld [vmem:[#allocation3 + $0x70] sm:$0xf] }
 0x44d   : > { %10101 = vmatmul.bf16.gmra.mxu3 %v13202_v7  ;;  %v10279_v7 = vld [vmem:[#allocation3 + $0x80] sm:$0x1]  ;;  %v9099_v26 = vpack.c.b16 %v9080_v56, %v9079_v29  ;;  %v10510_v29 = vor.u32 %v10509_v63, %v16155_v61  ;;  %v8988_v56 = vrot.slane %v8986_v22, 5  ;;  %v9591_v1 = vunpack.c.l.b16 %v9500_v52  ;;  %v8649_v22 = vld [vmem:[#allocation3 + $0xb8] sm:$0xf] }
 0x44e   : > { %v10513_v32 = vshll.u32 %v10279_v7, 16  ;;  %v9503_v17 = vsel %vm13993_vm10, %v9501_v24, %v9502_v46  ;;  %v8974_v9 = vrot.slane %v8973_v3, 4  ;;  %v10281_v7 = vld [vmem:[#allocation3 + $0x88] sm:$0xf]  ;;  %v10506_v58 = vsel %vm13392_vm14, %v10501_v25, %v16155_v61 }
 0x44f   : > { %v9196_v8 = vpop.f32.mrf.mxu1  ;;  %9727 = vmatmul.bf16.gmra.mxu2 %v9615_v59  ;;  %v16167_v59 = vpop.f32.mrf.mxu0  ;;  %v10511_v46 = vrot.slane %v10510_v29, 4  ;;  %v10527_v52 = vshll.u32 %v10281_v7, 16  ;;  %v10531_v30 = vshrl.u32 %v10281_v7, 16  ;;  %v10718_v62 = vunpack.c.l.b16 %v10506_v58 }
 0x450   : > { %v8117_v39 = vpop.f32.mrf.mxu3  ;;  %v16161_v42 = vadd.f32 %v9196_v8, %v8550_v15  ;;  %16849 = vst [vmem:[#allocation25_spill] sm:$0xff] %v16167_v59  ;;  %v10515_v15 = vrot.slane %v10513_v32, 5  ;;  %v10521_v32 = vshll.u32 %v10280_v51, 16  ;;  %v8979_v29 = vsel %vm13392_vm14, %v8974_v9, %v16157_v11  ;;  %v16854_v51 = vld [vmem:[#allocation9_spill] sm:$0xff]  ;;  %v8650_v9 = vld [vmem:[#allocation3 + $0xbc] sm:$0x1] }
 0x451   : > { %v16159_v21 = vadd.f32 %v8117_v39, %v7668_v60  ;;  %v8983_v60 = vor.u32 %v8982_v47, %v16157_v11  ;;  %v8648_v47 = vld [vmem:[#allocation3 + $0xb4] sm:$0xf]  ;;  %v9081_v11 = vunpack.c.l.b16 %v8979_v29 }
 0x452   : > { %16848 = vst [vmem:[#allocation24_spill] sm:$0xff] %v16161_v42  ;;  %9235 = vmatmul.bf16.gmra.mxu1 %v9099_v26  ;;  %v7600_v35 = vpop.f32.mrf.mxu2  ;;  %10857 = vmatmul.bf16.gmra.mxu0 %v10741_v34  ;;  %v9592_v34 = vunpack.c.l.b16 %v9503_v17  ;;  %v10516_v24 = vsel %vm13392_vm14, %v10511_v46, %v10515_v15  ;;  %v8991_v3 = vshrl.u32 %v8648_v47, 16  ;;  %v10523_v46 = vrot.slane %v10521_v32, 5 }
 0x453   : > { %v8984_v19 = vrot.slane %v8983_v60, 4  ;;  %v8994_v60 = vshll.u32 %v8648_v47, 16  ;;  %v10719_v15 = vunpack.c.l.b16 %v10516_v24  ;;  %v10520_v47 = vrot.slane %v10518_v53, 4 }
 0x454   : > { %v9616_v61 = vpack.c.b16 %v9592_v34, %v9591_v1  ;;  %v7670_v42 = vadd.f32 %v7600_v35, %v15922_v37  ;;  %v9010_v35 = vshll.u32 %v8650_v9, 16 }
 0x455   : > { %v8989_v50 = vsel %vm13392_vm14, %v8984_v19, %v8988_v56  ;;  %v9000_v56 = vshll.u32 %v8649_v22, 16  ;;  %v9378_v19 = vld [vmem:[#allocation3 + $0x74] sm:$0x1]  ;;  %v8996_v7 = vrot.slane %v8994_v60, 5  ;;  %v10742_v37 = vpack.c.b16 %v10719_v15, %v10718_v62  ;;  %v16857_v15 = vld [vmem:[#allocation11_spill] sm:$0xff] }
 0x456   : > { %v9082_v25 = vunpack.c.l.b16 %v8989_v50  ;;  %v9376_v50 = vld [vmem:[#allocation3 + $0x6c] sm:$0xe]  ;;  %v10524_v29 = vor.u32 %v10523_v46, %v10520_v47 }
 0x457   : > { %v9198_v8 = vpop.f32.mrf.mxu1  ;;  %v9002_v58 = vrot.slane %v9000_v56, 5  ;;  %v12713_v60 = vrot.slane %v9376_v50, 9 }
 0x458   : > { %v8119_v39 = vpop.f32.mrf.mxu3  ;;  %v16179_v63 = vadd.f32 %v9198_v8, %v8551_v14  ;;  %v9506_v14 = vrot.slane %v9377_v36, 5  ;;  %v9100_v32 = vpack.c.b16 %v9082_v25, %v9081_v11  ;;  %v10525_v25 = vrot.slane %v10524_v29, 4  ;;  %v8651_v11 = vld [vmem:[#allocation3 + $0xc0] sm:$0xf] }
 0x459   : > { %v16177_v26 = vadd.f32 %v8119_v39, %v7669_v10  ;;  %v9004_v10 = vshrl.u32 %v8649_v22, 16  ;;  %v16855_v39 = vld [vmem:[#allocation31_spill] sm:$0xff]  ;;  %v8993_v22 = vrot.slane %v8991_v3, 4 }
 0x45a   : > { %16853 = vst [vmem:[#allocation27_spill] sm:$0xff] %v16179_v63  ;;  %v7602_v17 = vpop.f32.mrf.mxu2  ;;  %v8552_v8 = vadd.f32 %v16855_v39, %v16854_v51  ;;  %v16193_v63 = vpop.f32.mrf.mxu0  ;;  %v10533_v51 = vrot.slane %v10531_v30, 4  ;;  %v9509_v39 = vrot.slane %v9378_v19, 5  ;;  %v9508_v56 = vrot.slane %v9506_v14, 4  ;;  %v16858_v19 = vld [vmem:[#allocation28_spill] sm:$0xff] }
 0x45b   : > { %16852 = vst [vmem:[#allocation6_spill] sm:$0xff] %v16177_v26  ;;  %v9006_v36 = vrot.slane %v9004_v10, 4  ;;  %v10529_v26 = vrot.slane %v10527_v52, 5  ;;  %v8553_v47 = vadd.f32 %v16858_v19, %v16857_v15 }
 0x45c   : > { %16856 = vst [vmem:[#allocation8_spill] sm:$0xff] %v16193_v63  ;;  %v8997_v63 = vor.u32 %v8996_v7, %v8993_v22  ;;  %v9510_v30 = vsel %vm13993_vm10, %v9508_v56, %v9509_v39 }
 0x45d   : > { %10106 = vmatmul.bf16.gmra.mxu3 %v13203_v4  ;;  %v10282_v4 = vld [vmem:[#allocation3 + $0x8c] sm:$0x1]  ;;  %v9007_v10 = vor.u32 %v9006_v36, %v9002_v58  ;;  %v10534_v52 = vor.u32 %v10533_v51, %v10529_v26  ;;  %v9594_v51 = vunpack.c.l.b16 %v9510_v30 }
 0x45e   : > { %v10537_v3 = vshll.u32 %v10282_v4, 16  ;;  %v8998_v46 = vrot.slane %v8997_v63, 4  ;;  %v10530_v63 = vsel %vm13392_vm14, %v10525_v25, %v10529_v26  ;;  %v16859_v25 = vld [vmem:[#allocation26_spill] sm:$0xff] }
 0x45f   : > { %v9201_v34 = vpop.f32.mrf.mxu1  ;;  %9732 = vmatmul.bf16.gmra.mxu2 %v9616_v61  ;;  %v9012_v61 = vrot.slane %v9010_v35, 5  ;;  %v9008_v7 = vrot.slane %v9007_v10, 4  ;;  %v10535_v4 = vrot.slane %v10534_v52, 4  ;;  %v13204_v35 = vld [vmem:[#allocation3 + $0x6c] sm:$0xff]  ;;  %v10720_v26 = vunpack.c.l.b16 %v10530_v63 }
 0x460   : > { %v8122_v1 = vpop.f32.mrf.mxu3  ;;  %v16198_v53 = vadd.f32 %v9201_v34, %v8552_v8  ;;  %v10539_v62 = vrot.slane %v10537_v3, 5  ;;  %v7671_v8 = vadd.f32 %v7602_v17, %v15938_v16  ;;  %v10284_v16 = vld [vmem:[#allocation3 + $0x94] sm:$0xf]  ;;  %v9003_v29 = vsel %vm13392_vm14, %v8998_v46, %v9002_v58 }
 0x461   : > { %v16196_v24 = vadd.f32 %v8122_v1, %v7670_v42  ;;  %v9507_v42 = vsel %vm13993_vm10, %v12713_v60, %v9506_v14  ;;  %v8652_v1 = vld [vmem:[#allocation3 + $0xc4] sm:$0xf]  ;;  %v9013_v17 = vsel %vm13392_vm14, %v9008_v7, %v9012_v61  ;;  %v9018_v3 = vshll.u32 %v8651_v11, 16 }
 0x462   : > { %9240 = vmatmul.bf16.gmra.mxu1 %v9100_v32  ;;  %v7605_v59 = vpop.f32.mrf.mxu2  ;;  %10862 = vmatmul.bf16.gmra.mxu0 %v10742_v37  ;;  %v16207_v34 = vpop.f32.mrf.mxu0  ;;  %v9593_v36 = vunpack.c.l.b16 %v9507_v42  ;;  %v10283_v32 = vld [vmem:[#allocation3 + $0x90] sm:$0xf]  ;;  %v10540_v39 = vsel %vm13392_vm14, %v10535_v4, %v10539_v62  ;;  %v9015_v37 = vshrl.u32 %v8651_v11, 16  ;;  %v9024_v60 = vshll.u32 %v8652_v1, 16 }
 0x463   : > { %v9028_v56 = vshrl.u32 %v8652_v1, 16  ;;  %v10542_v52 = vshrl.u32 %v10283_v32, 16  ;;  %v10545_v42 = vshll.u32 %v10283_v32, 16  ;;  %v10551_v30 = vshll.u32 %v10284_v16, 16  ;;  %v10285_v1 = vld [vmem:[#allocation3 + $0x98] sm:$0x1] }
 0x464   : > { %v9617_v61 = vpack.c.b16 %v9594_v51, %v9593_v36  ;;  %v9084_v15 = vunpack.c.l.b16 %v9013_v17  ;;  %v8554_v62 = vadd.f32 %v16859_v25, %v15889_v54  ;;  %v9083_v19 = vunpack.c.l.b16 %v9003_v29 }
 0x465   : > { %v9017_v58 = vrot.slane %v9015_v37, 4  ;;  %v7672_v46 = vadd.f32 %v7605_v59, %v15957_v2  ;;  %v9020_v11 = vrot.slane %v9018_v3, 5  ;;  %v16224_v7 = vrot.slane %v9024_v60, 5 }
 0x466   : > { %v9030_v4 = vrot.slane %v9028_v56, 4  ;;  %v10544_v36 = vrot.slane %v10542_v52, 4  ;;  %v10547_v51 = vrot.slane %v10545_v42, 5  ;;  %v16226_v17 = vrot.slane %v10551_v30, 5  ;;  %v9379_v56 = vld [vmem:[#allocation3 + $0x78] sm:$0xe] }
 0x467   : > { %v9203_v22 = vpop.f32.mrf.mxu1  ;;  %v9101_v37 = vpack.c.b16 %v9084_v15, %v9083_v19  ;;  %v10561_v3 = vshll.u32 %v10285_v1, 16  ;;  %v9021_v52 = vor.u32 %v9020_v11, %v9017_v58  ;;  %v12714_v19 = vrot.slane %v9379_v56, 9 }
 0x468   : > { %v8124_v9 = vpop.f32.mrf.mxu3  ;;  %v16211_v50 = vadd.f32 %v9203_v22, %v8553_v47  ;;  %v10721_v47 = vunpack.c.l.b16 %v10540_v39  ;;  %v8653_v22 = vld [vmem:[#allocation3 + $0xc8] sm:$0x1]  ;;  %v9031_v42 = vor.u32 %v9030_v4, %v16224_v7  ;;  %v10548_v25 = vor.u32 %v10547_v51, %v10544_v36 }
 0x469   : > { %v16209_v14 = vadd.f32 %v8124_v9, %v7671_v8  ;;  %v10555_v8 = vshrl.u32 %v10284_v16, 16  ;;  %v9380_v9 = vld [vmem:[#allocation3 + $0x7c] sm:$0xf]  ;;  %v9034_v2 = vshll.u32 %v8653_v22, 16  ;;  %v16860_v22 = vld [vmem:[#allocation7_spill] sm:$0xff]  ;;  %v9022_v58 = vrot.slane %v9021_v52, 4 }
 0x46a   : > { %v7607_v10 = vpop.f32.mrf.mxu2  ;;  %v10743_v59 = vpack.c.b16 %v10721_v47, %v10720_v26  ;;  %v9513_v29 = vrot.slane %v9380_v9, 5  ;;  %v16232_v60 = vpop.f32.mrf.mxu0  ;;  %v10563_v47 = vrot.slane %v10561_v3, 5  ;;  %v9032_v11 = vrot.slane %v9031_v42, 4 }
 0x46b   : > { %v10557_v63 = vrot.slane %v10555_v8, 4  ;;  %v7673_v9 = vadd.f32 %v7607_v10, %v15974_v6 }
 0x46c   : > { %v9515_v26 = vrot.slane %v9513_v29, 4 }
 0x46d   : > { %10111 = vmatmul.bf16.gmra.mxu3 %v13204_v35  ;;  %v9381_v35 = vld [vmem:[#allocation3 + $0x80] sm:$0x1]  ;;  %v10558_v15 = vor.u32 %v10557_v63, %v16226_v17 }
 0x46e   : > { %v9516_v8 = vrot.slane %v9381_v35, 5  ;;  %v10287_v63 = vld [vmem:[#allocation3 + $0xa0] sm:$0xf] }
 0x46f   : > { %v9206_v16 = vpop.f32.mrf.mxu1  ;;  %9737 = vmatmul.bf16.gmra.mxu2 %v9617_v61  ;;  %v9036_v61 = vrot.slane %v9034_v2, 5  ;;  %v10559_v10 = vrot.slane %v10558_v15, 4  ;;  %v9027_v2 = vsel %vm13392_vm14, %v9022_v58, %v16224_v7  ;;  %v10579_v15 = vshrl.u32 %v10287_v63, 16  ;;  %v11000_v58 = vld [vmem:[#allocation3 + $0x1c] sm:$0xf] }
 0x470   : > { %v8127_v32 = vpop.f32.mrf.mxu3  ;;  %v16230_v39 = vadd.f32 %v9206_v16, %v8554_v62  ;;  %v10549_v16 = vrot.slane %v10548_v25, 4  ;;  %v9085_v7 = vunpack.c.l.b16 %v9027_v2 }
 0x471   : > { %v16228_v54 = vadd.f32 %v8127_v32, %v7672_v46  ;;  %v8555_v46 = vadd.f32 %v16860_v22, %v15905_v5  ;;  %v9514_v32 = vsel %vm13993_vm10, %v12714_v19, %v9513_v29  ;;  %v9037_v6 = vsel %vm13392_vm14, %v9032_v11, %v9036_v61  ;;  %v10286_v5 = vld [vmem:[#allocation3 + $0x9c] sm:$0xf] }
 0x472   : > { %9245 = vmatmul.bf16.gmra.mxu1 %v9101_v37  ;;  %v9698_v30 = vpop.f32.mrf.mxu2  ;;  %10867 = vmatmul.bf16.gmra.mxu0 %v10743_v59  ;;  %v13205_v37 = vld [vmem:[#allocation3 + $0x78] sm:$0xff]  ;;  %v10564_v59 = vsel %vm13392_vm14, %v10559_v10, %v10563_v47  ;;  %v9595_v3 = vunpack.c.l.b16 %v9514_v32  ;;  %v9086_v56 = vunpack.c.l.b16 %v9037_v6  ;;  %v10566_v52 = vshrl.u32 %v10286_v5, 16  ;;  %v16862_v47 = vld [vmem:[#allocation12_spill] sm:$0xff] }
 0x473   : > { %v9810_v62 = vadd.f32 %v9698_v30, %v16000_v31  ;;  %v9517_v31 = vsel %vm13993_vm10, %v9515_v26, %v9516_v8  ;;  %v10569_v42 = vshll.u32 %v10286_v5, 16  ;;  %v16255_v30 = vpop.f32.mrf.mxu0  ;;  %v10554_v25 = vsel %vm13392_vm14, %v10549_v16, %v16226_v17  ;;  %v16861_v26 = vld [vmem:[#allocation13_spill] sm:$0xff]  ;;  %v9384_v16 = vld [vmem:[#allocation3 + $0x8c] sm:$0x1]  ;;  %v11001_v5 = vld [vmem:[#allocation3 + $0x20] sm:$0x1] }
 0x474   : > { %v9596_v35 = vunpack.c.l.b16 %v9517_v31  ;;  %v10575_v61 = vshll.u32 %v10287_v63, 16  ;;  %v10723_v19 = vunpack.c.l.b16 %v10564_v59  ;;  %v10722_v32 = vunpack.c.l.b16 %v10554_v25 }
 0x475   : > { %v10568_v31 = vrot.slane %v10566_v52, 4  ;;  %v10571_v6 = vrot.slane %v10569_v42, 5  ;;  %v11097_v59 = vrot.slane %v11000_v58, 5  ;;  %v9523_v25 = vrot.slane %v9384_v16, 5  ;;  %v10999_v42 = vld [vmem:[#allocation3 + $0x18] sm:$0xe] }
 0x476   : > { %v9618_v22 = vpack.c.b16 %v9596_v35, %v9595_v3  ;;  %v10577_v63 = vrot.slane %v10575_v61, 5  ;;  %v10744_v2 = vpack.c.b16 %v10723_v19, %v10722_v32  ;;  %v11100_v52 = vrot.slane %v11001_v5, 5  ;;  %v16864_v19 = vld [vmem:[#allocation10_spill] sm:$0xff] }
 0x477   : > { %v9208_v1 = vpop.f32.mrf.mxu1  ;;  %v12929_v32 = vrot.slane %v10999_v42, 9 }
 0x478   : > { %v8129_v4 = vpop.f32.mrf.mxu3  ;;  %v16246_v51 = vadd.f32 %v9208_v1, %v8555_v46  ;;  %v9383_v46 = vld [vmem:[#allocation3 + $0x88] sm:$0xf]  ;;  %v9102_v1 = vpack.c.b16 %v9086_v56, %v9085_v7  ;;  %v10572_v7 = vor.u32 %v10571_v6, %v10568_v31 }
 0x479   : > { %v16244_v36 = vadd.f32 %v8129_v4, %v7673_v9  ;;  %v8556_v9 = vadd.f32 %v16862_v47, %v16861_v26  ;;  %v9520_v35 = vrot.slane %v9383_v46, 5 }
 0x47a   : > { %v9700_v29 = vpop.f32.mrf.mxu2  ;;  %v10573_v16 = vrot.slane %v10572_v7, 4 }
 0x47b   : > { %v9811_v8 = vadd.f32 %v9700_v29, %v16023_v27  ;;  %v10288_v27 = vld [vmem:[#allocation3 + $0xa4] sm:$0x1]  ;;  %v9382_v29 = vld [vmem:[#allocation3 + $0x84] sm:$0xe]  ;;  %v16268_v61 = vpop.f32.mrf.mxu0 }
 0x47c   : > { %v10585_v3 = vshll.u32 %v10288_v27, 16  ;;  %v12715_v47 = vrot.slane %v9382_v29, 9  ;;  %v13206_v29 = vld [vmem:[#allocation3 + $0x84] sm:$0xff]  ;;  %v10578_v7 = vsel %vm13392_vm14, %v10573_v16, %v10577_v63 }
 0x47d   : > { %10116 = vmatmul.bf16.gmra.mxu3 %v13205_v37  ;;  %v10581_v37 = vrot.slane %v10579_v15, 4  ;;  %v16863_v15 = vld [vmem:[#allocation16_spill] sm:$0xff] }
 0x47e   : > { %v8557_v46 = vadd.f32 %v16864_v19, %v16863_v15  ;;  %v10587_v58 = vrot.slane %v10585_v3, 5 }
 0x47f   : > { %v9211_v4 = vpop.f32.mrf.mxu1  ;;  %9742 = vmatmul.bf16.gmra.mxu2 %v9618_v22  ;;  %v10582_v26 = vor.u32 %v10581_v37, %v10577_v63  ;;  %v11099_v22 = vrot.slane %v11097_v59, 4  ;;  %v10289_v37 = vld [vmem:[#allocation3 + $0xa8] sm:$0xf] }
 0x480   : > { %v10077_v11 = vpop.f32.mrf.mxu3  ;;  %v16265_v17 = vadd.f32 %v9211_v4, %v8556_v9  ;;  %v9522_v9 = vrot.slane %v9520_v35, 4 }
 0x481   : > { %v16263_v10 = vadd.f32 %v10077_v11, %v9810_v62  ;;  %v11101_v27 = vsel %vm13993_vm10, %v11099_v22, %v11100_v52  ;;  %v10583_v5 = vrot.slane %v10582_v26, 4  ;;  %v10590_v52 = vshrl.u32 %v10289_v37, 16 }
 0x482   : > { %9250 = vmatmul.bf16.gmra.mxu1 %v9102_v1  ;;  %v9703_v56 = vpop.f32.mrf.mxu2  ;;  %10872 = vmatmul.bf16.gmra.mxu0 %v10744_v2  ;;  %v9521_v1 = vsel %vm13993_vm10, %v12715_v47, %v9520_v35  ;;  %v10290_v2 = vld [vmem:[#allocation3 + $0xac] sm:$0xf]  ;;  %v11098_v35 = vsel %vm13993_vm10, %v12929_v32, %v11097_v59  ;;  %v11225_v47 = vunpack.c.l.b16 %v11101_v27  ;;  %v16866_v59 = vld [vmem:[#allocation14_spill] sm:$0xff]  ;;  %v10724_v27 = vunpack.c.l.b16 %v10578_v7 }
 0x483   : > { %v9812_v62 = vadd.f32 %v9703_v56, %v16044_v41  ;;  %v9524_v41 = vsel %vm13993_vm10, %v9522_v9, %v9523_v25  ;;  %v10588_v56 = vsel %vm13392_vm14, %v10583_v5, %v10587_v58  ;;  %v9597_v42 = vunpack.c.l.b16 %v9521_v1  ;;  %v9386_v58 = vld [vmem:[#allocation3 + $0x94] sm:$0xf]  ;;  %v10291_v5 = vld [vmem:[#allocation3 + $0xb0] sm:$0x1] }
 0x484   : > { %v9598_v3 = vunpack.c.l.b16 %v9524_v41  ;;  %v10599_v26 = vshll.u32 %v10290_v2, 16  ;;  %v10603_v22 = vshrl.u32 %v10290_v2, 16  ;;  %v11224_v15 = vunpack.c.l.b16 %v11098_v35  ;;  %v9387_v2 = vld [vmem:[#allocation3 + $0x98] sm:$0x1]  ;;  %v11004_v35 = vld [vmem:[#allocation3 + $0x2c] sm:$0x1] }
 0x485   : > { %v10725_v19 = vunpack.c.l.b16 %v10588_v56  ;;  %v10609_v7 = vshll.u32 %v10291_v5, 16 }
 0x486   : > { %v11256_v32 = vpack.c.b16 %v11225_v47, %v11224_v15  ;;  %v9385_v47 = vld [vmem:[#allocation3 + $0x90] sm:$0xe] }
 0x487   : > { %v9213_v4 = vpop.f32.mrf.mxu1  ;;  %v10745_v56 = vpack.c.b16 %v10725_v19, %v10724_v27 }
 0x488   : > { %v10079_v11 = vpop.f32.mrf.mxu3  ;;  %v16280_v6 = vadd.f32 %v9213_v4, %v8557_v46  ;;  %v8558_v46 = vadd.f32 %v16866_v59, %v15961_v28  ;;  %v11003_v4 = vld [vmem:[#allocation3 + $0x28] sm:$0xf]  ;;  %v10601_v28 = vrot.slane %v10599_v26, 5  ;;  %v11002_v59 = vld [vmem:[#allocation3 + $0x24] sm:$0xe] }
 0x489   : > { %v16278_v31 = vadd.f32 %v10079_v11, %v9811_v8  ;;  %v10593_v8 = vshll.u32 %v10289_v37, 16  ;;  %v9619_v11 = vpack.c.b16 %v9598_v3, %v9597_v42  ;;  %v10605_v3 = vrot.slane %v10603_v22, 4  ;;  %v16868_v26 = vld [vmem:[#allocation19_spill] sm:$0xff]  ;;  %v16869_v22 = vld [vmem:[#allocation17_spill] sm:$0xff] }
 0x48a   : > { %16865 = vst [vmem:[#allocation29_spill] sm:$0xff] %v16280_v6  ;;  %v9705_v25 = vpop.f32.mrf.mxu2  ;;  %v11104_v42 = vrot.slane %v11003_v4, 5  ;;  %v8559_v19 = vadd.f32 %v16869_v22, %v16868_v26 }
 0x48b   : > { %v9813_v9 = vadd.f32 %v9705_v25, %v16060_v40  ;;  %v10592_v40 = vrot.slane %v10590_v52, 4  ;;  %v10595_v37 = vrot.slane %v10593_v8, 5  ;;  %v9527_v25 = vrot.slane %v9386_v58, 5 }
 0x48c   : > { %v9530_v52 = vrot.slane %v9387_v2, 5  ;;  %v11107_v8 = vrot.slane %v11004_v35, 5  ;;  %v10611_v58 = vrot.slane %v10609_v7, 5  ;;  %v12930_v2 = vrot.slane %v11002_v59, 9 }
 0x48d   : > { %10121 = vmatmul.bf16.gmra.mxu3 %v13206_v29  ;;  %v16291_v29 = vpop.f32.mrf.mxu0 }
 0x48f   : > { %v9216_v41 = vpop.f32.mrf.mxu1  ;;  %9747 = vmatmul.bf16.gmra.mxu2 %v9619_v11  ;;  %v12716_v11 = vrot.slane %v9385_v47, 9  ;;  %v10293_v47 = vld [vmem:[#allocation3 + $0xb8] sm:$0xf] }
 0x490   : > { %v10082_v1 = vpop.f32.mrf.mxu3  ;;  %v16295_v16 = vadd.f32 %v9216_v41, %v8558_v46  ;;  %v10596_v46 = vor.u32 %v10595_v37, %v10592_v40  ;;  %v9529_v41 = vrot.slane %v9527_v25, 4  ;;  %v10627_v22 = vshrl.u32 %v10293_v47, 16 }
 0x491   : > { %v16293_v63 = vadd.f32 %v10082_v1, %v9812_v62  ;;  %v10606_v1 = vor.u32 %v10605_v3, %v10601_v28  ;;  %v9528_v27 = vsel %vm13993_vm10, %v12716_v11, %v9527_v25  ;;  %v11105_v25 = vsel %vm13993_vm10, %v12930_v2, %v11104_v42  ;;  %v11006_v2 = vld [vmem:[#allocation3 + $0x34] sm:$0xf] }
 0x492   : > { %16867 = vst [vmem:[#allocation9_spill] sm:$0xff] %v16295_v16  ;;  %11344 = vmatmul.bf16.vlgmr.msra.gmra.mxu1 %v11256_v32  ;;  %v9708_v15 = vpop.f32.mrf.mxu2  ;;  %10877 = vmatmul.bf16.gmra.mxu0 %v10745_v56  ;;  %v11106_v16 = vrot.slane %v11104_v42, 4  ;;  %v9531_v5 = vsel %vm13993_vm10, %v9529_v41, %v9530_v52  ;;  %v10597_v35 = vrot.slane %v10596_v46, 4  ;;  %v10292_v56 = vld [vmem:[#allocation3 + $0xb4] sm:$0xf]  ;;  %v10623_v41 = vshll.u32 %v10293_v47, 16 }
 0x493   : > { %v9814_v62 = vadd.f32 %v9708_v15, %v16085_v13  ;;  %v10607_v3 = vrot.slane %v10606_v1, 4  ;;  %v13207_v15 = vld [vmem:[#allocation3 + $0x90] sm:$0xff]  ;;  %v9600_v26 = vunpack.c.l.b16 %v9531_v5  ;;  %v10617_v11 = vshll.u32 %v10292_v56, 16  ;;  %v16871_v42 = vld [vmem:[#allocation15_spill] sm:$0xff]  ;;  %v11007_v47 = vld [vmem:[#allocation3 + $0x38] sm:$0x1] }
 0x494   : > { %v11108_v13 = vsel %vm13993_vm10, %v11106_v16, %v11107_v8  ;;  %v9599_v16 = vunpack.c.l.b16 %v9528_v27  ;;  %v10614_v8 = vshrl.u32 %v10292_v56, 16  ;;  %v10602_v1 = vsel %vm13392_vm14, %v10597_v35, %v10601_v28  ;;  %v9390_v35 = vld [vmem:[#allocation3 + $0xa4] sm:$0x1] }
 0x495   : > { %v16310_v7 = vpop.f32.mrf.mxu0  ;;  %v10612_v52 = vsel %vm13392_vm14, %v10607_v3, %v10611_v58  ;;  %v9389_v58 = vld [vmem:[#allocation3 + $0xa0] sm:$0xf]  ;;  %v10726_v56 = vunpack.c.l.b16 %v10602_v1  ;;  %v9537_v1 = vrot.slane %v9390_v35, 5 }
 0x496   : > { %v9620_v5 = vpack.c.b16 %v9600_v26, %v9599_v16  ;;  %v9534_v26 = vrot.slane %v9389_v58, 5  ;;  %v11111_v16 = vrot.slane %v11006_v2, 5 }
 0x497   : > { %v9218_v32 = vpop.f32.mrf.mxu1 }
 0x498   : > { %v10084_v4 = vpop.f32.mrf.mxu3  ;;  %v16308_v37 = vadd.f32 %v9218_v32, %v8559_v19  ;;  %v11226_v19 = vunpack.c.l.b16 %v11105_v25  ;;  %v8560_v32 = vadd.f32 %v16871_v42, %v15998_v23  ;;  %v10625_v25 = vrot.slane %v10623_v41, 5  ;;  %v9388_v42 = vld [vmem:[#allocation3 + $0x9c] sm:$0xe] }
 0x499   : > { %v16306_v40 = vadd.f32 %v10084_v4, %v9813_v9  ;;  %v11227_v9 = vunpack.c.l.b16 %v11108_v13  ;;  %v10727_v4 = vunpack.c.l.b16 %v10612_v52  ;;  %v10629_v52 = vrot.slane %v10627_v22, 4 }
 0x49a   : > { %16870 = vst [vmem:[#allocation31_spill] sm:$0xff] %v16308_v37  ;;  %v9710_v59 = vpop.f32.mrf.mxu2  ;;  %v10294_v37 = vld [vmem:[#allocation3 + $0xbc] sm:$0x1]  ;;  %v9536_v41 = vrot.slane %v9534_v26, 4  ;;  %v11113_v22 = vrot.slane %v11111_v16, 4 }
 0x49b   : > { %v9815_v46 = vadd.f32 %v9710_v59, %v16105_v55  ;;  %v11257_v3 = vpack.c.b16 %v11227_v9, %v11226_v19  ;;  %v10616_v55 = vrot.slane %v10614_v8, 4  ;;  %v10746_v23 = vpack.c.b16 %v10727_v4, %v10726_v56  ;;  %v11005_v19 = vld [vmem:[#allocation3 + $0x30] sm:$0xe]  ;;  %v16872_v4 = vld [vmem:[#allocation18_spill] sm:$0xff] }
 0x49c   : > { %v10633_v6 = vshll.u32 %v10294_v37, 16  ;;  %v11114_v8 = vrot.slane %v11007_v47, 5  ;;  %v8561_v58 = vadd.f32 %v16872_v4, %v16021_v38  ;;  %v9538_v56 = vsel %vm13993_vm10, %v9536_v41, %v9537_v1  ;;  %v10295_v38 = vld [vmem:[#allocation3 + $0xc0] sm:$0xf] }
 0x49d   : > { %10126 = vmatmul.bf16.gmra.mxu3 %v13207_v15  ;;  %v10619_v15 = vrot.slane %v10617_v11, 5  ;;  %v16325_v11 = vpop.f32.mrf.mxu0  ;;  %v12931_v35 = vrot.slane %v11005_v19, 9 }
 0x49e   : > { %v10635_v2 = vrot.slane %v10633_v6, 5  ;;  %v10296_v6 = vld [vmem:[#allocation3 + $0xc4] sm:$0xf] }
 0x49f   : > { %v9221_v13 = vpop.f32.mrf.mxu1  ;;  %9752 = vmatmul.bf16.gmra.mxu2 %v9620_v5  ;;  %v10630_v5 = vor.u32 %v10629_v52, %v10625_v25 }
 0x4a0   : > { %v10087_v27 = vpop.f32.mrf.mxu3  ;;  %v16323_v28 = vadd.f32 %v9221_v13, %v8560_v32  ;;  %v10620_v32 = vor.u32 %v10619_v15, %v10616_v55 }
 0x4a1   : > { %v16321_v59 = vadd.f32 %v10087_v27, %v9814_v62  ;;  %v12717_v27 = vrot.slane %v9388_v42, 9  ;;  %v10631_v52 = vrot.slane %v10630_v5, 4  ;;  %v9602_v42 = vunpack.c.l.b16 %v9538_v56 }
 0x4a2   : > { %11349 = vmatmul.bf16.gmra.mxu1 %v11257_v3  ;;  %v9713_v9 = vpop.f32.mrf.mxu2  ;;  %10882 = vmatmul.bf16.gmra.mxu0 %v10746_v23  ;;  %v10621_v47 = vrot.slane %v10620_v32, 4  ;;  %v13208_v23 = vld [vmem:[#allocation3 + $0x9c] sm:$0xff]  ;;  %v10647_v5 = vshll.u32 %v10296_v6, 16 }
 0x4a3   : > { %v9816_v62 = vadd.f32 %v9713_v9, %v16127_v45  ;;  %v9535_v3 = vsel %vm13993_vm10, %v12717_v27, %v9534_v26  ;;  %v11115_v45 = vsel %vm13993_vm10, %v11113_v22, %v11114_v8  ;;  %v11112_v26 = vsel %vm13993_vm10, %v12931_v35, %v11111_v16  ;;  %v16874_v16 = vld [vmem:[#allocation20_spill] sm:$0xff] }
 0x4a4   : > { %v10636_v9 = vsel %vm13392_vm14, %v10631_v52, %v10635_v2  ;;  %v9601_v19 = vunpack.c.l.b16 %v9535_v3  ;;  %v11229_v27 = vunpack.c.l.b16 %v11115_v45  ;;  %v10638_v8 = vshrl.u32 %v10295_v38, 16  ;;  %v9392_v3 = vld [vmem:[#allocation3 + $0xac] sm:$0xf] }
 0x4a5   : > { %v10626_v32 = vsel %vm13392_vm14, %v10621_v47, %v10625_v25  ;;  %v10651_v22 = vshrl.u32 %v10296_v6, 16  ;;  %v11228_v4 = vunpack.c.l.b16 %v11112_v26  ;;  %v8562_v2 = vadd.f32 %v16874_v16, %v16042_v49  ;;  %v9393_v47 = vld [vmem:[#allocation3 + $0xb0] sm:$0x1]  ;;  %v11009_v6 = vld [vmem:[#allocation3 + $0x40] sm:$0xf] }
 0x4a6   : > { %v10728_v52 = vunpack.c.l.b16 %v10626_v32  ;;  %v10649_v26 = vrot.slane %v10647_v5, 5  ;;  %v9541_v49 = vrot.slane %v9392_v3, 5  ;;  %v11118_v32 = vrot.slane %v11009_v6, 5 }
 0x4a7   : > { %v9223_v37 = vpop.f32.mrf.mxu1  ;;  %v11258_v45 = vpack.c.b16 %v11229_v27, %v11228_v4  ;;  %v9544_v27 = vrot.slane %v9393_v47, 5  ;;  %v9391_v4 = vld [vmem:[#allocation3 + $0xa8] sm:$0xe] }
 0x4a8   : > { %v10089_v13 = vpop.f32.mrf.mxu3  ;;  %v16338_v15 = vadd.f32 %v9223_v37, %v8561_v58  ;;  %v10729_v58 = vunpack.c.l.b16 %v10636_v9  ;;  %v9621_v37 = vpack.c.b16 %v9602_v42, %v9601_v19  ;;  %v10653_v9 = vrot.slane %v10651_v22, 4  ;;  %v11010_v42 = vld [vmem:[#allocation3 + $0x44] sm:$0x1]  ;;  %v13209_v47 = vld [vmem:[#allocation3 + $0xa8] sm:$0xff] }
 0x4a9   : > { %v16336_v55 = vadd.f32 %v10089_v13, %v9815_v46  ;;  %v10641_v46 = vshll.u32 %v10295_v38, 16  ;;  %v16347_v13 = vpop.f32.mrf.mxu0  ;;  %v10640_v38 = vrot.slane %v10638_v8, 4  ;;  %v11121_v16 = vrot.slane %v11010_v42, 5 }
 0x4aa   : > { %16873 = vst [vmem:[#allocation11_spill] sm:$0xff] %v16338_v15  ;;  %v9715_v1 = vpop.f32.mrf.mxu2  ;;  %v10747_v15 = vpack.c.b16 %v10729_v58, %v10728_v52  ;;  %v12718_v58 = vrot.slane %v9391_v4, 9 }
 0x4ab   : > { %v9817_v41 = vadd.f32 %v9715_v1, %v16139_v18  ;;  %v10297_v18 = vld [vmem:[#allocation3 + $0xc8] sm:$0x1] }
 0x4ac   : > { %v10657_v19 = vshll.u32 %v10297_v18, 16 }
 0x4ad   : > { %10131 = vmatmul.bf16.gmra.mxu3 %v13208_v23  ;;  %v10643_v23 = vrot.slane %v10641_v46, 5  ;;  %v10654_v46 = vor.u32 %v10653_v9, %v10649_v26 }
 0x4af   : > { %v9226_v35 = vpop.f32.mrf.mxu1  ;;  %9757 = vmatmul.bf16.gmra.mxu2 %v9621_v37  ;;  %v10644_v8 = vor.u32 %v10643_v23, %v10640_v38  ;;  %v11008_v37 = vld [vmem:[#allocation3 + $0x3c] sm:$0xe]  ;;  %v10655_v18 = vrot.slane %v10654_v46, 4 }
 0x4b0   : > { %v10092_v56 = vpop.f32.mrf.mxu3  ;;  %v16353_v25 = vadd.f32 %v9226_v35, %v8562_v2  ;;  %v8563_v2 = vadd.f32 %v16046_v0, %v16058_v12  ;;  %v11120_v35 = vrot.slane %v11118_v32, 4  ;;  %v9542_v0 = vsel %vm13993_vm10, %v12718_v58, %v9541_v49 }
 0x4b1   : > { %v16351_v1 = vadd.f32 %v10092_v56, %v9816_v62  ;;  %v9543_v62 = vrot.slane %v9541_v49, 4  ;;  %v10659_v56 = vrot.slane %v10657_v19, 5  ;;  %v10645_v52 = vrot.slane %v10644_v8, 4  ;;  %v16363_v38 = vpop.f32.mrf.mxu0 }
 0x4b2   : > { %11354 = vmatmul.bf16.gmra.mxu1 %v11258_v45  ;;  %10887 = vmatmul.bf16.gmra.mxu0 %v10747_v15  ;;  %v12932_v12 = vrot.slane %v11008_v37, 9  ;;  %v11122_v23 = vsel %vm13993_vm10, %v11120_v35, %v11121_v16  ;;  %v9603_v42 = vunpack.c.l.b16 %v9542_v0  ;;  %v8564_v49 = vadd.f32 %v16073_v20, %v16083_v48  ;;  %v9394_v48 = vld [vmem:[#allocation3 + $0xb4] sm:$0xe] }
 0x4b3   : > { %v9545_v3 = vsel %vm13993_vm10, %v9543_v62, %v9544_v27  ;;  %v10660_v9 = vsel %vm13392_vm14, %v10655_v18, %v10659_v56  ;;  %v11231_v19 = vunpack.c.l.b16 %v11122_v23  ;;  %v10650_v27 = vsel %vm13392_vm14, %v10645_v52, %v10649_v26  ;;  %v9395_v62 = vld [vmem:[#allocation3 + $0xb8] sm:$0xf] }
 0x4b4   : > { %v9604_v6 = vunpack.c.l.b16 %v9545_v3  ;;  %v10731_v4 = vunpack.c.l.b16 %v10660_v9  ;;  %v9548_v58 = vrot.slane %v9395_v62, 5  ;;  %v11013_v3 = vld [vmem:[#allocation3 + $0x50] sm:$0x1]  ;;  %v8565_v0 = vadd.f32 %v16094_v33, %v16103_v44  ;;  %v11015_v62 = vld [vmem:[#allocation3 + $0x58] sm:$0xf] }
 0x4b5   : > { %v11128_v18 = vrot.slane %v11013_v3, 5 }
 0x4b6   : > { %v9622_v8 = vpack.c.b16 %v9604_v6, %v9603_v42  ;;  %v9550_v52 = vrot.slane %v9548_v58, 4 }
 0x4b7   : > { %v9228_v22 = vpop.f32.mrf.mxu1 }
 0x4b8   : > { %v10094_v5 = vpop.f32.mrf.mxu3  ;;  %v16361_v45 = vadd.f32 %v9228_v22, %v8563_v2  ;;  %v10730_v2 = vunpack.c.l.b16 %v10650_v27 }
 0x4b9   : > { %v16359_v15 = vadd.f32 %v10094_v5, %v9817_v41  ;;  %v11119_v41 = vsel %vm13993_vm10, %v12932_v12, %v11118_v32  ;;  %v9396_v32 = vld [vmem:[#allocation3 + $0xbc] sm:$0x1]  ;;  %v11012_v5 = vld [vmem:[#allocation3 + $0x4c] sm:$0xf]  ;;  %v16379_v26 = vpop.f32.mrf.mxu0  ;;  %v11011_v12 = vld [vmem:[#allocation3 + $0x48] sm:$0xe] }
 0x4ba   : > { %v11230_v46 = vunpack.c.l.b16 %v11119_v41  ;;  %v10748_v22 = vpack.c.b16 %v10731_v4, %v10730_v2  ;;  %v9551_v35 = vrot.slane %v9396_v32, 5  ;;  %v11125_v20 = vrot.slane %v11012_v5, 5  ;;  %v13210_v4 = vld [vmem:[#allocation3 + $0xb4] sm:$0xff] }
 0x4bb   : > { %v16876_v2 = vld [vmem:[#allocation21_spill] sm:$0xff] }
 0x4bc   : > { %v11259_v56 = vpack.c.b16 %v11231_v19, %v11230_v46  ;;  %v9552_v6 = vsel %vm13993_vm10, %v9550_v52, %v9551_v35  ;;  %v11127_v9 = vrot.slane %v11125_v20, 4  ;;  %v12933_v19 = vrot.slane %v11011_v12, 9  ;;  %v9398_v46 = vld [vmem:[#allocation3 + $0xc4] sm:$0xf] }
 0x4bd   : > { %10136 = vmatmul.bf16.gmra.mxu3 %v13209_v47  ;;  %v12719_v47 = vrot.slane %v9394_v48, 9  ;;  %v9555_v3 = vrot.slane %v9398_v46, 5  ;;  %v11132_v35 = vrot.slane %v11015_v62, 5  ;;  %v16878_v46 = vld [vmem:[#allocation23_spill] sm:$0xff] }
 0x4be   : > { %v11129_v27 = vsel %vm13993_vm10, %v11127_v9, %v11128_v18  ;;  %v11126_v33 = vsel %vm13993_vm10, %v12933_v19, %v11125_v20  ;;  %v11016_v18 = vld [vmem:[#allocation3 + $0x5c] sm:$0x1]  ;;  %v10299_v9 = vld [vmem:[#allocation3 + $0xd0] sm:$0xf]  ;;  %v11014_v19 = vld [vmem:[#allocation3 + $0x54] sm:$0xe] }
 0x4bf   : > { %v9231_v16 = vpop.f32.mrf.mxu1  ;;  %9762 = vmatmul.bf16.gmra.mxu2 %v9622_v8  ;;  %v9549_v42 = vsel %vm13993_vm10, %v12719_v47, %v9548_v58  ;;  %v11233_v8 = vunpack.c.l.b16 %v11129_v27  ;;  %v11232_v5 = vunpack.c.l.b16 %v11126_v33  ;;  %v9399_v58 = vld [vmem:[#allocation3 + $0xc8] sm:$0x1]  ;;  %v9557_v12 = vrot.slane %v9555_v3, 4 }
 0x4c0   : > { %v16377_v37 = vadd.f32 %v9231_v16, %v8564_v49  ;;  %v9606_v49 = vunpack.c.l.b16 %v9552_v6  ;;  %v9605_v44 = vunpack.c.l.b16 %v9549_v42  ;;  %v16875_v16 = vld [vmem:[#allocation22_spill] sm:$0xff]  ;;  %v9558_v20 = vrot.slane %v9399_v58, 5  ;;  %v10298_v6 = vld [vmem:[#allocation3 + $0xcc] sm:$0xf]  ;;  %v10300_v42 = vld [vmem:[#allocation3 + $0xd4] sm:$0x1] }
 0x4c1   : > { %v11260_v52 = vpack.c.b16 %v11233_v8, %v11232_v5  ;;  %v11135_v47 = vrot.slane %v11016_v18, 5  ;;  %v10662_v27 = vshrl.u32 %v10298_v6, 16  ;;  %v10675_v33 = vshrl.u32 %v10299_v9, 16 }
 0x4c2   : > { %11359 = vmatmul.bf16.gmra.mxu1 %v11259_v56  ;;  %10892 = vmatmul.bf16.gmra.mxu0 %v10748_v22  ;;  %v8566_v56 = vadd.f32 %v16876_v2, %v16875_v16  ;;  %v9623_v32 = vpack.c.b16 %v9606_v49, %v9605_v44  ;;  %v10671_v49 = vshll.u32 %v10299_v9, 16  ;;  %v16877_v44 = vld [vmem:[#allocation30_spill] sm:$0xff]  ;;  %v9559_v8 = vsel %vm13993_vm10, %v9557_v12, %v9558_v20  ;;  %v13211_v12 = vld [vmem:[#allocation3 + $0xc0] sm:$0xff] }
 0x4c3   : > { %v8567_v62 = vadd.f32 %v16878_v46, %v16877_v44  ;;  %v10681_v2 = vshll.u32 %v10300_v42, 16  ;;  %v10677_v58 = vrot.slane %v10675_v33, 4  ;;  %v9608_v42 = vunpack.c.l.b16 %v9559_v8 }
 0x4c5   : > { %v10683_v20 = vrot.slane %v10681_v2, 5 }
 0x4c7   : > { %v9233_v23 = vpop.f32.mrf.mxu1 }
 0x4c8   : > { %v16385_v41 = vadd.f32 %v9233_v23, %v8565_v0  ;;  %v9397_v0 = vld [vmem:[#allocation3 + $0xc0] sm:$0xe]  ;;  %v11134_v23 = vrot.slane %v11132_v35, 4 }
 0x4c9   : > { %v12720_v16 = vrot.slane %v9397_v0, 9 }
 0x4ca   : > { %v11136_v9 = vsel %vm13993_vm10, %v11134_v23, %v11135_v47  ;;  %v16879_v47 = vld [vmem:[#allocation25_spill] sm:$0xff] }
 0x4cb   : > { %v9556_v0 = vsel %vm13993_vm10, %v12720_v16, %v9555_v3  ;;  %v8568_v16 = vadd.f32 %v16879_v47, %v16159_v21 }
 0x4cc   : > { %v9607_v33 = vunpack.c.l.b16 %v9556_v0 }
 0x4cd   : > { %10141 = vmatmul.bf16.gmra.mxu3 %v13210_v4  ;;  %v10665_v4 = vshll.u32 %v10298_v6, 16  ;;  %v12934_v6 = vrot.slane %v11014_v19, 9 }
 0x4ce   : > { %v9624_v2 = vpack.c.b16 %v9608_v42, %v9607_v33 }
 0x4cf   : > { %v9236_v22 = vpop.f32.mrf.mxu1  ;;  %9767 = vmatmul.bf16.gmra.mxu2 %v9623_v32  ;;  %v10664_v32 = vrot.slane %v10662_v27, 4  ;;  %v10667_v5 = vrot.slane %v10665_v4, 5  ;;  %v11133_v27 = vsel %vm13993_vm10, %v12934_v6, %v11132_v35 }
 0x4d0   : > { %v16395_v48 = vadd.f32 %v9236_v22, %v8566_v56  ;;  %v10673_v22 = vrot.slane %v10671_v49, 5  ;;  %v11234_v19 = vunpack.c.l.b16 %v11133_v27 }
 0x4d1   : > { %v10668_v44 = vor.u32 %v10667_v5, %v10664_v32 }
 0x4d2   : > { %11364 = vmatmul.bf16.gmra.mxu1 %v11260_v52  ;;  %v16401_v52 = vpop.f32.mrf.mxu0  ;;  %v10678_v46 = vor.u32 %v10677_v58, %v10673_v22  ;;  %v11018_v58 = vld [vmem:[#allocation3 + $0x64] sm:$0xf] }
 0x4d3   : > { %v10669_v4 = vrot.slane %v10668_v44, 4  ;;  %v11139_v57 = vrot.slane %v11018_v58, 5  ;;  %v16880_v44 = vld [vmem:[#allocation6_spill] sm:$0xff]  ;;  %v8571_v58 = vadd.f32 %v16232_v60, %v16209_v14 }
 0x4d4   : > { %v10679_v49 = vrot.slane %v10678_v46, 4  ;;  %v16881_v46 = vld [vmem:[#allocation8_spill] sm:$0xff]  ;;  %v11024_v60 = vld [vmem:[#allocation3 + $0x7c] sm:$0xf] }
 0x4d5   : > { %v10674_v23 = vsel %vm13392_vm14, %v10669_v4, %v10673_v22  ;;  %v11019_v22 = vld [vmem:[#allocation3 + $0x68] sm:$0x1]  ;;  %v8569_v21 = vadd.f32 %v16881_v46, %v16880_v44  ;;  %v11141_v42 = vrot.slane %v11139_v57, 4  ;;  %v13212_v4 = vld [vmem:[#allocation3 + $0xcc] sm:$0xff] }
 0x4d6   : > { %v10684_v3 = vsel %vm13392_vm14, %v10679_v49, %v10683_v20  ;;  %v10732_v8 = vunpack.c.l.b16 %v10674_v23  ;;  %v11142_v0 = vrot.slane %v11019_v22, 5  ;;  %v11017_v20 = vld [vmem:[#allocation3 + $0x60] sm:$0xe]  ;;  %v8570_v23 = vadd.f32 %v16207_v34, %v16196_v24 }
 0x4d7   : > { %v9238_v56 = vpop.f32.mrf.mxu1  ;;  %v12935_v49 = vrot.slane %v11017_v20, 9 }
 0x4d8   : > { %v16403_v18 = vadd.f32 %v9238_v56, %v8567_v62  ;;  %v11235_v62 = vunpack.c.l.b16 %v11136_v9  ;;  %v10733_v56 = vunpack.c.l.b16 %v10684_v3  ;;  %v11143_v33 = vsel %vm13993_vm10, %v11141_v42, %v11142_v0 }
 0x4da   : > { %v11261_v5 = vpack.c.b16 %v11235_v62, %v11234_v19  ;;  %v10749_v6 = vpack.c.b16 %v10733_v56, %v10732_v8  ;;  %v16419_v9 = vpop.f32.mrf.mxu0  ;;  %v11140_v62 = vsel %vm13993_vm10, %v12935_v49, %v11139_v57  ;;  %v11237_v19 = vunpack.c.l.b16 %v11143_v33  ;;  %v11021_v8 = vld [vmem:[#allocation3 + $0x70] sm:$0xf]  ;;  %v11022_v56 = vld [vmem:[#allocation3 + $0x74] sm:$0x1] }
 0x4db   : > { %v11236_v3 = vunpack.c.l.b16 %v11140_v62  ;;  %v11153_v49 = vrot.slane %v11024_v60, 5  ;;  %v8573_v62 = vadd.f32 %v16268_v61, %v16244_v36 }
 0x4dc   : > { %10897 = vmatmul.bf16.gmra.mxu0 %v10749_v6  ;;  %v11020_v6 = vld [vmem:[#allocation3 + $0x6c] sm:$0xe] }
 0x4dd   : > { %10146 = vmatmul.bf16.gmra.mxu3 %v13211_v12  ;;  %v12936_v44 = vrot.slane %v11020_v6, 9  ;;  %v13262_v6 = vld [vmem:[%s13351_s25] sm:$0xff] }
 0x4df   : > { %v9241_v32 = vpop.f32.mrf.mxu1  ;;  %9772 = vmatmul.bf16.gmra.mxu2 %v9624_v2  ;;  %v11262_v2 = vpack.c.b16 %v11237_v19, %v11236_v3  ;;  %v11023_v19 = vld [vmem:[#allocation3 + $0x78] sm:$0xe]  ;;  %v11155_v3 = vrot.slane %v11153_v49, 4 }
 0x4e0   : > { %v16417_v35 = vadd.f32 %v9241_v32, %v8568_v16  ;;  %v11146_v32 = vrot.slane %v11021_v8, 5 }
 0x4e2   : > { %11369 = vmatmul.bf16.gmra.mxu1 %v11261_v5  ;;  %v11149_v5 = vrot.slane %v11022_v56, 5  ;;  %v11148_v57 = vrot.slane %v11146_v32, 4  ;;  %v11147_v34 = vsel %vm13993_vm10, %v12936_v44, %v11146_v32  ;;  %v10935_v56 = vadd.f32 %v16291_v29, %v16263_v10 }
 0x4e3   : > { %v11238_v20 = vunpack.c.l.b16 %v11147_v34  ;;  %v10936_v29 = vadd.f32 %v16310_v7, %v16278_v31  ;;  %v16467_v34 = vpop.f32.mrf.mxu2  ;;  %v10937_v7 = vadd.f32 %v16325_v11, %v16293_v63  ;;  %v10938_v11 = vadd.f32 %v16347_v13, %v16306_v40 }
 0x4e4   : > { %v11150_v24 = vsel %vm13993_vm10, %v11148_v57, %v11149_v5  ;;  %v11028_v57 = vld [vmem:[#allocation3 + $0x8c] sm:$0x1] }
 0x4e5   : > { %v11239_v46 = vunpack.c.l.b16 %v11150_v24  ;;  %v11163_v10 = vrot.slane %v11028_v57, 5  ;;  %v11026_v24 = vld [vmem:[#allocation3 + $0x84] sm:$0xe] }
 0x4e7   : > { %v9243_v12 = vpop.f32.mrf.mxu1  ;;  %v11263_v14 = vpack.c.b16 %v11239_v46, %v11238_v20 }
 0x4e8   : > { %v16423_v27 = vadd.f32 %v9243_v12, %v8569_v21  ;;  %v8572_v21 = vadd.f32 %v16255_v30, %v16228_v54  ;;  %v12937_v54 = vrot.slane %v11023_v19, 9  ;;  %v16480_v19 = vpop.f32.mrf.mxu0 }
 0x4ed   : > { %10151 = vmatmul.bf16.gmra.mxu3 %v13212_v4  ;;  %v11025_v4 = vld [vmem:[#allocation3 + $0x80] sm:$0x1] }
 0x4ee   : > { %v11156_v33 = vrot.slane %v11025_v4, 5  ;;  %v13263_v4 = vld [vmem:[%s13351_s25 + $0x8] sm:$0xff] }
 0x4ef   : > { %v9246_v47 = vpop.f32.mrf.mxu1 }
 0x4f0   : > { %v16431_v16 = vadd.f32 %v9246_v47, %v8570_v23  ;;  %v11157_v30 = vsel %vm13993_vm10, %v11155_v3, %v11156_v33  ;;  %v16491_v57 = vpop.f32.mrf.mxu0 }
 0x4f1   : > { %v11241_v8 = vunpack.c.l.b16 %v11157_v30  ;;  %v11030_v30 = vld [vmem:[#allocation3 + $0x94] sm:$0xf] }
 0x4f2   : > { %11374 = vmatmul.bf16.gmra.mxu1 %v11262_v2  ;;  %v11154_v2 = vsel %vm13993_vm10, %v12937_v54, %v11153_v49 }
 0x4f3   : > { %v11240_v32 = vunpack.c.l.b16 %v11154_v2  ;;  %v16482_v2 = vpop.f32.mrf.mxu2 }
 0x4f5   : > { %v11264_v61 = vpack.c.b16 %v11241_v8, %v11240_v32  ;;  %v13264_v8 = vld [vmem:[%s13351_s25 + $0x10] sm:$0xff] }
 0x4f6   : > { %v11031_v32 = vld [vmem:[#allocation3 + $0x98] sm:$0x1] }
 0x4f7   : > { %v9248_v22 = vpop.f32.mrf.mxu1  ;;  %v11170_v63 = vrot.slane %v11031_v32, 5 }
 0x4f8   : > { %v16435_v0 = vadd.f32 %v9248_v22, %v8571_v58  ;;  %v11027_v58 = vld [vmem:[#allocation3 + $0x88] sm:$0xf] }
 0x4f9   : > { %v11160_v44 = vrot.slane %v11027_v58, 5 }
 0x4ff   : > { %v9251_v12 = vpop.f32.mrf.mxu1 }
 0x500   : > { %v16443_v42 = vadd.f32 %v9251_v12, %v8572_v21  ;;  %v11162_v21 = vrot.slane %v11160_v44, 4  ;;  %v16469_v12 = vpop.f32.mrf.mxu3 }
 0x502   : > { %11379 = vmatmul.bf16.gmra.mxu1 %v11263_v14  ;;  %v12938_v14 = vrot.slane %v11026_v24, 9  ;;  %v11164_v60 = vsel %vm13993_vm10, %v11162_v21, %v11163_v10 }
 0x503   : > { %v11243_v31 = vunpack.c.l.b16 %v11164_v60 }
 0x504   : > { %v11161_v33 = vsel %vm13993_vm10, %v12938_v14, %v11160_v44 }
 0x507   : > { %v9253_v23 = vpop.f32.mrf.mxu1 }
 0x508   : > { %v16447_v47 = vadd.f32 %v9253_v23, %v8573_v62  ;;  %v11242_v62 = vunpack.c.l.b16 %v11161_v33  ;;  %v11033_v33 = vld [vmem:[#allocation3 + $0xa0] sm:$0xf] }
 0x50a   : > { %v11265_v54 = vpack.c.b16 %v11243_v31, %v11242_v62  ;;  %v13266_v31 = vld [vmem:[%s13351_s25 + $0x20] sm:$0xff]  ;;  %v11034_v62 = vld [vmem:[#allocation3 + $0xa4] sm:$0x1] }
 0x50f   : > { %v11345_v5 = vpop.f32.mrf.mxu1 }
 0x510   : > { %v11457_v36 = vadd.f32 %v11345_v5, %v10935_v56  ;;  %v16485_v5 = vpop.f32.mrf.mxu3 }
 0x512   : > { %v11553_v22 = vadd.f32 %v13262_v6, %v11457_v36  ;;  %11384 = vmatmul.bf16.gmra.mxu1 %v11264_v61  ;;  %v11167_v36 = vrot.slane %v11030_v30, 5  ;;  %v11029_v61 = vld [vmem:[#allocation3 + $0x90] sm:$0xe]  ;;  %v11177_v30 = vrot.slane %v11034_v62, 5 }
 0x513   : > { %v12939_v44 = vrot.slane %v11029_v61, 9  ;;  %v13267_v61 = vld [vmem:[%s13351_s25 + $0x28] sm:$0xff] }
 0x514   : > { %11585 = vst.msk [vmem:[%s16460_s5] sm:$0xff] %vm412_vm2, %v11553_v22  ;;  %v11169_v6 = vrot.slane %v11167_v36, 4 }
 0x515   : > { %v11168_v21 = vsel %vm13993_vm10, %v12939_v44, %v11167_v36 }
 0x516   : > { %v11171_v10 = vsel %vm13993_vm10, %v11169_v6, %v11170_v63  ;;  %v11244_v14 = vunpack.c.l.b16 %v11168_v21 }
 0x517   : > { %v11347_v46 = vpop.f32.mrf.mxu1  ;;  %v11245_v40 = vunpack.c.l.b16 %v11171_v10 }
 0x518   : > { %v11458_v20 = vadd.f32 %v11347_v46, %v10936_v29  ;;  %v13265_v29 = vld [vmem:[%s13351_s25 + $0x18] sm:$0xff]  ;;  %v16496_v46 = vpop.f32.mrf.mxu2  ;;  %v16502_v13 = vpop.f32.mrf.mxu3 }
 0x51a   : > { %v11554_v49 = vadd.f32 %v13263_v4, %v11458_v20  ;;  %v10939_v20 = vadd.f32 %v16363_v38, %v16321_v59  ;;  %v10940_v59 = vadd.f32 %v16379_v26, %v16336_v55  ;;  %v11032_v38 = vld [vmem:[#allocation3 + $0x9c] sm:$0xe] }
 0x51b   : > { %v12940_v63 = vrot.slane %v11032_v38, 9 }
 0x51c   : > { %11586 = vst.msk [vmem:[%s16460_s5 + $0x8] sm:$0xff] %vm412_vm2, %v11554_v49  ;;  %v11266_v49 = vpack.c.b16 %v11245_v40, %v11244_v14  ;;  %v11036_v40 = vld [vmem:[#allocation3 + $0xac] sm:$0xf]  ;;  %v13268_v14 = vld [vmem:[%s13351_s25 + $0x30] sm:$0xff] }
 0x51f   : > { %v11350_v23 = vpop.f32.mrf.mxu1 }
 0x520   : > { %v11459_v3 = vadd.f32 %v11350_v23, %v10937_v7  ;;  %v16507_v23 = vpop.f32.mrf.mxu0 }
 0x522   : > { %v11555_v56 = vadd.f32 %v13264_v8, %v11459_v3  ;;  %11389 = vmatmul.bf16.gmra.mxu1 %v11265_v54  ;;  %v11174_v3 = vrot.slane %v11033_v33, 5  ;;  %v16511_v54 = vpop.f32.mrf.mxu2  ;;  %v16515_v8 = vpop.f32.mrf.mxu3 }
 0x524   : > { %11587 = vst.msk [vmem:[%s16460_s5 + $0x10] sm:$0xff] %vm412_vm2, %v11555_v56  ;;  %v11176_v32 = vrot.slane %v11174_v3, 4  ;;  %v11175_v6 = vsel %vm13993_vm10, %v12940_v63, %v11174_v3  ;;  %v16882_v3 = vld [vmem:[#allocation24_spill] sm:$0xff]  ;;  %v13269_v63 = vld [vmem:[%s13351_s25 + $0x38] sm:$0xff] }
 0x525   : > { %v11246_v44 = vunpack.c.l.b16 %v11175_v6 }
 0x527   : > { %v11352_v58 = vpop.f32.mrf.mxu1 }
 0x528   : > { %v11460_v22 = vadd.f32 %v11352_v58, %v10938_v11  ;;  %v11178_v11 = vsel %vm13993_vm10, %v11176_v32, %v11177_v30  ;;  %v16524_v26 = vpop.f32.mrf.mxu0  ;;  %v9818_v30 = vadd.f32 %v16467_v34, %v16882_v3 }
 0x529   : > { %v11247_v55 = vunpack.c.l.b16 %v11178_v11 }
 0x52a   : > { %v11556_v24 = vadd.f32 %v13265_v29, %v11460_v22  ;;  %v10941_v22 = vadd.f32 %v16401_v52, %v16351_v1  ;;  %v16528_v10 = vpop.f32.mrf.mxu2  ;;  %v10942_v1 = vadd.f32 %v16419_v9, %v16359_v15  ;;  %v11035_v52 = vld [vmem:[#allocation3 + $0xa8] sm:$0xe] }
 0x52b   : > { %v11267_v21 = vpack.c.b16 %v11247_v55, %v11246_v44  ;;  %v16883_v55 = vld [vmem:[#allocation27_spill] sm:$0xff] }
 0x52c   : > { %11588 = vst.msk [vmem:[%s16460_s5 + $0x18] sm:$0xff] %vm412_vm2, %v11556_v24 }
 0x52f   : > { %v11355_v60 = vpop.f32.mrf.mxu1 }
 0x530   : > { %v11461_v4 = vadd.f32 %v11355_v60, %v10939_v20  ;;  %v16530_v20 = vpop.f32.mrf.mxu3 }
 0x532   : > { %v11557_v7 = vadd.f32 %v13266_v31, %v11461_v4  ;;  %11394 = vmatmul.bf16.gmra.mxu1 %v11266_v49  ;;  %v11037_v4 = vld [vmem:[#allocation3 + $0xb0] sm:$0x1]  ;;  %v11181_v49 = vrot.slane %v11036_v40, 5  ;;  %v16537_v31 = vpop.f32.mrf.mxu0  ;;  %v16541_v38 = vpop.f32.mrf.mxu2  ;;  %v13270_v40 = vld [vmem:[%s13351_s25 + $0x40] sm:$0xff] }
 0x533   : > { %v11184_v33 = vrot.slane %v11037_v4, 5 }
 0x534   : > { %11589 = vst.msk [vmem:[%s16460_s5 + $0x20] sm:$0xff] %vm412_vm2, %v11557_v7  ;;  %v11183_v62 = vrot.slane %v11181_v49, 4 }
 0x536   : > { %v11185_v32 = vsel %vm13993_vm10, %v11183_v62, %v11184_v33 }
 0x537   : > { %v11357_v56 = vpop.f32.mrf.mxu1  ;;  %v11249_v34 = vunpack.c.l.b16 %v11185_v32 }
 0x538   : > { %v11462_v36 = vadd.f32 %v11357_v56, %v10940_v59  ;;  %v12941_v56 = vrot.slane %v11035_v52, 9  ;;  %v16547_v9 = vpop.f32.mrf.mxu3 }
 0x53a   : > { %v11558_v58 = vadd.f32 %v13267_v61, %v11462_v36  ;;  %v10197_v36 = vadd.f32 %v16469_v12, %v9818_v30  ;;  %v11182_v11 = vsel %vm13993_vm10, %v12941_v56, %v11181_v49  ;;  %v16560_v4 = vpop.f32.mrf.mxu2  ;;  %v13271_v56 = vld [vmem:[%s13351_s25 + $0x48] sm:$0xff] }
 0x53c   : > { %11590 = vst.msk [vmem:[%s16460_s5 + $0x28] sm:$0xff] %vm412_vm2, %v11558_v58  ;;  %v10943_v61 = vadd.f32 %v16480_v19, %v10197_v36  ;;  %v11248_v58 = vunpack.c.l.b16 %v11182_v11 }
 0x53e   : > { %v11268_v44 = vpack.c.b16 %v11249_v34, %v11248_v58  ;;  %v9821_v34 = vadd.f32 %v16511_v54, %v16211_v50  ;;  %v11041_v50 = vld [vmem:[#allocation3 + $0xc0] sm:$0xe] }
 0x53f   : > { %v11360_v29 = vpop.f32.mrf.mxu1 }
 0x540   : > { %v11463_v24 = vadd.f32 %v11360_v29, %v10941_v22  ;;  %v9819_v22 = vadd.f32 %v16482_v2, %v16883_v55  ;;  %v11039_v29 = vld [vmem:[#allocation3 + $0xb8] sm:$0xf]  ;;  %v16564_v49 = vpop.f32.mrf.mxu3  ;;  %v10200_v55 = vadd.f32 %v16515_v8, %v9821_v34  ;;  %v9822_v8 = vadd.f32 %v16528_v10, %v16230_v39  ;;  %v13274_v34 = vld [vmem:[%s13351_s25 + $0x60] sm:$0xff] }
 0x541   : > { %v11188_v19 = vrot.slane %v11039_v29, 5 }
 0x542   : > { %v11559_v60 = vadd.f32 %v13268_v14, %v11463_v24  ;;  %11399 = vmatmul.bf16.gmra.mxu1 %v11267_v21  ;;  %v16556_v24 = vpop.f32.mrf.mxu0  ;;  %v10198_v21 = vadd.f32 %v16485_v5, %v9819_v22  ;;  %v9820_v5 = vadd.f32 %v16496_v46, %v16198_v53  ;;  %v16579_v53 = vpop.f32.mrf.mxu2  ;;  %v13272_v22 = vld [vmem:[%s13351_s25 + $0x50] sm:$0xff] }
 0x544   : > { %11591 = vst.msk [vmem:[%s16460_s5 + $0x30] sm:$0xff] %vm412_vm2, %v11559_v60  ;;  %v11040_v60 = vld [vmem:[#allocation3 + $0xbc] sm:$0x1]  ;;  %v10944_v33 = vadd.f32 %v16491_v57, %v10198_v21 }
 0x545   : > { %v11191_v2 = vrot.slane %v11040_v60, 5 }
 0x547   : > { %v11362_v7 = vpop.f32.mrf.mxu1 }
 0x548   : > { %v11464_v59 = vadd.f32 %v11362_v7, %v10942_v1  ;;  %v11038_v1 = vld [vmem:[#allocation3 + $0xb4] sm:$0xe]  ;;  %v11190_v7 = vrot.slane %v11188_v19, 4  ;;  %v16582_v11 = vpop.f32.mrf.mxu3 }
 0x549   : > { %v12942_v3 = vrot.slane %v11038_v1, 9 }
 0x54a   : > { %v11560_v15 = vadd.f32 %v13269_v63, %v11464_v59  ;;  %v11192_v30 = vsel %vm13993_vm10, %v11190_v7, %v11191_v2  ;;  %v10199_v59 = vadd.f32 %v16502_v13, %v9820_v5  ;;  %v16573_v36 = vpop.f32.mrf.mxu0  ;;  %v16593_v54 = vpop.f32.mrf.mxu2  ;;  %v13273_v7 = vld [vmem:[%s13351_s25 + $0x58] sm:$0xff] }
 0x54b   : > { %v11189_v57 = vsel %vm13993_vm10, %v12942_v3, %v11188_v19  ;;  %v11251_v63 = vunpack.c.l.b16 %v11192_v30  ;;  %v11045_v3 = vld [vmem:[#allocation3 + $0xd0] sm:$0xf] }
 0x54c   : > { %11592 = vst.msk [vmem:[%s16460_s5 + $0x38] sm:$0xff] %vm412_vm2, %v11560_v15  ;;  %v10945_v46 = vadd.f32 %v16507_v23, %v10199_v59  ;;  %v11250_v15 = vunpack.c.l.b16 %v11189_v57 }
 0x54e   : > { %v11269_v58 = vpack.c.b16 %v11251_v63, %v11250_v15  ;;  %v11044_v63 = vld [vmem:[#allocation3 + $0xcc] sm:$0xe] }
 0x54f   : > { %v11365_v6 = vpop.f32.mrf.mxu1 }
 0x550   : > { %v11465_v12 = vadd.f32 %v11365_v6, %v10943_v61  ;;  %v11042_v6 = vld [vmem:[#allocation3 + $0xc4] sm:$0xf]  ;;  %v10117_v2 = vpop.f32.mrf.mxu3 }
 0x551   : > { %v11195_v29 = vrot.slane %v11042_v6, 5 }
 0x552   : > { %v11561_v14 = vadd.f32 %v13270_v40, %v11465_v12  ;;  %11404 = vmatmul.bf16.gmra.mxu1 %v11268_v44  ;;  %v11043_v44 = vld [vmem:[#allocation3 + $0xc8] sm:$0x1]  ;;  %v16590_v23 = vpop.f32.mrf.mxu0  ;;  %v10946_v40 = vadd.f32 %v16524_v26, %v10200_v55  ;;  %v9740_v15 = vpop.f32.mrf.mxu2 }
 0x553   : > { %v11198_v21 = vrot.slane %v11043_v44, 5  ;;  %v11197_v60 = vrot.slane %v11195_v29, 4 }
 0x554   : > { %11593 = vst.msk [vmem:[%s16460_s5 + $0x40] sm:$0xff] %vm412_vm2, %v11561_v14 }
 0x555   : > { %v11199_v1 = vsel %vm13993_vm10, %v11197_v60, %v11198_v21 }
 0x557   : > { %v11367_v52 = vpop.f32.mrf.mxu1 }
 0x558   : > { %v11466_v62 = vadd.f32 %v11367_v52, %v10944_v33  ;;  %v12943_v33 = vrot.slane %v11041_v50, 9  ;;  %v10201_v52 = vadd.f32 %v16530_v20, %v9822_v8  ;;  %v9823_v20 = vadd.f32 %v16541_v38, %v16246_v51 }
 0x55a   : > { %v11562_v32 = vadd.f32 %v13271_v56, %v11466_v62  ;;  %v11196_v26 = vsel %vm13993_vm10, %v12943_v33, %v11195_v29  ;;  %v11253_v62 = vunpack.c.l.b16 %v11199_v1  ;;  %v10947_v39 = vadd.f32 %v16537_v31, %v10201_v52  ;;  %v10863_v30 = vpop.f32.mrf.mxu0  ;;  %v10119_v31 = vpop.f32.mrf.mxu3  ;;  %v16884_v1 = vld [vmem:[#allocation29_spill] sm:$0xff]  ;;  %v13276_v52 = vld [vmem:[%s13351_s25 + $0x70] sm:$0xff] }
 0x55b   : > { %v11252_v10 = vunpack.c.l.b16 %v11196_v26  ;;  %v11202_v56 = vrot.slane %v11045_v3, 5  ;;  %v9743_v60 = vpop.f32.mrf.mxu2 }
 0x55c   : > { %11594 = vst.msk [vmem:[%s16460_s5 + $0x48] sm:$0xff] %vm412_vm2, %v11562_v32 }
 0x55d   : > { %v11270_v57 = vpack.c.b16 %v11253_v62, %v11252_v10  ;;  %v11204_v6 = vrot.slane %v11202_v56, 4 }
 0x55f   : > { %v11370_v13 = vpop.f32.mrf.mxu1 }
 0x560   : > { %v11467_v61 = vadd.f32 %v11370_v13, %v10945_v46  ;;  %v11046_v46 = vld [vmem:[#allocation3 + $0xd4] sm:$0x1]  ;;  %v10202_v13 = vadd.f32 %v16547_v9, %v9823_v20 }
 0x561   : > { %v11205_v55 = vrot.slane %v11046_v46, 5  ;;  %v16886_v46 = vld [vmem:[#allocation31_spill] sm:$0xff] }
 0x562   : > { %v11563_v12 = vadd.f32 %v13272_v22, %v11467_v61  ;;  %11409 = vmatmul.bf16.gmra.mxu1 %v11269_v58  ;;  %v12944_v58 = vrot.slane %v11044_v63, 9  ;;  %v10948_v51 = vadd.f32 %v16556_v24, %v10202_v13  ;;  %v10865_v29 = vpop.f32.mrf.mxu0  ;;  %v10122_v8 = vpop.f32.mrf.mxu3 }
 0x563   : > { %v11206_v9 = vsel %vm13993_vm10, %v11204_v6, %v11205_v55  ;;  %v9745_v26 = vpop.f32.mrf.mxu2 }
 0x564   : > { %11595 = vst.msk [vmem:[%s16460_s5 + $0x50] sm:$0xff] %vm412_vm2, %v11563_v12  ;;  %v11203_v22 = vsel %vm13993_vm10, %v12944_v58, %v11202_v56  ;;  %v9824_v12 = vadd.f32 %v16560_v4, %v16265_v17  ;;  %v11255_v24 = vunpack.c.l.b16 %v11206_v9  ;;  %v9825_v17 = vadd.f32 %v16579_v53, %v16884_v1  ;;  %v13277_v56 = vld [vmem:[%s13351_s25 + $0x78] sm:$0xff]  ;;  %v13278_v58 = vld [vmem:[%s13351_s25 + $0x80] sm:$0xff]  ;;  %v13279_v9 = vld [vmem:[%s13351_s25 + $0x88] sm:$0xff] }
 0x566   : > { %v10203_v21 = vadd.f32 %v16564_v49, %v9824_v12  ;;  %v10204_v49 = vadd.f32 %v16582_v11, %v9825_v17 }
 0x567   : > { %v11372_v14 = vpop.f32.mrf.mxu1 }
 0x568   : > { %v11468_v19 = vadd.f32 %v11372_v14, %v10946_v40  ;;  %v13275_v40 = vld [vmem:[%s13351_s25 + $0x68] sm:$0xff]  ;;  %v11254_v14 = vunpack.c.l.b16 %v11203_v22  ;;  %v10949_v43 = vadd.f32 %v16573_v36, %v10203_v21  ;;  %v10950_v62 = vadd.f32 %v16590_v23, %v10204_v49  ;;  %v16887_v21 = vld [vmem:[#allocation11_spill] sm:$0xff] }
 0x569   : > { %v9827_v23 = vadd.f32 %v9740_v15, %v16886_v46  ;;  %v13283_v46 = vld [vmem:[%s13351_s25 + $0xa8] sm:$0xff] }
 0x56a   : > { %v11564_v5 = vadd.f32 %v13273_v7, %v11468_v19  ;;  %v11271_v19 = vpack.c.b16 %v11255_v24, %v11254_v14  ;;  %v10124_v36 = vpop.f32.mrf.mxu3  ;;  %v13280_v24 = vld [vmem:[%s13351_s25 + $0x90] sm:$0xff] }
 0x56c   : > { %11596 = vst.msk [vmem:[%s16460_s5 + $0x58] sm:$0xff] %vm412_vm2, %v11564_v5  ;;  %v10868_v5 = vpop.f32.mrf.mxu0 }
 0x56f   : > { %v11375_v59 = vpop.f32.mrf.mxu1 }
 0x570   : > { %v11469_v32 = vadd.f32 %v11375_v59, %v10947_v39  ;;  %v16885_v39 = vld [vmem:[#allocation9_spill] sm:$0xff] }
 0x571   : > { %v9826_v10 = vadd.f32 %v16593_v54, %v16885_v39 }
 0x572   : > { %v11565_v61 = vadd.f32 %v13274_v34, %v11469_v32  ;;  %11414 = vmatmul.bf16.gmra.mxu1 %v11270_v57  ;;  %v9748_v57 = vpop.f32.mrf.mxu2  ;;  %v10127_v34 = vpop.f32.mrf.mxu3 }
 0x573   : > { %v10205_v59 = vadd.f32 %v10117_v2, %v9826_v10  ;;  %v13282_v10 = vld [vmem:[%s13351_s25 + $0xa0] sm:$0xff] }
 0x574   : > { %11597 = vst.msk [vmem:[%s16460_s5 + $0x60] sm:$0xff] %vm412_vm2, %v11565_v61  ;;  %v10870_v20 = vpop.f32.mrf.mxu0  ;;  %v10206_v61 = vadd.f32 %v10119_v31, %v9827_v23 }
 0x575   : > { %v10951_v32 = vadd.f32 %v10863_v30, %v10205_v59 }
 0x576   : > { %v10952_v2 = vadd.f32 %v10865_v29, %v10206_v61 }
 0x577   : > { %v11377_v38 = vpop.f32.mrf.mxu1 }
 0x578   : > { %v11470_v44 = vadd.f32 %v11377_v38, %v10948_v51  ;;  %v9828_v51 = vadd.f32 %v9743_v60, %v16323_v28 }
 0x57a   : > { %v11566_v50 = vadd.f32 %v13275_v40, %v11470_v44  ;;  %v9750_v38 = vpop.f32.mrf.mxu2  ;;  %v10207_v22 = vadd.f32 %v10122_v8, %v9828_v51  ;;  %v10129_v12 = vpop.f32.mrf.mxu3  ;;  %v9829_v40 = vadd.f32 %v9745_v26, %v16887_v21 }
 0x57c   : > { %11598 = vst.msk [vmem:[%s16460_s5 + $0x68] sm:$0xff] %vm412_vm2, %v11566_v50  ;;  %v10873_v6 = vpop.f32.mrf.mxu0  ;;  %v10953_v31 = vadd.f32 %v10868_v5, %v10207_v22  ;;  %v10208_v14 = vadd.f32 %v10124_v36, %v9829_v40  ;;  %v9831_v36 = vadd.f32 %v9750_v38, %v16361_v45 }
 0x57e   : > { %v10210_v39 = vadd.f32 %v10129_v12, %v9831_v36  ;;  %v13285_v12 = vld [vmem:[%s13351_s25 + $0xb8] sm:$0xff] }
 0x57f   : > { %v11380_v33 = vpop.f32.mrf.mxu1 }
 0x580   : > { %v11471_v4 = vadd.f32 %v11380_v33, %v10949_v43  ;;  %v10954_v43 = vadd.f32 %v10870_v20, %v10208_v14  ;;  %v9830_v33 = vadd.f32 %v9748_v57, %v16353_v25 }
 0x582   : > { %v11567_v7 = vadd.f32 %v13276_v52, %v11471_v4  ;;  %11419 = vmatmul.bf16.gmra.mxu1 %v11271_v19  ;;  %v9753_v60 = vpop.f32.mrf.mxu2  ;;  %v10132_v8 = vpop.f32.mrf.mxu3  ;;  %v10209_v17 = vadd.f32 %v10127_v34, %v9830_v33  ;;  %v13281_v4 = vld [vmem:[%s13351_s25 + $0x98] sm:$0xff] }
 0x583   : > { %v9832_v20 = vadd.f32 %v9753_v60, %v16377_v37 }
 0x584   : > { %11599 = vst.msk [vmem:[%s16460_s5 + $0x70] sm:$0xff] %vm412_vm2, %v11567_v7  ;;  %v10875_v50 = vpop.f32.mrf.mxu0  ;;  %v10955_v5 = vadd.f32 %v10873_v6, %v10209_v17  ;;  %v13284_v6 = vld [vmem:[%s13351_s25 + $0xb0] sm:$0xff] }
 0x585   : > { %v10956_v59 = vadd.f32 %v10875_v50, %v10210_v39  ;;  %v13288_v39 = vld [vmem:[%s13351_s25 + $0xd0] sm:$0xff] }
 0x587   : > { %v11382_v3 = vpop.f32.mrf.mxu1 }
 0x588   : > { %v11472_v53 = vadd.f32 %v11382_v3, %v10950_v62 }
 0x58a   : > { %v11568_v11 = vadd.f32 %v13277_v56, %v11472_v53  ;;  %v9755_v7 = vpop.f32.mrf.mxu2  ;;  %v10134_v26 = vpop.f32.mrf.mxu3 }
 0x58b   : > { %v9833_v61 = vadd.f32 %v9755_v7, %v16385_v41 }
 0x58c   : > { %11600 = vst.msk [vmem:[%s16460_s5 + $0x78] sm:$0xff] %vm412_vm2, %v11568_v11  ;;  %v10878_v52 = vpop.f32.mrf.mxu0 }
 0x58f   : > { %v11385_v63 = vpop.f32.mrf.mxu1 }
 0x590   : > { %v11473_v13 = vadd.f32 %v11385_v63, %v10951_v32  ;;  %v10211_v63 = vadd.f32 %v10132_v8, %v9832_v20 }
 0x592   : > { %v11569_v54 = vadd.f32 %v13278_v58, %v11473_v13  ;;  %v9758_v56 = vpop.f32.mrf.mxu2  ;;  %v10137_v57 = vpop.f32.mrf.mxu3  ;;  %v10957_v23 = vadd.f32 %v10878_v52, %v10211_v63 }
 0x593   : > { %v9834_v38 = vadd.f32 %v9758_v56, %v16395_v48 }
 0x594   : > { %11601 = vst.msk [vmem:[%s16460_s5 + $0x80] sm:$0xff] %vm412_vm2, %v11569_v54  ;;  %v10880_v53 = vpop.f32.mrf.mxu0 }
 0x597   : > { %v11387_v55 = vpop.f32.mrf.mxu1 }
 0x598   : > { %v11474_v30 = vadd.f32 %v11387_v55, %v10952_v2  ;;  %v10212_v2 = vadd.f32 %v10134_v26, %v9833_v61  ;;  %v13290_v61 = vld [vmem:[%s13351_s25 + $0xe0] sm:$0xff] }
 0x59a   : > { %v11570_v15 = vadd.f32 %v13279_v9, %v11474_v30  ;;  %v9760_v54 = vpop.f32.mrf.mxu2  ;;  %v10139_v55 = vpop.f32.mrf.mxu3  ;;  %v10958_v51 = vadd.f32 %v10880_v53, %v10212_v2 }
 0x59c   : > { %11602 = vst.msk [vmem:[%s16460_s5 + $0x88] sm:$0xff] %vm412_vm2, %v11570_v15  ;;  %v10883_v13 = vpop.f32.mrf.mxu0  ;;  %v10213_v15 = vadd.f32 %v10137_v57, %v9834_v38 }
 0x59e   : > { %v10959_v21 = vadd.f32 %v10883_v13, %v10213_v15 }
 0x59f   : > { %v11390_v44 = vpop.f32.mrf.mxu1 }
 0x5a0   : > { %v11475_v29 = vadd.f32 %v11390_v44, %v10953_v31 }
 0x5a2   : > { %v11571_v28 = vadd.f32 %v13280_v24, %v11475_v29  ;;  %v9763_v31 = vpop.f32.mrf.mxu2  ;;  %v10142_v44 = vpop.f32.mrf.mxu3  ;;  %v9835_v29 = vadd.f32 %v9760_v54, %v16403_v18  ;;  %v13286_v24 = vld [vmem:[%s13351_s25 + $0xc0] sm:$0xff] }
 0x5a3   : > { %v9836_v33 = vadd.f32 %v9763_v31, %v16417_v35 }
 0x5a4   : > { %11603 = vst.msk [vmem:[%s16460_s5 + $0x90] sm:$0xff] %vm412_vm2, %v11571_v28  ;;  %v10885_v9 = vpop.f32.mrf.mxu0  ;;  %v10214_v14 = vadd.f32 %v10139_v55, %v9835_v29 }
 0x5a5   : > { %v10215_v17 = vadd.f32 %v10142_v44, %v9836_v33 }
 0x5a6   : > { %v10960_v8 = vadd.f32 %v10885_v9, %v10214_v14 }
 0x5a7   : > { %v11392_v19 = vpop.f32.mrf.mxu1 }
 0x5a8   : > { %v11476_v1 = vadd.f32 %v11392_v19, %v10954_v43 }
 0x5aa   : > { %v11572_v49 = vadd.f32 %v13281_v4, %v11476_v1  ;;  %v9765_v60 = vpop.f32.mrf.mxu2  ;;  %v10144_v43 = vpop.f32.mrf.mxu3  ;;  %v13287_v4 = vld [vmem:[%s13351_s25 + $0xc8] sm:$0xff] }
 0x5ab   : > { %v9837_v26 = vadd.f32 %v9765_v60, %v16423_v27 }
 0x5ac   : > { %11604 = vst.msk [vmem:[%s16460_s5 + $0x98] sm:$0xff] %vm412_vm2, %v11572_v49  ;;  %v10888_v28 = vpop.f32.mrf.mxu0 }
 0x5ad   : > { %v10961_v52 = vadd.f32 %v10888_v28, %v10215_v17 }
 0x5af   : > { %v11395_v62 = vpop.f32.mrf.mxu1 }
 0x5b0   : > { %v11477_v3 = vadd.f32 %v11395_v62, %v10955_v5 }
 0x5b2   : > { %v11573_v25 = vadd.f32 %v13282_v10, %v11477_v3  ;;  %v9768_v7 = vpop.f32.mrf.mxu2  ;;  %v10147_v36 = vpop.f32.mrf.mxu3  ;;  %v10216_v3 = vadd.f32 %v10144_v43, %v9837_v26 }
 0x5b4   : > { %11605 = vst.msk [vmem:[%s16460_s5 + $0xa0] sm:$0xff] %vm412_vm2, %v11573_v25  ;;  %v10890_v49 = vpop.f32.mrf.mxu0 }
 0x5b5   : > { %v10962_v10 = vadd.f32 %v10890_v49, %v10216_v3 }
 0x5b7   : > { %v11397_v11 = vpop.f32.mrf.mxu1 }
 0x5b8   : > { %v11478_v32 = vadd.f32 %v11397_v11, %v10956_v59  ;;  %v9838_v59 = vadd.f32 %v9768_v7, %v16431_v16 }
 0x5ba   : > { %v11574_v45 = vadd.f32 %v13283_v46, %v11478_v32  ;;  %v9770_v11 = vpop.f32.mrf.mxu2  ;;  %v10217_v20 = vadd.f32 %v10147_v36, %v9838_v59  ;;  %v13289_v32 = vld [vmem:[%s13351_s25 + $0xd8] sm:$0xff]  ;;  %v10149_v57 = vpop.f32.mrf.mxu3 }
 0x5bc   : > { %11606 = vst.msk [vmem:[%s16460_s5 + $0xa8] sm:$0xff] %vm412_vm2, %v11574_v45  ;;  %v10893_v25 = vpop.f32.mrf.mxu0  ;;  %v9839_v45 = vadd.f32 %v9770_v11, %v16435_v0  ;;  %v13291_v0 = vld [vmem:[%s13351_s25 + $0xe8] sm:$0xff] }
 0x5bd   : > { %v10963_v63 = vadd.f32 %v10893_v25, %v10217_v20 }
 0x5bf   : > { %v11400_v34 = vpop.f32.mrf.mxu1 }
 0x5c0   : > { %v11479_v58 = vadd.f32 %v11400_v34, %v10957_v23  ;;  %v10218_v34 = vadd.f32 %v10149_v57, %v9839_v45 }
 0x5c2   : > { %v11575_v37 = vadd.f32 %v13284_v6, %v11479_v58  ;;  %v9773_v58 = vpop.f32.mrf.mxu2  ;;  %v10152_v54 = vpop.f32.mrf.mxu3 }
 0x5c4   : > { %11607 = vst.msk [vmem:[%s16460_s5 + $0xb0] sm:$0xff] %vm412_vm2, %v11575_v37  ;;  %v10895_v13 = vpop.f32.mrf.mxu0  ;;  %v9840_v37 = vadd.f32 %v9773_v58, %v16443_v42 }
 0x5c5   : > { %v10964_v2 = vadd.f32 %v10895_v13, %v10218_v34 }
 0x5c7   : > { %v11402_v30 = vpop.f32.mrf.mxu1 }
 0x5c8   : > { %v11480_v22 = vadd.f32 %v11402_v30, %v10958_v51  ;;  %v10219_v30 = vadd.f32 %v10152_v54, %v9840_v37 }
 0x5ca   : > { %v11576_v41 = vadd.f32 %v13285_v12, %v11480_v22  ;;  %v9775_v22 = vpop.f32.mrf.mxu2  ;;  %v10154_v15 = vpop.f32.mrf.mxu3 }
 0x5cc   : > { %11608 = vst.msk [vmem:[%s16460_s5 + $0xb8] sm:$0xff] %vm412_vm2, %v11576_v41  ;;  %v10898_v51 = vpop.f32.mrf.mxu0  ;;  %v9841_v41 = vadd.f32 %v9775_v22, %v16447_v47 }
 0x5cd   : > { %v10965_v9 = vadd.f32 %v10898_v51, %v10219_v30 }
 0x5ce   : > { %v10220_v44 = vadd.f32 %v10154_v15, %v9841_v41 }
 0x5cf   : > { %v11405_v40 = vpop.f32.mrf.mxu1 }
 0x5d0   : > { %v11481_v50 = vadd.f32 %v11405_v40, %v10959_v21  ;;  %v13292_v21 = vld [vmem:[%s13351_s25 + $0xf0] sm:$0xff] }
 0x5d2   : > { %v11577_v48 = vadd.f32 %v13286_v24, %v11481_v50  ;;  %v13293_v24 = vld [vmem:[%s13351_s25 + $0xf8] sm:$0xff] }
 0x5d4   : > { %11609 = vst.msk [vmem:[%s16460_s5 + $0xc0] sm:$0xff] %vm412_vm2, %v11577_v48  ;;  %v10900_v40 = vpop.f32.mrf.mxu0 }
 0x5d5   : > { %v10966_v29 = vadd.f32 %v10900_v40, %v10220_v44 }
 0x5d7   : > { %v11407_v19 = vpop.f32.mrf.mxu1 }
 0x5d8   : > { %v11482_v1 = vadd.f32 %v11407_v19, %v10960_v8 }
 0x5da   : > { %v11578_v18 = vadd.f32 %v13287_v4, %v11482_v1 }
 0x5dc   : > { %11610 = vst.msk [vmem:[%s16460_s5 + $0xc8] sm:$0xff] %vm412_vm2, %v11578_v18 }
 0x5df   : > { %v11410_v5 = vpop.f32.mrf.mxu1 }
 0x5e0   : > { %v11483_v62 = vadd.f32 %v11410_v5, %v10961_v52 }
 0x5e2   : > { %v11579_v35 = vadd.f32 %v13288_v39, %v11483_v62 }
 0x5e4   : > { %11611 = vst.msk [vmem:[%s16460_s5 + $0xd0] sm:$0xff] %vm412_vm2, %v11579_v35 }
 0x5e7   : > { %v11412_v53 = vpop.f32.mrf.mxu1 }
 0x5e8   : > { %v11484_v56 = vadd.f32 %v11412_v53, %v10962_v10 }
 0x5ea   : > { %v11580_v27 = vadd.f32 %v13289_v32, %v11484_v56 }
 0x5ec   : > { %11612 = vst.msk [vmem:[%s16460_s5 + $0xd8] sm:$0xff] %vm412_vm2, %v11580_v27 }
 0x5ef   : > { %v11415_v46 = vpop.f32.mrf.mxu1 }
 0x5f0   : > { %v11485_v23 = vadd.f32 %v11415_v46, %v10963_v63 }
 0x5f2   : > { %v11581_v16 = vadd.f32 %v13290_v61, %v11485_v23 }
 0x5f4   : > { %11613 = vst.msk [vmem:[%s16460_s5 + $0xe0] sm:$0xff] %vm412_vm2, %v11581_v16 }
 0x5f7   : > { %v11417_v6 = vpop.f32.mrf.mxu1 }
 0x5f8   : > { %v11486_v55 = vadd.f32 %v11417_v6, %v10964_v2 }
 0x5fa   : > { %v11582_v38 = vadd.f32 %v13291_v0, %v11486_v55 }
 0x5fc   : > { %11614 = vst.msk [vmem:[%s16460_s5 + $0xe8] sm:$0xff] %vm412_vm2, %v11582_v38 }
 0x5ff   : > { %v11420_v12 = vpop.f32.mrf.mxu1 }
 0x600   : > { %v11487_v31 = vadd.f32 %v11420_v12, %v10965_v9 }
 0x602   : > { %v11583_v42 = vadd.f32 %v13292_v21, %v11487_v31 }
 0x604   : > { %11615 = vst.msk [vmem:[%s16460_s5 + $0xf0] sm:$0xff] %vm412_vm2, %v11583_v42 }
 0x607   : > { %v11422_v50 = vpop.f32.mrf.mxu1 }
 0x608   : > { %v11488_v14 = vadd.f32 %v11422_v50, %v10966_v29 }
 0x60a   : > { %v11584_v48 = vadd.f32 %v13293_v24, %v11488_v14 }
 0x60c   : > { %11616 = vst.msk [vmem:[%s16460_s5 + $0xf8] sm:$0xff] %vm412_vm2, %v11584_v48 }
 0x60d PF: > { %s13_s12 = sadd.s32 1, %s13300_s12  }
 0x60e   : > { %p10_p4 = scmp.ge.s32.totalorder %s13_s12, 4  }
 0x610   :  { %12 = sbr.rel (!%p10_p4) target bundleno = 1 (0x1), region = 84 }

</bundles_post_ra>
